<compile_context>
chip_gen: v7x
topology: tpu7x:2x2x1
jax: 0.10.0
libtpu: 0.0.40
codegen_flags: <defaults>
</compile_context>

<pallas_src>
import functools

import numpy as np
import jax
import jax.numpy as jnp
from jax.experimental import pallas as pl
from jax.experimental.pallas import tpu as pltpu

KW = 4           # conv kernel size
PADW = 1         # conv padding
NDF = 64
LEAKY_SLOPE = 0.2
IN_EPS = 1e-5    # nn.InstanceNorm2d default eps
STRIDES = (2, 2, 1, 1)


def _out_size(n, stride):
    return (n + 2 * PADW - KW) // stride + 1


def _round_up(x, m):
    return ((x + m - 1) // m) * m


# ---------------------------------------------------------------------------
# In-kernel helpers
# ---------------------------------------------------------------------------
def _leaky(x):
    return jnp.where(x >= 0.0, x, LEAKY_SLOPE * x)


def _fold_lane_groups(row, w_groups, c):
    """Sum the w_groups lane groups of width c of row:(1, w_groups*c) -> (1, c).

    c is a multiple of 128 here, so the slices are vreg-aligned; the adds form
    a log-depth pairwise tree.
    """
    parts = [row[:, g * c:(g + 1) * c] for g in range(w_groups)]
    while len(parts) > 1:
        nxt = [parts[i] + parts[i + 1] for i in range(0, len(parts) - 1, 2)]
        if len(parts) % 2:
            nxt.append(parts[-1])
        parts = nxt
    return parts[0]
    # TODO(synk): at real widths (w_groups ~ 64) fold with a pltpu.roll
    # shift-add tree on the XLU and avoid the lane concat in the broadcast.


def _instance_norm_rows(y, w_groups, c):
    """InstanceNorm2d(affine=False, eps=1e-5) on y:(rows, w_groups*c) f32.

    Lane layout is (w, c): lane = w_idx*c + channel.  Per-channel stats over
    rows * w_groups spatial positions (biased variance), computed in f32.
    """
    n = y.shape[0] * w_groups
    mean = _fold_lane_groups(jnp.sum(y, axis=0, keepdims=True),
                             w_groups, c) * (1.0 / n)
    cen = y - jnp.concatenate([mean] * w_groups, axis=1)     # reused below
    var = _fold_lane_groups(jnp.sum(cen * cen, axis=0, keepdims=True),
                            w_groups, c) * (1.0 / n)
    inv = jax.lax.rsqrt(var + IN_EPS)
    return cen * jnp.concatenate([inv] * w_groups, axis=1)


# ---------------------------------------------------------------------------
# Fused kernel: all four conv layers of NB samples per grid step
# ---------------------------------------------------------------------------
def _disc_kernel(dims, x_ref,
                 tin_ref, bin_ref, t1_ref, b1_ref,
                 t2_ref, b2_ref, t3_ref, b3_ref,
                 f0_ref, f1_ref, lg_ref,
                 a0e, a0o, a1, a2):
    nb, h2, h3, h4, w2, c2, w3, c3 = dims
    f32 = jnp.float32
    h1 = 2 * h2              # in_conv output rows per sample
    he0 = h2 + 1             # rows/sample in the parity-split a0 buffers
    seg1 = h2 + 2            # rows/sample in padded a1
    seg2 = h3 + 2            # rows/sample in padded a2

    # Zero ONLY the pad rows each step (interiors are fully overwritten below;
    # VMEM scratch persists across steps and is per-core under "parallel").
    z0 = jnp.zeros((1, a0e.shape[1]), a0e.dtype)
    z1 = jnp.zeros((1, a1.shape[1]), a1.dtype)
    z2 = jnp.zeros((1, a2.shape[1]), a2.dtype)
    for s in range(nb):
        a0e[s * he0:s * he0 + 1, :] = z0
        a0o[s * he0 + h2:s * he0 + h2 + 1, :] = z0
        a1[s * seg1:s * seg1 + 1, :] = z1
        a1[s * seg1 + h2 + 1:s * seg1 + h2 + 2, :] = z1
        a2[s * seg2:s * seg2 + 1, :] = z2
        a2[s * seg2 + h3 + 1:s * seg2 + h3 + 2, :] = z2

    # --- in_conv: 3 -> 64, stride 2, + LeakyReLU ----------------------------
    # The host pre-stacked all 4 row taps into the lanes, so this is a single
    # (NB*h1, 4*W*Cin) @ (4*W*Cin, w1*64) matmul for the whole block.  Rows
    # are ordered (even output rows, then odd) per sample so both parity
    # stores below are contiguous slabs.
    y0 = jnp.dot(x_ref[...], tin_ref[...], preferred_element_type=f32)
    y0 = _leaky(y0 + bin_ref[...]).astype(a0e.dtype)
    for s in range(nb):
        r = s * h1
        # even output rows -> odd padded rows   -> a0o segment rows [0, h2)
        a0o[s * he0:s * he0 + h2, :] = y0[r:r + h2]
        # odd output rows  -> even padded rows  -> a0e segment rows [1, 1+h2)
        a0e[s * he0 + 1:s * he0 + 1 + h2, :] = y0[r + h2:r + h1]

    # --- layer0: 64 -> 128, stride 2, + InstanceNorm + LeakyReLU ------------
    # One tall matmul per tap over all NB stacked samples; junk rows at the
    # sample seams are discarded by the per-sample slices below.
    m0 = nb * he0 - 1
    acc = jnp.dot(a0e[0:m0, :], t1_ref[0], preferred_element_type=f32)
    acc = acc + jnp.dot(a0o[0:m0, :], t1_ref[1], preferred_element_type=f32)
    acc = acc + jnp.dot(a0e[1:1 + m0, :], t1_ref[2], preferred_element_type=f32)
    acc = acc + jnp.dot(a0o[1:1 + m0, :], t1_ref[3], preferred_element_type=f32)
    acc = acc + b1_ref[...]
    for s in range(nb):
        y = _leaky(_instance_norm_rows(acc[s * he0:s * he0 + h2], w2, c2))
        f0_ref[s] = y
        a1[s * seg1 + 1:s * seg1 + 1 + h2, :] = y.astype(a1.dtype)

    # --- layer1: 128 -> 256, stride 1, + InstanceNorm + LeakyReLU -----------
    m1 = nb * seg1 - (KW - 1)
    acc = jnp.dot(a1[0:m1, :], t2_ref[0], preferred_element_type=f32)
    for ki in range(1, KW):
        acc = acc + jnp.dot(a1[ki:ki + m1, :], t2_ref[ki],
                            preferred_element_type=f32)
    acc = acc + b2_ref[...]
    for s in range(nb):
        y = _leaky(_instance_norm_rows(acc[s * seg1:s * seg1 + h3], w3, c3))
        f1_ref[s] = y
        a2[s * seg2 + 1:s * seg2 + 1 + h3, :] = y.astype(a2.dtype)

    # --- out_conv: 256 -> 1, stride 1 (lanes = output column, pad to 128) ---
    m2 = nb * seg2 - (KW - 1)
    acc = jnp.dot(a2[0:m2, :], t3_ref[0], preferred_element_type=f32)
    for ki in range(1, KW):
        acc = acc + jnp.dot(a2[ki:ki + m2, :], t3_ref[ki],
                            preferred_element_type=f32)
    acc = acc + b3_ref[...]
    for s in range(nb):
        lg_ref[s] = acc[s * seg2:s * seg2 + h4]


# ---------------------------------------------------------------------------
# Host-side parameter preparation (weights -> row-Toeplitz form, bf16)
# ---------------------------------------------------------------------------
def _make_inconv_toeplitz(w, in_w, out_w):
    """(KW*in_w*cin, out_w*cout): all 4 row taps of the stride-2 in_conv folded
    into one dense weight (column taps + column padding folded in)."""
    w = np.asarray(w, np.float32)
    cout, cin, kh, kw_ = w.shape
    t = np.zeros((kh * in_w * cin, out_w * cout), np.float32)
    for ki in range(kh):
        for ow in range(out_w):
            for kj in range(kw_):
                wi = 2 * ow + kj - PADW          # un-padded input column
                if 0 <= wi < in_w:
                    r0 = ki * in_w * cin + wi * cin
                    t[r0:r0 + cin, ow * cout:(ow + 1) * cout] = w[:, :, ki, kj].T
    return jnp.asarray(t, jnp.bfloat16)


def _make_row_toeplitz(w, stride, in_w, out_w):
    """T[ki][wi*Cin+ci, ow*Cout+co] = W[co,ci,ki,kj], wi = stride*ow+kj-PADW."""
    w = np.asarray(w, np.float32)
    cout, cin, kh, kw_ = w.shape
    t = np.zeros((kh, in_w * cin, out_w * cout), np.float32)
    for ki in range(kh):
        for ow in range(out_w):
            for kj in range(kw_):
                wi = stride * ow + kj - PADW
                if 0 <= wi < in_w:
                    t[ki, wi * cin:(wi + 1) * cin,
                      ow * cout:(ow + 1) * cout] = w[:, :, ki, kj].T
    return jnp.asarray(t, jnp.bfloat16)


def _make_outconv_toeplitz(w, in_w, out_w, lanes):
    """Cout=1 conv: lane index = output column ow (out_w <= lanes, rest zero)."""
    w = np.asarray(w, np.float32)
    cout, cin, kh, kw_ = w.shape
    assert cout == 1
    t = np.zeros((kh, in_w * cin, lanes), np.float32)
    for ki in range(kh):
        for ow in range(out_w):
            for kj in range(kw_):
                wi = ow + kj - PADW
                if 0 <= wi < in_w:
                    t[ki, wi * cin:(wi + 1) * cin, ow] = w[0, :, ki, kj]
    return jnp.asarray(t, jnp.bfloat16)


def _make_bias_tile(b, out_w):
    b = np.asarray(b, np.float32)
    return jnp.asarray(np.tile(b, out_w)[None, :], jnp.float32)


def prepare_pallas_params(params, h, w):
    """params: list of (weight (Cout,Cin,4,4), bias (Cout,)) in PyTorch layout."""
    del h  # only the widths matter for the Toeplitz weights
    sizes = [w]
    for s in STRIDES:
        sizes.append(_out_size(sizes[-1], s))
    w0, w1, w2, w3, w4 = sizes
    (wi_, bi_), (w0_, b0_), (w1_, b1_), (wo_, bo_) = params
    logit_lanes = _round_up(w4, 128)
    bo_t = np.zeros((1, logit_lanes), np.float32)
    bo_t[0, :w4] = np.asarray(bo_, np.float32)[0]
    return (
        _make_inconv_toeplitz(wi_, w0, w1), _make_bias_tile(bi_, w1),
        _make_row_toeplitz(w0_, 2, w1, w2), _make_bias_tile(b0_, w2),
        _make_row_toeplitz(w1_, 1, w2, w3), _make_bias_tile(b1_, w3),
        _make_outconv_toeplitz(wo_, w3, w4, logit_lanes),
        jnp.asarray(bo_t, jnp.float32),
    )


# ---------------------------------------------------------------------------
# Forward pass
# ---------------------------------------------------------------------------
def _pick_block_batch(n, cap=8):
    """Largest divisor of n (<= cap) that still leaves >= 2 grid steps
    (keeps both TensorCores busy on v7x while raising the MXU M dim)."""
    best = 1
    for d in range(2, min(n, cap) + 1):
        if n % d == 0 and n // d >= 2:
            best = d
    return best


def patch_discriminator_forward(x_nchw, prep, block_batch=None):
    """x_nchw: (N, 3, H, W) f32. Returns (logits (N,1,h4,w4), [fmap0, fmap1])."""
    tin, bin_t, t1, b1t, t2, b2t, t3, b3t = prep
    n, cin, h, w = x_nchw.shape
    h1, w1 = _out_size(h, 2), _out_size(w, 2)
    h2, w2 = _out_size(h1, 2), _out_size(w1, 2)
    h3, w3 = _out_size(h2, 1), _out_size(w2, 1)
    h4, w4 = _out_size(h3, 1), _out_size(w3, 1)
    c1, c2, c3 = NDF, 2 * NDF, 4 * NDF
    logit_lanes = _round_up(w4, 128)
    assert h % 2 == 0 and h1 % 2 == 0, (
        "parity-split layout needs the input height divisible by 4")

    nb = block_batch if block_batch is not None else _pick_block_batch(n)
    assert n % nb == 0, "block_batch must divide the batch size"

    # Host layout: NHWC, pad rows, lanes = W*Cin.  Pre-gather the 4 row taps
    # of every stride-2 in_conv output row into the lanes (4*W*Cin) and order
    # the rows (even output rows first, then odd) per sample so the kernel's
    # parity scatter is two contiguous slab stores per sample.
    x = jnp.transpose(x_nchw, (0, 2, 3, 1)).astype(jnp.float32)
    x = jnp.pad(x, ((0, 0), (PADW, PADW), (0, 0), (0, 0)))      # pad rows only
    x = x.reshape(n, h + 2 * PADW, w * cin)
    base = 2 * np.arange(h1)
    taps = jnp.concatenate([x[:, base + ki, :] for ki in range(KW)], axis=-1)
    order = np.concatenate([np.arange(0, h1, 2), np.arange(1, h1, 2)])
    xs = taps[:, order, :].reshape(n // nb, nb * h1, KW * w * cin)
    xs = xs.astype(jnp.bfloat16)

    dims = (nb, h2, h3, h4, w2, c2, w3, c3)
    kernel = functools.partial(_disc_kernel, dims)
    he0, seg1, seg2 = h2 + 1, h2 + 2, h3 + 2

    f0, f1, lg = pl.pallas_call(
        kernel,
        out_shape=(
            jax.ShapeDtypeStruct((n, h2, w2 * c2), jnp.float32),
            jax.ShapeDtypeStruct((n, h3, w3 * c3), jnp.float32),
            jax.ShapeDtypeStruct((n, h4, logit_lanes), jnp.float32),
        ),
        grid=(n // nb,),
        in_specs=[
            pl.BlockSpec((None, nb * h1, KW * w * cin), lambda i: (i, 0, 0)),
            pl.BlockSpec(tin.shape, lambda i: (0, 0)),
            pl.BlockSpec(bin_t.shape, lambda i: (0, 0)),
            pl.BlockSpec(t1.shape, lambda i: (0, 0, 0)),
            pl.BlockSpec(b1t.shape, lambda i: (0, 0)),
            pl.BlockSpec(t2.shape, lambda i: (0, 0, 0)),
            pl.BlockSpec(b2t.shape, lambda i: (0, 0)),
            pl.BlockSpec(t3.shape, lambda i: (0, 0, 0)),
            pl.BlockSpec(b3t.shape, lambda i: (0, 0)),
        ],
        out_specs=(
            pl.BlockSpec((nb, h2, w2 * c2), lambda i: (i, 0, 0)),
            pl.BlockSpec((nb, h3, w3 * c3), lambda i: (i, 0, 0)),
            pl.BlockSpec((nb, h4, logit_lanes), lambda i: (i, 0, 0)),
        ),
        scratch_shapes=[
            pltpu.VMEM((nb * he0, w1 * c1), jnp.bfloat16),   # a0 even padded rows
            pltpu.VMEM((nb * he0, w1 * c1), jnp.bfloat16),   # a0 odd  padded rows
            pltpu.VMEM((nb * seg1, w2 * c2), jnp.bfloat16),  # padded a1 (stacked)
            pltpu.VMEM((nb * seg2, w3 * c3), jnp.bfloat16),  # padded a2 (stacked)
        ],
        compiler_params=pltpu.CompilerParams(
            dimension_semantics=("parallel",),
            vmem_limit_bytes=48 * 1024 * 1024,
        ),
    )(xs, tin, bin_t, t1, b1t, t2, b2t, t3, b3t)

    # Reassemble host-facing NCHW tensors (pure layout ops).
    fmap0 = jnp.transpose(f0.reshape(n, h2, w2, c2), (0, 3, 1, 2))
    fmap1 = jnp.transpose(f1.reshape(n, h3, w3, c3), (0, 3, 1, 2))
    logits = lg[:, :, 0:w4][:, None, :, :]
    return logits, [fmap0, fmap1]


# ---------------------------------------------------------------------------
# Parameter construction + pure-JAX reference (validation only)
# ---------------------------------------------------------------------------
def build_params(key, input_nc=3, ndf=NDF):
    chans = [(input_nc, ndf), (ndf, 2 * ndf), (2 * ndf, 4 * ndf), (4 * ndf, 1)]
    params = []
    for cin, cout in chans:
        key, kw_key, kb_key = jax.random.split(key, 3)
        wt = jax.random.normal(kw_key, (cout, cin, KW, KW), jnp.float32) * 0.02
        bs = jax.random.normal(kb_key, (cout,), jnp.float32) * 0.01
        params.append((wt, bs))
    return params


def reference_forward(x_nchw, params):
    """Pure-JAX port of the PyTorch forward (bf16 MXU inputs, f32 elsewhere)."""
    cfg = ((2, False, True), (2, True, True), (1, True, True), (1, False, False))
    x = jnp.transpose(x_nchw, (0, 2, 3, 1)).astype(jnp.float32)
    fmaps = []
    for li, ((stride, use_norm, use_act), (wt, bs)) in enumerate(zip(cfg, params)):
        w_hwio = jnp.transpose(wt, (2, 3, 1, 0)).astype(jnp.bfloat16)
        x = jax.lax.conv_general_dilated(
            x.astype(jnp.bfloat16), w_hwio, (stride, stride),
            [(PADW, PADW), (PADW, PADW)],
            dimension_numbers=("NHWC", "HWIO", "NHWC"),
            preferred_element_type=jnp.float32) + bs
        if use_norm:
            m = jnp.mean(x, axis=(1, 2), keepdims=True)
            v = jnp.mean((x - m) ** 2, axis=(1, 2), keepdims=True)
            x = (x - m) * jax.lax.rsqrt(v + IN_EPS)
        if use_act:
            x = jnp.where(x >= 0.0, x, LEAKY_SLOPE * x)
        if 0 < li < len(params) - 1:
            fmaps.append(jnp.transpose(x, (0, 3, 1, 2)))
    return jnp.transpose(x, (0, 3, 1, 2)), fmaps


if __name__ == "__main__":
    key = jax.random.PRNGKey(0)
    key, pkey, xkey = jax.random.split(key, 3)

    params = build_params(pkey, input_nc=3, ndf=NDF)
    # Input: (batch=4, channels=3, H=16, W=16) NCHW, like the PyTorch module.
    # batch=4 -> NB=2 samples per grid step, grid=(2,) ("parallel").
    x = jax.random.normal(xkey, (4, 3, 16, 16), jnp.float32)

    prep = prepare_pallas_params(params, 16, 16)
    logits, fmap = patch_discriminator_forward(x, prep)
    jax.block_until_ready(logits)
    for f in fmap:
        jax.block_until_ready(f)

    # Shapes implied by the module with this config.
    assert logits.shape == (4, 1, 2, 2), logits.shape
    assert fmap[0].shape == (4, 128, 4, 4), fmap[0].shape
    assert fmap[1].shape == (4, 256, 3, 3), fmap[1].shape

    # Numerical check against the pure-JAX reference of the module.
    ref_logits, ref_fmap = reference_forward(x, params)
    for got, want in ((logits, ref_logits),
                      (fmap[0], ref_fmap[0]),
                      (fmap[1], ref_fmap[1])):
        err = float(jnp.max(jnp.abs(got - want)))
        assert err < 5e-2, f"max abs diff {err}"

    print("KERNEL_OK")
</pallas_src>

<mosaic_0001>
module attributes {stable_mosaic.version = 11 : i64} {
  func.func @_disc_kernel(%arg0: i32, %arg1: memref<1x16x192xbf16, #tpu.memory_space<vmem>>, %arg2: memref<192x512xbf16, #tpu.memory_space<vmem>>, %arg3: memref<1x512xf32, #tpu.memory_space<vmem>>, %arg4: memref<4x512x512xbf16, #tpu.memory_space<vmem>>, %arg5: memref<1x512xf32, #tpu.memory_space<vmem>>, %arg6: memref<4x512x768xbf16, #tpu.memory_space<vmem>>, %arg7: memref<1x768xf32, #tpu.memory_space<vmem>>, %arg8: memref<4x768x128xbf16, #tpu.memory_space<vmem>>, %arg9: memref<1x128xf32, #tpu.memory_space<vmem>>, %arg10: memref<2x4x512xf32, #tpu.memory_space<vmem>>, %arg11: memref<2x3x768xf32, #tpu.memory_space<vmem>>, %arg12: memref<2x2x128xf32, #tpu.memory_space<vmem>>, %arg13: memref<10x512xbf16, #tpu.memory_space<vmem>>, %arg14: memref<10x512xbf16, #tpu.memory_space<vmem>>, %arg15: memref<12x512xbf16, #tpu.memory_space<vmem>>, %arg16: memref<10x768xbf16, #tpu.memory_space<vmem>>) attributes {dimension_semantics = [#tpu.dimension_semantics<parallel>], iteration_bounds = array<i64: 2>, scalar_prefetch = 0 : i64, scratch_operands = 4 : i64, tpu.core_type = #tpu.core_type<tc>, window_params = [{transform_indices = @transform_0, window_bounds = array<i64: 1, 16, 192>}, {pipeline_mode = #tpu.pipeline_mode<synchronous>, transform_indices = @transform_1, window_bounds = array<i64: 192, 512>}, {pipeline_mode = #tpu.pipeline_mode<synchronous>, transform_indices = @transform_2, window_bounds = array<i64: 1, 512>}, {pipeline_mode = #tpu.pipeline_mode<synchronous>, transform_indices = @transform_3, window_bounds = array<i64: 4, 512, 512>}, {pipeline_mode = #tpu.pipeline_mode<synchronous>, transform_indices = @transform_4, window_bounds = array<i64: 1, 512>}, {pipeline_mode = #tpu.pipeline_mode<synchronous>, transform_indices = @transform_5, window_bounds = array<i64: 4, 512, 768>}, {pipeline_mode = #tpu.pipeline_mode<synchronous>, transform_indices = @transform_6, window_bounds = array<i64: 1, 768>}, {pipeline_mode = #tpu.pipeline_mode<synchronous>, transform_indices = @transform_7, window_bounds = array<i64: 4, 768, 128>}, {pipeline_mode = #tpu.pipeline_mode<synchronous>, transform_indices = @transform_8, window_bounds = array<i64: 1, 128>}, {transform_indices = @transform_9, window_bounds = array<i64: 2, 4, 512>}, {transform_indices = @transform_10, window_bounds = array<i64: 2, 3, 768>}, {transform_indices = @transform_11, window_bounds = array<i64: 2, 2, 128>}]} {
    %cst = arith.constant 0.000000e+00 : bf16
    %0 = vector.broadcast %cst : bf16 to vector<1x512xbf16>
    %cst_0 = arith.constant 0.000000e+00 : bf16
    %1 = vector.broadcast %cst_0 : bf16 to vector<1x512xbf16>
    %cst_1 = arith.constant 0.000000e+00 : bf16
    %2 = vector.broadcast %cst_1 : bf16 to vector<1x768xbf16>
    %c0 = arith.constant 0 : index
    %c0_2 = arith.constant 0 : index
    %3 = vector.load %arg13[%c0, %c0_2] : memref<10x512xbf16, #tpu.memory_space<vmem>>, vector<1x512xbf16>
    tpu.vector_store %arg13[%c0, %c0_2], %0 {strides = array<i32>} : memref<10x512xbf16, #tpu.memory_space<vmem>>, vector<1x512xbf16>,
    %c4 = arith.constant 4 : index
    %c0_3 = arith.constant 0 : index
    %4 = vector.load %arg14[%c4, %c0_3] : memref<10x512xbf16, #tpu.memory_space<vmem>>, vector<1x512xbf16>
    tpu.vector_store %arg14[%c4, %c0_3], %0 {strides = array<i32>} : memref<10x512xbf16, #tpu.memory_space<vmem>>, vector<1x512xbf16>,
    %c0_4 = arith.constant 0 : index
    %c0_5 = arith.constant 0 : index
    %5 = vector.load %arg15[%c0_4, %c0_5] : memref<12x512xbf16, #tpu.memory_space<vmem>>, vector<1x512xbf16>
    tpu.vector_store %arg15[%c0_4, %c0_5], %1 {strides = array<i32>} : memref<12x512xbf16, #tpu.memory_space<vmem>>, vector<1x512xbf16>,
    %c5 = arith.constant 5 : index
    %c0_6 = arith.constant 0 : index
    %6 = vector.load %arg15[%c5, %c0_6] : memref<12x512xbf16, #tpu.memory_space<vmem>>, vector<1x512xbf16>
    tpu.vector_store %arg15[%c5, %c0_6], %1 {strides = array<i32>} : memref<12x512xbf16, #tpu.memory_space<vmem>>, vector<1x512xbf16>,
    %c0_7 = arith.constant 0 : index
    %c0_8 = arith.constant 0 : index
    %7 = vector.load %arg16[%c0_7, %c0_8] : memref<10x768xbf16, #tpu.memory_space<vmem>>, vector<1x768xbf16>
    tpu.vector_store %arg16[%c0_7, %c0_8], %2 {strides = array<i32>} : memref<10x768xbf16, #tpu.memory_space<vmem>>, vector<1x768xbf16>,
    %c4_9 = arith.constant 4 : index
    %c0_10 = arith.constant 0 : index
    %8 = vector.load %arg16[%c4_9, %c0_10] : memref<10x768xbf16, #tpu.memory_space<vmem>>, vector<1x768xbf16>
    tpu.vector_store %arg16[%c4_9, %c0_10], %2 {strides = array<i32>} : memref<10x768xbf16, #tpu.memory_space<vmem>>, vector<1x768xbf16>,
    %c5_11 = arith.constant 5 : index
    %c0_12 = arith.constant 0 : index
    %9 = vector.load %arg13[%c5_11, %c0_12] : memref<10x512xbf16, #tpu.memory_space<vmem>>, vector<1x512xbf16>
    tpu.vector_store %arg13[%c5_11, %c0_12], %0 {strides = array<i32>} : memref<10x512xbf16, #tpu.memory_space<vmem>>, vector<1x512xbf16>,
    %c9 = arith.constant 9 : index
    %c0_13 = arith.constant 0 : index
    %10 = vector.load %arg14[%c9, %c0_13] : memref<10x512xbf16, #tpu.memory_space<vmem>>, vector<1x512xbf16>
    tpu.vector_store %arg14[%c9, %c0_13], %0 {strides = array<i32>} : memref<10x512xbf16, #tpu.memory_space<vmem>>, vector<1x512xbf16>,
    %c6 = arith.constant 6 : index
    %c0_14 = arith.constant 0 : index
    %11 = vector.load %arg15[%c6, %c0_14] : memref<12x512xbf16, #tpu.memory_space<vmem>>, vector<1x512xbf16>
    tpu.vector_store %arg15[%c6, %c0_14], %1 {strides = array<i32>} : memref<12x512xbf16, #tpu.memory_space<vmem>>, vector<1x512xbf16>,
    %c11 = arith.constant 11 : index
    %c0_15 = arith.constant 0 : index
    %12 = vector.load %arg15[%c11, %c0_15] : memref<12x512xbf16, #tpu.memory_space<vmem>>, vector<1x512xbf16>
    tpu.vector_store %arg15[%c11, %c0_15], %1 {strides = array<i32>} : memref<12x512xbf16, #tpu.memory_space<vmem>>, vector<1x512xbf16>,
    %c5_16 = arith.constant 5 : index
    %c0_17 = arith.constant 0 : index
    %13 = vector.load %arg16[%c5_16, %c0_17] : memref<10x768xbf16, #tpu.memory_space<vmem>>, vector<1x768xbf16>
    tpu.vector_store %arg16[%c5_16, %c0_17], %2 {strides = array<i32>} : memref<10x768xbf16, #tpu.memory_space<vmem>>, vector<1x768xbf16>,
    %c9_18 = arith.constant 9 : index
    %c0_19 = arith.constant 0 : index
    %14 = vector.load %arg16[%c9_18, %c0_19] : memref<10x768xbf16, #tpu.memory_space<vmem>>, vector<1x768xbf16>
    tpu.vector_store %arg16[%c9_18, %c0_19], %2 {strides = array<i32>} : memref<10x768xbf16, #tpu.memory_space<vmem>>, vector<1x768xbf16>,
    %c0_20 = arith.constant 0 : index
    %c0_21 = arith.constant 0 : index
    %c0_22 = arith.constant 0 : index
    %15 = vector.load %arg1[%c0_20, %c0_21, %c0_22] : memref<1x16x192xbf16, #tpu.memory_space<vmem>>, vector<1x16x192xbf16>
    %16 = vector.shape_cast %15 : vector<1x16x192xbf16> to vector<16x192xbf16>
    %c0_23 = arith.constant 0 : index
    %c0_24 = arith.constant 0 : index
    %17 = vector.load %arg2[%c0_23, %c0_24] : memref<192x512xbf16, #tpu.memory_space<vmem>>, vector<192x512xbf16>
    %cst_25 = arith.constant dense<0.000000e+00> : vector<16x512xf32>
    %18 = tpu.matmul %16, %17, %cst_25 {dimension_numbers = #tpu.dot_dimension_numbers<[1], [0], [0], [1], [0, 0, 1, 1], [], []>} : vector<16x192xbf16>, vector<192x512xbf16>, vector<16x512xf32> -> vector<16x512xf32>
    %c0_26 = arith.constant 0 : index
    %c0_27 = arith.constant 0 : index
    %19 = vector.load %arg3[%c0_26, %c0_27] : memref<1x512xf32, #tpu.memory_space<vmem>>, vector<1x512xf32>
    %20 = vector.broadcast %19 : vector<1x512xf32> to vector<16x512xf32>
    %21 = arith.addf %18, %20 : vector<16x512xf32>
    %cst_28 = arith.constant 0.000000e+00 : f32
    %22 = vector.broadcast %cst_28 : f32 to vector<16x512xf32>
    %23 = arith.cmpf oge, %21, %22 : vector<16x512xf32>
    %cst_29 = arith.constant 2.000000e-01 : f32
    %24 = vector.broadcast %cst_29 : f32 to vector<16x512xf32>
    %25 = arith.mulf %24, %21 : vector<16x512xf32>
    %26 = arith.select %23, %21, %25 : vector<16x512xi1>, vector<16x512xf32>
    %27 = arith.truncf %26 : vector<16x512xf32> to vector<16x512xbf16>
    %28 = vector.extract_strided_slice %27 {offsets = [0, 0], sizes = [4, 512], strides = [1, 1]} : vector<16x512xbf16> to vector<4x512xbf16>
    %c0_30 = arith.constant 0 : index
    %c0_31 = arith.constant 0 : index
    %29 = vector.load %arg14[%c0_30, %c0_31] : memref<10x512xbf16, #tpu.memory_space<vmem>>, vector<4x512xbf16>
    tpu.vector_store %arg14[%c0_30, %c0_31], %28 {strides = array<i32>} : memref<10x512xbf16, #tpu.memory_space<vmem>>, vector<4x512xbf16>,
    %30 = vector.extract_strided_slice %27 {offsets = [4, 0], sizes = [4, 512], strides = [1, 1]} : vector<16x512xbf16> to vector<4x512xbf16>
    %c1 = arith.constant 1 : index
    %c0_32 = arith.constant 0 : index
    %31 = vector.load %arg13[%c1, %c0_32] : memref<10x512xbf16, #tpu.memory_space<vmem>>, vector<4x512xbf16>
    tpu.vector_store %arg13[%c1, %c0_32], %30 {strides = array<i32>} : memref<10x512xbf16, #tpu.memory_space<vmem>>, vector<4x512xbf16>,
    %32 = vector.extract_strided_slice %27 {offsets = [8, 0], sizes = [4, 512], strides = [1, 1]} : vector<16x512xbf16> to vector<4x512xbf16>
    %c5_33 = arith.constant 5 : index
    %c0_34 = arith.constant 0 : index
    %33 = vector.load %arg14[%c5_33, %c0_34] : memref<10x512xbf16, #tpu.memory_space<vmem>>, vector<4x512xbf16>
    tpu.vector_store %arg14[%c5_33, %c0_34], %32 {strides = array<i32>} : memref<10x512xbf16, #tpu.memory_space<vmem>>, vector<4x512xbf16>,
    %34 = vector.extract_strided_slice %27 {offsets = [12, 0], sizes = [4, 512], strides = [1, 1]} : vector<16x512xbf16> to vector<4x512xbf16>
    %c6_35 = arith.constant 6 : index
    %c0_36 = arith.constant 0 : index
    %35 = vector.load %arg13[%c6_35, %c0_36] : memref<10x512xbf16, #tpu.memory_space<vmem>>, vector<4x512xbf16>
    tpu.vector_store %arg13[%c6_35, %c0_36], %34 {strides = array<i32>} : memref<10x512xbf16, #tpu.memory_space<vmem>>, vector<4x512xbf16>,
    %c0_37 = arith.constant 0 : index
    %c0_38 = arith.constant 0 : index
    %36 = vector.load %arg13[%c0_37, %c0_38] : memref<10x512xbf16, #tpu.memory_space<vmem>>, vector<9x512xbf16>
    %c0_39 = arith.constant 0 : index
    %c0_40 = arith.constant 0 : index
    %c0_41 = arith.constant 0 : index
    %37 = vector.load %arg4[%c0_39, %c0_40, %c0_41] : memref<4x512x512xbf16, #tpu.memory_space<vmem>>, vector<1x512x512xbf16>
    %38 = vector.shape_cast %37 : vector<1x512x512xbf16> to vector<512x512xbf16>
    %cst_42 = arith.constant dense<0.000000e+00> : vector<9x512xf32>
    %39 = tpu.matmul %36, %38, %cst_42 {dimension_numbers = #tpu.dot_dimension_numbers<[1], [0], [0], [1], [0, 0, 1, 1], [], []>} : vector<9x512xbf16>, vector<512x512xbf16>, vector<9x512xf32> -> vector<9x512xf32>
    %c0_43 = arith.constant 0 : index
    %c0_44 = arith.constant 0 : index
    %40 = vector.load %arg14[%c0_43, %c0_44] : memref<10x512xbf16, #tpu.memory_space<vmem>>, vector<9x512xbf16>
    %c1_45 = arith.constant 1 : index
    %c0_46 = arith.constant 0 : index
    %c0_47 = arith.constant 0 : index
    %41 = vector.load %arg4[%c1_45, %c0_46, %c0_47] : memref<4x512x512xbf16, #tpu.memory_space<vmem>>, vector<1x512x512xbf16>
    %42 = vector.shape_cast %41 : vector<1x512x512xbf16> to vector<512x512xbf16>
    %cst_48 = arith.constant dense<0.000000e+00> : vector<9x512xf32>
    %43 = tpu.matmul %40, %42, %cst_48 {dimension_numbers = #tpu.dot_dimension_numbers<[1], [0], [0], [1], [0, 0, 1, 1], [], []>} : vector<9x512xbf16>, vector<512x512xbf16>, vector<9x512xf32> -> vector<9x512xf32>
    %44 = arith.addf %39, %43 : vector<9x512xf32>
    %c1_49 = arith.constant 1 : index
    %c0_50 = arith.constant 0 : index
    %45 = vector.load %arg13[%c1_49, %c0_50] : memref<10x512xbf16, #tpu.memory_space<vmem>>, vector<9x512xbf16>
    %c2 = arith.constant 2 : index
    %c0_51 = arith.constant 0 : index
    %c0_52 = arith.constant 0 : index
    %46 = vector.load %arg4[%c2, %c0_51, %c0_52] : memref<4x512x512xbf16, #tpu.memory_space<vmem>>, vector<1x512x512xbf16>
    %47 = vector.shape_cast %46 : vector<1x512x512xbf16> to vector<512x512xbf16>
    %cst_53 = arith.constant dense<0.000000e+00> : vector<9x512xf32>
    %48 = tpu.matmul %45, %47, %cst_53 {dimension_numbers = #tpu.dot_dimension_numbers<[1], [0], [0], [1], [0, 0, 1, 1], [], []>} : vector<9x512xbf16>, vector<512x512xbf16>, vector<9x512xf32> -> vector<9x512xf32>
    %49 = arith.addf %44, %48 : vector<9x512xf32>
    %c1_54 = arith.constant 1 : index
    %c0_55 = arith.constant 0 : index
    %50 = vector.load %arg14[%c1_54, %c0_55] : memref<10x512xbf16, #tpu.memory_space<vmem>>, vector<9x512xbf16>
    %c3 = arith.constant 3 : index
    %c0_56 = arith.constant 0 : index
    %c0_57 = arith.constant 0 : index
    %51 = vector.load %arg4[%c3, %c0_56, %c0_57] : memref<4x512x512xbf16, #tpu.memory_space<vmem>>, vector<1x512x512xbf16>
    %52 = vector.shape_cast %51 : vector<1x512x512xbf16> to vector<512x512xbf16>
    %cst_58 = arith.constant dense<0.000000e+00> : vector<9x512xf32>
    %53 = tpu.matmul %50, %52, %cst_58 {dimension_numbers = #tpu.dot_dimension_numbers<[1], [0], [0], [1], [0, 0, 1, 1], [], []>} : vector<9x512xbf16>, vector<512x512xbf16>, vector<9x512xf32> -> vector<9x512xf32>
    %54 = arith.addf %49, %53 : vector<9x512xf32>
    %c0_59 = arith.constant 0 : index
    %c0_60 = arith.constant 0 : index
    %55 = vector.load %arg5[%c0_59, %c0_60] : memref<1x512xf32, #tpu.memory_space<vmem>>, vector<1x512xf32>
    %56 = vector.broadcast %55 : vector<1x512xf32> to vector<9x512xf32>
    %57 = arith.addf %54, %56 : vector<9x512xf32>
    %58 = vector.extract_strided_slice %57 {offsets = [0, 0], sizes = [4, 512], strides = [1, 1]} : vector<9x512xf32> to vector<4x512xf32>
    %cst_61 = arith.constant dense<0.000000e+00> : vector<512xf32>
    %59 = vector.multi_reduction <add>, %58, %cst_61 [0] : vector<4x512xf32> to vector<512xf32>
    %60 = vector.shape_cast %59 : vector<512xf32> to vector<1x512xf32>
    %61 = vector.extract_strided_slice %60 {offsets = [0, 0], sizes = [1, 128], strides = [1, 1]} : vector<1x512xf32> to vector<1x128xf32>
    %62 = vector.extract_strided_slice %60 {offsets = [0, 128], sizes = [1, 128], strides = [1, 1]} : vector<1x512xf32> to vector<1x128xf32>
    %63 = vector.extract_strided_slice %60 {offsets = [0, 256], sizes = [1, 128], strides = [1, 1]} : vector<1x512xf32> to vector<1x128xf32>
    %64 = vector.extract_strided_slice %60 {offsets = [0, 384], sizes = [1, 128], strides = [1, 1]} : vector<1x512xf32> to vector<1x128xf32>
    %65 = arith.addf %61, %62 : vector<1x128xf32>
    %66 = arith.addf %63, %64 : vector<1x128xf32>
    %67 = arith.addf %65, %66 : vector<1x128xf32>
    %cst_62 = arith.constant 6.250000e-02 : f32
    %68 = vector.broadcast %cst_62 : f32 to vector<1x128xf32>
    %69 = arith.mulf %67, %68 : vector<1x128xf32>
    %70 = tpu.concatenate %69, %69, %69, %69 in 1 : vector<1x128xf32>, vector<1x128xf32>, vector<1x128xf32>, vector<1x128xf32> -> vector<1x512xf32>
    %71 = vector.broadcast %70 : vector<1x512xf32> to vector<4x512xf32>
    %72 = arith.subf %58, %71 : vector<4x512xf32>
    %73 = arith.mulf %72, %72 : vector<4x512xf32>
    %cst_63 = arith.constant dense<0.000000e+00> : vector<512xf32>
    %74 = vector.multi_reduction <add>, %73, %cst_63 [0] : vector<4x512xf32> to vector<512xf32>
    %75 = vector.shape_cast %74 : vector<512xf32> to vector<1x512xf32>
    %76 = vector.extract_strided_slice %75 {offsets = [0, 0], sizes = [1, 128], strides = [1, 1]} : vector<1x512xf32> to vector<1x128xf32>
    %77 = vector.extract_strided_slice %75 {offsets = [0, 128], sizes = [1, 128], strides = [1, 1]} : vector<1x512xf32> to vector<1x128xf32>
    %78 = vector.extract_strided_slice %75 {offsets = [0, 256], sizes = [1, 128], strides = [1, 1]} : vector<1x512xf32> to vector<1x128xf32>
    %79 = vector.extract_strided_slice %75 {offsets = [0, 384], sizes = [1, 128], strides = [1, 1]} : vector<1x512xf32> to vector<1x128xf32>
    %80 = arith.addf %76, %77 : vector<1x128xf32>
    %81 = arith.addf %78, %79 : vector<1x128xf32>
    %82 = arith.addf %80, %81 : vector<1x128xf32>
    %cst_64 = arith.constant 6.250000e-02 : f32
    %83 = vector.broadcast %cst_64 : f32 to vector<1x128xf32>
    %84 = arith.mulf %82, %83 : vector<1x128xf32>
    %cst_65 = arith.constant 9.99999974E-6 : f32
    %85 = vector.broadcast %cst_65 : f32 to vector<1x128xf32>
    %86 = arith.addf %84, %85 : vector<1x128xf32>
    %87 = math.rsqrt %86 : vector<1x128xf32>
    %88 = tpu.concatenate %87, %87, %87, %87 in 1 : vector<1x128xf32>, vector<1x128xf32>, vector<1x128xf32>, vector<1x128xf32> -> vector<1x512xf32>
    %89 = vector.broadcast %88 : vector<1x512xf32> to vector<4x512xf32>
    %90 = arith.mulf %72, %89 : vector<4x512xf32>
    %cst_66 = arith.constant 0.000000e+00 : f32
    %91 = vector.broadcast %cst_66 : f32 to vector<4x512xf32>
    %92 = arith.cmpf oge, %90, %91 : vector<4x512xf32>
    %cst_67 = arith.constant 2.000000e-01 : f32
    %93 = vector.broadcast %cst_67 : f32 to vector<4x512xf32>
    %94 = arith.mulf %93, %90 : vector<4x512xf32>
    %95 = arith.select %92, %90, %94 : vector<4x512xi1>, vector<4x512xf32>
    %c0_68 = arith.constant 0 : index
    %c0_69 = arith.constant 0 : index
    %c0_70 = arith.constant 0 : index
    %96 = vector.load %arg10[%c0_68, %c0_69, %c0_70] : memref<2x4x512xf32, #tpu.memory_space<vmem>>, vector<1x4x512xf32>
    %97 = vector.shape_cast %96 : vector<1x4x512xf32> to vector<4x512xf32>
    %98 = vector.shape_cast %95 : vector<4x512xf32> to vector<1x4x512xf32>
    tpu.vector_store %arg10[%c0_68, %c0_69, %c0_70], %98 {strides = array<i32>} : memref<2x4x512xf32, #tpu.memory_space<vmem>>, vector<1x4x512xf32>,
    %99 = arith.truncf %95 : vector<4x512xf32> to vector<4x512xbf16>
    %c1_71 = arith.constant 1 : index
    %c0_72 = arith.constant 0 : index
    %100 = vector.load %arg15[%c1_71, %c0_72] : memref<12x512xbf16, #tpu.memory_space<vmem>>, vector<4x512xbf16>
    tpu.vector_store %arg15[%c1_71, %c0_72], %99 {strides = array<i32>} : memref<12x512xbf16, #tpu.memory_space<vmem>>, vector<4x512xbf16>,
    %101 = vector.extract_strided_slice %57 {offsets = [5, 0], sizes = [4, 512], strides = [1, 1]} : vector<9x512xf32> to vector<4x512xf32>
    %cst_73 = arith.constant dense<0.000000e+00> : vector<512xf32>
    %102 = vector.multi_reduction <add>, %101, %cst_73 [0] : vector<4x512xf32> to vector<512xf32>
    %103 = vector.shape_cast %102 : vector<512xf32> to vector<1x512xf32>
    %104 = vector.extract_strided_slice %103 {offsets = [0, 0], sizes = [1, 128], strides = [1, 1]} : vector<1x512xf32> to vector<1x128xf32>
    %105 = vector.extract_strided_slice %103 {offsets = [0, 128], sizes = [1, 128], strides = [1, 1]} : vector<1x512xf32> to vector<1x128xf32>
    %106 = vector.extract_strided_slice %103 {offsets = [0, 256], sizes = [1, 128], strides = [1, 1]} : vector<1x512xf32> to vector<1x128xf32>
    %107 = vector.extract_strided_slice %103 {offsets = [0, 384], sizes = [1, 128], strides = [1, 1]} : vector<1x512xf32> to vector<1x128xf32>
    %108 = arith.addf %104, %105 : vector<1x128xf32>
    %109 = arith.addf %106, %107 : vector<1x128xf32>
    %110 = arith.addf %108, %109 : vector<1x128xf32>
    %cst_74 = arith.constant 6.250000e-02 : f32
    %111 = vector.broadcast %cst_74 : f32 to vector<1x128xf32>
    %112 = arith.mulf %110, %111 : vector<1x128xf32>
    %113 = tpu.concatenate %112, %112, %112, %112 in 1 : vector<1x128xf32>, vector<1x128xf32>, vector<1x128xf32>, vector<1x128xf32> -> vector<1x512xf32>
    %114 = vector.broadcast %113 : vector<1x512xf32> to vector<4x512xf32>
    %115 = arith.subf %101, %114 : vector<4x512xf32>
    %116 = arith.mulf %115, %115 : vector<4x512xf32>
    %cst_75 = arith.constant dense<0.000000e+00> : vector<512xf32>
    %117 = vector.multi_reduction <add>, %116, %cst_75 [0] : vector<4x512xf32> to vector<512xf32>
    %118 = vector.shape_cast %117 : vector<512xf32> to vector<1x512xf32>
    %119 = vector.extract_strided_slice %118 {offsets = [0, 0], sizes = [1, 128], strides = [1, 1]} : vector<1x512xf32> to vector<1x128xf32>
    %120 = vector.extract_strided_slice %118 {offsets = [0, 128], sizes = [1, 128], strides = [1, 1]} : vector<1x512xf32> to vector<1x128xf32>
    %121 = vector.extract_strided_slice %118 {offsets = [0, 256], sizes = [1, 128], strides = [1, 1]} : vector<1x512xf32> to vector<1x128xf32>
    %122 = vector.extract_strided_slice %118 {offsets = [0, 384], sizes = [1, 128], strides = [1, 1]} : vector<1x512xf32> to vector<1x128xf32>
    %123 = arith.addf %119, %120 : vector<1x128xf32>
    %124 = arith.addf %121, %122 : vector<1x128xf32>
    %125 = arith.addf %123, %124 : vector<1x128xf32>
    %cst_76 = arith.constant 6.250000e-02 : f32
    %126 = vector.broadcast %cst_76 : f32 to vector<1x128xf32>
    %127 = arith.mulf %125, %126 : vector<1x128xf32>
    %cst_77 = arith.constant 9.99999974E-6 : f32
    %128 = vector.broadcast %cst_77 : f32 to vector<1x128xf32>
    %129 = arith.addf %127, %128 : vector<1x128xf32>
    %130 = math.rsqrt %129 : vector<1x128xf32>
    %131 = tpu.concatenate %130, %130, %130, %130 in 1 : vector<1x128xf32>, vector<1x128xf32>, vector<1x128xf32>, vector<1x128xf32> -> vector<1x512xf32>
    %132 = vector.broadcast %131 : vector<1x512xf32> to vector<4x512xf32>
    %133 = arith.mulf %115, %132 : vector<4x512xf32>
    %cst_78 = arith.constant 0.000000e+00 : f32
    %134 = vector.broadcast %cst_78 : f32 to vector<4x512xf32>
    %135 = arith.cmpf oge, %133, %134 : vector<4x512xf32>
    %cst_79 = arith.constant 2.000000e-01 : f32
    %136 = vector.broadcast %cst_79 : f32 to vector<4x512xf32>
    %137 = arith.mulf %136, %133 : vector<4x512xf32>
    %138 = arith.select %135, %133, %137 : vector<4x512xi1>, vector<4x512xf32>
    %c1_80 = arith.constant 1 : index
    %c0_81 = arith.constant 0 : index
    %c0_82 = arith.constant 0 : index
    %139 = vector.load %arg10[%c1_80, %c0_81, %c0_82] : memref<2x4x512xf32, #tpu.memory_space<vmem>>, vector<1x4x512xf32>
    %140 = vector.shape_cast %139 : vector<1x4x512xf32> to vector<4x512xf32>
    %141 = vector.shape_cast %138 : vector<4x512xf32> to vector<1x4x512xf32>
    tpu.vector_store %arg10[%c1_80, %c0_81, %c0_82], %141 {strides = array<i32>} : memref<2x4x512xf32, #tpu.memory_space<vmem>>, vector<1x4x512xf32>,
    %142 = arith.truncf %138 : vector<4x512xf32> to vector<4x512xbf16>
    %c7 = arith.constant 7 : index
    %c0_83 = arith.constant 0 : index
    %143 = vector.load %arg15[%c7, %c0_83] : memref<12x512xbf16, #tpu.memory_space<vmem>>, vector<4x512xbf16>
    tpu.vector_store %arg15[%c7, %c0_83], %142 {strides = array<i32>} : memref<12x512xbf16, #tpu.memory_space<vmem>>, vector<4x512xbf16>,
    %c0_84 = arith.constant 0 : index
    %c0_85 = arith.constant 0 : index
    %144 = vector.load %arg15[%c0_84, %c0_85] : memref<12x512xbf16, #tpu.memory_space<vmem>>, vector<9x512xbf16>
    %c0_86 = arith.constant 0 : index
    %c0_87 = arith.constant 0 : index
    %c0_88 = arith.constant 0 : index
    %145 = vector.load %arg6[%c0_86, %c0_87, %c0_88] : memref<4x512x768xbf16, #tpu.memory_space<vmem>>, vector<1x512x768xbf16>
    %146 = vector.shape_cast %145 : vector<1x512x768xbf16> to vector<512x768xbf16>
    %cst_89 = arith.constant dense<0.000000e+00> : vector<9x768xf32>
    %147 = tpu.matmul %144, %146, %cst_89 {dimension_numbers = #tpu.dot_dimension_numbers<[1], [0], [0], [1], [0, 0, 1, 1], [], []>} : vector<9x512xbf16>, vector<512x768xbf16>, vector<9x768xf32> -> vector<9x768xf32>
    %c1_90 = arith.constant 1 : index
    %c0_91 = arith.constant 0 : index
    %148 = vector.load %arg15[%c1_90, %c0_91] : memref<12x512xbf16, #tpu.memory_space<vmem>>, vector<9x512xbf16>
    %c1_92 = arith.constant 1 : index
    %c0_93 = arith.constant 0 : index
    %c0_94 = arith.constant 0 : index
    %149 = vector.load %arg6[%c1_92, %c0_93, %c0_94] : memref<4x512x768xbf16, #tpu.memory_space<vmem>>, vector<1x512x768xbf16>
    %150 = vector.shape_cast %149 : vector<1x512x768xbf16> to vector<512x768xbf16>
    %cst_95 = arith.constant dense<0.000000e+00> : vector<9x768xf32>
    %151 = tpu.matmul %148, %150, %cst_95 {dimension_numbers = #tpu.dot_dimension_numbers<[1], [0], [0], [1], [0, 0, 1, 1], [], []>} : vector<9x512xbf16>, vector<512x768xbf16>, vector<9x768xf32> -> vector<9x768xf32>
    %152 = arith.addf %147, %151 : vector<9x768xf32>
    %c2_96 = arith.constant 2 : index
    %c0_97 = arith.constant 0 : index
    %153 = vector.load %arg15[%c2_96, %c0_97] : memref<12x512xbf16, #tpu.memory_space<vmem>>, vector<9x512xbf16>
    %c2_98 = arith.constant 2 : index
    %c0_99 = arith.constant 0 : index
    %c0_100 = arith.constant 0 : index
    %154 = vector.load %arg6[%c2_98, %c0_99, %c0_100] : memref<4x512x768xbf16, #tpu.memory_space<vmem>>, vector<1x512x768xbf16>
    %155 = vector.shape_cast %154 : vector<1x512x768xbf16> to vector<512x768xbf16>
    %cst_101 = arith.constant dense<0.000000e+00> : vector<9x768xf32>
    %156 = tpu.matmul %153, %155, %cst_101 {dimension_numbers = #tpu.dot_dimension_numbers<[1], [0], [0], [1], [0, 0, 1, 1], [], []>} : vector<9x512xbf16>, vector<512x768xbf16>, vector<9x768xf32> -> vector<9x768xf32>
    %157 = arith.addf %152, %156 : vector<9x768xf32>
    %c3_102 = arith.constant 3 : index
    %c0_103 = arith.constant 0 : index
    %158 = vector.load %arg15[%c3_102, %c0_103] : memref<12x512xbf16, #tpu.memory_space<vmem>>, vector<9x512xbf16>
    %c3_104 = arith.constant 3 : index
    %c0_105 = arith.constant 0 : index
    %c0_106 = arith.constant 0 : index
    %159 = vector.load %arg6[%c3_104, %c0_105, %c0_106] : memref<4x512x768xbf16, #tpu.memory_space<vmem>>, vector<1x512x768xbf16>
    %160 = vector.shape_cast %159 : vector<1x512x768xbf16> to vector<512x768xbf16>
    %cst_107 = arith.constant dense<0.000000e+00> : vector<9x768xf32>
    %161 = tpu.matmul %158, %160, %cst_107 {dimension_numbers = #tpu.dot_dimension_numbers<[1], [0], [0], [1], [0, 0, 1, 1], [], []>} : vector<9x512xbf16>, vector<512x768xbf16>, vector<9x768xf32> -> vector<9x768xf32>
    %162 = arith.addf %157, %161 : vector<9x768xf32>
    %c0_108 = arith.constant 0 : index
    %c0_109 = arith.constant 0 : index
    %163 = vector.load %arg7[%c0_108, %c0_109] : memref<1x768xf32, #tpu.memory_space<vmem>>, vector<1x768xf32>
    %164 = vector.broadcast %163 : vector<1x768xf32> to vector<9x768xf32>
    %165 = arith.addf %162, %164 : vector<9x768xf32>
    %166 = vector.extract_strided_slice %165 {offsets = [0, 0], sizes = [3, 768], strides = [1, 1]} : vector<9x768xf32> to vector<3x768xf32>
    %cst_110 = arith.constant dense<0.000000e+00> : vector<768xf32>
    %167 = vector.multi_reduction <add>, %166, %cst_110 [0] : vector<3x768xf32> to vector<768xf32>
    %168 = vector.shape_cast %167 : vector<768xf32> to vector<1x768xf32>
    %169 = vector.extract_strided_slice %168 {offsets = [0, 0], sizes = [1, 256], strides = [1, 1]} : vector<1x768xf32> to vector<1x256xf32>
    %170 = vector.extract_strided_slice %168 {offsets = [0, 256], sizes = [1, 256], strides = [1, 1]} : vector<1x768xf32> to vector<1x256xf32>
    %171 = vector.extract_strided_slice %168 {offsets = [0, 512], sizes = [1, 256], strides = [1, 1]} : vector<1x768xf32> to vector<1x256xf32>
    %172 = arith.addf %169, %170 : vector<1x256xf32>
    %173 = arith.addf %172, %171 : vector<1x256xf32>
    %cst_111 = arith.constant 0.111111112 : f32
    %174 = vector.broadcast %cst_111 : f32 to vector<1x256xf32>
    %175 = arith.mulf %173, %174 : vector<1x256xf32>
    %176 = tpu.concatenate %175, %175, %175 in 1 : vector<1x256xf32>, vector<1x256xf32>, vector<1x256xf32> -> vector<1x768xf32>
    %177 = vector.broadcast %176 : vector<1x768xf32> to vector<3x768xf32>
    %178 = arith.subf %166, %177 : vector<3x768xf32>
    %179 = arith.mulf %178, %178 : vector<3x768xf32>
    %cst_112 = arith.constant dense<0.000000e+00> : vector<768xf32>
    %180 = vector.multi_reduction <add>, %179, %cst_112 [0] : vector<3x768xf32> to vector<768xf32>
    %181 = vector.shape_cast %180 : vector<768xf32> to vector<1x768xf32>
    %182 = vector.extract_strided_slice %181 {offsets = [0, 0], sizes = [1, 256], strides = [1, 1]} : vector<1x768xf32> to vector<1x256xf32>
    %183 = vector.extract_strided_slice %181 {offsets = [0, 256], sizes = [1, 256], strides = [1, 1]} : vector<1x768xf32> to vector<1x256xf32>
    %184 = vector.extract_strided_slice %181 {offsets = [0, 512], sizes = [1, 256], strides = [1, 1]} : vector<1x768xf32> to vector<1x256xf32>
    %185 = arith.addf %182, %183 : vector<1x256xf32>
    %186 = arith.addf %185, %184 : vector<1x256xf32>
    %cst_113 = arith.constant 0.111111112 : f32
    %187 = vector.broadcast %cst_113 : f32 to vector<1x256xf32>
    %188 = arith.mulf %186, %187 : vector<1x256xf32>
    %cst_114 = arith.constant 9.99999974E-6 : f32
    %189 = vector.broadcast %cst_114 : f32 to vector<1x256xf32>
    %190 = arith.addf %188, %189 : vector<1x256xf32>
    %191 = math.rsqrt %190 : vector<1x256xf32>
    %192 = tpu.concatenate %191, %191, %191 in 1 : vector<1x256xf32>, vector<1x256xf32>, vector<1x256xf32> -> vector<1x768xf32>
    %193 = vector.broadcast %192 : vector<1x768xf32> to vector<3x768xf32>
    %194 = arith.mulf %178, %193 : vector<3x768xf32>
    %cst_115 = arith.constant 0.000000e+00 : f32
    %195 = vector.broadcast %cst_115 : f32 to vector<3x768xf32>
    %196 = arith.cmpf oge, %194, %195 : vector<3x768xf32>
    %cst_116 = arith.constant 2.000000e-01 : f32
    %197 = vector.broadcast %cst_116 : f32 to vector<3x768xf32>
    %198 = arith.mulf %197, %194 : vector<3x768xf32>
    %199 = arith.select %196, %194, %198 : vector<3x768xi1>, vector<3x768xf32>
    %c0_117 = arith.constant 0 : index
    %c0_118 = arith.constant 0 : index
    %c0_119 = arith.constant 0 : index
    %200 = vector.load %arg11[%c0_117, %c0_118, %c0_119] : memref<2x3x768xf32, #tpu.memory_space<vmem>>, vector<1x3x768xf32>
    %201 = vector.shape_cast %200 : vector<1x3x768xf32> to vector<3x768xf32>
    %202 = vector.shape_cast %199 : vector<3x768xf32> to vector<1x3x768xf32>
    tpu.vector_store %arg11[%c0_117, %c0_118, %c0_119], %202 {strides = array<i32>} : memref<2x3x768xf32, #tpu.memory_space<vmem>>, vector<1x3x768xf32>,
    %203 = arith.truncf %199 : vector<3x768xf32> to vector<3x768xbf16>
    %c1_120 = arith.constant 1 : index
    %c0_121 = arith.constant 0 : index
    %204 = vector.load %arg16[%c1_120, %c0_121] : memref<10x768xbf16, #tpu.memory_space<vmem>>, vector<3x768xbf16>
    tpu.vector_store %arg16[%c1_120, %c0_121], %203 {strides = array<i32>} : memref<10x768xbf16, #tpu.memory_space<vmem>>, vector<3x768xbf16>,
    %205 = vector.extract_strided_slice %165 {offsets = [6, 0], sizes = [3, 768], strides = [1, 1]} : vector<9x768xf32> to vector<3x768xf32>
    %cst_122 = arith.constant dense<0.000000e+00> : vector<768xf32>
    %206 = vector.multi_reduction <add>, %205, %cst_122 [0] : vector<3x768xf32> to vector<768xf32>
    %207 = vector.shape_cast %206 : vector<768xf32> to vector<1x768xf32>
    %208 = vector.extract_strided_slice %207 {offsets = [0, 0], sizes = [1, 256], strides = [1, 1]} : vector<1x768xf32> to vector<1x256xf32>
    %209 = vector.extract_strided_slice %207 {offsets = [0, 256], sizes = [1, 256], strides = [1, 1]} : vector<1x768xf32> to vector<1x256xf32>
    %210 = vector.extract_strided_slice %207 {offsets = [0, 512], sizes = [1, 256], strides = [1, 1]} : vector<1x768xf32> to vector<1x256xf32>
    %211 = arith.addf %208, %209 : vector<1x256xf32>
    %212 = arith.addf %211, %210 : vector<1x256xf32>
    %cst_123 = arith.constant 0.111111112 : f32
    %213 = vector.broadcast %cst_123 : f32 to vector<1x256xf32>
    %214 = arith.mulf %212, %213 : vector<1x256xf32>
    %215 = tpu.concatenate %214, %214, %214 in 1 : vector<1x256xf32>, vector<1x256xf32>, vector<1x256xf32> -> vector<1x768xf32>
    %216 = vector.broadcast %215 : vector<1x768xf32> to vector<3x768xf32>
    %217 = arith.subf %205, %216 : vector<3x768xf32>
    %218 = arith.mulf %217, %217 : vector<3x768xf32>
    %cst_124 = arith.constant dense<0.000000e+00> : vector<768xf32>
    %219 = vector.multi_reduction <add>, %218, %cst_124 [0] : vector<3x768xf32> to vector<768xf32>
    %220 = vector.shape_cast %219 : vector<768xf32> to vector<1x768xf32>
    %221 = vector.extract_strided_slice %220 {offsets = [0, 0], sizes = [1, 256], strides = [1, 1]} : vector<1x768xf32> to vector<1x256xf32>
    %222 = vector.extract_strided_slice %220 {offsets = [0, 256], sizes = [1, 256], strides = [1, 1]} : vector<1x768xf32> to vector<1x256xf32>
    %223 = vector.extract_strided_slice %220 {offsets = [0, 512], sizes = [1, 256], strides = [1, 1]} : vector<1x768xf32> to vector<1x256xf32>
    %224 = arith.addf %221, %222 : vector<1x256xf32>
    %225 = arith.addf %224, %223 : vector<1x256xf32>
    %cst_125 = arith.constant 0.111111112 : f32
    %226 = vector.broadcast %cst_125 : f32 to vector<1x256xf32>
    %227 = arith.mulf %225, %226 : vector<1x256xf32>
    %cst_126 = arith.constant 9.99999974E-6 : f32
    %228 = vector.broadcast %cst_126 : f32 to vector<1x256xf32>
    %229 = arith.addf %227, %228 : vector<1x256xf32>
    %230 = math.rsqrt %229 : vector<1x256xf32>
    %231 = tpu.concatenate %230, %230, %230 in 1 : vector<1x256xf32>, vector<1x256xf32>, vector<1x256xf32> -> vector<1x768xf32>
    %232 = vector.broadcast %231 : vector<1x768xf32> to vector<3x768xf32>
    %233 = arith.mulf %217, %232 : vector<3x768xf32>
    %cst_127 = arith.constant 0.000000e+00 : f32
    %234 = vector.broadcast %cst_127 : f32 to vector<3x768xf32>
    %235 = arith.cmpf oge, %233, %234 : vector<3x768xf32>
    %cst_128 = arith.constant 2.000000e-01 : f32
    %236 = vector.broadcast %cst_128 : f32 to vector<3x768xf32>
    %237 = arith.mulf %236, %233 : vector<3x768xf32>
    %238 = arith.select %235, %233, %237 : vector<3x768xi1>, vector<3x768xf32>
    %c1_129 = arith.constant 1 : index
    %c0_130 = arith.constant 0 : index
    %c0_131 = arith.constant 0 : index
    %239 = vector.load %arg11[%c1_129, %c0_130, %c0_131] : memref<2x3x768xf32, #tpu.memory_space<vmem>>, vector<1x3x768xf32>
    %240 = vector.shape_cast %239 : vector<1x3x768xf32> to vector<3x768xf32>
    %241 = vector.shape_cast %238 : vector<3x768xf32> to vector<1x3x768xf32>
    tpu.vector_store %arg11[%c1_129, %c0_130, %c0_131], %241 {strides = array<i32>} : memref<2x3x768xf32, #tpu.memory_space<vmem>>, vector<1x3x768xf32>,
    %242 = arith.truncf %238 : vector<3x768xf32> to vector<3x768xbf16>
    %c6_132 = arith.constant 6 : index
    %c0_133 = arith.constant 0 : index
    %243 = vector.load %arg16[%c6_132, %c0_133] : memref<10x768xbf16, #tpu.memory_space<vmem>>, vector<3x768xbf16>
    tpu.vector_store %arg16[%c6_132, %c0_133], %242 {strides = array<i32>} : memref<10x768xbf16, #tpu.memory_space<vmem>>, vector<3x768xbf16>,
    %c0_134 = arith.constant 0 : index
    %c0_135 = arith.constant 0 : index
    %244 = vector.load %arg16[%c0_134, %c0_135] : memref<10x768xbf16, #tpu.memory_space<vmem>>, vector<7x768xbf16>
    %c0_136 = arith.constant 0 : index
    %c0_137 = arith.constant 0 : index
    %c0_138 = arith.constant 0 : index
    %245 = vector.load %arg8[%c0_136, %c0_137, %c0_138] : memref<4x768x128xbf16, #tpu.memory_space<vmem>>, vector<1x768x128xbf16>
    %246 = vector.shape_cast %245 : vector<1x768x128xbf16> to vector<768x128xbf16>
    %cst_139 = arith.constant dense<0.000000e+00> : vector<7x128xf32>
    %247 = tpu.matmul %244, %246, %cst_139 {dimension_numbers = #tpu.dot_dimension_numbers<[1], [0], [0], [1], [0, 0, 1, 1], [], []>} : vector<7x768xbf16>, vector<768x128xbf16>, vector<7x128xf32> -> vector<7x128xf32>
    %c1_140 = arith.constant 1 : index
    %c0_141 = arith.constant 0 : index
    %248 = vector.load %arg16[%c1_140, %c0_141] : memref<10x768xbf16, #tpu.memory_space<vmem>>, vector<7x768xbf16>
    %c1_142 = arith.constant 1 : index
    %c0_143 = arith.constant 0 : index
    %c0_144 = arith.constant 0 : index
    %249 = vector.load %arg8[%c1_142, %c0_143, %c0_144] : memref<4x768x128xbf16, #tpu.memory_space<vmem>>, vector<1x768x128xbf16>
    %250 = vector.shape_cast %249 : vector<1x768x128xbf16> to vector<768x128xbf16>
    %cst_145 = arith.constant dense<0.000000e+00> : vector<7x128xf32>
    %251 = tpu.matmul %248, %250, %cst_145 {dimension_numbers = #tpu.dot_dimension_numbers<[1], [0], [0], [1], [0, 0, 1, 1], [], []>} : vector<7x768xbf16>, vector<768x128xbf16>, vector<7x128xf32> -> vector<7x128xf32>
    %252 = arith.addf %247, %251 : vector<7x128xf32>
    %c2_146 = arith.constant 2 : index
    %c0_147 = arith.constant 0 : index
    %253 = vector.load %arg16[%c2_146, %c0_147] : memref<10x768xbf16, #tpu.memory_space<vmem>>, vector<7x768xbf16>
    %c2_148 = arith.constant 2 : index
    %c0_149 = arith.constant 0 : index
    %c0_150 = arith.constant 0 : index
    %254 = vector.load %arg8[%c2_148, %c0_149, %c0_150] : memref<4x768x128xbf16, #tpu.memory_space<vmem>>, vector<1x768x128xbf16>
    %255 = vector.shape_cast %254 : vector<1x768x128xbf16> to vector<768x128xbf16>
    %cst_151 = arith.constant dense<0.000000e+00> : vector<7x128xf32>
    %256 = tpu.matmul %253, %255, %cst_151 {dimension_numbers = #tpu.dot_dimension_numbers<[1], [0], [0], [1], [0, 0, 1, 1], [], []>} : vector<7x768xbf16>, vector<768x128xbf16>, vector<7x128xf32> -> vector<7x128xf32>
    %257 = arith.addf %252, %256 : vector<7x128xf32>
    %c3_152 = arith.constant 3 : index
    %c0_153 = arith.constant 0 : index
    %258 = vector.load %arg16[%c3_152, %c0_153] : memref<10x768xbf16, #tpu.memory_space<vmem>>, vector<7x768xbf16>
    %c3_154 = arith.constant 3 : index
    %c0_155 = arith.constant 0 : index
    %c0_156 = arith.constant 0 : index
    %259 = vector.load %arg8[%c3_154, %c0_155, %c0_156] : memref<4x768x128xbf16, #tpu.memory_space<vmem>>, vector<1x768x128xbf16>
    %260 = vector.shape_cast %259 : vector<1x768x128xbf16> to vector<768x128xbf16>
    %cst_157 = arith.constant dense<0.000000e+00> : vector<7x128xf32>
    %261 = tpu.matmul %258, %260, %cst_157 {dimension_numbers = #tpu.dot_dimension_numbers<[1], [0], [0], [1], [0, 0, 1, 1], [], []>} : vector<7x768xbf16>, vector<768x128xbf16>, vector<7x128xf32> -> vector<7x128xf32>
    %262 = arith.addf %257, %261 : vector<7x128xf32>
    %c0_158 = arith.constant 0 : index
    %c0_159 = arith.constant 0 : index
    %263 = vector.load %arg9[%c0_158, %c0_159] : memref<1x128xf32, #tpu.memory_space<vmem>>, vector<1x128xf32>
    %264 = vector.broadcast %263 : vector<1x128xf32> to vector<7x128xf32>
    %265 = arith.addf %262, %264 : vector<7x128xf32>
    %266 = vector.extract_strided_slice %265 {offsets = [0, 0], sizes = [2, 128], strides = [1, 1]} : vector<7x128xf32> to vector<2x128xf32>
    %c0_160 = arith.constant 0 : index
    %c0_161 = arith.constant 0 : index
    %c0_162 = arith.constant 0 : index
    %267 = vector.load %arg12[%c0_160, %c0_161, %c0_162] : memref<2x2x128xf32, #tpu.memory_space<vmem>>, vector<1x2x128xf32>
    %268 = vector.shape_cast %267 : vector<1x2x128xf32> to vector<2x128xf32>
    %269 = vector.shape_cast %266 : vector<2x128xf32> to vector<1x2x128xf32>
    tpu.vector_store %arg12[%c0_160, %c0_161, %c0_162], %269 {strides = array<i32>} : memref<2x2x128xf32, #tpu.memory_space<vmem>>, vector<1x2x128xf32>,
    %270 = vector.extract_strided_slice %265 {offsets = [5, 0], sizes = [2, 128], strides = [1, 1]} : vector<7x128xf32> to vector<2x128xf32>
    %c1_163 = arith.constant 1 : index
    %c0_164 = arith.constant 0 : index
    %c0_165 = arith.constant 0 : index
    %271 = vector.load %arg12[%c1_163, %c0_164, %c0_165] : memref<2x2x128xf32, #tpu.memory_space<vmem>>, vector<1x2x128xf32>
    %272 = vector.shape_cast %271 : vector<1x2x128xf32> to vector<2x128xf32>
    %273 = vector.shape_cast %270 : vector<2x128xf32> to vector<1x2x128xf32>
    tpu.vector_store %arg12[%c1_163, %c0_164, %c0_165], %273 {strides = array<i32>} : memref<2x2x128xf32, #tpu.memory_space<vmem>>, vector<1x2x128xf32>,
    return
  }
  func.func @transform_0(%arg0: i32) -> (i32, i32, i32) {
    %c0_i32 = arith.constant 0 : i32
    %c0_i32_0 = arith.constant 0 : i32
    %c0_i32_1 = arith.constant 0 : i32
    return %arg0, %c0_i32, %c0_i32_0 : i32, i32, i32
  }
  func.func @transform_1(%arg0: i32) -> (i32, i32) {
    %c0_i32 = arith.constant 0 : i32
    %c0_i32_0 = arith.constant 0 : i32
    %c0_i32_1 = arith.constant 0 : i32
    return %c0_i32, %c0_i32_0 : i32, i32
  }
  func.func @transform_2(%arg0: i32) -> (i32, i32) {
    %c0_i32 = arith.constant 0 : i32
    %c0_i32_0 = arith.constant 0 : i32
    %c0_i32_1 = arith.constant 0 : i32
    return %c0_i32, %c0_i32_0 : i32, i32
  }
  func.func @transform_3(%arg0: i32) -> (i32, i32, i32) {
    %c0_i32 = arith.constant 0 : i32
    %c0_i32_0 = arith.constant 0 : i32
    %c0_i32_1 = arith.constant 0 : i32
    %c0_i32_2 = arith.constant 0 : i32
    return %c0_i32, %c0_i32_0, %c0_i32_1 : i32, i32, i32
  }
  func.func @transform_4(%arg0: i32) -> (i32, i32) {
    %c0_i32 = arith.constant 0 : i32
    %c0_i32_0 = arith.constant 0 : i32
    %c0_i32_1 = arith.constant 0 : i32
    return %c0_i32, %c0_i32_0 : i32, i32
  }
  func.func @transform_5(%arg0: i32) -> (i32, i32, i32) {
    %c0_i32 = arith.constant 0 : i32
    %c0_i32_0 = arith.constant 0 : i32
    %c0_i32_1 = arith.constant 0 : i32
    %c0_i32_2 = arith.constant 0 : i32
    return %c0_i32, %c0_i32_0, %c0_i32_1 : i32, i32, i32
  }
  func.func @transform_6(%arg0: i32) -> (i32, i32) {
    %c0_i32 = arith.constant 0 : i32
    %c0_i32_0 = arith.constant 0 : i32
    %c0_i32_1 = arith.constant 0 : i32
    return %c0_i32, %c0_i32_0 : i32, i32
  }
  func.func @transform_7(%arg0: i32) -> (i32, i32, i32) {
    %c0_i32 = arith.constant 0 : i32
    %c0_i32_0 = arith.constant 0 : i32
    %c0_i32_1 = arith.constant 0 : i32
    %c0_i32_2 = arith.constant 0 : i32
    return %c0_i32, %c0_i32_0, %c0_i32_1 : i32, i32, i32
  }
  func.func @transform_8(%arg0: i32) -> (i32, i32) {
    %c0_i32 = arith.constant 0 : i32
    %c0_i32_0 = arith.constant 0 : i32
    %c0_i32_1 = arith.constant 0 : i32
    return %c0_i32, %c0_i32_0 : i32, i32
  }
  func.func @transform_9(%arg0: i32) -> (i32, i32, i32) {
    %c0_i32 = arith.constant 0 : i32
    %c0_i32_0 = arith.constant 0 : i32
    %c0_i32_1 = arith.constant 0 : i32
    return %arg0, %c0_i32, %c0_i32_0 : i32, i32, i32
  }
  func.func @transform_10(%arg0: i32) -> (i32, i32, i32) {
    %c0_i32 = arith.constant 0 : i32
    %c0_i32_0 = arith.constant 0 : i32
    %c0_i32_1 = arith.constant 0 : i32
    return %arg0, %c0_i32, %c0_i32_0 : i32, i32, i32
  }
  func.func @transform_11(%arg0: i32) -> (i32, i32, i32) {
    %c0_i32 = arith.constant 0 : i32
    %c0_i32_0 = arith.constant 0 : i32
    %c0_i32_1 = arith.constant 0 : i32
    return %arg0, %c0_i32, %c0_i32_0 : i32, i32, i32
  }
}

</mosaic_0001>

<bundles_post_ra>
// kernel: tpu_custom_call.1
= control target key start
LH: loop header
LB: loop body
LE: loop exit
PB: predicated region body
PF: predicated region fallthrough
CT: control target
= control target key end

     0   :  { %s20601_s0 = inlined_call_operand.hbm [shape: bf16[2,16,192], index: 0, kind: input, shape index: {}]   ;;  %s20602_s1 = inlined_call_operand.hbm [shape: bf16[192,512], index: 1, kind: input, shape index: {}]   ;;  %s20603_s2 = inlined_call_operand.hbm [shape: f32[1,512], index: 2, kind: input, shape index: {}]   ;;  %s20604_s3 = inlined_call_operand.hbm [shape: bf16[4,512,512], index: 3, kind: input, shape index: {}]   ;;  %s20605_s4 = inlined_call_operand.hbm [shape: f32[1,512], index: 4, kind: input, shape index: {}]   ;;  %s20606_s5 = inlined_call_operand.hbm [shape: bf16[4,512,768], index: 5, kind: input, shape index: {}]   ;;  %s20607_s6 = inlined_call_operand.hbm [shape: f32[1,768], index: 6, kind: input, shape index: {}]   ;;  %s20608_s7 = inlined_call_operand.hbm [shape: bf16[4,768,128], index: 7, kind: input, shape index: {}]   ;;  %s20609_s8 = inlined_call_operand.hbm [shape: f32[1,128], index: 8, kind: input, shape index: {}]   ;;  %s20610_s9 = inlined_call_operand.hbm [shape: f32[4,4,512], index: 9, kind: output, shape index: {0}]   ;;  %s20611_s10 = inlined_call_operand.vmem [shape: f32[4,3,768], index: 10, kind: output, shape index: {1}]   ;;  %s20612_s11 = inlined_call_operand.hbm [shape: f32[4,2,128], index: 11, kind: output, shape index: {2}]  }
   0x1   :  { %20627 = sst [smem:[#allocation31_spill]] %s20610_s9 }
   0x2   :  { %20628 = sst [smem:[#allocation32_spill]] %s20611_s10 }
   0x3   :  { %20629 = sst [smem:[#allocation33_spill]] %s20612_s11 }
   0x4   :  { %17 = vsyncpa [#allocation7], 0 }
   0x5   :  { %19 = vsyncpa [#allocation7 + $0x1], 0 }
   0x6   :  { %20 = vsyncpa [#allocation10], 0 }
   0x7   :  { %21 = vsyncpa [#allocation13], 0 }
   0x8   :  { %22 = vsyncpa [#allocation16], 0 }
   0x9   :  { %23 = vsyncpa [#allocation19], 0 }
   0xa   :  { %24 = vsyncpa [#allocation8], 0 }
   0xb   :  { %26 = vsyncpa [#allocation8 + $0x1], 0 }
   0xc   :  { %27 = vsyncpa [#allocation23], 0 }
   0xd   :  { %29 = vsyncpa [#allocation23 + $0x1], 0  ;;  %s19280_s17 = smov 0   ;;  %s19282_s18 = smov 0  }
   0xe   :  { %s19284_s19 = smov 0   ;;  %s19286_s20 = smov 0  }
   0xf LB: > { %s19197_s21 = smov [#allocation9]   ;;  %s19301_s23 = sadd.s32 4294967295, %s19195_s20   ;;  %s19195_s20 = sphi %s19286_s20, %s20758_s20   ;;  %s19191_s19 = sphi %s19284_s19, %s20757_s19   ;;  %s19187_s18 = sphi %s19282_s18, %s20756_s18   ;;  %s19183_s17 = sphi %s19280_s17, %s20755_s17  }
  0x10   : > { %s324_s22 = sshll.u32 %s19197_s21, 4  ;;  %p14385_p0 = scmp.ge.s32.totalorder %s19195_s20, 1  ;;  %s19306_s22 = int_to_ptr.vmem [resolvable:$true] %s324_s22 }
  0x11   : > { %p20615_p1 = scmp.eq.s32.totalorder %s19301_s23, 0  ;;  %p312_p2 = scmp.lt.s32.totalorder %s19195_s20, 3 }
  0x12   : > { %s19198_s25 = smov [#allocation12]   ;;  %s19199_s28 = smov [#allocation15]  }
  0x13   : > { %p19308_p3 = pnand %p14385_p0, %p312_p2  ;;  %s348_s26 = sshll.u32 %s19198_s25, 4  ;;  %s19321_s26 = int_to_ptr.vmem [resolvable:$true] %s348_s26 }
  0x14   : > { %s372_s29 = sshll.u32 %s19199_s28, 4  ;;  %s18827_s13 = scalar_lea.hbm %s20602_s1, 6144  ;;  %s19323_s29 = int_to_ptr.vmem [resolvable:$true] %s372_s29 }
  0x15   : > { %s20630_s24 = scalar_select %p19308_p3, 1, 0 }
  0x16   : > { %p16470_p5 = pneg %p19308_p3  ;;  %p18828_p7 = scmp.ne.s32.totalorder %s20602_s1, %s18827_s13 }
  0x17   : > { %p18834_p11 = scmp.lt.u32.totalorder %s18827_s13, %s20602_s1 }
  0x18   : > { %p19317_p6 = pnand %p16470_p5, %p20615_p1 }
  0x1a   : > { %p19333_p8 = pneg %p19317_p6 }
  0x1c   : > { %p18830_p9 = pnand %p19333_p8, %p18828_p7 }
  0x1e   : > { %p18831_p10 = pneg %p18830_p9 }
  0x20   : > { %p18836_p12 = pnand %p18834_p11, %p18831_p10 }
  0x22   : > { %18839 = shalt.err (!%p18836_p12)
}
  0x23   : > { %s18840_s28 = scalar_lea.vmem %s19306_s22, 6144  ;;  %p18848_p5 = scmp.lt.s32.totalorder %s19306_s22, %s19306_s22 }
  0x24   : > { %p18841_p13 = scmp.ne.s32.totalorder %s19306_s22, %s18840_s28  ;;  %p18849_p4 = scmp.lt.s32.totalorder %s18840_s28, %s18840_s28 }
  0x26   : > { %p18843_p0 = pnand %p18841_p13, %p19333_p8  ;;  %p18850_p7 = por %p18849_p4, %p18848_p5 }
  0x28   : > { %p18844_p2 = pneg %p18843_p0 }
  0x2a   : > { %p18851_p9 = pnand %p18850_p7, %p18844_p2 }
  0x2c   : > { %18854 = shalt.err (!%p18851_p9)
}
  0x2d   : > { %s19200_s30 = smov 256   ;;  %s19201_s12 = smov 16  }
  0x2e   : > { %16473 = dma.hbm_to_vmem [thread:$0]  (!%p19317_p6), %s20602_s1, 6144, %s19306_s22, [#allocation10], %s19200_s30, %s19200_s30, %s19201_s12  }
  0x2f   : > { %s18855_s25 = scalar_lea.hbm %s20604_s3, 65536 }
  0x30   : > { %p18856_p4 = scmp.ne.s32.totalorder %s20604_s3, %s18855_s25  ;;  %p18862_p12 = scmp.lt.u32.totalorder %s18855_s25, %s20604_s3 }
  0x32   : > { %p18858_p10 = pnand %p18856_p4, %p19333_p8 }
  0x34   : > { %p18859_p11 = pneg %p18858_p10 }
  0x36   : > { %p18864_p13 = pnand %p18862_p12, %p18859_p11 }
  0x38   : > { %18867 = shalt.err (!%p18864_p13)
}
  0x39   : > { %s18868_s22 = scalar_lea.vmem %s19321_s26, 65536  ;;  %p18876_p7 = scmp.lt.s32.totalorder %s19321_s26, %s19321_s26 }
  0x3a   : > { %p18869_p0 = scmp.ne.s32.totalorder %s19321_s26, %s18868_s22  ;;  %p18877_p9 = scmp.lt.s32.totalorder %s18868_s22, %s18868_s22 }
  0x3c   : > { %p18871_p2 = pnand %p18869_p0, %p19333_p8  ;;  %p18878_p4 = por %p18877_p9, %p18876_p7 }
  0x3e   : > { %p18872_p5 = pneg %p18871_p2 }
  0x40   : > { %p18879_p10 = pnand %p18878_p4, %p18872_p5 }
  0x42   : > { %18882 = shalt.err (!%p18879_p10)
}
  0x43   : > { %16479 = dma.hbm_to_vmem [thread:$0]  (!%p19317_p6), %s20604_s3, 65536, %s19321_s26, [#allocation13], %s19200_s30, %s19200_s30, %s19201_s12  }
  0x44   : > { %s18883_s14 = scalar_lea.hbm %s20606_s5, 98304 }
  0x45   : > { %p18884_p11 = scmp.ne.s32.totalorder %s20606_s5, %s18883_s14  ;;  %p18890_p0 = scmp.lt.u32.totalorder %s18883_s14, %s20606_s5 }
  0x47   : > { %p18886_p12 = pnand %p18884_p11, %p19333_p8 }
  0x49   : > { %p18887_p13 = pneg %p18886_p12 }
  0x4b   : > { %p18892_p2 = pnand %p18890_p0, %p18887_p13 }
  0x4d   : > { %18895 = shalt.err (!%p18892_p2)
}
  0x4e   : > { %s18896_s26 = scalar_lea.vmem %s19323_s29, 98304  ;;  %p18904_p4 = scmp.lt.s32.totalorder %s19323_s29, %s19323_s29 }
  0x4f   : > { %p18897_p5 = scmp.ne.s32.totalorder %s19323_s29, %s18896_s26  ;;  %p18905_p10 = scmp.lt.s32.totalorder %s18896_s26, %s18896_s26 }
  0x51   : > { %p18899_p7 = pnand %p18897_p5, %p19333_p8  ;;  %p18906_p11 = por %p18905_p10, %p18904_p4 }
  0x53   : > { %p18900_p9 = pneg %p18899_p7 }
  0x55   : > { %p18907_p12 = pnand %p18906_p11, %p18900_p9 }
  0x57   : > { %18910 = shalt.err (!%p18907_p12)
}
  0x58   : > { %s19202_s30 = smov 384   ;;  %s19203_s12 = smov 24  }
  0x59   : > { %16485 = dma.hbm_to_vmem [thread:$0]  (!%p19317_p6), %s20606_s5, 98304, %s19323_s29, [#allocation16], %s19202_s30, %s19202_s30, %s19203_s12  }
  0x5a   : > { %s19204_s10 = smov [#allocation18]   ;;  %s18911_s15 = scalar_lea.hbm %s20608_s7, 24576 }
  0x5b   : > { %s396_s11 = sshll.u32 %s19204_s10, 4  ;;  %p18912_p13 = scmp.ne.s32.totalorder %s20608_s7, %s18911_s15  ;;  %s397_s11 = int_to_ptr.vmem [resolvable:$true] %s396_s11 }
  0x5c   : > { %p18918_p5 = scmp.lt.u32.totalorder %s18911_s15, %s20608_s7 }
  0x5d   : > { %p18914_p0 = pnand %p18912_p13, %p19333_p8 }
  0x5f   : > { %p18915_p2 = pneg %p18914_p0 }
  0x61   : > { %p18920_p7 = pnand %p18918_p5, %p18915_p2 }
  0x63   : > { %18923 = shalt.err (!%p18920_p7)
}
  0x64   : > { %s18924_s29 = scalar_lea.vmem %s397_s11, 24576  ;;  %p18932_p11 = scmp.lt.s32.totalorder %s397_s11, %s397_s11 }
  0x65   : > { %p18925_p9 = scmp.ne.s32.totalorder %s397_s11, %s18924_s29  ;;  %p18933_p12 = scmp.lt.s32.totalorder %s18924_s29, %s18924_s29 }
  0x67   : > { %p18927_p4 = pnand %p18925_p9, %p19333_p8  ;;  %p18934_p1 = por %p18933_p12, %p18932_p11 }
  0x69   : > { %p18928_p10 = pneg %p18927_p4 }
  0x6b   : > { %p18935_p3 = pnand %p18934_p1, %p18928_p10 }
  0x6d   : > { %18938 = shalt.err (!%p18935_p3)
}
  0x6e   : > { %s19205_s30 = smov 64   ;;  %s19206_s12 = smov 4  }
  0x6f   : > { %16491 = dma.hbm_to_vmem [thread:$0]  (!%p19317_p6), %s20608_s7, 24576, %s397_s11, [#allocation19], %s19205_s30, %s19205_s30, %s19206_s12  }
  0x70   : > { %s19207_s10 = smov [#allocation11]   ;;  %s19208_s14 = smov [#allocation14]  }
  0x71   : > { %s338_s13 = sshll.u32 %s19207_s10, 4  ;;  %s362_s15 = sshll.u32 %s19208_s14, 4  ;;  %s339_s13 = int_to_ptr.vmem [resolvable:$true] %s338_s13  ;;  %s19418_s15 = int_to_ptr.vmem [resolvable:$true] %s362_s15 }
  0x72   : > { %s18939_s28 = scalar_lea.hbm %s20603_s2, 64 }
  0x73   : > { %p18940_p1 = scmp.ne.s32.totalorder %s20603_s2, %s18939_s28  ;;  %p18946_p0 = scmp.lt.u32.totalorder %s18939_s28, %s20603_s2 }
  0x75   : > { %p18942_p3 = pnand %p18940_p1, %p19333_p8 }
  0x77   : > { %p18943_p13 = pneg %p18942_p3 }
  0x79   : > { %p18948_p2 = pnand %p18946_p0, %p18943_p13 }
  0x7b   : > { %18951 = shalt.err (!%p18948_p2)
}
  0x7c   : > { %s18952_s30 = scalar_lea.vmem %s339_s13, 64  ;;  %p18960_p4 = scmp.lt.s32.totalorder %s339_s13, %s339_s13 }
  0x7d   : > { %p18953_p5 = scmp.ne.s32.totalorder %s339_s13, %s18952_s30  ;;  %p18961_p10 = scmp.lt.s32.totalorder %s18952_s30, %s18952_s30 }
  0x7f   : > { %p18955_p7 = pnand %p18953_p5, %p19333_p8  ;;  %p18962_p11 = por %p18961_p10, %p18960_p4 }
  0x81   : > { %p18956_p9 = pneg %p18955_p7 }
  0x83   : > { %p18963_p12 = pnand %p18962_p11, %p18956_p9 }
  0x85   : > { %18966 = shalt.err (!%p18963_p12)
}
  0x86   : > { %16476 = dma.hbm_to_vmem [thread:$0]  (!%p19317_p6), %s20603_s2, 64, %s339_s13, [#allocation10]  }
  0x87   : > { %s18967_s21 = scalar_lea.hbm %s20605_s4, 64 }
  0x88   : > { %p18968_p1 = scmp.ne.s32.totalorder %s20605_s4, %s18967_s21  ;;  %p18974_p0 = scmp.lt.u32.totalorder %s18967_s21, %s20605_s4 }
  0x8a   : > { %p18970_p3 = pnand %p18968_p1, %p19333_p8 }
  0x8c   : > { %p18971_p13 = pneg %p18970_p3 }
  0x8e   : > { %p18976_p2 = pnand %p18974_p0, %p18971_p13 }
  0x90   : > { %18979 = shalt.err (!%p18976_p2)
}
  0x91   : > { %s18980_s13 = scalar_lea.vmem %s19418_s15, 64  ;;  %p18988_p4 = scmp.lt.s32.totalorder %s19418_s15, %s19418_s15 }
  0x92   : > { %p18981_p5 = scmp.ne.s32.totalorder %s19418_s15, %s18980_s13  ;;  %p18989_p10 = scmp.lt.s32.totalorder %s18980_s13, %s18980_s13 }
  0x94   : > { %p18983_p7 = pnand %p18981_p5, %p19333_p8  ;;  %p18990_p11 = por %p18989_p10, %p18988_p4 }
  0x96   : > { %p18984_p9 = pneg %p18983_p7 }
  0x98   : > { %p18991_p12 = pnand %p18990_p11, %p18984_p9 }
  0x9a   : > { %18994 = shalt.err (!%p18991_p12)
}
  0x9b   : > { %16482 = dma.hbm_to_vmem [thread:$0]  (!%p19317_p6), %s20605_s4, 64, %s19418_s15, [#allocation13]  }
  0x9c   : > { %s19209_s30 = smov [#allocation17]   ;;  %s19210_s9 = smov [#allocation20]  }
  0x9d   : > { %s386_s12 = sshll.u32 %s19209_s30, 4  ;;  %s410_s10 = sshll.u32 %s19210_s9, 4  ;;  %s387_s12 = int_to_ptr.vmem [resolvable:$true] %s386_s12  ;;  %s19461_s10 = int_to_ptr.vmem [resolvable:$true] %s410_s10 }
  0x9e   : > { %s18995_s25 = scalar_lea.hbm %s20607_s6, 96 }
  0x9f   : > { %p18996_p1 = scmp.ne.s32.totalorder %s20607_s6, %s18995_s25  ;;  %p19002_p0 = scmp.lt.u32.totalorder %s18995_s25, %s20607_s6 }
  0xa1   : > { %p18998_p3 = pnand %p18996_p1, %p19333_p8 }
  0xa3   : > { %p18999_p13 = pneg %p18998_p3 }
  0xa5   : > { %p19004_p2 = pnand %p19002_p0, %p18999_p13 }
  0xa7   : > { %19007 = shalt.err (!%p19004_p2)
}
  0xa8   : > { %s19008_s13 = scalar_lea.vmem %s387_s12, 96  ;;  %p19016_p4 = scmp.lt.s32.totalorder %s387_s12, %s387_s12 }
  0xa9   : > { %p19009_p5 = scmp.ne.s32.totalorder %s387_s12, %s19008_s13  ;;  %p19017_p10 = scmp.lt.s32.totalorder %s19008_s13, %s19008_s13 }
  0xab   : > { %p19011_p7 = pnand %p19009_p5, %p19333_p8  ;;  %p19018_p11 = por %p19017_p10, %p19016_p4 }
  0xad   : > { %p19012_p9 = pneg %p19011_p7 }
  0xaf   : > { %p19019_p12 = pnand %p19018_p11, %p19012_p9 }
  0xb1   : > { %19022 = shalt.err (!%p19019_p12)
}
  0xb2   : > { %16488 = dma.hbm_to_vmem [thread:$0]  (!%p19317_p6), %s20607_s6, 96, %s387_s12, [#allocation16]  }
  0xb3   : > { %s19023_s14 = scalar_lea.hbm %s20609_s8, 16 }
  0xb4   : > { %p19024_p1 = scmp.ne.s32.totalorder %s20609_s8, %s19023_s14  ;;  %p19030_p0 = scmp.lt.u32.totalorder %s19023_s14, %s20609_s8 }
  0xb6   : > { %p19026_p3 = pnand %p19024_p1, %p19333_p8 }
  0xb8   : > { %p19027_p13 = pneg %p19026_p3 }
  0xba   : > { %p19032_p2 = pnand %p19030_p0, %p19027_p13 }
  0xbc   : > { %19035 = shalt.err (!%p19032_p2)
}
  0xbd   : > { %s19036_s12 = scalar_lea.vmem %s19461_s10, 16  ;;  %s19043_s29 = scalar_lea.vmem %s19461_s10, 32 }
  0xbe   : > { %p19037_p5 = scmp.ne.s32.totalorder %s19461_s10, %s19036_s12  ;;  %p19044_p4 = scmp.lt.s32.totalorder %s19461_s10, %s19461_s10 }
  0xbf   : > { %p19045_p10 = scmp.lt.s32.totalorder %s19043_s29, %s19036_s12 }
  0xc0   : > { %p19039_p7 = pnand %p19037_p5, %p19333_p8 }
  0xc1   : > { %p19046_p11 = por %p19045_p10, %p19044_p4 }
  0xc2   : > { %p19040_p9 = pneg %p19039_p7 }
  0xc4   : > { %p19047_p12 = pnand %p19046_p11, %p19040_p9 }
  0xc6   : > { %19050 = shalt.err (!%p19047_p12)
}
  0xc7   : > { %16494 = dma.hbm_to_vmem [thread:$0]  (!%p19317_p6), %s20609_s8, 16, %s19461_s10, [#allocation19]  }
  0xc8   : > { %s14384_s27 = sadd.s32 4294967294, %s19195_s20   ;;  %s19507_s16 = sadd.s32 1, %s19195_s20  }
  0xc9   : > { %s39_s22 = ssub.s32 %s19195_s20, %s19507_s16  ;;  %s42_s11 = sadd.s32 1, %s19191_s19 }
  0xca   : > { %p40_p8 = scmp.eq.s32.totalorder %s39_s22, 0  ;;  %p49_p1 = scmp.ne.s32.totalorder %s19191_s19, %s19187_s18 }
  0xcb   : > { %p50_p3 = scmp.eq.s32.totalorder %s19195_s20, 0  ;;  %p55_p13 = scmp.ne.s32.totalorder %s19187_s18, %s19183_s17 }
  0xcc   : > { %s19518_s30 = scalar_select %p40_p8, %s19191_s19, %s42_s11  }
  0xcd   : > { %p19520_p0 = por %p50_p3, %p49_p1  ;;  %p20634_p2 = scmp.eq.s32.totalorder %s19301_s23, 0 }
  0xce   : > { %p247_p5 = scmp.eq.s32.totalorder %s19301_s23, 1  ;;  %p253_p7 = scmp.eq.s32.totalorder %s14384_s27, 1 }
  0xcf   : > { %p19526_p6 = por %p20634_p2, %p55_p13  ;;  %p16514_p9 = scmp.lt.s32.totalorder %s19195_s20, 2 }
  0xd0   : > { %s421_s14 = sand.u32 1, %s19191_s19   ;;  %p19533_p4 = por %p247_p5, %p49_p1 }
  0xd1   : > { %p19537_p10 = por %p253_p7, %p55_p13  ;;  %s14395_s28 = sshll.u32 %s421_s14, 4 }
  0xd2   : > { %s20636_s21 = scalar_select %p19533_p4, 1, 0 }
  0xd3   : > { %s20637_s25 = scalar_select %p19537_p10, 1, 0 }
  0xd4   : > { %s16004_s26 = sshll.u32 %s19195_s20, 8  ;;  %s425_s13 = scalar_lea.vmem [#allocation6], %s14395_s28 }
  0xd5   : > { %s19545_s15 = scalar_lea.hbm %s20601_s0, %s16004_s26  ;;  %s432_s27 = sshll.u32 %s425_s13, 4  ;;  %s19547_s27 = int_to_ptr.vmem [resolvable:$true] %s432_s27 }
  0xd6   : > { %p19551_p11 = pnand %p16514_p9, %p19520_p0  ;;  %s19555_s11 = scalar_lea.sflag [#allocation7], %s421_s14 }
  0xd7   : > { %s19051_s12 = scalar_lea.hbm %s19545_s15, 256  ;;  %s19056_s9 = scalar_lea.hbm %s20601_s0, 512 }
  0xd8   : > { %p19052_p12 = scmp.ne.s32.totalorder %s19545_s15, %s19051_s12  ;;  %p19053_p8 = pneg %p19551_p11 }
  0xd9   : > { %p19057_p13 = scmp.lt.u32.totalorder %s19545_s15, %s20601_s0  ;;  %p19058_p0 = scmp.lt.u32.totalorder %s19056_s9, %s19051_s12 }
  0xda   : > { %p19054_p1 = pnand %p19053_p8, %p19052_p12  ;;  %p19060_p5 = scmp.lt.u32.totalorder %s19051_s12, %s19545_s15 }
  0xdb   : > { %p19059_p2 = por %p19058_p0, %p19057_p13 }
  0xdc   : > { %p19055_p3 = pneg %p19054_p1 }
  0xdd   : > { %p19061_p7 = por %p19060_p5, %p19059_p2 }
  0xdf   : > { %p19062_p9 = pnand %p19061_p7, %p19055_p3 }
  0xe1   : > { %19065 = shalt.err (!%p19062_p9)
}
  0xe2   : > { %s19066_s14 = scalar_lea.vmem %s19547_s27, 256  ;;  %s19211_s28 = smov [#allocation6]  }
  0xe3   : > { %p19067_p12 = scmp.ne.s32.totalorder %s19547_s27, %s19066_s14  ;;  %s19071_s26 = sshll.u32 %s19211_s28, 4  ;;  %s19072_s26 = int_to_ptr.vmem [resolvable:$false] %s19071_s26 }
  0xe4   : > { %s19073_s29 = scalar_lea.vmem %s19072_s26, 512  ;;  %p19074_p4 = scmp.lt.s32.totalorder %s19547_s27, %s19072_s26 }
  0xe5   : > { %p19069_p1 = pnand %p19067_p12, %p19053_p8  ;;  %p19075_p13 = scmp.lt.s32.totalorder %s19073_s29, %s19066_s14 }
  0xe7   : > { %p19070_p10 = pneg %p19069_p1  ;;  %p19076_p0 = por %p19075_p13, %p19074_p4 }
  0xe9   : > { %p19077_p2 = pnand %p19076_p0, %p19070_p10 }
  0xeb   : > { %19080 = shalt.err (!%p19077_p2)
}
  0xec   : > { %s19212_s12 = smov 128   ;;  %s19213_s9 = smov 8  }
  0xed   : > { %16498 = dma.hbm_to_vmem [thread:$0]  (!%p19551_p11), %s19545_s15, 256, %s19547_s27, %s19555_s11, %s19212_s12, %s19212_s12, %s19213_s9  }
  0xee   : > { %p20639_p8 = scmp.ne.s32.totalorder %s20630_s24, 0 }
  0xef   : > { %s19586_s13 = sand.u32 (!%p20639_p8), 1, %s19187_s18  }
  0xf0   : > { %444 = sbr.rel (%p20639_p8) target bundleno = 3270 (0xcc6), region = 56  ;;  %s14399_s14 = sshll.u32 (!%p20639_p8), %s19586_s13, 4 }
  0xf1   : > { %s447_s28 = scalar_lea.sflag (!%p20639_p8), [#allocation7], %s19586_s13  ;;  %s19590_s26 = scalar_lea.vmem (!%p20639_p8), [#allocation6], %s14399_s14 }
  0xf7   : > { %19154 = dma.done.wait (%p19526_p6), %s447_s28, 256  }
  0xf8   : > { %19156 = vsyncadd (%p19526_p6), %s447_s28, 4294967040  ;;  %p20640_p4 = scmp.eq.s32.totalorder %s19301_s23, 0 }
  0xfa   : > { %19158 = dma.done.wait (%p20640_p4), [#allocation10], 6208   ;;  %p20641_p10 = pmov %p20640_p4 }
  0xfb   : > { %p20642_p11 = pmov %p20640_p4 }
  0xfc   : > { %19160 = vsyncadd (%p20641_p10), [#allocation10], 4294961088 }
  0xfd   : > { %19162 = dma.done.wait (%p20642_p11), [#allocation13], 65600   ;;  %p20643_p3 = pmov %p20640_p4 }
  0xff   : > { %19164 = vsyncadd (%p20643_p3), [#allocation13], 4294901696  ;;  %p20644_p5 = pmov %p20643_p3 }
 0x100   : > { %p20645_p7 = pmov %p20643_p3 }
 0x101   : > { %19166 = dma.done.wait (%p20644_p5), [#allocation16], 98400  }
 0x102   : > { %19168 = vsyncadd (%p20645_p7), [#allocation16], 4294868896  ;;  %p20646_p6 = pmov %p20643_p3 }
 0x103   : > { %p20647_p9 = pmov %p20643_p3 }
 0x104   : > { %19170 = dma.done.wait (%p20646_p6), [#allocation19], 24592  }
 0x105   : > { %19172 = vsyncadd (%p20647_p9), [#allocation19], 4294942704  ;;  %v16576_v0 = vld [vmem:[#allocation9 + $0x4] ss:$16 sps:$4 sm:$0xff]   ;;  %v16578_v1 = vld [vmem:[#allocation9 + $0xc] ss:$16 sps:$4 sm:$0xff]  }
 0x106   : > { %989 = vmatprep.subr.bf16.mxu0 %v16576_v0  ;;  %v16580_v2 = vld [vmem:[#allocation9] ss:$16 sps:$4 sm:$0xff]   ;;  %v16581_v3 = vld [vmem:[#allocation9 + $0x8] ss:$16 sps:$4 sm:$0xff]   ;;  %1032 = vmatprep.subr.bf16.mxu1 %v16578_v1  ;;  %v16582_v4 = vld [vmem:[#allocation9 + $0x24] ss:$16 sps:$4 sm:$0xff]  }
 0x107   : > { %990 = vmatpush1.bf16.msra.mxu0 %v16580_v2  ;;  %1033 = vmatpush1.bf16.msra.mxu1 %v16581_v3  ;;  %v16584_v5 = vld [vmem:[#allocation9 + $0x2c] ss:$16 sps:$4 sm:$0xff]   ;;  %v16586_v6 = vld [vmem:[#allocation9 + $0x20] ss:$16 sps:$4 sm:$0xff]   ;;  %v16587_v7 = vld [vmem:[#allocation9 + $0x28] ss:$16 sps:$4 sm:$0xff]  }
 0x108   : > { %991 = vmatprep.subr.bf16.mxu0 %v16582_v4  ;;  %1034 = vmatprep.subr.bf16.mxu1 %v16584_v5  ;;  %v16588_v8 = vld [vmem:[#allocation9 + $0x44] ss:$16 sps:$4 sm:$0xff]   ;;  %v16590_v9 = vld [vmem:[#allocation9 + $0x4c] ss:$16 sps:$4 sm:$0xff]   ;;  %v16592_v10 = vld [vmem:[#allocation9 + $0x40] ss:$16 sps:$4 sm:$0xff]  }
 0x109   : > { %v16593_v11 = vld [vmem:[#allocation9 + $0x48] ss:$16 sps:$4 sm:$0xff]   ;;  %v16594_v12 = vld [vmem:[#allocation9 + $0x64] ss:$16 sps:$4 sm:$0xff]   ;;  %v16596_v13 = vld [vmem:[#allocation9 + $0x6c] ss:$16 sps:$4 sm:$0xff]  }
 0x10a   : > { %v16598_v14 = vld [vmem:[#allocation9 + $0x60] ss:$16 sps:$4 sm:$0xff]   ;;  %v16599_v15 = vld [vmem:[#allocation9 + $0x68] ss:$16 sps:$4 sm:$0xff]   ;;  %v16600_v16 = vld [vmem:[#allocation9 + $0x84] ss:$16 sps:$4 sm:$0xff]  }
 0x10b   : > { %992 = vmatpush1.bf16.msra.mxu0 %v16586_v6  ;;  %1035 = vmatpush1.bf16.msra.mxu1 %v16587_v7  ;;  %v16602_v17 = vld [vmem:[#allocation9 + $0x8c] ss:$16 sps:$4 sm:$0xff]   ;;  %v16604_v18 = vld [vmem:[#allocation9 + $0x80] ss:$16 sps:$4 sm:$0xff]   ;;  %v16605_v19 = vld [vmem:[#allocation9 + $0x88] ss:$16 sps:$4 sm:$0xff]  }
 0x10c   : > { %993 = vmatprep.subr.bf16.mxu0 %v16588_v8  ;;  %1036 = vmatprep.subr.bf16.mxu1 %v16590_v9  ;;  %v16606_v20 = vld [vmem:[#allocation9 + $0xa4] ss:$16 sps:$4 sm:$0xff]   ;;  %v16608_v21 = vld [vmem:[#allocation9 + $0xac] ss:$16 sps:$4 sm:$0xff]   ;;  %v16610_v22 = vld [vmem:[#allocation9 + $0xa0] ss:$16 sps:$4 sm:$0xff]  }
 0x10d   : > { %v16611_v23 = vld [vmem:[#allocation9 + $0xa8] ss:$16 sps:$4 sm:$0xff]   ;;  %v16612_v24 = vld [vmem:[#allocation9 + $0xc4] ss:$16 sps:$4 sm:$0xff]   ;;  %v16614_v25 = vld [vmem:[#allocation9 + $0xcc] ss:$16 sps:$4 sm:$0xff]  }
 0x10e   : > { %v16616_v26 = vld [vmem:[#allocation9 + $0xc0] ss:$16 sps:$4 sm:$0xff]   ;;  %v16617_v27 = vld [vmem:[#allocation9 + $0xc8] ss:$16 sps:$4 sm:$0xff]   ;;  %v16618_v28 = vld [vmem:[#allocation9 + $0xe4] ss:$16 sps:$4 sm:$0xff]  }
 0x10f   : > { %994 = vmatpush1.bf16.msra.mxu0 %v16592_v10  ;;  %1037 = vmatpush1.bf16.msra.mxu1 %v16593_v11  ;;  %v16620_v29 = vld [vmem:[#allocation9 + $0xec] ss:$16 sps:$4 sm:$0xff]   ;;  %v16622_v30 = vld [vmem:[#allocation9 + $0xe0] ss:$16 sps:$4 sm:$0xff]   ;;  %v16623_v31 = vld [vmem:[#allocation9 + $0xe8] ss:$16 sps:$4 sm:$0xff]  }
 0x110   : > { %995 = vmatprep.subr.bf16.mxu0 %v16594_v12  ;;  %1038 = vmatprep.subr.bf16.mxu1 %v16596_v13  ;;  %v16624_v32 = vld [vmem:[#allocation9 + $0x104] ss:$16 sps:$4 sm:$0xff]   ;;  %v16626_v33 = vld [vmem:[#allocation9 + $0x10c] ss:$16 sps:$4 sm:$0xff]   ;;  %v16628_v34 = vld [vmem:[#allocation9 + $0x100] ss:$16 sps:$4 sm:$0xff]  }
 0x111   : > { %v16629_v35 = vld [vmem:[#allocation9 + $0x108] ss:$16 sps:$4 sm:$0xff]   ;;  %v16630_v36 = vld [vmem:[#allocation9 + $0x124] ss:$16 sps:$4 sm:$0xff]   ;;  %v16632_v37 = vld [vmem:[#allocation9 + $0x12c] ss:$16 sps:$4 sm:$0xff]  }
 0x112   : > { %vm985_vm0 = vcmask 523264   ;;  %v16650_v38 = vld [vmem:[%s19590_s26 + $0x4] ss:$8 sps:$4 sm:$0xff]   ;;  %v16634_v39 = vld [vmem:[#allocation9 + $0x120] ss:$16 sps:$4 sm:$0xff]   ;;  %vm20620_vm1 = vcmask 1040384  }
 0x113   : > { %996 = vmatpush1.bf16.msra.mxu0 %v16598_v14  ;;  %1039 = vmatpush1.bf16.msra.mxu1 %v16599_v15  ;;  %v16635_v40 = vld [vmem:[#allocation9 + $0x128] ss:$16 sps:$4 sm:$0xff]   ;;  %v16636_v41 = vld [vmem:[#allocation9 + $0x144] ss:$16 sps:$4 sm:$0xff]   ;;  %v16638_v42 = vld [vmem:[#allocation9 + $0x14c] ss:$16 sps:$4 sm:$0xff]  }
 0x114   : > { %997 = vmatprep.subr.bf16.mxu0 %v16600_v16  ;;  %1040 = vmatprep.subr.bf16.mxu1 %v16602_v17  ;;  %v16640_v43 = vld [vmem:[#allocation9 + $0x140] ss:$16 sps:$4 sm:$0xff]   ;;  %v16641_v44 = vld [vmem:[#allocation9 + $0x148] ss:$16 sps:$4 sm:$0xff]   ;;  %v16642_v45 = vld [vmem:[#allocation9 + $0x164] ss:$16 sps:$4 sm:$0xff]  }
 0x115   : > { %14462 = vmatprep.mubr.msk.bf16.mxu0 %vm985_vm0, %v16650_v38  ;;  %14463 = vmatprep.mubr.msk.bf16.mxu1 %vm985_vm0, %v16650_v38  ;;  %v16644_v46 = vld [vmem:[#allocation9 + $0x16c] ss:$16 sps:$4 sm:$0xff]   ;;  %v16646_v47 = vld [vmem:[#allocation9 + $0x160] ss:$16 sps:$4 sm:$0xff]   ;;  %v16647_v48 = vld [vmem:[#allocation9 + $0x168] ss:$16 sps:$4 sm:$0xff]  }
 0x116   : > { %v16653_v49 = vld [vmem:[#allocation12 + $0x404] ss:$16 sps:$4 sm:$0xff]   ;;  %v16651_v52 = vld [vmem:[#allocation12 + $0x400] ss:$16 sps:$4 sm:$0xff]   ;;  %vm543_vm2 = vsmask.f32 256 }
 0x117   : > { %998 = vmatpush1.bf16.msra.mxu0 %v16604_v18  ;;  %1041 = vmatpush1.bf16.msra.mxu1 %v16605_v19  ;;  %v16656_v50 = vld [vmem:[#allocation12 + $0x604] ss:$16 sps:$4 sm:$0xff]   ;;  %v16654_v53 = vld [vmem:[#allocation12 + $0x600] ss:$16 sps:$4 sm:$0xff]   ;;  %vm20621_vm3 = vcmask 1044484   ;;  %vm544_vm5 = vmand %vm20620_vm1, %vm543_vm2  ;;  %vm555_vm6 = vcmask 1042434  }
 0x118   : > { %999 = vmatprep.subr.bf16.mxu0 %v16606_v20  ;;  %1042 = vmatprep.subr.bf16.mxu1 %v16608_v21  ;;  %v16648_v51 = vld [vmem:[%s19590_s26] ss:$8 sps:$4 sm:$0xff]   ;;  %v16657_v56 = vld [vmem:[#allocation12 + $0x420] ss:$16 sps:$4 sm:$0xff]   ;;  %vm546_vm4 = vsmask.f32 4352 }
 0x119   : > { %v16659_v54 = vld [vmem:[#allocation12 + $0x424] ss:$16 sps:$4 sm:$0xff]   ;;  %v16660_v57 = vld [vmem:[#allocation12 + $0x620] ss:$16 sps:$4 sm:$0xff]   ;;  %vm574_vm7 = vsmask.f32 7946  ;;  %vm547_vm8 = vmand %vm20621_vm3, %vm546_vm4 }
 0x11a   : > { %v16662_v55 = vld [vmem:[#allocation12 + $0x624] ss:$16 sps:$4 sm:$0xff]   ;;  %v16663_v60 = vld [vmem:[#allocation12 + $0x440] ss:$16 sps:$4 sm:$0xff]   ;;  %vm558_vm9 = vcmask 1046534   ;;  %vm19616_vm11 = vmor %vm547_vm8, %vm544_vm5  ;;  %s14408_s24 = sshll.u32 %s19586_s13, 5 }
 0x11b   : > { %1000 = vmatpush1.bf16.msra.mxu0 %v16610_v22  ;;  %1043 = vmatpush1.bf16.msra.mxu1 %v16611_v23  ;;  %v16665_v58 = vld [vmem:[#allocation12 + $0x444] ss:$16 sps:$4 sm:$0xff]   ;;  %v16666_v61 = vld [vmem:[#allocation12 + $0x640] ss:$16 sps:$4 sm:$0xff]   ;;  %vm576_vm10 = vsmask.f32 7962  ;;  %vm575_vm12 = vmand %vm555_vm6, %vm574_vm7 }
 0x11c   : > { %1001 = vmatprep.subr.bf16.mxu0 %v16612_v24  ;;  %1044 = vmatprep.subr.bf16.mxu1 %v16614_v25  ;;  %v16668_v59 = vld [vmem:[#allocation12 + $0x644] ss:$16 sps:$4 sm:$0xff]   ;;  %v16669_v0 = vld [vmem:[#allocation12 + $0x460] ss:$16 sps:$4 sm:$0xff]   ;;  %vm556_vm13 = vsmask.f32 2304  ;;  %vm577_vm14 = vmand %vm558_vm9, %vm576_vm10 }
 0x11d   : > { %v16671_v62 = vld [vmem:[#allocation12 + $0x464] ss:$16 sps:$4 sm:$0xff]   ;;  %v16672_v1 = vld [vmem:[#allocation12 + $0x660] ss:$16 sps:$4 sm:$0xff]   ;;  %vm559_vm15 = vsmask.f32 6400  ;;  %vm19626_vm0 = vmor %vm577_vm14, %vm575_vm12 }
 0x11e   : > { %v16674_v63 = vld [vmem:[#allocation12 + $0x664] ss:$16 sps:$4 sm:$0xff]   ;;  %v16675_v4 = vld [vmem:[#allocation12 + $0x480] ss:$16 sps:$4 sm:$0xff]   ;;  %vm557_vm2 = vmand %vm555_vm6, %vm556_vm13  ;;  %vm20619_vm8 = vsmask.f32 7938 }
 0x11f   : > { %1002 = vmatpush1.bf16.msra.mxu0 %v16616_v26  ;;  %1045 = vmatpush1.bf16.msra.mxu1 %v16617_v27  ;;  %v16677_v2 = vld [vmem:[#allocation12 + $0x484] ss:$16 sps:$4 sm:$0xff]   ;;  %v16678_v5 = vld [vmem:[#allocation12 + $0x680] ss:$16 sps:$4 sm:$0xff]   ;;  %vm560_vm4 = vmand %vm558_vm9, %vm559_vm15  ;;  %vm20618_vm6 = vsmask.f32 7954 }
 0x120   : > { %1003 = vmatprep.subr.bf16.mxu0 %v16618_v28  ;;  %1046 = vmatprep.subr.bf16.mxu1 %v16620_v29  ;;  %v16680_v3 = vld [vmem:[#allocation12 + $0x684] ss:$16 sps:$4 sm:$0xff]   ;;  %v16681_v8 = vld [vmem:[#allocation12 + $0x4a0] ss:$16 sps:$4 sm:$0xff]   ;;  %vm19636_vm5 = vmor %vm560_vm4, %vm557_vm2  ;;  %vm1178_vm9 = vcmask 1043458   ;;  %vm1180_vm14 = vcmask 1047558  }
 0x121   : > { %v16683_v6 = vld [vmem:[#allocation12 + $0x4a4] ss:$16 sps:$4 sm:$0xff]   ;;  %v16684_v9 = vld [vmem:[#allocation12 + $0x6a0] ss:$16 sps:$4 sm:$0xff]   ;;  %vm610_vm12 = vmand %vm20620_vm1, %vm20619_vm8  ;;  %s19961_s10 = scalar_lea.vmem [#allocation21], %s14408_s24  ;;  %s14410_s15 = sshll.u32 %s19301_s23, 1 }
 0x122   : > { %v16686_v7 = vld [vmem:[#allocation12 + $0x6a4] ss:$16 sps:$4 sm:$0xff]   ;;  %v16687_v12 = vld [vmem:[#allocation12 + $0x4c0] ss:$16 sps:$4 sm:$0xff]   ;;  %vm612_vm13 = vmand %vm20621_vm3, %vm20618_vm6  ;;  %p20369_p12 = scmp.lt.s32.totalorder %s14410_s15, 3  ;;  %s20738_s12 = sld [smem:[#allocation32_spill]] }
 0x123   : > { %1004 = vmatpush1.bf16.msra.mxu0 %v16622_v30  ;;  %1047 = vmatpush1.bf16.msra.mxu1 %v16623_v31  ;;  %v16689_v10 = vld [vmem:[#allocation12 + $0x4c4] ss:$16 sps:$4 sm:$0xff]   ;;  %v16690_v13 = vld [vmem:[#allocation12 + $0x6c0] ss:$16 sps:$4 sm:$0xff]   ;;  %vm19658_vm15 = vmor %vm612_vm13, %vm610_vm12  ;;  %vm20622_vm12 = vcmask 1046532   ;;  %s16025_s14 = sshll.u32 %s19301_s23, 9 }
 0x124   : > { %1005 = vmatprep.subr.bf16.mxu0 %v16624_v32  ;;  %1048 = vmatprep.subr.bf16.mxu1 %v16626_v33  ;;  %v16692_v11 = vld [vmem:[#allocation12 + $0x6c4] ss:$16 sps:$4 sm:$0xff]   ;;  %v16693_v16 = vld [vmem:[#allocation12 + $0x4e0] ss:$16 sps:$4 sm:$0xff]   ;;  %v20650_v32 = vmov 0  ;;  %vm19666_vm2 = vmand %vm1178_vm9, %vm574_vm7  ;;  %vm20623_vm9 = vcmask 1042432  }
 0x125   : > { %v16695_v14 = vld [vmem:[#allocation12 + $0x4e4] ss:$16 sps:$4 sm:$0xff]   ;;  %v16696_v17 = vld [vmem:[#allocation12 + $0x6e0] ss:$16 sps:$4 sm:$0xff]   ;;  %v20651_v32 = vsel %vm19626_vm0, 4294967295, %v20650_v32  ;;  %vm19673_vm4 = vmand %vm1180_vm14, %vm576_vm10  ;;  %s20760_s15 = smov (!%p20369_p12, %s14410_s15), 3 }
 0x126   : > { %v16698_v15 = vld [vmem:[#allocation12 + $0x6e4] ss:$16 sps:$4 sm:$0xff]   ;;  %v16699_v20 = vld [vmem:[#allocation12 + $0x500] ss:$16 sps:$4 sm:$0xff]   ;;  %vm1182_vm7 = vmor %vm19673_vm4, %vm19666_vm2  ;;  %vm1138_vm10 = vsmask.f32 2306 }
 0x127   : > { %1006 = vmatpush1.bf16.msra.mxu0 %v16628_v34  ;;  %1049 = vmatpush1.bf16.msra.mxu1 %v16629_v35  ;;  %v16701_v18 = vld [vmem:[#allocation12 + $0x504] ss:$16 sps:$4 sm:$0xff]   ;;  %v16702_v21 = vld [vmem:[#allocation12 + $0x700] ss:$16 sps:$4 sm:$0xff]   ;;  %vm19701_vm3 = vmand %vm20623_vm9, %vm1138_vm10  ;;  %vm621_vm2 = vsmask.f32 3328 }
 0x128   : > { %1007 = vmatprep.subr.bf16.mxu0 %v16630_v36  ;;  %1050 = vmatprep.subr.bf16.mxu1 %v16632_v37  ;;  %v16704_v19 = vld [vmem:[#allocation12 + $0x704] ss:$16 sps:$4 sm:$0xff]   ;;  %v16705_v24 = vld [vmem:[#allocation12 + $0x520] ss:$16 sps:$4 sm:$0xff]   ;;  %vm623_vm4 = vcmask 1047559   ;;  %s16431_s22 = smul.u32 24, %s20760_s15 }
 0x129   : > { %v16707_v22 = vld [vmem:[#allocation12 + $0x524] ss:$16 sps:$4 sm:$0xff]   ;;  %v16708_v25 = vld [vmem:[#allocation12 + $0x720] ss:$16 sps:$4 sm:$0xff]   ;;  %s14157_s28 = sshll.u32 %s19961_s10, 4  ;;  %s20750_s15 = sld [smem:[#allocation31_spill]]  ;;  %s20524_s28 = int_to_ptr.vmem [resolvable:$true] %s14157_s28 }
 0x12a   : > { %v16710_v23 = vld [vmem:[#allocation12 + $0x724] ss:$16 sps:$4 sm:$0xff]   ;;  %v549_v26 = vld [vmem:[#allocation2] sm:$0x11]  ;;  %v579_v28 = vld [vmem:[#allocation4] sm:$0x44]  ;;  %s20390_s9 = scalar_lea.vmem %s20738_s12, %s16431_s22 }
 0x12b   : > { %1008 = vmatpush1.bf16.msra.mxu0 %v16634_v39  ;;  %1051 = vmatpush1.bf16.msra.mxu1 %v16635_v40  ;;  %v550_v29 = vsel %vm19616_vm11, 0, %v549_v26  ;;  %v603_v30 = vld [vmem:[#allocation2] sm:$0x44]  ;;  %v565_v34 = vld [vmem:[#allocation3 + $0x8] sm:$0x44]  ;;  %v580_v35 = vsel %vm19626_vm0, 0, %v579_v28 }
 0x12c   : > { %1009 = vmatprep.subr.bf16.mxu0 %v16636_v41  ;;  %1052 = vmatprep.subr.bf16.mxu1 %v16638_v42  ;;  %551 = vst [vmem:[#allocation2] sm:$0x11] %v550_v29  ;;  %v16711_v31 = vld [vmem:[#allocation12 + $0x540] ss:$16 sps:$4 sm:$0xff]   ;;  %v604_v36 = vsel %vm19626_vm0, 0, %v603_v30  ;;  %v566_v42 = vsel %vm19636_vm5, 0, %v565_v34 }
 0x12d   : > { %v562_v33 = vld [vmem:[#allocation3] sm:$0x44]  ;;  %v16713_v37 = vld [vmem:[#allocation12 + $0x544] ss:$16 sps:$4 sm:$0xff]   ;;  %581 = vst [vmem:[#allocation4] sm:$0x44] %v580_v35 }
 0x12e   : > { %v16714_v38 = vld [vmem:[#allocation12 + $0x740] ss:$16 sps:$4 sm:$0xff]   ;;  %605 = vst [vmem:[#allocation2] sm:$0x44] %v604_v36  ;;  %v16716_v39 = vld [vmem:[#allocation12 + $0x744] ss:$16 sps:$4 sm:$0xff]  }
 0x12f   : > { %1010 = vmatpush1.bf16.msra.mxu0 %v16640_v43  ;;  %1053 = vmatpush1.bf16.msra.mxu1 %v16641_v44  ;;  %v563_v41 = vsel %vm19636_vm5, 0, %v562_v33  ;;  %v16717_v43 = vld [vmem:[#allocation12 + $0x560] ss:$16 sps:$4 sm:$0xff]   ;;  %v16719_v44 = vld [vmem:[#allocation12 + $0x564] ss:$16 sps:$4 sm:$0xff]   ;;  %s20522_s27 = scalar_lea.hbm %s20750_s15, %s16025_s14  ;;  %s14132_s22 = scalar_lea.sflag [#allocation8], %s19586_s13 }
 0x130   : > { %1011 = vmatprep.subr.bf16.mxu0 %v16642_v45  ;;  %1054 = vmatprep.subr.bf16.mxu1 %v16644_v46  ;;  %564 = vst [vmem:[#allocation3] sm:$0x44] %v563_v41  ;;  %567 = vst [vmem:[#allocation3 + $0x8] sm:$0x44] %v566_v42  ;;  %v16720_v45 = vld [vmem:[#allocation12 + $0x760] ss:$16 sps:$4 sm:$0xff]  }
 0x131   : > { %v16722_v46 = vld [vmem:[#allocation12 + $0x764] ss:$16 sps:$4 sm:$0xff]   ;;  %s19081_s11 = scalar_lea.vmem %s20524_s28, 512  ;;  %p20751_p13 = scmp.ne.s32.totalorder %s20636_s21, 0 }
 0x132   : > { %p19082_p1 = scmp.ne.s32.totalorder %s20524_s28, %s19081_s11  ;;  %s19214_s29 = smov [#allocation21]  }
 0x133   : > { %1012 = vmatpush1.bf16.msra.mxu0 %v16646_v47  ;;  %1055 = vmatpush1.bf16.msra.mxu1 %v16647_v48  ;;  %v614_v47 = vld [vmem:[#allocation3 + $0x10] sm:$0x11]  ;;  %v617_v48 = vld [vmem:[#allocation3 + $0x18] sm:$0x11]  ;;  %s19085_s12 = sshll.u32 %s19214_s29, 4  ;;  %s19086_s12 = int_to_ptr.vmem [resolvable:$false] %s19085_s12 }
 0x134   : > { %2132 = vmatprep.subr.bf16.mxu1 %v16653_v49  ;;  %2175 = vmatprep.subr.bf16.mxu0 %v16656_v50  ;;  %v16723_v49 = vld [vmem:[#allocation12 + $0x580] ss:$16 sps:$4 sm:$0xff]   ;;  %v16725_v50 = vld [vmem:[#allocation12 + $0x584] ss:$16 sps:$4 sm:$0xff]   ;;  %p19083_p0 = pnand %p19082_p1, %p20751_p13  ;;  %p19088_p8 = scmp.lt.s32.totalorder %s20524_s28, %s19086_s12 }
 0x136   : > { %1022 = vmatmul.mubr.bf16.vlgmr.msra.gmra.mrb[0].mxu0 %v16648_v51  ;;  %1065 = vmatmul.mubr.bf16.vlgmr.msra.gmra.mrb[0].mxu1 %v16648_v51  ;;  %v552_v51 = vld [vmem:[#allocation2 + $0x8] sm:$0x11]  ;;  %p19084_p2 = pneg %p19083_p0 }
 0x137   : > { %2133 = vmatpush1.bf16.msra.mxu1 %v16651_v52  ;;  %2176 = vmatpush1.bf16.msra.mxu0 %v16654_v53  ;;  %v606_v52 = vld [vmem:[#allocation2 + $0x8] sm:$0x44]  ;;  %v594_v53 = vld [vmem:[#allocation5] sm:$0x44] }
 0x138   : > { %2134 = vmatprep.subr.bf16.mxu1 %v16659_v54  ;;  %2177 = vmatprep.subr.bf16.mxu0 %v16662_v55  ;;  %v553_v54 = vsel %vm19616_vm11, 0, %v552_v51  ;;  %v607_v55 = vsel %vm19626_vm0, 0, %v606_v52 }
 0x139   : > { %554 = vst [vmem:[#allocation2 + $0x8] sm:$0x11] %v553_v54  ;;  %608 = vst [vmem:[#allocation2 + $0x8] sm:$0x44] %v607_v55 }
 0x13b   : > { %2135 = vmatpush1.bf16.msra.mxu1 %v16657_v56  ;;  %2178 = vmatpush1.bf16.msra.mxu0 %v16660_v57  ;;  %v595_v56 = vsel %vm19636_vm5, 0, %v594_v53  ;;  %v597_v57 = vld [vmem:[#allocation5 + $0x8] sm:$0x44] }
 0x13c   : > { %2136 = vmatprep.subr.bf16.mxu1 %v16665_v58  ;;  %2179 = vmatprep.subr.bf16.mxu0 %v16668_v59  ;;  %596 = vst [vmem:[#allocation5] sm:$0x44] %v595_v56  ;;  %v598_v58 = vsel %vm19636_vm5, 0, %v597_v57  ;;  %v600_v59 = vld [vmem:[#allocation5 + $0x10] sm:$0x44] }
 0x13d   : > { %599 = vst [vmem:[#allocation5 + $0x8] sm:$0x44] %v598_v58 }
 0x13f   : > { %2137 = vmatpush1.bf16.msra.mxu1 %v16663_v60  ;;  %2180 = vmatpush1.bf16.msra.mxu0 %v16666_v61  ;;  %v16726_v60 = vld [vmem:[#allocation12 + $0x780] ss:$16 sps:$4 sm:$0xff]   ;;  %v601_v61 = vsel %vm19636_vm5, 0, %v600_v59  ;;  %vm1141_vm5 = vsmask.f32 6418 }
 0x140   : > { %2138 = vmatprep.subr.bf16.mxu1 %v16671_v62  ;;  %2181 = vmatprep.subr.bf16.mxu0 %v16674_v63  ;;  %v16728_v63 = vld [vmem:[#allocation12 + $0x784] ss:$16 sps:$4 sm:$0xff]   ;;  %602 = vst [vmem:[#allocation5 + $0x10] sm:$0x44] %v601_v61  ;;  %v18603_v62 = vld [vmem:[#allocation18 + $0x1e0] sm:$0xff]  }
 0x143   : > { %2139 = vmatpush1.bf16.msra.mxu1 %v16669_v0  ;;  %2182 = vmatpush1.bf16.msra.mxu0 %v16672_v1  ;;  %v615_v0 = vsel %vm19658_vm15, 0, %v614_v47 }
 0x144   : > { %2140 = vmatprep.subr.bf16.mxu1 %v16677_v2  ;;  %2183 = vmatprep.subr.bf16.mxu0 %v16680_v3  ;;  %v618_v2 = vsel %vm19658_vm15, 0, %v617_v48  ;;  %v16731_v3 = vld [vmem:[#allocation12 + $0x5a4] ss:$16 sps:$4 sm:$0xff]   ;;  %616 = vst [vmem:[#allocation3 + $0x10] sm:$0x11] %v615_v0 }
 0x145   : > { %619 = vst [vmem:[#allocation3 + $0x18] sm:$0x11] %v618_v2 }
 0x147   : > { %2141 = vmatpush1.bf16.msra.mxu1 %v16675_v4  ;;  %2184 = vmatpush1.bf16.msra.mxu0 %v16678_v5  ;;  %v16729_v5 = vld [vmem:[#allocation12 + $0x5a0] ss:$16 sps:$4 sm:$0xff]   ;;  %v16766_v4 = vld [vmem:[#allocation12 + $0x24] ss:$16 sps:$4 sm:$0xff]  }
 0x148   : > { %2142 = vmatprep.subr.bf16.mxu1 %v16683_v6  ;;  %2185 = vmatprep.subr.bf16.mxu0 %v16686_v7  ;;  %v16732_v6 = vld [vmem:[#allocation12 + $0x7a0] ss:$16 sps:$4 sm:$0xff]   ;;  %v16734_v7 = vld [vmem:[#allocation12 + $0x7a4] ss:$16 sps:$4 sm:$0xff]  }
 0x14b   : > { %2143 = vmatpush1.bf16.msra.mxu1 %v16681_v8  ;;  %2186 = vmatpush1.bf16.msra.mxu0 %v16684_v9  ;;  %v16737_v8 = vld [vmem:[#allocation12 + $0x5c4] ss:$16 sps:$4 sm:$0xff]  }
 0x14c   : > { %2144 = vmatprep.subr.bf16.mxu1 %v16689_v10  ;;  %2187 = vmatprep.subr.bf16.mxu0 %v16692_v11  ;;  %v16740_v9 = vld [vmem:[#allocation12 + $0x7c4] ss:$16 sps:$4 sm:$0xff]   ;;  %v16735_v10 = vld [vmem:[#allocation12 + $0x5c0] ss:$16 sps:$4 sm:$0xff]  }
 0x14d   : > { %v16738_v11 = vld [vmem:[#allocation12 + $0x7c0] ss:$16 sps:$4 sm:$0xff]  }
 0x14f   : > { %2145 = vmatpush1.bf16.msra.mxu1 %v16687_v12  ;;  %2188 = vmatpush1.bf16.msra.mxu0 %v16690_v13  ;;  %v16743_v12 = vld [vmem:[#allocation12 + $0x5e4] ss:$16 sps:$4 sm:$0xff]  }
 0x150   : > { %2146 = vmatprep.subr.bf16.mxu1 %v16695_v14  ;;  %2189 = vmatprep.subr.bf16.mxu0 %v16698_v15  ;;  %v16746_v13 = vld [vmem:[#allocation12 + $0x7e4] ss:$16 sps:$4 sm:$0xff]   ;;  %v16741_v14 = vld [vmem:[#allocation12 + $0x5e0] ss:$16 sps:$4 sm:$0xff]  }
 0x151   : > { %v16744_v15 = vld [vmem:[#allocation12 + $0x7e0] ss:$16 sps:$4 sm:$0xff]  }
 0x153   : > { %2147 = vmatpush1.bf16.msra.mxu1 %v16693_v16  ;;  %2190 = vmatpush1.bf16.msra.mxu0 %v16696_v17  ;;  %v16753_v16 = vld [vmem:[#allocation12 + $0x40c] ss:$16 sps:$4 sm:$0xff]   ;;  %v16756_v17 = vld [vmem:[#allocation12 + $0x4] ss:$16 sps:$4 sm:$0xff]  }
 0x154   : > { %2148 = vmatprep.subr.bf16.mxu1 %v16701_v18  ;;  %2191 = vmatprep.subr.bf16.mxu0 %v16704_v19  ;;  %v716_v18 = vlaneseq }
 0x156   : > { %v19681_v19 = vshrl.u32 %v716_v18, 7 }
 0x157   : > { %2149 = vmatpush1.bf16.msra.mxu1 %v16699_v20  ;;  %2192 = vmatpush1.bf16.msra.mxu0 %v16702_v21  ;;  %v714_v20 = vld [vmem:[#allocation11] sm:$0xf] }
 0x158   : > { %2150 = vmatprep.subr.bf16.mxu1 %v16707_v22  ;;  %2193 = vmatprep.subr.bf16.mxu0 %v16710_v23  ;;  %v19684_v21 = vsub.s32 0, %v19681_v19  ;;  %v19687_v22 = vsub.s32 1, %v19681_v19  ;;  %v19690_v23 = vsub.s32 2, %v19681_v19 }
 0x15a   : > { %v723_v26 = vrot.slane %v714_v20, %v19687_v22  ;;  %v727_v28 = vrot.slane %v714_v20, %v19690_v23 }
 0x15b   : > { %2151 = vmatpush1.bf16.msra.mxu1 %v16705_v24  ;;  %2194 = vmatpush1.bf16.msra.mxu0 %v16708_v25  ;;  %v19693_v24 = vsub.s32 3, %v19681_v19  ;;  %v719_v25 = vrot.slane %v714_v20, %v19684_v21 }
 0x15c   : > { %2152 = vmatprep.subr.bf16.mxu1 %v16713_v37  ;;  %2195 = vmatprep.subr.bf16.mxu0 %v16716_v39 }
 0x15f   : > { %2153 = vmatpush1.bf16.msra.mxu1 %v16711_v31  ;;  %2196 = vmatpush1.bf16.msra.mxu0 %v16714_v38  ;;  %v731_v31 = vrot.slane %v714_v20, %v19693_v24 }
 0x160   : > { %2154 = vmatprep.subr.bf16.mxu1 %v16719_v44  ;;  %2197 = vmatprep.subr.bf16.mxu0 %v16722_v46 }
 0x163   : > { %2155 = vmatpush1.bf16.msra.mxu1 %v16717_v43  ;;  %2198 = vmatpush1.bf16.msra.mxu0 %v16720_v45 }
 0x164   : > { %2156 = vmatprep.subr.bf16.mxu1 %v16725_v50  ;;  %2199 = vmatprep.subr.bf16.mxu0 %v16728_v63 }
 0x167   : > { %2157 = vmatpush1.bf16.msra.mxu1 %v16723_v49  ;;  %2200 = vmatpush1.bf16.msra.mxu0 %v16726_v60 }
 0x168   : > { %2158 = vmatprep.subr.bf16.mxu1 %v16731_v3  ;;  %2201 = vmatprep.subr.bf16.mxu0 %v16734_v7 }
 0x16b   : > { %2159 = vmatpush1.bf16.msra.mxu1 %v16729_v5  ;;  %2202 = vmatpush1.bf16.msra.mxu0 %v16732_v6 }
 0x16c   : > { %2160 = vmatprep.subr.bf16.mxu1 %v16737_v8  ;;  %2203 = vmatprep.subr.bf16.mxu0 %v16740_v9 }
 0x16f   : > { %2161 = vmatpush1.bf16.msra.mxu1 %v16735_v10  ;;  %2204 = vmatpush1.bf16.msra.mxu0 %v16738_v11  ;;  %v1144_v11 = vld [vmem:[#allocation2] sm:$0x77] }
 0x170   : > { %2162 = vmatprep.subr.bf16.mxu1 %v16743_v12  ;;  %2205 = vmatprep.subr.bf16.mxu0 %v16746_v13 }
 0x173   : > { %2163 = vmatpush1.bf16.msra.mxu1 %v16741_v14  ;;  %2206 = vmatpush1.bf16.msra.mxu0 %v16744_v15 }
 0x174   : > { %2218 = vmatprep.subr.bf16.mxu1 %v16753_v16  ;;  %2964 = vmatprep.subr.bf16.mxu0 %v16756_v17  ;;  %v1147_v17 = vld [vmem:[#allocation2 + $0x8] sm:$0x77] }
 0x209   : > { %v1023_v29 = vpop.f32.mrb[0].mxu0  ;;  %v1066_v30 = vpop.f32.mrb[0].mxu1 }
 0x20a   : > { %v1024_v33 = vadd.f32 %v1023_v29, %v719_v25  ;;  %v1067_v34 = vadd.f32 %v1066_v30, %v727_v28  ;;  %v1025_v35 = vpop.f32.mrb[1].mxu0  ;;  %v1068_v36 = vpop.f32.mrb[1].mxu1 }
 0x20b   : > { %v1026_v37 = vadd.f32 %v1025_v35, %v723_v26  ;;  %v1069_v38 = vadd.f32 %v1068_v36, %v731_v31  ;;  %v1027_v39 = vpop.f32.mrb[2].mxu0  ;;  %v1070_v40 = vpop.f32.mrb[2].mxu1 }
 0x20c   : > { %vm1075_vm13 = vcmp.ge.f32.partialorder %v1024_v33, 0.0  ;;  %v1083_v41 = vmul.f32 0.2, %v1024_v33  ;;  %vm1077_vm14 = vcmp.ge.f32.partialorder %v1067_v34, 0.0  ;;  %v1085_v42 = vmul.f32 0.2, %v1067_v34 }
 0x20d   : > { %vm1076_vm6 = vcmp.ge.f32.partialorder %v1026_v37, 0.0  ;;  %v1084_v43 = vmul.f32 0.2, %v1026_v37  ;;  %vm1078_vm8 = vcmp.ge.f32.partialorder %v1069_v38, 0.0  ;;  %v1086_v44 = vmul.f32 0.2, %v1069_v38 }
 0x20e   : > { %v1091_v45 = vsel %vm1075_vm13, %v1024_v33, %v1083_v41  ;;  %v1093_v46 = vsel %vm1077_vm14, %v1067_v34, %v1085_v42  ;;  %v1028_v47 = vadd.f32 %v1027_v39, %v719_v25  ;;  %v1071_v48 = vadd.f32 %v1070_v40, %v727_v28  ;;  %v1029_v49 = vpop.f32.mrb[3].mxu0  ;;  %v1072_v50 = vpop.f32.mrb[3].mxu1  ;;  %v1183_v34 = vld [vmem:[#allocation3] sm:$0xcc] }
 0x20f   : > { %v1092_v51 = vsel %vm1076_vm6, %v1026_v37, %v1084_v43  ;;  %v1094_v52 = vsel %vm1078_vm8, %v1069_v38, %v1086_v44  ;;  %v1030_v53 = vadd.f32 %v1029_v49, %v723_v26  ;;  %v1073_v54 = vadd.f32 %v1072_v50, %v731_v31  ;;  %vm1142_vm8 = vmand %vm20622_vm12, %vm1141_vm5  ;;  %v1189_v38 = vld [vmem:[#allocation3 + $0x10] sm:$0x11]  ;;  %v1192_v49 = vld [vmem:[#allocation3 + $0x18] sm:$0x11] }
 0x210   : > { %v16005_v55 = vpack.c.bf16 %v1092_v51, %v1091_v45  ;;  %v16006_v56 = vpack.c.bf16 %v1094_v52, %v1093_v46  ;;  %vm1079_vm1 = vcmp.ge.f32.partialorder %v1028_v47, 0.0  ;;  %v1087_v57 = vmul.f32 0.2, %v1028_v47  ;;  %vm19709_vm10 = vmor %vm1142_vm8, %vm19701_vm3 }
 0x211   : > { %vm1081_vm13 = vcmp.ge.f32.partialorder %v1071_v48, 0.0  ;;  %v1089_v59 = vmul.f32 0.2, %v1071_v48  ;;  %vm1080_vm14 = vcmp.ge.f32.partialorder %v1030_v53, 0.0  ;;  %v1088_v60 = vmul.f32 0.2, %v1030_v53 }
 0x212   : > { %1115 = vst [vmem:[#allocation3] sm:$0x33] %v16005_v55  ;;  %v1118_v61 = vshrl.u32 %v16005_v55, 16  ;;  %v1121_v63 = vshll.u32 %v16005_v55, 16  ;;  %1116 = vst [vmem:[#allocation3 + $0x8] sm:$0x33] %v16006_v56  ;;  %v1095_v3 = vsel %vm1079_vm1, %v1028_v47, %v1087_v57 }
 0x213   : > { %v1127_v0 = vshrl.u32 %v16006_v56, 16  ;;  %v1130_v2 = vshll.u32 %v16006_v56, 16  ;;  %v1096_v5 = vsel %vm1080_vm14, %v1030_v53, %v1088_v60  ;;  %vm1082_vm6 = vcmp.ge.f32.partialorder %v1073_v54, 0.0  ;;  %v16751_v55 = vld [vmem:[#allocation12 + $0x408] ss:$16 sps:$4 sm:$0xff]  }
 0x214   : > { %v1120_v6 = vrot.slane %v1118_v61, 5  ;;  %v1123_v7 = vrot.slane %v1121_v63, 6  ;;  %v1097_v12 = vsel %vm1081_vm13, %v1071_v48, %v1089_v59  ;;  %v16007_v13 = vpack.c.bf16 %v1096_v5, %v1095_v3  ;;  %v1186_v48 = vld [vmem:[#allocation3 + $0x8] sm:$0xcc]  ;;  %v16763_v56 = vld [vmem:[#allocation12 + $0x42c] ss:$16 sps:$4 sm:$0xff]  }
 0x215   : > { %v1129_v8 = vrot.slane %v1127_v0, 5  ;;  %v1132_v9 = vrot.slane %v1130_v2, 6  ;;  %v1090_v14 = vmul.f32 0.2, %v1073_v54  ;;  %v16754_v59 = vld [vmem:[#allocation12] ss:$16 sps:$4 sm:$0xff]  }
 0x216   : > { %v1124_v15 = vor.u32 %v1123_v7, %v1120_v6  ;;  %v1157_v18 = vshrl.u32 %v16007_v13, 16  ;;  %v1160_v20 = vshll.u32 %v16007_v13, 16  ;;  %v1195_v25 = vrot.slane %v16007_v13, 7  ;;  %v16761_v60 = vld [vmem:[#allocation12 + $0x428] ss:$16 sps:$4 sm:$0xff]  }
 0x217   : > { %v1133_v16 = vor.u32 %v1132_v9, %v1129_v8  ;;  %v1098_v26 = vsel %vm1082_vm6, %v1073_v54, %v1090_v14  ;;  %v16769_v0 = vld [vmem:[#allocation12 + $0x44c] ss:$16 sps:$4 sm:$0xff]   ;;  %v16764_v2 = vld [vmem:[#allocation12 + $0x20] ss:$16 sps:$4 sm:$0xff]   ;;  %v16767_v3 = vld [vmem:[#allocation12 + $0x448] ss:$16 sps:$4 sm:$0xff]  }
 0x218   : > { %v1125_v28 = vrot.slane %v1124_v15, 4  ;;  %v16008_v30 = vpack.c.bf16 %v1098_v26, %v1097_v12  ;;  %v1159_v31 = vrot.slane %v1157_v18, 5  ;;  %v1162_v33 = vrot.slane %v1160_v20, 6  ;;  %1203 = vst [vmem:[#allocation2] sm:$0x88] %v1195_v25 }
 0x219   : > { %v1134_v29 = vrot.slane %v1133_v16, 4  ;;  %v1197_v35 = vrot.slane %v1195_v25, 4  ;;  %v16772_v5 = vld [vmem:[#allocation12 + $0x44] ss:$16 sps:$4 sm:$0xff]   ;;  %v16775_v6 = vld [vmem:[#allocation12 + $0x46c] ss:$16 sps:$4 sm:$0xff]  }
 0x21a   : > { %v1145_v36 = vsel %vm19709_vm10, %v1125_v28, %v1144_v11  ;;  %v1165_v39 = vshrl.u32 %v16008_v30, 16  ;;  %v1168_v40 = vshll.u32 %v16008_v30, 16  ;;  %v1163_v41 = vor.u32 %v1162_v33, %v1159_v31  ;;  %v16770_v7 = vld [vmem:[#allocation12 + $0x40] ss:$16 sps:$4 sm:$0xff]   ;;  %v16773_v8 = vld [vmem:[#allocation12 + $0x468] ss:$16 sps:$4 sm:$0xff]  }
 0x21b   : > { %v1148_v37 = vsel %vm19709_vm10, %v1134_v29, %v1147_v17  ;;  %1146 = vst [vmem:[#allocation2] sm:$0x77] %v1145_v36  ;;  %v1172_v42 = vrot.slane %v1159_v31, 4  ;;  %1205 = vst [vmem:[#allocation2 + $0x10] sm:$0x11] %v1197_v35  ;;  %v1196_v43 = vrot.slane %v16008_v30, 7 }
 0x21c   : > { %1149 = vst [vmem:[#allocation2 + $0x8] sm:$0x77] %v1148_v37  ;;  %v1167_v44 = vrot.slane %v1165_v39, 5  ;;  %v1170_v45 = vrot.slane %v1168_v40, 6  ;;  %v1184_v46 = vsel %vm1182_vm7, %v1163_v41, %v1183_v34  ;;  %v16778_v9 = vld [vmem:[#allocation12 + $0x64] ss:$16 sps:$4 sm:$0xff]  }
 0x21d   : > { %v1190_v47 = vsel %vm19616_vm11, %v1172_v42, %v1189_v38  ;;  %v1198_v50 = vrot.slane %v1196_v43, 4  ;;  %1204 = vst [vmem:[#allocation2 + $0x8] sm:$0x88] %v1196_v43  ;;  %1185 = vst [vmem:[#allocation3] sm:$0xcc] %v1184_v46  ;;  %vm20624_vm1 = vcmask 1043456  }
 0x21e   : > { %1191 = vst [vmem:[#allocation3 + $0x10] sm:$0x11] %v1190_v47  ;;  %v1171_v51 = vor.u32 %v1170_v45, %v1167_v44  ;;  %v1173_v52 = vrot.slane %v1167_v44, 4  ;;  %v16781_v11 = vld [vmem:[#allocation12 + $0x48c] ss:$16 sps:$4 sm:$0xff]   ;;  %vm620_vm3 = vcmask 1043459  }
 0x21f   : > { %1206 = vst [vmem:[#allocation2 + $0x18] sm:$0x11] %v1198_v50  ;;  %v16776_v12 = vld [vmem:[#allocation12 + $0x60] ss:$16 sps:$4 sm:$0xff]   ;;  %v16779_v13 = vld [vmem:[#allocation12 + $0x488] ss:$16 sps:$4 sm:$0xff]   ;;  %vm622_vm5 = vmand %vm620_vm3, %vm621_vm2 }
 0x220   : > { %v1187_v53 = vsel %vm1182_vm7, %v1171_v51, %v1186_v48  ;;  %v1193_v54 = vsel %vm19616_vm11, %v1173_v52, %v1192_v49  ;;  %v16784_v14 = vld [vmem:[#allocation12 + $0x84] ss:$16 sps:$4 sm:$0xff]   ;;  %v16787_v15 = vld [vmem:[#allocation12 + $0x4ac] ss:$16 sps:$4 sm:$0xff]   ;;  %v16782_v16 = vld [vmem:[#allocation12 + $0x80] ss:$16 sps:$4 sm:$0xff]  }
 0x221   : > { %1188 = vst [vmem:[#allocation3 + $0x8] sm:$0xcc] %v1187_v53  ;;  %1194 = vst [vmem:[#allocation3 + $0x18] sm:$0x11] %v1193_v54  ;;  %v16785_v17 = vld [vmem:[#allocation12 + $0x4a8] ss:$16 sps:$4 sm:$0xff]  }
 0x222   : > { %v19739_v63 = vld [vmem:[#allocation2 + $0x4] ss:$16 sps:$4 sm:$0x1f]   ;;  %v16790_v18 = vld [vmem:[#allocation12 + $0xa4] ss:$16 sps:$4 sm:$0xff]   ;;  %vm633_vm8 = vcmask 1041409  }
 0x223   : > { %v16793_v20 = vld [vmem:[#allocation12 + $0x4cc] ss:$16 sps:$4 sm:$0xff]   ;;  %v16788_v25 = vld [vmem:[#allocation12 + $0xa0] ss:$16 sps:$4 sm:$0xff]   ;;  %v16791_v26 = vld [vmem:[#allocation12 + $0x4c8] ss:$16 sps:$4 sm:$0xff]  }
 0x224   : > { %v16796_v28 = vld [vmem:[#allocation12 + $0xc4] ss:$16 sps:$4 sm:$0xff]   ;;  %v16799_v29 = vld [vmem:[#allocation12 + $0x4ec] ss:$16 sps:$4 sm:$0xff]   ;;  %v16794_v30 = vld [vmem:[#allocation12 + $0xc0] ss:$16 sps:$4 sm:$0xff]  }
 0x225   : > { %v16747_v57 = vld [vmem:[#allocation3 + $0x4] ss:$16 sps:$4 sm:$0x1f]   ;;  %v19733_v58 = vld [vmem:[#allocation3] ss:$16 sps:$4 sm:$0x1f]  }
 0x226   : > { %2164 = vmatprep.mubr.bf16.mxu1 %v16747_v57  ;;  %v16797_v31 = vld [vmem:[#allocation12 + $0x4e8] ss:$16 sps:$4 sm:$0xff]   ;;  %v16802_v33 = vld [vmem:[#allocation12 + $0xe4] ss:$16 sps:$4 sm:$0xff]   ;;  %v16805_v34 = vld [vmem:[#allocation12 + $0x50c] ss:$16 sps:$4 sm:$0xff]  }
 0x227   : > { %2165 = vmatmul.mubr.bf16.vlgmr.msra.gmra.mrb[4].mxu1 %v19733_v58  ;;  %v16800_v35 = vld [vmem:[#allocation12 + $0xe0] ss:$16 sps:$4 sm:$0xff]   ;;  %v16803_v36 = vld [vmem:[#allocation12 + $0x508] ss:$16 sps:$4 sm:$0xff]   ;;  %v16808_v37 = vld [vmem:[#allocation12 + $0x104] ss:$16 sps:$4 sm:$0xff]  }
 0x228   : > { %v19735_v61 = vld [vmem:[#allocation3 + $0xc] ss:$16 sps:$4 sm:$0x1f]   ;;  %v16758_v1 = vld [vmem:[#allocation3 + $0x8] ss:$16 sps:$4 sm:$0x1f]   ;;  %2219 = vmatpush1.bf16.msra.mxu1 %v16751_v55  ;;  %2250 = vmatprep.mubr.bf16.mxu1 %v16747_v57 }
 0x229   : > { %2207 = vmatprep.mubr.bf16.mxu0 %v19735_v61  ;;  %2220 = vmatprep.subr.bf16.mxu1 %v16763_v56  ;;  %v16811_v38 = vld [vmem:[#allocation12 + $0x52c] ss:$16 sps:$4 sm:$0xff]   ;;  %v16806_v39 = vld [vmem:[#allocation12 + $0x100] ss:$16 sps:$4 sm:$0xff]   ;;  %v16809_v40 = vld [vmem:[#allocation12 + $0x528] ss:$16 sps:$4 sm:$0xff]  }
 0x22a   : > { %2208 = vmatmul.mubr.bf16.vlgmr.msra.gmra.mrb[4].mxu0 %v16758_v1  ;;  %v16814_v41 = vld [vmem:[#allocation12 + $0x124] ss:$16 sps:$4 sm:$0xff]   ;;  %v16817_v42 = vld [vmem:[#allocation12 + $0x54c] ss:$16 sps:$4 sm:$0xff]   ;;  %v16812_v43 = vld [vmem:[#allocation12 + $0x120] ss:$16 sps:$4 sm:$0xff]  }
 0x22b   : > { %2965 = vmatpush1.bf16.msra.mxu0 %v16754_v59  ;;  %2996 = vmatprep.mubr.bf16.mxu0 %v19739_v63  ;;  %v16815_v44 = vld [vmem:[#allocation12 + $0x548] ss:$16 sps:$4 sm:$0xff]   ;;  %v16820_v45 = vld [vmem:[#allocation12 + $0x144] ss:$16 sps:$4 sm:$0xff]   ;;  %v16823_v46 = vld [vmem:[#allocation12 + $0x56c] ss:$16 sps:$4 sm:$0xff]  }
 0x22c   : > { %2966 = vmatprep.subr.bf16.mxu0 %v16766_v4  ;;  %2221 = vmatpush1.bf16.msra.mxu1 %v16761_v60  ;;  %v16818_v47 = vld [vmem:[#allocation12 + $0x140] ss:$16 sps:$4 sm:$0xff]   ;;  %v16821_v48 = vld [vmem:[#allocation12 + $0x568] ss:$16 sps:$4 sm:$0xff]   ;;  %v16826_v49 = vld [vmem:[#allocation12 + $0x164] ss:$16 sps:$4 sm:$0xff]  }
 0x22d   : > { %2222 = vmatprep.subr.bf16.mxu1 %v16769_v0  ;;  %v16829_v50 = vld [vmem:[#allocation12 + $0x58c] ss:$16 sps:$4 sm:$0xff]   ;;  %v16824_v51 = vld [vmem:[#allocation12 + $0x160] ss:$16 sps:$4 sm:$0xff]   ;;  %v16827_v52 = vld [vmem:[#allocation12 + $0x588] ss:$16 sps:$4 sm:$0xff]  }
 0x22e   : > { %v16832_v53 = vld [vmem:[#allocation12 + $0x184] ss:$16 sps:$4 sm:$0xff]   ;;  %v16835_v54 = vld [vmem:[#allocation12 + $0x5ac] ss:$16 sps:$4 sm:$0xff]   ;;  %v16830_v55 = vld [vmem:[#allocation12 + $0x180] ss:$16 sps:$4 sm:$0xff]  }
 0x22f   : > { %2967 = vmatpush1.bf16.msra.mxu0 %v16764_v2  ;;  %v16833_v56 = vld [vmem:[#allocation12 + $0x5a8] ss:$16 sps:$4 sm:$0xff]   ;;  %v16838_v57 = vld [vmem:[#allocation12 + $0x1a4] ss:$16 sps:$4 sm:$0xff]   ;;  %v16841_v59 = vld [vmem:[#allocation12 + $0x5cc] ss:$16 sps:$4 sm:$0xff]  }
 0x230   : > { %2968 = vmatprep.subr.bf16.mxu0 %v16772_v5  ;;  %2223 = vmatpush1.bf16.msra.mxu1 %v16767_v3  ;;  %v16836_v60 = vld [vmem:[#allocation12 + $0x1a0] ss:$16 sps:$4 sm:$0xff]   ;;  %v16839_v1 = vld [vmem:[#allocation12 + $0x5c8] ss:$16 sps:$4 sm:$0xff]   ;;  %v16844_v4 = vld [vmem:[#allocation12 + $0x1c4] ss:$16 sps:$4 sm:$0xff]  }
 0x231   : > { %2224 = vmatprep.subr.bf16.mxu1 %v16775_v6  ;;  %v16847_v0 = vld [vmem:[#allocation12 + $0x5ec] ss:$16 sps:$4 sm:$0xff]   ;;  %v16842_v2 = vld [vmem:[#allocation12 + $0x1c0] ss:$16 sps:$4 sm:$0xff]   ;;  %v16845_v3 = vld [vmem:[#allocation12 + $0x5e8] ss:$16 sps:$4 sm:$0xff]  }
 0x232   : > { %v16850_v5 = vld [vmem:[#allocation12 + $0x1e4] ss:$16 sps:$4 sm:$0xff]   ;;  %v16853_v6 = vld [vmem:[#allocation12 + $0x60c] ss:$16 sps:$4 sm:$0xff]   ;;  %vm624_vm7 = vsmask.f32 7424 }
 0x233   : > { %2969 = vmatpush1.bf16.msra.mxu0 %v16770_v7  ;;  %v16848_v7 = vld [vmem:[#allocation12 + $0x1e0] ss:$16 sps:$4 sm:$0xff]   ;;  %vm625_vm13 = vmand %vm623_vm4, %vm624_vm7  ;;  %vm634_vm6 = vsmask.f32 7942  ;;  %vm636_vm12 = vcmask 1045509  }
 0x234   : > { %2970 = vmatprep.subr.bf16.mxu0 %v16778_v9  ;;  %2225 = vmatpush1.bf16.msra.mxu1 %v16773_v8  ;;  %v16851_v8 = vld [vmem:[#allocation12 + $0x608] ss:$16 sps:$4 sm:$0xff]   ;;  %v16857_v9 = vld [vmem:[#allocation12 + $0x204] ss:$16 sps:$4 sm:$0xff]   ;;  %vm626_vm14 = vmor %vm625_vm13, %vm622_vm5  ;;  %vm20670_vm5 = vcmask 1042432  }
 0x235   : > { %2226 = vmatprep.subr.bf16.mxu1 %v16781_v11  ;;  %v16860_v11 = vld [vmem:[#allocation12 + $0x62c] ss:$16 sps:$4 sm:$0xff]  }
 0x237   : > { %2971 = vmatpush1.bf16.msra.mxu0 %v16776_v12  ;;  %v16855_v12 = vld [vmem:[#allocation12 + $0x200] ss:$16 sps:$4 sm:$0xff]  }
 0x238   : > { %2972 = vmatprep.subr.bf16.mxu0 %v16784_v14  ;;  %2227 = vmatpush1.bf16.msra.mxu1 %v16779_v13  ;;  %v16858_v13 = vld [vmem:[#allocation12 + $0x628] ss:$16 sps:$4 sm:$0xff]   ;;  %v16863_v14 = vld [vmem:[#allocation12 + $0x224] ss:$16 sps:$4 sm:$0xff]  }
 0x239   : > { %2228 = vmatprep.subr.bf16.mxu1 %v16787_v15  ;;  %v16866_v15 = vld [vmem:[#allocation12 + $0x64c] ss:$16 sps:$4 sm:$0xff]  }
 0x23b   : > { %2973 = vmatpush1.bf16.msra.mxu0 %v16782_v16  ;;  %v19743_v16 = vld [vmem:[#allocation2] ss:$16 sps:$4 sm:$0x1f]  }
 0x23c   : > { %2974 = vmatprep.subr.bf16.mxu0 %v16790_v18  ;;  %2229 = vmatpush1.bf16.msra.mxu1 %v16785_v17  ;;  %v19746_v17 = vld [vmem:[#allocation2 + $0xc] ss:$16 sps:$4 sm:$0x1f]   ;;  %v16861_v18 = vld [vmem:[#allocation12 + $0x220] ss:$16 sps:$4 sm:$0xff]  }
 0x23d   : > { %2230 = vmatprep.subr.bf16.mxu1 %v16793_v20  ;;  %v16864_v20 = vld [vmem:[#allocation12 + $0x648] ss:$16 sps:$4 sm:$0xff]  }
 0x23f   : > { %2975 = vmatpush1.bf16.msra.mxu0 %v16788_v25  ;;  %v16869_v25 = vld [vmem:[#allocation12 + $0x244] ss:$16 sps:$4 sm:$0xff]  }
 0x240   : > { %2976 = vmatprep.subr.bf16.mxu0 %v16796_v28  ;;  %2231 = vmatpush1.bf16.msra.mxu1 %v16791_v26  ;;  %v16867_v26 = vld [vmem:[#allocation12 + $0x240] ss:$16 sps:$4 sm:$0xff]   ;;  %v16870_v28 = vld [vmem:[#allocation12 + $0x668] ss:$16 sps:$4 sm:$0xff]  }
 0x241   : > { %2232 = vmatprep.subr.bf16.mxu1 %v16799_v29  ;;  %v16875_v29 = vld [vmem:[#allocation12 + $0x264] ss:$16 sps:$4 sm:$0xff]  }
 0x243   : > { %2977 = vmatpush1.bf16.msra.mxu0 %v16794_v30  ;;  %v16873_v30 = vld [vmem:[#allocation12 + $0x260] ss:$16 sps:$4 sm:$0xff]  }
 0x244   : > { %2978 = vmatprep.subr.bf16.mxu0 %v16802_v33  ;;  %2233 = vmatpush1.bf16.msra.mxu1 %v16797_v31  ;;  %v16876_v31 = vld [vmem:[#allocation12 + $0x688] ss:$16 sps:$4 sm:$0xff]   ;;  %v16881_v33 = vld [vmem:[#allocation12 + $0x284] ss:$16 sps:$4 sm:$0xff]  }
 0x245   : > { %2234 = vmatprep.subr.bf16.mxu1 %v16805_v34  ;;  %v16884_v34 = vld [vmem:[#allocation12 + $0x6ac] ss:$16 sps:$4 sm:$0xff]  }
 0x247   : > { %2979 = vmatpush1.bf16.msra.mxu0 %v16800_v35  ;;  %v16879_v35 = vld [vmem:[#allocation12 + $0x280] ss:$16 sps:$4 sm:$0xff]  }
 0x248   : > { %2980 = vmatprep.subr.bf16.mxu0 %v16808_v37  ;;  %2235 = vmatpush1.bf16.msra.mxu1 %v16803_v36  ;;  %v16882_v36 = vld [vmem:[#allocation12 + $0x6a8] ss:$16 sps:$4 sm:$0xff]   ;;  %v16887_v37 = vld [vmem:[#allocation12 + $0x2a4] ss:$16 sps:$4 sm:$0xff]  }
 0x249   : > { %2236 = vmatprep.subr.bf16.mxu1 %v16811_v38  ;;  %v16890_v38 = vld [vmem:[#allocation12 + $0x6cc] ss:$16 sps:$4 sm:$0xff]  }
 0x24b   : > { %2981 = vmatpush1.bf16.msra.mxu0 %v16806_v39  ;;  %v16885_v39 = vld [vmem:[#allocation12 + $0x2a0] ss:$16 sps:$4 sm:$0xff]  }
 0x24c   : > { %2982 = vmatprep.subr.bf16.mxu0 %v16814_v41  ;;  %2237 = vmatpush1.bf16.msra.mxu1 %v16809_v40  ;;  %v16888_v40 = vld [vmem:[#allocation12 + $0x6c8] ss:$16 sps:$4 sm:$0xff]   ;;  %v16893_v41 = vld [vmem:[#allocation12 + $0x2c4] ss:$16 sps:$4 sm:$0xff]  }
 0x24d   : > { %2238 = vmatprep.subr.bf16.mxu1 %v16817_v42  ;;  %v16896_v42 = vld [vmem:[#allocation12 + $0x6ec] ss:$16 sps:$4 sm:$0xff]  }
 0x24f   : > { %2983 = vmatpush1.bf16.msra.mxu0 %v16812_v43  ;;  %v16891_v43 = vld [vmem:[#allocation12 + $0x2c0] ss:$16 sps:$4 sm:$0xff]  }
 0x250   : > { %2984 = vmatprep.subr.bf16.mxu0 %v16820_v45  ;;  %2239 = vmatpush1.bf16.msra.mxu1 %v16815_v44  ;;  %v16894_v44 = vld [vmem:[#allocation12 + $0x6e8] ss:$16 sps:$4 sm:$0xff]   ;;  %v16899_v45 = vld [vmem:[#allocation12 + $0x2e4] ss:$16 sps:$4 sm:$0xff]  }
 0x251   : > { %2240 = vmatprep.subr.bf16.mxu1 %v16823_v46  ;;  %v16902_v46 = vld [vmem:[#allocation12 + $0x70c] ss:$16 sps:$4 sm:$0xff]  }
 0x253   : > { %2985 = vmatpush1.bf16.msra.mxu0 %v16818_v47  ;;  %v16897_v47 = vld [vmem:[#allocation12 + $0x2e0] ss:$16 sps:$4 sm:$0xff]  }
 0x254   : > { %2986 = vmatprep.subr.bf16.mxu0 %v16826_v49  ;;  %2241 = vmatpush1.bf16.msra.mxu1 %v16821_v48  ;;  %v16900_v48 = vld [vmem:[#allocation12 + $0x708] ss:$16 sps:$4 sm:$0xff]   ;;  %v16905_v49 = vld [vmem:[#allocation12 + $0x304] ss:$16 sps:$4 sm:$0xff]  }
 0x255   : > { %2242 = vmatprep.subr.bf16.mxu1 %v16829_v50  ;;  %v16908_v50 = vld [vmem:[#allocation12 + $0x72c] ss:$16 sps:$4 sm:$0xff]  }
 0x257   : > { %2987 = vmatpush1.bf16.msra.mxu0 %v16824_v51  ;;  %v16903_v51 = vld [vmem:[#allocation12 + $0x300] ss:$16 sps:$4 sm:$0xff]  }
 0x258   : > { %2988 = vmatprep.subr.bf16.mxu0 %v16832_v53  ;;  %2243 = vmatpush1.bf16.msra.mxu1 %v16827_v52  ;;  %v16906_v52 = vld [vmem:[#allocation12 + $0x728] ss:$16 sps:$4 sm:$0xff]   ;;  %v16911_v53 = vld [vmem:[#allocation12 + $0x324] ss:$16 sps:$4 sm:$0xff]  }
 0x259   : > { %2244 = vmatprep.subr.bf16.mxu1 %v16835_v54  ;;  %v16914_v54 = vld [vmem:[#allocation12 + $0x74c] ss:$16 sps:$4 sm:$0xff]  }
 0x25b   : > { %2989 = vmatpush1.bf16.msra.mxu0 %v16830_v55  ;;  %v16909_v55 = vld [vmem:[#allocation12 + $0x320] ss:$16 sps:$4 sm:$0xff]  }
 0x25c   : > { %2990 = vmatprep.subr.bf16.mxu0 %v16838_v57  ;;  %2245 = vmatpush1.bf16.msra.mxu1 %v16833_v56  ;;  %v16912_v56 = vld [vmem:[#allocation12 + $0x748] ss:$16 sps:$4 sm:$0xff]   ;;  %v16917_v57 = vld [vmem:[#allocation12 + $0x344] ss:$16 sps:$4 sm:$0xff]  }
 0x25d   : > { %2246 = vmatprep.subr.bf16.mxu1 %v16841_v59  ;;  %v16920_v59 = vld [vmem:[#allocation12 + $0x76c] ss:$16 sps:$4 sm:$0xff]  }
 0x25f   : > { %2991 = vmatpush1.bf16.msra.mxu0 %v16836_v60  ;;  %v16915_v60 = vld [vmem:[#allocation12 + $0x340] ss:$16 sps:$4 sm:$0xff]  }
 0x260   : > { %2992 = vmatprep.subr.bf16.mxu0 %v16844_v4  ;;  %2247 = vmatpush1.bf16.msra.mxu1 %v16839_v1  ;;  %v16918_v1 = vld [vmem:[#allocation12 + $0x768] ss:$16 sps:$4 sm:$0xff]   ;;  %v16923_v4 = vld [vmem:[#allocation12 + $0x364] ss:$16 sps:$4 sm:$0xff]  }
 0x261   : > { %2248 = vmatprep.subr.bf16.mxu1 %v16847_v0  ;;  %v16926_v0 = vld [vmem:[#allocation12 + $0x78c] ss:$16 sps:$4 sm:$0xff]  }
 0x263   : > { %2993 = vmatpush1.bf16.msra.mxu0 %v16842_v2  ;;  %v16921_v2 = vld [vmem:[#allocation12 + $0x360] ss:$16 sps:$4 sm:$0xff]  }
 0x264   : > { %2994 = vmatprep.subr.bf16.mxu0 %v16850_v5  ;;  %2249 = vmatpush1.bf16.msra.mxu1 %v16845_v3  ;;  %v16924_v3 = vld [vmem:[#allocation12 + $0x788] ss:$16 sps:$4 sm:$0xff]   ;;  %v16929_v5 = vld [vmem:[#allocation12 + $0x384] ss:$16 sps:$4 sm:$0xff]  }
 0x265   : > { %2261 = vmatprep.subr.bf16.mxu1 %v16853_v6  ;;  %v16932_v6 = vld [vmem:[#allocation12 + $0x7ac] ss:$16 sps:$4 sm:$0xff]  }
 0x267   : > { %2995 = vmatpush1.bf16.msra.mxu0 %v16848_v7  ;;  %2251 = vmatmul.mubr.bf16.vlgmr.msra.gmra.mrb[8].mxu1 %v19733_v58  ;;  %v16872_v58 = vld [vmem:[#allocation12 + $0x66c] ss:$16 sps:$4 sm:$0xff]   ;;  %v16927_v7 = vld [vmem:[#allocation12 + $0x380] ss:$16 sps:$4 sm:$0xff]  }
 0x268   : > { %3007 = vmatprep.subr.bf16.mxu0 %v16857_v9  ;;  %2262 = vmatpush1.bf16.msra.mxu1 %v16851_v8  ;;  %v16930_v8 = vld [vmem:[#allocation12 + $0x7a8] ss:$16 sps:$4 sm:$0xff]   ;;  %v16935_v9 = vld [vmem:[#allocation12 + $0x3a4] ss:$16 sps:$4 sm:$0xff]  }
 0x269   : > { %2263 = vmatprep.subr.bf16.mxu1 %v16860_v11  ;;  %2293 = vmatprep.mubr.bf16.mxu1 %v19735_v61  ;;  %v16878_v61 = vld [vmem:[#allocation12 + $0x68c] ss:$16 sps:$4 sm:$0xff]  }
 0x26a   : > { %2997 = vmatmul.mubr.bf16.vlgmr.msra.gmra.mrb[4].mxu0 %v19743_v16  ;;  %v16940_v11 = vld [vmem:[#allocation12 + $0x7cc] ss:$16 sps:$4 sm:$0xff]  }
 0x26b   : > { %3008 = vmatpush1.bf16.msra.mxu0 %v16855_v12  ;;  %3039 = vmatprep.mubr.bf16.mxu0 %v19746_v17  ;;  %v16933_v12 = vld [vmem:[#allocation12 + $0x3a0] ss:$16 sps:$4 sm:$0xff]  }
 0x26c   : > { %3009 = vmatprep.subr.bf16.mxu0 %v16863_v14  ;;  %2264 = vmatpush1.bf16.msra.mxu1 %v16858_v13  ;;  %v16938_v13 = vld [vmem:[#allocation12 + $0x7c8] ss:$16 sps:$4 sm:$0xff]   ;;  %v16943_v14 = vld [vmem:[#allocation12 + $0x3c4] ss:$16 sps:$4 sm:$0xff]  }
 0x26d   : > { %2265 = vmatprep.subr.bf16.mxu1 %v16866_v15  ;;  %v16946_v15 = vld [vmem:[#allocation12 + $0x7ec] ss:$16 sps:$4 sm:$0xff]  }
 0x26f   : > { %3010 = vmatpush1.bf16.msra.mxu0 %v16861_v18  ;;  %v16941_v18 = vld [vmem:[#allocation12 + $0x3c0] ss:$16 sps:$4 sm:$0xff]  }
 0x270   : > { %3011 = vmatprep.subr.bf16.mxu0 %v16869_v25  ;;  %2266 = vmatpush1.bf16.msra.mxu1 %v16864_v20  ;;  %v16944_v20 = vld [vmem:[#allocation12 + $0x7e8] ss:$16 sps:$4 sm:$0xff]   ;;  %v16949_v25 = vld [vmem:[#allocation12 + $0x3e4] ss:$16 sps:$4 sm:$0xff]  }
 0x271   : > { %2267 = vmatprep.subr.bf16.mxu1 %v16872_v58  ;;  %v16953_v58 = vld [vmem:[#allocation12 + $0xc] ss:$16 sps:$4 sm:$0xff]  }
 0x273   : > { %3012 = vmatpush1.bf16.msra.mxu0 %v16867_v26  ;;  %v3275_v26 = vshll.u32 %v19739_v63, 16 }
 0x274   : > { %3013 = vmatprep.subr.bf16.mxu0 %v16875_v29  ;;  %2268 = vmatpush1.bf16.msra.mxu1 %v16870_v28  ;;  %v16947_v28 = vld [vmem:[#allocation12 + $0x3e0] ss:$16 sps:$4 sm:$0xff]   ;;  %v16951_v29 = vld [vmem:[#allocation12 + $0x8] ss:$16 sps:$4 sm:$0xff]  }
 0x275   : > { %2269 = vmatprep.subr.bf16.mxu1 %v16878_v61  ;;  %v16956_v61 = vld [vmem:[#allocation12 + $0x804] ss:$16 sps:$4 sm:$0xff]  }
 0x277   : > { %3014 = vmatpush1.bf16.msra.mxu0 %v16873_v30  ;;  %v16959_v30 = vld [vmem:[#allocation12 + $0x2c] ss:$16 sps:$4 sm:$0xff]  }
 0x278   : > { %3015 = vmatprep.subr.bf16.mxu0 %v16881_v33  ;;  %2270 = vmatpush1.bf16.msra.mxu1 %v16876_v31  ;;  %v16954_v31 = vld [vmem:[#allocation12 + $0x800] ss:$16 sps:$4 sm:$0xff]   ;;  %v3277_v33 = vrot.slane %v3275_v26, 1  ;;  %v17022_v26 = vld [vmem:[#allocation12 + $0x964] ss:$16 sps:$4 sm:$0xff]  }
 0x279   : > { %2271 = vmatprep.subr.bf16.mxu1 %v16884_v34  ;;  %v19751_v34 = vld [vmem:[#allocation2 + $0x8] ss:$16 sps:$4 sm:$0x1f]  }
 0x27b   : > { %3016 = vmatpush1.bf16.msra.mxu0 %v16879_v35  ;;  %v18814_v35 = vld [vmem:[#allocation3 + $0x8] ss:$16 sps:$4 sm:$0x1f]  }
 0x27c   : > { %3017 = vmatprep.subr.bf16.mxu0 %v16887_v37  ;;  %2272 = vmatpush1.bf16.msra.mxu1 %v16882_v36  ;;  %v3273_v36 = vshrl.u32 %v19739_v63, 16  ;;  %v16957_v37 = vld [vmem:[#allocation12 + $0x28] ss:$16 sps:$4 sm:$0xff]   ;;  %v16971_v63 = vld [vmem:[#allocation12 + $0x6c] ss:$16 sps:$4 sm:$0xff]  }
 0x27d   : > { %2273 = vmatprep.subr.bf16.mxu1 %v16890_v38  ;;  %v16962_v38 = vld [vmem:[#allocation12 + $0x824] ss:$16 sps:$4 sm:$0xff]  }
 0x27f   : > { %3018 = vmatpush1.bf16.msra.mxu0 %v16885_v39  ;;  %v18815_v39 = vld [vmem:[#allocation2 + $0x4] ss:$16 sps:$4 sm:$0x1f]  }
 0x280   : > { %3019 = vmatprep.subr.bf16.mxu0 %v16893_v41  ;;  %2274 = vmatpush1.bf16.msra.mxu1 %v16888_v40  ;;  %v19754_v40 = vor.u32 %v3277_v33, %v3273_v36  ;;  %v16965_v41 = vld [vmem:[#allocation12 + $0x4c] ss:$16 sps:$4 sm:$0xff]   ;;  %v17026_v33 = vld [vmem:[#allocation12 + $0x980] ss:$16 sps:$4 sm:$0xff]   ;;  %v17034_v36 = vld [vmem:[#allocation12 + $0x9a4] ss:$16 sps:$4 sm:$0xff]  }
 0x281   : > { %2275 = vmatprep.subr.bf16.mxu1 %v16896_v42  ;;  %v16960_v42 = vld [vmem:[#allocation12 + $0x820] ss:$16 sps:$4 sm:$0xff]  }
 0x283   : > { %3020 = vmatpush1.bf16.msra.mxu0 %v16891_v43  ;;  %v16963_v43 = vld [vmem:[#allocation12 + $0x48] ss:$16 sps:$4 sm:$0xff]  }
 0x284   : > { %3021 = vmatprep.subr.bf16.mxu0 %v16899_v45  ;;  %2276 = vmatpush1.bf16.msra.mxu1 %v16894_v44  ;;  %v16968_v44 = vld [vmem:[#allocation12 + $0x844] ss:$16 sps:$4 sm:$0xff]   ;;  %v16966_v45 = vld [vmem:[#allocation12 + $0x840] ss:$16 sps:$4 sm:$0xff]  }
 0x285   : > { %2277 = vmatprep.subr.bf16.mxu1 %v16902_v46  ;;  %v16969_v46 = vld [vmem:[#allocation12 + $0x68] ss:$16 sps:$4 sm:$0xff]  }
 0x287   : > { %3022 = vmatpush1.bf16.msra.mxu0 %v16897_v47  ;;  %v16974_v47 = vld [vmem:[#allocation12 + $0x864] ss:$16 sps:$4 sm:$0xff]  }
 0x288   : > { %3023 = vmatprep.subr.bf16.mxu0 %v16905_v49  ;;  %2278 = vmatpush1.bf16.msra.mxu1 %v16900_v48  ;;  %v16977_v48 = vld [vmem:[#allocation12 + $0x8c] ss:$16 sps:$4 sm:$0xff]   ;;  %v16972_v49 = vld [vmem:[#allocation12 + $0x860] ss:$16 sps:$4 sm:$0xff]  }
 0x289   : > { %2279 = vmatprep.subr.bf16.mxu1 %v16908_v50  ;;  %v16975_v50 = vld [vmem:[#allocation12 + $0x88] ss:$16 sps:$4 sm:$0xff]  }
 0x28b   : > { %3024 = vmatpush1.bf16.msra.mxu0 %v16903_v51  ;;  %v16980_v51 = vld [vmem:[#allocation12 + $0x884] ss:$16 sps:$4 sm:$0xff]  }
 0x28c   : > { %3025 = vmatprep.subr.bf16.mxu0 %v16911_v53  ;;  %2280 = vmatpush1.bf16.msra.mxu1 %v16906_v52  ;;  %v16983_v52 = vld [vmem:[#allocation12 + $0xac] ss:$16 sps:$4 sm:$0xff]   ;;  %v16978_v53 = vld [vmem:[#allocation12 + $0x880] ss:$16 sps:$4 sm:$0xff]  }
 0x28d   : > { %2281 = vmatprep.subr.bf16.mxu1 %v16914_v54  ;;  %v16981_v54 = vld [vmem:[#allocation12 + $0xa8] ss:$16 sps:$4 sm:$0xff]  }
 0x28f   : > { %3026 = vmatpush1.bf16.msra.mxu0 %v16909_v55  ;;  %v16986_v55 = vld [vmem:[#allocation12 + $0x8a4] ss:$16 sps:$4 sm:$0xff]  }
 0x290   : > { %3027 = vmatprep.subr.bf16.mxu0 %v16917_v57  ;;  %2282 = vmatpush1.bf16.msra.mxu1 %v16912_v56  ;;  %v16989_v56 = vld [vmem:[#allocation12 + $0xcc] ss:$16 sps:$4 sm:$0xff]   ;;  %v16984_v57 = vld [vmem:[#allocation12 + $0x8a0] ss:$16 sps:$4 sm:$0xff]  }
 0x291   : > { %2283 = vmatprep.subr.bf16.mxu1 %v16920_v59  ;;  %v16987_v59 = vld [vmem:[#allocation12 + $0xc8] ss:$16 sps:$4 sm:$0xff]  }
 0x293   : > { %3028 = vmatpush1.bf16.msra.mxu0 %v16915_v60  ;;  %v16992_v60 = vld [vmem:[#allocation12 + $0x8c4] ss:$16 sps:$4 sm:$0xff]  }
 0x294   : > { %3029 = vmatprep.subr.bf16.mxu0 %v16923_v4  ;;  %2284 = vmatpush1.bf16.msra.mxu1 %v16918_v1  ;;  %v16995_v1 = vld [vmem:[#allocation12 + $0xec] ss:$16 sps:$4 sm:$0xff]   ;;  %v16990_v4 = vld [vmem:[#allocation12 + $0x8c0] ss:$16 sps:$4 sm:$0xff]  }
 0x295   : > { %2285 = vmatprep.subr.bf16.mxu1 %v16926_v0  ;;  %v16993_v0 = vld [vmem:[#allocation12 + $0xe8] ss:$16 sps:$4 sm:$0xff]  }
 0x297   : > { %3030 = vmatpush1.bf16.msra.mxu0 %v16921_v2  ;;  %v16998_v2 = vld [vmem:[#allocation12 + $0x8e4] ss:$16 sps:$4 sm:$0xff]  }
 0x298   : > { %3031 = vmatprep.subr.bf16.mxu0 %v16929_v5  ;;  %2286 = vmatpush1.bf16.msra.mxu1 %v16924_v3  ;;  %v17001_v3 = vld [vmem:[#allocation12 + $0x10c] ss:$16 sps:$4 sm:$0xff]   ;;  %v16996_v5 = vld [vmem:[#allocation12 + $0x8e0] ss:$16 sps:$4 sm:$0xff]  }
 0x299   : > { %2287 = vmatprep.subr.bf16.mxu1 %v16932_v6  ;;  %v16999_v6 = vld [vmem:[#allocation12 + $0x108] ss:$16 sps:$4 sm:$0xff]  }
 0x29b   : > { %3032 = vmatpush1.bf16.msra.mxu0 %v16927_v7  ;;  %v17004_v7 = vld [vmem:[#allocation12 + $0x904] ss:$16 sps:$4 sm:$0xff]  }
 0x29c   : > { %3033 = vmatprep.subr.bf16.mxu0 %v16935_v9  ;;  %2288 = vmatpush1.bf16.msra.mxu1 %v16930_v8  ;;  %v17007_v8 = vld [vmem:[#allocation12 + $0x12c] ss:$16 sps:$4 sm:$0xff]   ;;  %v17002_v9 = vld [vmem:[#allocation12 + $0x900] ss:$16 sps:$4 sm:$0xff]  }
 0x29d   : > { %2289 = vmatprep.subr.bf16.mxu1 %v16940_v11  ;;  %v17005_v11 = vld [vmem:[#allocation12 + $0x128] ss:$16 sps:$4 sm:$0xff]  }
 0x29f   : > { %3034 = vmatpush1.bf16.msra.mxu0 %v16933_v12  ;;  %v17010_v12 = vld [vmem:[#allocation12 + $0x924] ss:$16 sps:$4 sm:$0xff]  }
 0x2a0   : > { %3035 = vmatprep.subr.bf16.mxu0 %v16943_v14  ;;  %2290 = vmatpush1.bf16.msra.mxu1 %v16938_v13  ;;  %v17013_v13 = vld [vmem:[#allocation12 + $0x14c] ss:$16 sps:$4 sm:$0xff]   ;;  %v17008_v14 = vld [vmem:[#allocation12 + $0x920] ss:$16 sps:$4 sm:$0xff]  }
 0x2a1   : > { %2291 = vmatprep.subr.bf16.mxu1 %v16946_v15  ;;  %v17011_v15 = vld [vmem:[#allocation12 + $0x148] ss:$16 sps:$4 sm:$0xff]  }
 0x2a3   : > { %3036 = vmatpush1.bf16.msra.mxu0 %v16941_v18  ;;  %v17016_v18 = vld [vmem:[#allocation12 + $0x944] ss:$16 sps:$4 sm:$0xff]  }
 0x2a4   : > { %3037 = vmatprep.subr.bf16.mxu0 %v16949_v25  ;;  %2292 = vmatpush1.bf16.msra.mxu1 %v16944_v20  ;;  %v17019_v20 = vld [vmem:[#allocation12 + $0x16c] ss:$16 sps:$4 sm:$0xff]   ;;  %v17014_v25 = vld [vmem:[#allocation12 + $0x940] ss:$16 sps:$4 sm:$0xff]  }
 0x2a5   : > { %3050 = vmatprep.subr.bf16.mxu1 %v16953_v58  ;;  %v17017_v58 = vld [vmem:[#allocation12 + $0x168] ss:$16 sps:$4 sm:$0xff]  }
 0x2a7   : > { %3038 = vmatpush1.bf16.msra.mxu0 %v16947_v28  ;;  %2294 = vmatmul.mubr.bf16.vlgmr.msra.gmra.mrb[8].mxu1 %v18814_v35  ;;  %v17025_v28 = vld [vmem:[#allocation12 + $0x18c] ss:$16 sps:$4 sm:$0xff]   ;;  %v17029_v35 = vld [vmem:[#allocation12 + $0x1a8] ss:$16 sps:$4 sm:$0xff]  }
 0x2a8   : > { %3937 = vmatprep.subr.bf16.mxu0 %v16956_v61  ;;  %3051 = vmatpush1.bf16.msra.mxu1 %v16951_v29  ;;  %v17020_v29 = vld [vmem:[#allocation12 + $0x960] ss:$16 sps:$4 sm:$0xff]   ;;  %v17023_v61 = vld [vmem:[#allocation12 + $0x188] ss:$16 sps:$4 sm:$0xff]  }
 0x2a9   : > { %3082 = vmatprep.mubr.bf16.mxu1 %v18815_v39  ;;  %3052 = vmatprep.subr.bf16.mxu1 %v16959_v30  ;;  %v17028_v30 = vld [vmem:[#allocation12 + $0x984] ss:$16 sps:$4 sm:$0xff]   ;;  %v17035_v39 = vld [vmem:[#allocation12 + $0x1c8] ss:$16 sps:$4 sm:$0xff]  }
 0x2aa   : > { %3040 = vmatmul.mubr.bf16.vlgmr.msra.gmra.mrb[4].mxu0 %v19751_v34 }
 0x2ab   : > { %3938 = vmatpush1.bf16.msra.mxu0 %v16954_v31  ;;  %3969 = vmatprep.mubr.bf16.mxu0 %v19754_v40  ;;  %v17031_v31 = vld [vmem:[#allocation12 + $0x1ac] ss:$16 sps:$4 sm:$0xff]  }
 0x2ac   : > { %3939 = vmatprep.subr.bf16.mxu0 %v16962_v38  ;;  %3053 = vmatpush1.bf16.msra.mxu1 %v16957_v37  ;;  %v17037_v37 = vld [vmem:[#allocation12 + $0x1cc] ss:$16 sps:$4 sm:$0xff]   ;;  %v17032_v38 = vld [vmem:[#allocation12 + $0x9a0] ss:$16 sps:$4 sm:$0xff]  }
 0x2ad   : > { %3054 = vmatprep.subr.bf16.mxu1 %v16965_v41  ;;  %v17040_v41 = vld [vmem:[#allocation12 + $0x9c4] ss:$16 sps:$4 sm:$0xff]  }
 0x2af   : > { %3940 = vmatpush1.bf16.msra.mxu0 %v16960_v42  ;;  %v17043_v42 = vld [vmem:[#allocation12 + $0x1ec] ss:$16 sps:$4 sm:$0xff]  }
 0x2b0   : > { %3941 = vmatprep.subr.bf16.mxu0 %v16968_v44  ;;  %3055 = vmatpush1.bf16.msra.mxu1 %v16963_v43  ;;  %v17038_v43 = vld [vmem:[#allocation12 + $0x9c0] ss:$16 sps:$4 sm:$0xff]   ;;  %v17041_v44 = vld [vmem:[#allocation12 + $0x1e8] ss:$16 sps:$4 sm:$0xff]  }
 0x2b1   : > { %3056 = vmatprep.subr.bf16.mxu1 %v16971_v63  ;;  %v17046_v63 = vld [vmem:[#allocation12 + $0x9e4] ss:$16 sps:$4 sm:$0xff]  }
 0x2b3   : > { %3942 = vmatpush1.bf16.msra.mxu0 %v16966_v45  ;;  %v17049_v45 = vld [vmem:[#allocation12 + $0x20c] ss:$16 sps:$4 sm:$0xff]  }
 0x2b4   : > { %3943 = vmatprep.subr.bf16.mxu0 %v16974_v47  ;;  %3057 = vmatpush1.bf16.msra.mxu1 %v16969_v46  ;;  %v3268_v46 = vshll.u32 %v19743_v16, 16  ;;  %v3289_v47 = vshll.u32 %v19746_v17, 16  ;;  %v17058_v16 = vld [vmem:[#allocation12 + $0xa24] ss:$16 sps:$4 sm:$0xff]  }
 0x2b5   : > { %3058 = vmatprep.subr.bf16.mxu1 %v16977_v48  ;;  %v17044_v48 = vld [vmem:[#allocation12 + $0x9e0] ss:$16 sps:$4 sm:$0xff]  }
 0x2b7   : > { %3944 = vmatpush1.bf16.msra.mxu0 %v16972_v49  ;;  %v17047_v49 = vld [vmem:[#allocation12 + $0x208] ss:$16 sps:$4 sm:$0xff]  }
 0x2b8   : > { %3945 = vmatprep.subr.bf16.mxu0 %v16980_v51  ;;  %3059 = vmatpush1.bf16.msra.mxu1 %v16975_v50  ;;  %v17052_v50 = vld [vmem:[#allocation12 + $0xa04] ss:$16 sps:$4 sm:$0xff]   ;;  %v3270_v51 = vrot.slane %v3268_v46, 1  ;;  %v17109_v46 = vld [vmem:[#allocation12 + $0x34c] ss:$16 sps:$4 sm:$0xff]  }
 0x2b9   : > { %3060 = vmatprep.subr.bf16.mxu1 %v16983_v52  ;;  %v17055_v52 = vld [vmem:[#allocation12 + $0x22c] ss:$16 sps:$4 sm:$0xff]  }
 0x2bb   : > { %3946 = vmatpush1.bf16.msra.mxu0 %v16978_v53  ;;  %v17050_v53 = vld [vmem:[#allocation12 + $0xa00] ss:$16 sps:$4 sm:$0xff]  }
 0x2bc   : > { %3947 = vmatprep.subr.bf16.mxu0 %v16986_v55  ;;  %3061 = vmatpush1.bf16.msra.mxu1 %v16981_v54  ;;  %v3287_v54 = vshrl.u32 %v19746_v17, 16  ;;  %v3291_v55 = vrot.slane %v3289_v47, 1  ;;  %v17056_v17 = vld [vmem:[#allocation12 + $0xa20] ss:$16 sps:$4 sm:$0xff]  }
 0x2bd   : > { %3062 = vmatprep.subr.bf16.mxu1 %v16989_v56  ;;  %v18816_v56 = vld [vmem:[#allocation2] ss:$16 sps:$4 sm:$0x1f]   ;;  %v17104_v47 = vld [vmem:[#allocation12 + $0xb20] ss:$16 sps:$4 sm:$0xff]  }
 0x2bf   : > { %3948 = vmatpush1.bf16.msra.mxu0 %v16984_v57  ;;  %v3266_v57 = vshrl.u32 %v18816_v56, 16 }
 0x2c0   : > { %3949 = vmatprep.subr.bf16.mxu0 %v16992_v60  ;;  %3063 = vmatpush1.bf16.msra.mxu1 %v16987_v59  ;;  %v17053_v59 = vld [vmem:[#allocation12 + $0x228] ss:$16 sps:$4 sm:$0xff]   ;;  %v17061_v60 = vld [vmem:[#allocation12 + $0x24c] ss:$16 sps:$4 sm:$0xff]  }
 0x2c1   : > { %3064 = vmatprep.subr.bf16.mxu1 %v16995_v1  ;;  %v19761_v1 = vor.u32 %v3270_v51, %v3266_v57  ;;  %v17110_v51 = vld [vmem:[#allocation12 + $0xb40] ss:$16 sps:$4 sm:$0xff]   ;;  %v17124_v57 = vld [vmem:[#allocation12 + $0xb84] ss:$16 sps:$4 sm:$0xff]  }
 0x2c3   : > { %3950 = vmatpush1.bf16.msra.mxu0 %v16990_v4  ;;  %v18817_v4 = vld [vmem:[#allocation2 + $0xc] ss:$16 sps:$4 sm:$0x1f]  }
 0x2c4   : > { %3951 = vmatprep.subr.bf16.mxu0 %v16998_v2  ;;  %3065 = vmatpush1.bf16.msra.mxu1 %v16993_v0  ;;  %v19763_v0 = vor.u32 %v3291_v55, %v3287_v54  ;;  %v17059_v2 = vld [vmem:[#allocation12 + $0x248] ss:$16 sps:$4 sm:$0xff]   ;;  %v17121_v54 = vld [vmem:[#allocation12 + $0x38c] ss:$16 sps:$4 sm:$0xff]   ;;  %v17116_v55 = vld [vmem:[#allocation12 + $0xb60] ss:$16 sps:$4 sm:$0xff]  }
 0x2c5   : > { %3066 = vmatprep.subr.bf16.mxu1 %v17001_v3  ;;  %v17064_v3 = vld [vmem:[#allocation12 + $0xa44] ss:$16 sps:$4 sm:$0xff]  }
 0x2c7   : > { %3952 = vmatpush1.bf16.msra.mxu0 %v16996_v5  ;;  %v17067_v5 = vld [vmem:[#allocation12 + $0x26c] ss:$16 sps:$4 sm:$0xff]  }
 0x2c8   : > { %3953 = vmatprep.subr.bf16.mxu0 %v17004_v7  ;;  %3067 = vmatpush1.bf16.msra.mxu1 %v16999_v6  ;;  %v17062_v6 = vld [vmem:[#allocation12 + $0xa40] ss:$16 sps:$4 sm:$0xff]   ;;  %v17065_v7 = vld [vmem:[#allocation12 + $0x268] ss:$16 sps:$4 sm:$0xff]  }
 0x2c9   : > { %3068 = vmatprep.subr.bf16.mxu1 %v17007_v8  ;;  %v17070_v8 = vld [vmem:[#allocation12 + $0xa64] ss:$16 sps:$4 sm:$0xff]  }
 0x2cb   : > { %3954 = vmatpush1.bf16.msra.mxu0 %v17002_v9  ;;  %v17073_v9 = vld [vmem:[#allocation12 + $0x28c] ss:$16 sps:$4 sm:$0xff]  }
 0x2cc   : > { %3955 = vmatprep.subr.bf16.mxu0 %v17010_v12  ;;  %3069 = vmatpush1.bf16.msra.mxu1 %v17005_v11  ;;  %v17068_v11 = vld [vmem:[#allocation12 + $0xa60] ss:$16 sps:$4 sm:$0xff]   ;;  %v17071_v12 = vld [vmem:[#allocation12 + $0x288] ss:$16 sps:$4 sm:$0xff]  }
 0x2cd   : > { %3070 = vmatprep.subr.bf16.mxu1 %v17013_v13  ;;  %v17076_v13 = vld [vmem:[#allocation12 + $0xa84] ss:$16 sps:$4 sm:$0xff]  }
 0x2cf   : > { %3956 = vmatpush1.bf16.msra.mxu0 %v17008_v14  ;;  %v17079_v14 = vld [vmem:[#allocation12 + $0x2ac] ss:$16 sps:$4 sm:$0xff]  }
 0x2d0   : > { %3957 = vmatprep.subr.bf16.mxu0 %v17016_v18  ;;  %3071 = vmatpush1.bf16.msra.mxu1 %v17011_v15  ;;  %v17074_v15 = vld [vmem:[#allocation12 + $0xa80] ss:$16 sps:$4 sm:$0xff]   ;;  %v17077_v18 = vld [vmem:[#allocation12 + $0x2a8] ss:$16 sps:$4 sm:$0xff]  }
 0x2d1   : > { %3072 = vmatprep.subr.bf16.mxu1 %v17019_v20  ;;  %v17082_v20 = vld [vmem:[#allocation12 + $0xaa4] ss:$16 sps:$4 sm:$0xff]  }
 0x2d3   : > { %3958 = vmatpush1.bf16.msra.mxu0 %v17014_v25  ;;  %v17085_v25 = vld [vmem:[#allocation12 + $0x2cc] ss:$16 sps:$4 sm:$0xff]  }
 0x2d4   : > { %3959 = vmatprep.subr.bf16.mxu0 %v17022_v26  ;;  %3073 = vmatpush1.bf16.msra.mxu1 %v17017_v58  ;;  %v17080_v26 = vld [vmem:[#allocation12 + $0xaa0] ss:$16 sps:$4 sm:$0xff]  }
 0x2d5   : > { %3074 = vmatprep.subr.bf16.mxu1 %v17025_v28 }
 0x2d7   : > { %3960 = vmatpush1.bf16.msra.mxu0 %v17020_v29  ;;  %v17083_v29 = vld [vmem:[#allocation12 + $0x2c8] ss:$16 sps:$4 sm:$0xff]  }
 0x2d8   : > { %3961 = vmatprep.subr.bf16.mxu0 %v17028_v30  ;;  %3075 = vmatpush1.bf16.msra.mxu1 %v17023_v61  ;;  %v17088_v30 = vld [vmem:[#allocation12 + $0xac4] ss:$16 sps:$4 sm:$0xff]  }
 0x2d9   : > { %3076 = vmatprep.subr.bf16.mxu1 %v17031_v31  ;;  %v17091_v31 = vld [vmem:[#allocation12 + $0x2ec] ss:$16 sps:$4 sm:$0xff]  }
 0x2db   : > { %3962 = vmatpush1.bf16.msra.mxu0 %v17026_v33 }
 0x2dc   : > { %3963 = vmatprep.subr.bf16.mxu0 %v17034_v36  ;;  %3077 = vmatpush1.bf16.msra.mxu1 %v17029_v35  ;;  %v17086_v35 = vld [vmem:[#allocation12 + $0xac0] ss:$16 sps:$4 sm:$0xff]   ;;  %v17089_v36 = vld [vmem:[#allocation12 + $0x2e8] ss:$16 sps:$4 sm:$0xff]  }
 0x2dd   : > { %3078 = vmatprep.subr.bf16.mxu1 %v17037_v37  ;;  %v17094_v37 = vld [vmem:[#allocation12 + $0xae4] ss:$16 sps:$4 sm:$0xff]  }
 0x2df   : > { %3964 = vmatpush1.bf16.msra.mxu0 %v17032_v38  ;;  %v17097_v38 = vld [vmem:[#allocation12 + $0x30c] ss:$16 sps:$4 sm:$0xff]  }
 0x2e0   : > { %3965 = vmatprep.subr.bf16.mxu0 %v17040_v41  ;;  %3079 = vmatpush1.bf16.msra.mxu1 %v17035_v39  ;;  %v17092_v39 = vld [vmem:[#allocation12 + $0xae0] ss:$16 sps:$4 sm:$0xff]   ;;  %v17095_v41 = vld [vmem:[#allocation12 + $0x308] ss:$16 sps:$4 sm:$0xff]  }
 0x2e1   : > { %3080 = vmatprep.subr.bf16.mxu1 %v17043_v42  ;;  %v17100_v42 = vld [vmem:[#allocation12 + $0xb04] ss:$16 sps:$4 sm:$0xff]  }
 0x2e3   : > { %3966 = vmatpush1.bf16.msra.mxu0 %v17038_v43  ;;  %v17103_v43 = vld [vmem:[#allocation12 + $0x32c] ss:$16 sps:$4 sm:$0xff]  }
 0x2e4   : > { %3967 = vmatprep.subr.bf16.mxu0 %v17046_v63  ;;  %3081 = vmatpush1.bf16.msra.mxu1 %v17041_v44  ;;  %v17098_v44 = vld [vmem:[#allocation12 + $0xb00] ss:$16 sps:$4 sm:$0xff]   ;;  %v17101_v63 = vld [vmem:[#allocation12 + $0x328] ss:$16 sps:$4 sm:$0xff]  }
 0x2e5   : > { %3093 = vmatprep.subr.bf16.mxu1 %v17049_v45  ;;  %v17106_v45 = vld [vmem:[#allocation12 + $0xb24] ss:$16 sps:$4 sm:$0xff]  }
 0x2e7   : > { %3968 = vmatpush1.bf16.msra.mxu0 %v17044_v48  ;;  %3083 = vmatmul.mubr.bf16.vlgmr.msra.gmra.mrb[8].mxu1 %v18816_v56  ;;  %v17107_v48 = vld [vmem:[#allocation12 + $0x348] ss:$16 sps:$4 sm:$0xff]  }
 0x2e8   : > { %3980 = vmatprep.subr.bf16.mxu0 %v17052_v50  ;;  %3094 = vmatpush1.bf16.msra.mxu1 %v17047_v49  ;;  %v17112_v49 = vld [vmem:[#allocation12 + $0xb44] ss:$16 sps:$4 sm:$0xff]   ;;  %v17115_v50 = vld [vmem:[#allocation12 + $0x36c] ss:$16 sps:$4 sm:$0xff]   ;;  %v17119_v56 = vld [vmem:[#allocation12 + $0x388] ss:$16 sps:$4 sm:$0xff]  }
 0x2e9   : > { %3125 = vmatprep.mubr.bf16.mxu1 %v18817_v4  ;;  %3095 = vmatprep.subr.bf16.mxu1 %v17055_v52  ;;  %v17113_v52 = vld [vmem:[#allocation12 + $0x368] ss:$16 sps:$4 sm:$0xff]   ;;  %v17130_v4 = vld [vmem:[#allocation12 + $0xba4] ss:$16 sps:$4 sm:$0xff]  }
 0x2ea   : > { %3970 = vmatmul.mubr.bf16.vlgmr.msra.gmra.mrb[4].mxu0 %v19761_v1 }
 0x2eb   : > { %3981 = vmatpush1.bf16.msra.mxu0 %v17050_v53  ;;  %4012 = vmatprep.mubr.bf16.mxu0 %v19763_v0  ;;  %v17118_v53 = vld [vmem:[#allocation12 + $0xb64] ss:$16 sps:$4 sm:$0xff]  }
 0x2ec   : > { %3982 = vmatprep.subr.bf16.mxu0 %v17058_v16  ;;  %3096 = vmatpush1.bf16.msra.mxu1 %v17053_v59  ;;  %v17127_v59 = vld [vmem:[#allocation12 + $0x3ac] ss:$16 sps:$4 sm:$0xff]   ;;  %v17122_v16 = vld [vmem:[#allocation12 + $0xb80] ss:$16 sps:$4 sm:$0xff]  }
 0x2ed   : > { %3097 = vmatprep.subr.bf16.mxu1 %v17061_v60  ;;  %v17125_v60 = vld [vmem:[#allocation12 + $0x3a8] ss:$16 sps:$4 sm:$0xff]  }
 0x2ef   : > { %3983 = vmatpush1.bf16.msra.mxu0 %v17056_v17  ;;  %v17133_v17 = vld [vmem:[#allocation12 + $0x3cc] ss:$16 sps:$4 sm:$0xff]  }
 0x2f0   : > { %3984 = vmatprep.subr.bf16.mxu0 %v17064_v3  ;;  %3098 = vmatpush1.bf16.msra.mxu1 %v17059_v2  ;;  %v17128_v2 = vld [vmem:[#allocation12 + $0xba0] ss:$16 sps:$4 sm:$0xff]   ;;  %v17131_v3 = vld [vmem:[#allocation12 + $0x3c8] ss:$16 sps:$4 sm:$0xff]  }
 0x2f1   : > { %3099 = vmatprep.subr.bf16.mxu1 %v17067_v5  ;;  %v17136_v5 = vld [vmem:[#allocation12 + $0xbc4] ss:$16 sps:$4 sm:$0xff]  }
 0x2f3   : > { %3985 = vmatpush1.bf16.msra.mxu0 %v17062_v6  ;;  %v17139_v6 = vld [vmem:[#allocation12 + $0x3ec] ss:$16 sps:$4 sm:$0xff]  }
 0x2f4   : > { %3986 = vmatprep.subr.bf16.mxu0 %v17070_v8  ;;  %3100 = vmatpush1.bf16.msra.mxu1 %v17065_v7  ;;  %v17134_v7 = vld [vmem:[#allocation12 + $0xbc0] ss:$16 sps:$4 sm:$0xff]   ;;  %v17137_v8 = vld [vmem:[#allocation12 + $0x3e8] ss:$16 sps:$4 sm:$0xff]  }
 0x2f5   : > { %3101 = vmatprep.subr.bf16.mxu1 %v17073_v9  ;;  %v17142_v9 = vld [vmem:[#allocation12 + $0xbe4] ss:$16 sps:$4 sm:$0xff]  }
 0x2f7   : > { %3987 = vmatpush1.bf16.msra.mxu0 %v17068_v11  ;;  %v3282_v11 = vshll.u32 %v19751_v34, 16 }
 0x2f8   : > { %3988 = vmatprep.subr.bf16.mxu0 %v17076_v13  ;;  %3102 = vmatpush1.bf16.msra.mxu1 %v17071_v12  ;;  %v17145_v12 = vld [vmem:[#allocation12 + $0x80c] ss:$16 sps:$4 sm:$0xff]   ;;  %v18818_v13 = vld [vmem:[#allocation3 + $0x4] ss:$16 sps:$4 sm:$0x1f]  }
 0x2f9   : > { %3103 = vmatprep.subr.bf16.mxu1 %v17079_v14  ;;  %v4256_v14 = vshll.u32 %v18818_v13, 16  ;;  %v4254_v34 = vshrl.u32 %v18818_v13, 16  ;;  %v17200_v13 = vld [vmem:[#allocation12 + $0xd20] ss:$16 sps:$4 sm:$0xff]  }
 0x2fa   : > { %v19767_v58 = vpop.f32.mrb[4].mxu1 }
 0x2fb   : > { %3989 = vmatpush1.bf16.msra.mxu0 %v17074_v15  ;;  %v19769_v28 = vpop.f32.mrb[5].mxu1  ;;  %v17140_v15 = vld [vmem:[#allocation12 + $0xbe0] ss:$16 sps:$4 sm:$0xff]  }
 0x2fc   : > { %3990 = vmatprep.subr.bf16.mxu0 %v17082_v20  ;;  %3104 = vmatpush1.bf16.msra.mxu1 %v17077_v18  ;;  %v19771_v61 = vpop.f32.mrb[6].mxu1  ;;  %v17143_v18 = vld [vmem:[#allocation12 + $0x808] ss:$16 sps:$4 sm:$0xff]   ;;  %v17148_v20 = vld [vmem:[#allocation12 + $0xc04] ss:$16 sps:$4 sm:$0xff]  }
 0x2fd   : > { %v19773_v33 = vpop.f32.mrb[7].mxu1  ;;  %3105 = vmatprep.subr.bf16.mxu1 %v17085_v25  ;;  %v18819_v25 = vld [vmem:[#allocation2 + $0x8] ss:$16 sps:$4 sm:$0x1f]  }
 0x2ff   : > { %3991 = vmatpush1.bf16.msra.mxu0 %v17080_v26  ;;  %v3280_v26 = vshrl.u32 %v18819_v25, 16 }
 0x300   : > { %3992 = vmatprep.subr.bf16.mxu0 %v17088_v30  ;;  %3106 = vmatpush1.bf16.msra.mxu1 %v17083_v29  ;;  %v3284_v29 = vrot.slane %v3282_v11, 1  ;;  %v17151_v30 = vld [vmem:[#allocation12 + $0x82c] ss:$16 sps:$4 sm:$0xff]   ;;  %v17202_v11 = vld [vmem:[#allocation12 + $0xd24] ss:$16 sps:$4 sm:$0xff]  }
 0x301   : > { %3107 = vmatprep.subr.bf16.mxu1 %v17091_v31  ;;  %v17146_v31 = vld [vmem:[#allocation12 + $0xc00] ss:$16 sps:$4 sm:$0xff]  }
 0x303   : > { %3993 = vmatpush1.bf16.msra.mxu0 %v17086_v35  ;;  %v4258_v35 = vrot.slane %v4256_v14, 1  ;;  %v17203_v14 = vld [vmem:[#allocation12 + $0x948] ss:$16 sps:$4 sm:$0xff]  }
 0x304   : > { %3994 = vmatprep.subr.bf16.mxu0 %v17094_v37  ;;  %3108 = vmatpush1.bf16.msra.mxu1 %v17089_v36  ;;  %v17149_v36 = vld [vmem:[#allocation12 + $0x828] ss:$16 sps:$4 sm:$0xff]   ;;  %v17154_v37 = vld [vmem:[#allocation12 + $0xc24] ss:$16 sps:$4 sm:$0xff]  }
 0x305   : > { %3109 = vmatprep.subr.bf16.mxu1 %v17097_v38  ;;  %v17157_v38 = vld [vmem:[#allocation12 + $0x84c] ss:$16 sps:$4 sm:$0xff]  }
 0x307   : > { %3995 = vmatpush1.bf16.msra.mxu0 %v17092_v39  ;;  %v19776_v39 = vor.u32 %v3284_v29, %v3280_v26  ;;  %v17214_v26 = vld [vmem:[#allocation12 + $0xd64] ss:$16 sps:$4 sm:$0xff]   ;;  %v17217_v29 = vld [vmem:[#allocation12 + $0x98c] ss:$16 sps:$4 sm:$0xff]  }
 0x308   : > { %3996 = vmatprep.subr.bf16.mxu0 %v17100_v42  ;;  %3110 = vmatpush1.bf16.msra.mxu1 %v17095_v41  ;;  %v19779_v41 = vor.u32 %v4258_v35, %v4254_v34  ;;  %v17152_v42 = vld [vmem:[#allocation12 + $0xc20] ss:$16 sps:$4 sm:$0xff]   ;;  %v17220_v35 = vld [vmem:[#allocation12 + $0xd84] ss:$16 sps:$4 sm:$0xff]   ;;  %v17221_v34 = vld [vmem:[#allocation12 + $0x9a8] ss:$16 sps:$4 sm:$0xff]  }
 0x309   : > { %3111 = vmatprep.subr.bf16.mxu1 %v17103_v43  ;;  %v17155_v43 = vld [vmem:[#allocation12 + $0x848] ss:$16 sps:$4 sm:$0xff]  }
 0x30b   : > { %3997 = vmatpush1.bf16.msra.mxu0 %v17098_v44  ;;  %v17160_v44 = vld [vmem:[#allocation12 + $0xc44] ss:$16 sps:$4 sm:$0xff]  }
 0x30c   : > { %3998 = vmatprep.subr.bf16.mxu0 %v17106_v45  ;;  %3112 = vmatpush1.bf16.msra.mxu1 %v17101_v63  ;;  %v17163_v63 = vld [vmem:[#allocation12 + $0x86c] ss:$16 sps:$4 sm:$0xff]   ;;  %v17158_v45 = vld [vmem:[#allocation12 + $0xc40] ss:$16 sps:$4 sm:$0xff]  }
 0x30d   : > { %3113 = vmatprep.subr.bf16.mxu1 %v17109_v46  ;;  %v17161_v46 = vld [vmem:[#allocation12 + $0x868] ss:$16 sps:$4 sm:$0xff]  }
 0x30f   : > { %3999 = vmatpush1.bf16.msra.mxu0 %v17104_v47  ;;  %v17169_v47 = vld [vmem:[#allocation12 + $0x88c] ss:$16 sps:$4 sm:$0xff]  }
 0x310   : > { %4000 = vmatprep.subr.bf16.mxu0 %v17112_v49  ;;  %3114 = vmatpush1.bf16.msra.mxu1 %v17107_v48  ;;  %v17164_v48 = vld [vmem:[#allocation12 + $0xc60] ss:$16 sps:$4 sm:$0xff]   ;;  %v17167_v49 = vld [vmem:[#allocation12 + $0x888] ss:$16 sps:$4 sm:$0xff]  }
 0x311   : > { %3115 = vmatprep.subr.bf16.mxu1 %v17115_v50  ;;  %v17172_v50 = vld [vmem:[#allocation12 + $0xc84] ss:$16 sps:$4 sm:$0xff]  }
 0x313   : > { %4001 = vmatpush1.bf16.msra.mxu0 %v17110_v51  ;;  %v17175_v51 = vld [vmem:[#allocation12 + $0x8ac] ss:$16 sps:$4 sm:$0xff]  }
 0x314   : > { %4002 = vmatprep.subr.bf16.mxu0 %v17118_v53  ;;  %3116 = vmatpush1.bf16.msra.mxu1 %v17113_v52  ;;  %v17170_v52 = vld [vmem:[#allocation12 + $0xc80] ss:$16 sps:$4 sm:$0xff]   ;;  %v17173_v53 = vld [vmem:[#allocation12 + $0x8a8] ss:$16 sps:$4 sm:$0xff]  }
 0x315   : > { %3117 = vmatprep.subr.bf16.mxu1 %v17121_v54  ;;  %v17178_v54 = vld [vmem:[#allocation12 + $0xca4] ss:$16 sps:$4 sm:$0xff]  }
 0x317   : > { %4003 = vmatpush1.bf16.msra.mxu0 %v17116_v55  ;;  %v17181_v55 = vld [vmem:[#allocation12 + $0x8cc] ss:$16 sps:$4 sm:$0xff]  }
 0x318   : > { %4004 = vmatprep.subr.bf16.mxu0 %v17124_v57  ;;  %3118 = vmatpush1.bf16.msra.mxu1 %v17119_v56  ;;  %v17176_v56 = vld [vmem:[#allocation12 + $0xca0] ss:$16 sps:$4 sm:$0xff]   ;;  %v17179_v57 = vld [vmem:[#allocation12 + $0x8c8] ss:$16 sps:$4 sm:$0xff]  }
 0x319   : > { %3119 = vmatprep.subr.bf16.mxu1 %v17127_v59  ;;  %v17184_v59 = vld [vmem:[#allocation12 + $0xcc4] ss:$16 sps:$4 sm:$0xff]  }
 0x31b   : > { %4005 = vmatpush1.bf16.msra.mxu0 %v17122_v16  ;;  %v17187_v16 = vld [vmem:[#allocation12 + $0x8ec] ss:$16 sps:$4 sm:$0xff]  }
 0x31c   : > { %4006 = vmatprep.subr.bf16.mxu0 %v17130_v4  ;;  %3120 = vmatpush1.bf16.msra.mxu1 %v17125_v60  ;;  %v17182_v60 = vld [vmem:[#allocation12 + $0xcc0] ss:$16 sps:$4 sm:$0xff]   ;;  %v17185_v4 = vld [vmem:[#allocation12 + $0x8e8] ss:$16 sps:$4 sm:$0xff]  }
 0x31d   : > { %3121 = vmatprep.subr.bf16.mxu1 %v17133_v17  ;;  %v17190_v17 = vld [vmem:[#allocation12 + $0xce4] ss:$16 sps:$4 sm:$0xff]  }
 0x31f   : > { %4007 = vmatpush1.bf16.msra.mxu0 %v17128_v2  ;;  %v17193_v2 = vld [vmem:[#allocation12 + $0x90c] ss:$16 sps:$4 sm:$0xff]  }
 0x320   : > { %4008 = vmatprep.subr.bf16.mxu0 %v17136_v5  ;;  %3122 = vmatpush1.bf16.msra.mxu1 %v17131_v3  ;;  %v17188_v3 = vld [vmem:[#allocation12 + $0xce0] ss:$16 sps:$4 sm:$0xff]   ;;  %v17191_v5 = vld [vmem:[#allocation12 + $0x908] ss:$16 sps:$4 sm:$0xff]  }
 0x321   : > { %3123 = vmatprep.subr.bf16.mxu1 %v17139_v6  ;;  %v17196_v6 = vld [vmem:[#allocation12 + $0xd04] ss:$16 sps:$4 sm:$0xff]  }
 0x323   : > { %4009 = vmatpush1.bf16.msra.mxu0 %v17134_v7  ;;  %v17199_v7 = vld [vmem:[#allocation12 + $0x92c] ss:$16 sps:$4 sm:$0xff]  }
 0x324   : > { %4010 = vmatprep.subr.bf16.mxu0 %v17142_v9  ;;  %3124 = vmatpush1.bf16.msra.mxu1 %v17137_v8  ;;  %v17194_v8 = vld [vmem:[#allocation12 + $0xd00] ss:$16 sps:$4 sm:$0xff]   ;;  %v17197_v9 = vld [vmem:[#allocation12 + $0x928] ss:$16 sps:$4 sm:$0xff]  }
 0x325   : > { %4023 = vmatprep.subr.bf16.mxu1 %v17145_v12  ;;  %v17205_v12 = vld [vmem:[#allocation12 + $0x94c] ss:$16 sps:$4 sm:$0xff]  }
 0x327   : > { %4011 = vmatpush1.bf16.msra.mxu0 %v17140_v15  ;;  %3126 = vmatmul.mubr.bf16.vlgmr.msra.gmra.mrb[8].mxu1 %v18819_v25  ;;  %v17208_v15 = vld [vmem:[#allocation12 + $0xd44] ss:$16 sps:$4 sm:$0xff]   ;;  %v17209_v25 = vld [vmem:[#allocation12 + $0x968] ss:$16 sps:$4 sm:$0xff]  }
 0x328   : > { %4918 = vmatprep.subr.bf16.mxu0 %v17148_v20  ;;  %4024 = vmatpush1.bf16.msra.mxu1 %v17143_v18  ;;  %v17211_v18 = vld [vmem:[#allocation12 + $0x96c] ss:$16 sps:$4 sm:$0xff]   ;;  %v17206_v20 = vld [vmem:[#allocation12 + $0xd40] ss:$16 sps:$4 sm:$0xff]  }
 0x329   : > { %4055 = vmatprep.mubr.bf16.mxu1 %v19754_v40  ;;  %4025 = vmatprep.subr.bf16.mxu1 %v17151_v30  ;;  %v17166_v40 = vld [vmem:[#allocation12 + $0xc64] ss:$16 sps:$4 sm:$0xff]   ;;  %v17212_v30 = vld [vmem:[#allocation12 + $0xd60] ss:$16 sps:$4 sm:$0xff]  }
 0x32a   : > { %4013 = vmatmul.mubr.bf16.vlgmr.msra.gmra.mrb[4].mxu0 %v19776_v39 }
 0x32b   : > { %4919 = vmatpush1.bf16.msra.mxu0 %v17146_v31  ;;  %4950 = vmatprep.mubr.bf16.mxu0 %v19779_v41  ;;  %v17215_v31 = vld [vmem:[#allocation12 + $0x988] ss:$16 sps:$4 sm:$0xff]  }
 0x32c   : > { %4920 = vmatprep.subr.bf16.mxu0 %v17154_v37  ;;  %4026 = vmatpush1.bf16.msra.mxu1 %v17149_v36  ;;  %v17223_v36 = vld [vmem:[#allocation12 + $0x9ac] ss:$16 sps:$4 sm:$0xff]   ;;  %v17218_v37 = vld [vmem:[#allocation12 + $0xd80] ss:$16 sps:$4 sm:$0xff]  }
 0x32d   : > { %4027 = vmatprep.subr.bf16.mxu1 %v17157_v38  ;;  %v17226_v38 = vld [vmem:[#allocation12 + $0xda4] ss:$16 sps:$4 sm:$0xff]  }
 0x32f   : > { %4921 = vmatpush1.bf16.msra.mxu0 %v17152_v42  ;;  %v17229_v42 = vld [vmem:[#allocation12 + $0x9cc] ss:$16 sps:$4 sm:$0xff]  }
 0x330   : > { %4922 = vmatprep.subr.bf16.mxu0 %v17160_v44  ;;  %4028 = vmatpush1.bf16.msra.mxu1 %v17155_v43  ;;  %v17224_v43 = vld [vmem:[#allocation12 + $0xda0] ss:$16 sps:$4 sm:$0xff]   ;;  %v17227_v44 = vld [vmem:[#allocation12 + $0x9c8] ss:$16 sps:$4 sm:$0xff]  }
 0x331   : > { %4029 = vmatprep.subr.bf16.mxu1 %v17163_v63  ;;  %v17232_v63 = vld [vmem:[#allocation12 + $0xdc4] ss:$16 sps:$4 sm:$0xff]  }
 0x333   : > { %4923 = vmatpush1.bf16.msra.mxu0 %v17158_v45  ;;  %v17235_v45 = vld [vmem:[#allocation12 + $0x9ec] ss:$16 sps:$4 sm:$0xff]  }
 0x334   : > { %4924 = vmatprep.subr.bf16.mxu0 %v17166_v40  ;;  %4030 = vmatpush1.bf16.msra.mxu1 %v17161_v46  ;;  %v17230_v46 = vld [vmem:[#allocation12 + $0xdc0] ss:$16 sps:$4 sm:$0xff]   ;;  %v17233_v40 = vld [vmem:[#allocation12 + $0x9e8] ss:$16 sps:$4 sm:$0xff]  }
 0x335   : > { %4031 = vmatprep.subr.bf16.mxu1 %v17169_v47  ;;  %v17238_v47 = vld [vmem:[#allocation12 + $0xde4] ss:$16 sps:$4 sm:$0xff]  }
 0x337   : > { %4925 = vmatpush1.bf16.msra.mxu0 %v17164_v48  ;;  %v17241_v48 = vld [vmem:[#allocation12 + $0xa0c] ss:$16 sps:$4 sm:$0xff]  }
 0x338   : > { %4926 = vmatprep.subr.bf16.mxu0 %v17172_v50  ;;  %4032 = vmatpush1.bf16.msra.mxu1 %v17167_v49  ;;  %v18820_v49 = vld [vmem:[#allocation3] ss:$16 sps:$4 sm:$0x1f]  }
 0x339   : > { %4033 = vmatprep.subr.bf16.mxu1 %v17175_v51  ;;  %v4249_v50 = vshll.u32 %v18820_v49, 16  ;;  %v17236_v51 = vld [vmem:[#allocation12 + $0xde0] ss:$16 sps:$4 sm:$0xff]  }
 0x33b   : > { %4927 = vmatpush1.bf16.msra.mxu0 %v17170_v52  ;;  %v18821_v52 = vld [vmem:[#allocation3 + $0xc] ss:$16 sps:$4 sm:$0x1f]  }
 0x33c   : > { %4928 = vmatprep.subr.bf16.mxu0 %v17178_v54  ;;  %4034 = vmatpush1.bf16.msra.mxu1 %v17173_v53  ;;  %v4270_v53 = vshll.u32 %v18821_v52, 16  ;;  %v17239_v54 = vld [vmem:[#allocation12 + $0xa08] ss:$16 sps:$4 sm:$0xff]  }
 0x33d   : > { %4035 = vmatprep.subr.bf16.mxu1 %v17181_v55  ;;  %v17244_v55 = vld [vmem:[#allocation12 + $0xe04] ss:$16 sps:$4 sm:$0xff]  }
 0x33f   : > { %4929 = vmatpush1.bf16.msra.mxu0 %v17176_v56  ;;  %v17247_v56 = vld [vmem:[#allocation12 + $0xa2c] ss:$16 sps:$4 sm:$0xff]  }
 0x340   : > { %4930 = vmatprep.subr.bf16.mxu0 %v17184_v59  ;;  %4036 = vmatpush1.bf16.msra.mxu1 %v17179_v57  ;;  %v4251_v57 = vrot.slane %v4249_v50, 1  ;;  %v4268_v59 = vshrl.u32 %v18821_v52, 16  ;;  %v17296_v50 = vld [vmem:[#allocation12 + $0xf20] ss:$16 sps:$4 sm:$0xff]   ;;  %v17304_v52 = vld [vmem:[#allocation12 + $0xf44] ss:$16 sps:$4 sm:$0xff]  }
 0x341   : > { %4037 = vmatprep.subr.bf16.mxu1 %v17187_v16  ;;  %v4272_v16 = vrot.slane %v4270_v53, 1  ;;  %v17307_v53 = vld [vmem:[#allocation12 + $0xb6c] ss:$16 sps:$4 sm:$0xff]  }
 0x343   : > { %4931 = vmatpush1.bf16.msra.mxu0 %v17182_v60  ;;  %v4247_v60 = vshrl.u32 %v18820_v49, 16  ;;  %v17301_v49 = vld [vmem:[#allocation12 + $0xb4c] ss:$16 sps:$4 sm:$0xff]  }
 0x344   : > { %4932 = vmatprep.subr.bf16.mxu0 %v17190_v17  ;;  %4038 = vmatpush1.bf16.msra.mxu1 %v17185_v4  ;;  %v17242_v4 = vld [vmem:[#allocation12 + $0xe00] ss:$16 sps:$4 sm:$0xff]   ;;  %v17245_v17 = vld [vmem:[#allocation12 + $0xa28] ss:$16 sps:$4 sm:$0xff]  }
 0x345   : > { %4039 = vmatprep.subr.bf16.mxu1 %v17193_v2  ;;  %v19784_v2 = vor.u32 %v4251_v57, %v4247_v60  ;;  %v17308_v60 = vld [vmem:[#allocation12 + $0xf60] ss:$16 sps:$4 sm:$0xff]  }
 0x347   : > { %4933 = vmatpush1.bf16.msra.mxu0 %v17188_v3  ;;  %v17250_v3 = vld [vmem:[#allocation12 + $0xe24] ss:$16 sps:$4 sm:$0xff]  }
 0x348   : > { %4934 = vmatprep.subr.bf16.mxu0 %v17196_v6  ;;  %4040 = vmatpush1.bf16.msra.mxu1 %v17191_v5  ;;  %v17253_v5 = vld [vmem:[#allocation12 + $0xa4c] ss:$16 sps:$4 sm:$0xff]   ;;  %v19787_v6 = vor.u32 %v4272_v16, %v4268_v59  ;;  %v17310_v59 = vld [vmem:[#allocation12 + $0xf64] ss:$16 sps:$4 sm:$0xff]  }
 0x349   : > { %4041 = vmatprep.subr.bf16.mxu1 %v17199_v7  ;;  %v17248_v7 = vld [vmem:[#allocation12 + $0xe20] ss:$16 sps:$4 sm:$0xff]   ;;  %v17313_v16 = vld [vmem:[#allocation12 + $0xb8c] ss:$16 sps:$4 sm:$0xff]  }
 0x34b   : > { %4935 = vmatpush1.bf16.msra.mxu0 %v17194_v8  ;;  %v17251_v8 = vld [vmem:[#allocation12 + $0xa48] ss:$16 sps:$4 sm:$0xff]  }
 0x34c   : > { %4936 = vmatprep.subr.bf16.mxu0 %v17202_v11  ;;  %4042 = vmatpush1.bf16.msra.mxu1 %v17197_v9  ;;  %v17259_v9 = vld [vmem:[#allocation12 + $0xa6c] ss:$16 sps:$4 sm:$0xff]   ;;  %v17254_v11 = vld [vmem:[#allocation12 + $0xe40] ss:$16 sps:$4 sm:$0xff]  }
 0x34d   : > { %4043 = vmatprep.subr.bf16.mxu1 %v17205_v12  ;;  %v17257_v12 = vld [vmem:[#allocation12 + $0xa68] ss:$16 sps:$4 sm:$0xff]  }
 0x34f   : > { %4937 = vmatpush1.bf16.msra.mxu0 %v17200_v13  ;;  %v17265_v13 = vld [vmem:[#allocation12 + $0xa8c] ss:$16 sps:$4 sm:$0xff]  }
 0x350   : > { %4938 = vmatprep.subr.bf16.mxu0 %v17208_v15  ;;  %4044 = vmatpush1.bf16.msra.mxu1 %v17203_v14  ;;  %v17260_v14 = vld [vmem:[#allocation12 + $0xe60] ss:$16 sps:$4 sm:$0xff]   ;;  %v17263_v15 = vld [vmem:[#allocation12 + $0xa88] ss:$16 sps:$4 sm:$0xff]  }
 0x351   : > { %4045 = vmatprep.subr.bf16.mxu1 %v17211_v18  ;;  %v17268_v18 = vld [vmem:[#allocation12 + $0xe84] ss:$16 sps:$4 sm:$0xff]  }
 0x353   : > { %4939 = vmatpush1.bf16.msra.mxu0 %v17206_v20  ;;  %v17271_v20 = vld [vmem:[#allocation12 + $0xaac] ss:$16 sps:$4 sm:$0xff]  }
 0x354   : > { %4940 = vmatprep.subr.bf16.mxu0 %v17214_v26  ;;  %4046 = vmatpush1.bf16.msra.mxu1 %v17209_v25  ;;  %v17266_v25 = vld [vmem:[#allocation12 + $0xe80] ss:$16 sps:$4 sm:$0xff]   ;;  %v17269_v26 = vld [vmem:[#allocation12 + $0xaa8] ss:$16 sps:$4 sm:$0xff]  }
 0x355   : > { %4047 = vmatprep.subr.bf16.mxu1 %v17217_v29  ;;  %v17274_v29 = vld [vmem:[#allocation12 + $0xea4] ss:$16 sps:$4 sm:$0xff]  }
 0x357   : > { %4941 = vmatpush1.bf16.msra.mxu0 %v17212_v30  ;;  %v17277_v30 = vld [vmem:[#allocation12 + $0xacc] ss:$16 sps:$4 sm:$0xff]  }
 0x358   : > { %4942 = vmatprep.subr.bf16.mxu0 %v17220_v35  ;;  %4048 = vmatpush1.bf16.msra.mxu1 %v17215_v31  ;;  %v17272_v31 = vld [vmem:[#allocation12 + $0xea0] ss:$16 sps:$4 sm:$0xff]   ;;  %v17275_v35 = vld [vmem:[#allocation12 + $0xac8] ss:$16 sps:$4 sm:$0xff]  }
 0x359   : > { %4049 = vmatprep.subr.bf16.mxu1 %v17223_v36  ;;  %v17280_v36 = vld [vmem:[#allocation12 + $0xec4] ss:$16 sps:$4 sm:$0xff]  }
 0x35b   : > { %4943 = vmatpush1.bf16.msra.mxu0 %v17218_v37  ;;  %v17283_v37 = vld [vmem:[#allocation12 + $0xaec] ss:$16 sps:$4 sm:$0xff]  }
 0x35c   : > { %4944 = vmatprep.subr.bf16.mxu0 %v17226_v38  ;;  %4050 = vmatpush1.bf16.msra.mxu1 %v17221_v34  ;;  %v17278_v34 = vld [vmem:[#allocation12 + $0xec0] ss:$16 sps:$4 sm:$0xff]   ;;  %v17281_v38 = vld [vmem:[#allocation12 + $0xae8] ss:$16 sps:$4 sm:$0xff]  }
 0x35d   : > { %4051 = vmatprep.subr.bf16.mxu1 %v17229_v42  ;;  %v17286_v42 = vld [vmem:[#allocation12 + $0xee4] ss:$16 sps:$4 sm:$0xff]  }
 0x35f   : > { %4945 = vmatpush1.bf16.msra.mxu0 %v17224_v43  ;;  %v17289_v43 = vld [vmem:[#allocation12 + $0xb0c] ss:$16 sps:$4 sm:$0xff]  }
 0x360   : > { %4946 = vmatprep.subr.bf16.mxu0 %v17232_v63  ;;  %4052 = vmatpush1.bf16.msra.mxu1 %v17227_v44  ;;  %v17284_v44 = vld [vmem:[#allocation12 + $0xee0] ss:$16 sps:$4 sm:$0xff]   ;;  %v17287_v63 = vld [vmem:[#allocation12 + $0xb08] ss:$16 sps:$4 sm:$0xff]  }
 0x361   : > { %4053 = vmatprep.subr.bf16.mxu1 %v17235_v45  ;;  %v17292_v45 = vld [vmem:[#allocation12 + $0xf04] ss:$16 sps:$4 sm:$0xff]  }
 0x363   : > { %4947 = vmatpush1.bf16.msra.mxu0 %v17230_v46  ;;  %v17295_v46 = vld [vmem:[#allocation12 + $0xb2c] ss:$16 sps:$4 sm:$0xff]  }
 0x364   : > { %4948 = vmatprep.subr.bf16.mxu0 %v17238_v47  ;;  %4054 = vmatpush1.bf16.msra.mxu1 %v17233_v40  ;;  %v17290_v40 = vld [vmem:[#allocation12 + $0xf00] ss:$16 sps:$4 sm:$0xff]   ;;  %v17293_v47 = vld [vmem:[#allocation12 + $0xb28] ss:$16 sps:$4 sm:$0xff]  }
 0x365   : > { %4066 = vmatprep.subr.bf16.mxu1 %v17241_v48  ;;  %v17298_v48 = vld [vmem:[#allocation12 + $0xf24] ss:$16 sps:$4 sm:$0xff]  }
 0x367   : > { %4949 = vmatpush1.bf16.msra.mxu0 %v17236_v51  ;;  %4056 = vmatmul.mubr.bf16.vlgmr.msra.gmra.mrb[8].mxu1 %v19761_v1  ;;  %v17256_v1 = vld [vmem:[#allocation12 + $0xe44] ss:$16 sps:$4 sm:$0xff]   ;;  %v17299_v51 = vld [vmem:[#allocation12 + $0xb48] ss:$16 sps:$4 sm:$0xff]  }
 0x368   : > { %4961 = vmatprep.subr.bf16.mxu0 %v17244_v55  ;;  %4067 = vmatpush1.bf16.msra.mxu1 %v17239_v54  ;;  %v17302_v54 = vld [vmem:[#allocation12 + $0xf40] ss:$16 sps:$4 sm:$0xff]   ;;  %v17305_v55 = vld [vmem:[#allocation12 + $0xb68] ss:$16 sps:$4 sm:$0xff]  }
 0x369   : > { %4098 = vmatprep.mubr.bf16.mxu1 %v19763_v0  ;;  %4068 = vmatprep.subr.bf16.mxu1 %v17247_v56  ;;  %v17262_v0 = vld [vmem:[#allocation12 + $0xe64] ss:$16 sps:$4 sm:$0xff]  }
 0x36a   : > { %4951 = vmatmul.mubr.bf16.vlgmr.msra.gmra.mrb[4].mxu0 %v19784_v2  ;;  %v18822_v56 = vld [vmem:[#allocation3 + $0x8] ss:$16 sps:$4 sm:$0x1f]  }
 0x36b   : > { %4962 = vmatpush1.bf16.msra.mxu0 %v17242_v4  ;;  %4993 = vmatprep.mubr.bf16.mxu0 %v19787_v6  ;;  %v4263_v57 = vshll.u32 %v18822_v56, 16  ;;  %v17311_v4 = vld [vmem:[#allocation12 + $0xb88] ss:$16 sps:$4 sm:$0xff]  }
 0x36c   : > { %4963 = vmatprep.subr.bf16.mxu0 %v17250_v3  ;;  %4069 = vmatpush1.bf16.msra.mxu1 %v17245_v17  ;;  %v4261_v17 = vshrl.u32 %v18822_v56, 16  ;;  %v17376_v56 = vld [vmem:[#allocation12 + $0xdac] ss:$16 sps:$4 sm:$0xff]  }
 0x36d   : > { %4070 = vmatprep.subr.bf16.mxu1 %v17253_v5  ;;  %v4265_v3 = vrot.slane %v4263_v57, 1  ;;  %v17316_v5 = vld [vmem:[#allocation12 + $0xf84] ss:$16 sps:$4 sm:$0xff]   ;;  %v17374_v57 = vld [vmem:[#allocation12 + $0xda8] ss:$16 sps:$4 sm:$0xff]  }
 0x36f   : > { %4964 = vmatpush1.bf16.msra.mxu0 %v17248_v7  ;;  %v17319_v7 = vld [vmem:[#allocation12 + $0xbac] ss:$16 sps:$4 sm:$0xff]  }
 0x370   : > { %4965 = vmatprep.subr.bf16.mxu0 %v17256_v1  ;;  %4071 = vmatpush1.bf16.msra.mxu1 %v17251_v8  ;;  %v17314_v8 = vld [vmem:[#allocation12 + $0xf80] ss:$16 sps:$4 sm:$0xff]   ;;  %v17317_v1 = vld [vmem:[#allocation12 + $0xba8] ss:$16 sps:$4 sm:$0xff]  }
 0x371   : > { %4072 = vmatprep.subr.bf16.mxu1 %v17259_v9  ;;  %v17322_v9 = vld [vmem:[#allocation12 + $0xfa4] ss:$16 sps:$4 sm:$0xff]  }
 0x373   : > { %4966 = vmatpush1.bf16.msra.mxu0 %v17254_v11  ;;  %v17325_v11 = vld [vmem:[#allocation12 + $0xbcc] ss:$16 sps:$4 sm:$0xff]  }
 0x374   : > { %4967 = vmatprep.subr.bf16.mxu0 %v17262_v0  ;;  %4073 = vmatpush1.bf16.msra.mxu1 %v17257_v12  ;;  %v17320_v12 = vld [vmem:[#allocation12 + $0xfa0] ss:$16 sps:$4 sm:$0xff]   ;;  %v17323_v0 = vld [vmem:[#allocation12 + $0xbc8] ss:$16 sps:$4 sm:$0xff]  }
 0x375   : > { %4074 = vmatprep.subr.bf16.mxu1 %v17265_v13  ;;  %v17328_v13 = vld [vmem:[#allocation12 + $0xfc4] ss:$16 sps:$4 sm:$0xff]  }
 0x377   : > { %4968 = vmatpush1.bf16.msra.mxu0 %v17260_v14  ;;  %v17331_v14 = vld [vmem:[#allocation12 + $0xbec] ss:$16 sps:$4 sm:$0xff]  }
 0x378   : > { %4969 = vmatprep.subr.bf16.mxu0 %v17268_v18  ;;  %4075 = vmatpush1.bf16.msra.mxu1 %v17263_v15  ;;  %v17326_v15 = vld [vmem:[#allocation12 + $0xfc0] ss:$16 sps:$4 sm:$0xff]   ;;  %v17329_v18 = vld [vmem:[#allocation12 + $0xbe8] ss:$16 sps:$4 sm:$0xff]  }
 0x379   : > { %4076 = vmatprep.subr.bf16.mxu1 %v17271_v20  ;;  %v17334_v20 = vld [vmem:[#allocation12 + $0xfe4] ss:$16 sps:$4 sm:$0xff]  }
 0x37b   : > { %4970 = vmatpush1.bf16.msra.mxu0 %v17266_v25  ;;  %v17337_v25 = vld [vmem:[#allocation12 + $0xc0c] ss:$16 sps:$4 sm:$0xff]  }
 0x37c   : > { %4971 = vmatprep.subr.bf16.mxu0 %v17274_v29  ;;  %4077 = vmatpush1.bf16.msra.mxu1 %v17269_v26  ;;  %v17332_v26 = vld [vmem:[#allocation12 + $0xfe0] ss:$16 sps:$4 sm:$0xff]   ;;  %v17335_v29 = vld [vmem:[#allocation12 + $0xc08] ss:$16 sps:$4 sm:$0xff]  }
 0x37d   : > { %4078 = vmatprep.subr.bf16.mxu1 %v17277_v30  ;;  %v17340_v30 = vld [vmem:[#allocation12 + $0xc2c] ss:$16 sps:$4 sm:$0xff]  }
 0x37f   : > { %4972 = vmatpush1.bf16.msra.mxu0 %v17272_v31  ;;  %v17338_v31 = vld [vmem:[#allocation12 + $0xc28] ss:$16 sps:$4 sm:$0xff]  }
 0x380   : > { %4973 = vmatprep.subr.bf16.mxu0 %v17280_v36  ;;  %4079 = vmatpush1.bf16.msra.mxu1 %v17275_v35  ;;  %v17343_v35 = vld [vmem:[#allocation12 + $0xc4c] ss:$16 sps:$4 sm:$0xff]   ;;  %v19792_v36 = vor.u32 %v4265_v3, %v4261_v17  ;;  %v17383_v3 = vld [vmem:[#allocation12 + $0xe08] ss:$16 sps:$4 sm:$0xff]  }
 0x381   : > { %4080 = vmatprep.subr.bf16.mxu1 %v17283_v37  ;;  %v17341_v37 = vld [vmem:[#allocation12 + $0xc48] ss:$16 sps:$4 sm:$0xff]   ;;  %v17385_v17 = vld [vmem:[#allocation12 + $0xe0c] ss:$16 sps:$4 sm:$0xff]  }
 0x383   : > { %4974 = vmatpush1.bf16.msra.mxu0 %v17278_v34  ;;  %v17346_v34 = vld [vmem:[#allocation12 + $0xc6c] ss:$16 sps:$4 sm:$0xff]  }
 0x384   : > { %4975 = vmatprep.subr.bf16.mxu0 %v17286_v42  ;;  %4081 = vmatpush1.bf16.msra.mxu1 %v17281_v38  ;;  %v17344_v38 = vld [vmem:[#allocation12 + $0xc68] ss:$16 sps:$4 sm:$0xff]   ;;  %v17349_v42 = vld [vmem:[#allocation12 + $0xc8c] ss:$16 sps:$4 sm:$0xff]  }
 0x385   : > { %4082 = vmatprep.subr.bf16.mxu1 %v17289_v43  ;;  %v17347_v43 = vld [vmem:[#allocation12 + $0xc88] ss:$16 sps:$4 sm:$0xff]  }
 0x387   : > { %4976 = vmatpush1.bf16.msra.mxu0 %v17284_v44  ;;  %v17352_v44 = vld [vmem:[#allocation12 + $0xcac] ss:$16 sps:$4 sm:$0xff]  }
 0x388   : > { %4977 = vmatprep.subr.bf16.mxu0 %v17292_v45  ;;  %4083 = vmatpush1.bf16.msra.mxu1 %v17287_v63  ;;  %v17355_v63 = vld [vmem:[#allocation12 + $0xccc] ss:$16 sps:$4 sm:$0xff]  }
 0x389   : > { %4084 = vmatprep.subr.bf16.mxu1 %v17295_v46  ;;  %v17358_v45 = vld [vmem:[#allocation12 + $0xcec] ss:$16 sps:$4 sm:$0xff]   ;;  %v17356_v46 = vld [vmem:[#allocation12 + $0xce8] ss:$16 sps:$4 sm:$0xff]  }
 0x38b   : > { %4978 = vmatpush1.bf16.msra.mxu0 %v17290_v40  ;;  %v17361_v40 = vld [vmem:[#allocation12 + $0xd0c] ss:$16 sps:$4 sm:$0xff]  }
 0x38c   : > { %4979 = vmatprep.subr.bf16.mxu0 %v17298_v48  ;;  %4085 = vmatpush1.bf16.msra.mxu1 %v17293_v47  ;;  %v17359_v47 = vld [vmem:[#allocation12 + $0xd08] ss:$16 sps:$4 sm:$0xff]   ;;  %v17364_v48 = vld [vmem:[#allocation12 + $0xd2c] ss:$16 sps:$4 sm:$0xff]  }
 0x38d   : > { %4086 = vmatprep.subr.bf16.mxu1 %v17301_v49  ;;  %v17362_v49 = vld [vmem:[#allocation12 + $0xd28] ss:$16 sps:$4 sm:$0xff]  }
 0x38f   : > { %4980 = vmatpush1.bf16.msra.mxu0 %v17296_v50  ;;  %v17367_v50 = vld [vmem:[#allocation12 + $0xd4c] ss:$16 sps:$4 sm:$0xff]  }
 0x390   : > { %4981 = vmatprep.subr.bf16.mxu0 %v17304_v52  ;;  %4087 = vmatpush1.bf16.msra.mxu1 %v17299_v51  ;;  %v17365_v51 = vld [vmem:[#allocation12 + $0xd48] ss:$16 sps:$4 sm:$0xff]   ;;  %v17370_v52 = vld [vmem:[#allocation12 + $0xd6c] ss:$16 sps:$4 sm:$0xff]  }
 0x391   : > { %4088 = vmatprep.subr.bf16.mxu1 %v17307_v53  ;;  %v17368_v53 = vld [vmem:[#allocation12 + $0xd68] ss:$16 sps:$4 sm:$0xff]  }
 0x393   : > { %4982 = vmatpush1.bf16.msra.mxu0 %v17302_v54  ;;  %v17373_v54 = vld [vmem:[#allocation12 + $0xd8c] ss:$16 sps:$4 sm:$0xff]  }
 0x394   : > { %4983 = vmatprep.subr.bf16.mxu0 %v17310_v59  ;;  %4089 = vmatpush1.bf16.msra.mxu1 %v17305_v55  ;;  %v17371_v55 = vld [vmem:[#allocation12 + $0xd88] ss:$16 sps:$4 sm:$0xff]   ;;  %v17379_v59 = vld [vmem:[#allocation12 + $0xdcc] ss:$16 sps:$4 sm:$0xff]  }
 0x395   : > { %4090 = vmatprep.subr.bf16.mxu1 %v17313_v16  ;;  %v17377_v16 = vld [vmem:[#allocation12 + $0xdc8] ss:$16 sps:$4 sm:$0xff]  }
 0x397   : > { %4984 = vmatpush1.bf16.msra.mxu0 %v17308_v60  ;;  %v17382_v60 = vld [vmem:[#allocation12 + $0xdec] ss:$16 sps:$4 sm:$0xff]  }
 0x398   : > { %4985 = vmatprep.subr.bf16.mxu0 %v17316_v5  ;;  %4091 = vmatpush1.bf16.msra.mxu1 %v17311_v4  ;;  %v17380_v4 = vld [vmem:[#allocation12 + $0xde8] ss:$16 sps:$4 sm:$0xff]   ;;  %v17388_v5 = vld [vmem:[#allocation12 + $0xe2c] ss:$16 sps:$4 sm:$0xff]  }
 0x399   : > { %4092 = vmatprep.subr.bf16.mxu1 %v17319_v7  ;;  %v17386_v7 = vld [vmem:[#allocation12 + $0xe28] ss:$16 sps:$4 sm:$0xff]  }
 0x39b   : > { %4986 = vmatpush1.bf16.msra.mxu0 %v17314_v8  ;;  %v17391_v8 = vld [vmem:[#allocation12 + $0xe4c] ss:$16 sps:$4 sm:$0xff]  }
 0x39c   : > { %4987 = vmatprep.subr.bf16.mxu0 %v17322_v9  ;;  %4093 = vmatpush1.bf16.msra.mxu1 %v17317_v1  ;;  %v17389_v1 = vld [vmem:[#allocation12 + $0xe48] ss:$16 sps:$4 sm:$0xff]   ;;  %v17394_v9 = vld [vmem:[#allocation12 + $0xe6c] ss:$16 sps:$4 sm:$0xff]  }
 0x39d   : > { %4094 = vmatprep.subr.bf16.mxu1 %v17325_v11  ;;  %v17392_v11 = vld [vmem:[#allocation12 + $0xe68] ss:$16 sps:$4 sm:$0xff]  }
 0x39f   : > { %4988 = vmatpush1.bf16.msra.mxu0 %v17320_v12  ;;  %v17397_v12 = vld [vmem:[#allocation12 + $0xe8c] ss:$16 sps:$4 sm:$0xff]  }
 0x3a0   : > { %4989 = vmatprep.subr.bf16.mxu0 %v17328_v13  ;;  %4095 = vmatpush1.bf16.msra.mxu1 %v17323_v0  ;;  %v17395_v0 = vld [vmem:[#allocation12 + $0xe88] ss:$16 sps:$4 sm:$0xff]   ;;  %v17400_v13 = vld [vmem:[#allocation12 + $0xeac] ss:$16 sps:$4 sm:$0xff]  }
 0x3a1   : > { %4096 = vmatprep.subr.bf16.mxu1 %v17331_v14  ;;  %v17398_v14 = vld [vmem:[#allocation12 + $0xea8] ss:$16 sps:$4 sm:$0xff]  }
 0x3a3   : > { %4990 = vmatpush1.bf16.msra.mxu0 %v17326_v15  ;;  %v17403_v15 = vld [vmem:[#allocation12 + $0xecc] ss:$16 sps:$4 sm:$0xff]  }
 0x3a4   : > { %4991 = vmatprep.subr.bf16.mxu0 %v17334_v20  ;;  %4097 = vmatpush1.bf16.msra.mxu1 %v17329_v18  ;;  %v17406_v18 = vld [vmem:[#allocation12 + $0xeec] ss:$16 sps:$4 sm:$0xff]  }
 0x3a5   : > { %5004 = vmatprep.subr.bf16.mxu1 %v17337_v25  ;;  %v17409_v20 = vld [vmem:[#allocation12 + $0xf0c] ss:$16 sps:$4 sm:$0xff]   ;;  %v17407_v25 = vld [vmem:[#allocation12 + $0xf08] ss:$16 sps:$4 sm:$0xff]  }
 0x3a7   : > { %4992 = vmatpush1.bf16.msra.mxu0 %v17332_v26  ;;  %4099 = vmatmul.mubr.bf16.vlgmr.msra.gmra.mrb[8].mxu1 %v19776_v39  ;;  %v17350_v39 = vld [vmem:[#allocation12 + $0xca8] ss:$16 sps:$4 sm:$0xff]   ;;  %v17412_v26 = vld [vmem:[#allocation12 + $0xf2c] ss:$16 sps:$4 sm:$0xff]  }
 0x3a8   : > { %5005 = vmatpush1.bf16.msra.mxu1 %v17335_v29  ;;  %5036 = vmatprep.mubr.bf16.mxu1 %v19779_v41  ;;  %v17353_v41 = vld [vmem:[#allocation12 + $0xcc8] ss:$16 sps:$4 sm:$0xff]  }
 0x3a9   : > { %5006 = vmatprep.subr.bf16.mxu1 %v17340_v30  ;;  %v17410_v29 = vld [vmem:[#allocation12 + $0xf28] ss:$16 sps:$4 sm:$0xff]   ;;  %v17415_v30 = vld [vmem:[#allocation12 + $0xf4c] ss:$16 sps:$4 sm:$0xff]  }
 0x3aa   : > { %4994 = vmatmul.mubr.bf16.vlgmr.msra.gmra.mrb[4].mxu0 %v19792_v36 }
 0x3ac   : > { %5007 = vmatpush1.bf16.msra.mxu1 %v17338_v31  ;;  %v17413_v31 = vld [vmem:[#allocation12 + $0xf48] ss:$16 sps:$4 sm:$0xff]  }
 0x3ad   : > { %5008 = vmatprep.subr.bf16.mxu1 %v17343_v35  ;;  %v17418_v35 = vld [vmem:[#allocation12 + $0xf6c] ss:$16 sps:$4 sm:$0xff]  }
 0x3b0   : > { %5009 = vmatpush1.bf16.msra.mxu1 %v17341_v37  ;;  %v17416_v37 = vld [vmem:[#allocation12 + $0xf68] ss:$16 sps:$4 sm:$0xff]  }
 0x3b1   : > { %5010 = vmatprep.subr.bf16.mxu1 %v17346_v34  ;;  %v17421_v34 = vld [vmem:[#allocation12 + $0xf8c] ss:$16 sps:$4 sm:$0xff]  }
 0x3b4   : > { %5011 = vmatpush1.bf16.msra.mxu1 %v17344_v38  ;;  %v17419_v38 = vld [vmem:[#allocation12 + $0xf88] ss:$16 sps:$4 sm:$0xff]  }
 0x3b5   : > { %5012 = vmatprep.subr.bf16.mxu1 %v17349_v42  ;;  %v17424_v42 = vld [vmem:[#allocation12 + $0xfac] ss:$16 sps:$4 sm:$0xff]  }
 0x3b8   : > { %5013 = vmatpush1.bf16.msra.mxu1 %v17347_v43  ;;  %v17422_v43 = vld [vmem:[#allocation12 + $0xfa8] ss:$16 sps:$4 sm:$0xff]  }
 0x3b9   : > { %5014 = vmatprep.subr.bf16.mxu1 %v17352_v44  ;;  %v17427_v44 = vld [vmem:[#allocation12 + $0xfcc] ss:$16 sps:$4 sm:$0xff]  }
 0x3bc   : > { %5015 = vmatpush1.bf16.msra.mxu1 %v17350_v39  ;;  %v17425_v39 = vld [vmem:[#allocation12 + $0xfc8] ss:$16 sps:$4 sm:$0xff]  }
 0x3bd   : > { %5016 = vmatprep.subr.bf16.mxu1 %v17355_v63  ;;  %v17430_v63 = vld [vmem:[#allocation12 + $0xfec] ss:$16 sps:$4 sm:$0xff]  }
 0x3c0   : > { %5017 = vmatpush1.bf16.msra.mxu1 %v17353_v41  ;;  %v17428_v41 = vld [vmem:[#allocation12 + $0xfe8] ss:$16 sps:$4 sm:$0xff]  }
 0x3c1   : > { %5018 = vmatprep.subr.bf16.mxu1 %v17358_v45  ;;  %v19799_v45 = vld [vmem:[#allocation14] sm:$0xf] }
 0x3c4   : > { %5019 = vmatpush1.bf16.msra.mxu1 %v17356_v46  ;;  %v5103_v46 = vrot.slane %v19799_v45, %v19684_v21 }
 0x3c5   : > { %5020 = vmatprep.subr.bf16.mxu1 %v17361_v40 }
 0x3c8   : > { %5021 = vmatpush1.bf16.msra.mxu1 %v17359_v47  ;;  %v5107_v47 = vrot.slane %v19799_v45, %v19687_v22 }
 0x3c9   : > { %5022 = vmatprep.subr.bf16.mxu1 %v17364_v48 }
 0x3cc   : > { %5023 = vmatpush1.bf16.msra.mxu1 %v17362_v49 }
 0x3cd   : > { %5024 = vmatprep.subr.bf16.mxu1 %v17367_v50 }
 0x3d0   : > { %5025 = vmatpush1.bf16.msra.mxu1 %v17365_v51 }
 0x3d1   : > { %5026 = vmatprep.subr.bf16.mxu1 %v17370_v52 }
 0x3d4   : > { %5027 = vmatpush1.bf16.msra.mxu1 %v17368_v53 }
 0x3d5   : > { %5028 = vmatprep.subr.bf16.mxu1 %v17373_v54 }
 0x3d8   : > { %5029 = vmatpush1.bf16.msra.mxu1 %v17371_v55 }
 0x3d9   : > { %5030 = vmatprep.subr.bf16.mxu1 %v17376_v56 }
 0x3dc   : > { %5031 = vmatpush1.bf16.msra.mxu1 %v17374_v57 }
 0x3dd   : > { %5032 = vmatprep.subr.bf16.mxu1 %v17379_v59 }
 0x3e0   : > { %5033 = vmatpush1.bf16.msra.mxu1 %v17377_v16 }
 0x3e1   : > { %5034 = vmatprep.subr.bf16.mxu1 %v17382_v60 }
 0x3e4   : > { %5035 = vmatpush1.bf16.msra.mxu1 %v17380_v4 }
 0x3e5   : > { %5047 = vmatprep.subr.bf16.mxu1 %v17385_v17 }
 0x3e7   : > { %5037 = vmatmul.mubr.bf16.vlgmr.msra.gmra.mrb[8].mxu1 %v19784_v2  ;;  %v17401_v2 = vld [vmem:[#allocation12 + $0xec8] ss:$16 sps:$4 sm:$0xff]  }
 0x3e8   : > { %5048 = vmatpush1.bf16.msra.mxu1 %v17383_v3  ;;  %5079 = vmatprep.mubr.bf16.mxu1 %v19787_v6  ;;  %v17404_v6 = vld [vmem:[#allocation12 + $0xee8] ss:$16 sps:$4 sm:$0xff]  }
 0x3e9   : > { %5049 = vmatprep.subr.bf16.mxu1 %v17388_v5 }
 0x3ec   : > { %5050 = vmatpush1.bf16.msra.mxu1 %v17386_v7 }
 0x3ed   : > { %5051 = vmatprep.subr.bf16.mxu1 %v17391_v8 }
 0x3f0   : > { %5052 = vmatpush1.bf16.msra.mxu1 %v17389_v1 }
 0x3f1   : > { %5053 = vmatprep.subr.bf16.mxu1 %v17394_v9 }
 0x3f4   : > { %5054 = vmatpush1.bf16.msra.mxu1 %v17392_v11 }
 0x3f5   : > { %5055 = vmatprep.subr.bf16.mxu1 %v17397_v12 }
 0x3f8   : > { %5056 = vmatpush1.bf16.msra.mxu1 %v17395_v0  ;;  %v568_v0 = vld [vmem:[#allocation4] sm:$0x11] }
 0x3f9   : > { %5057 = vmatprep.subr.bf16.mxu1 %v17400_v13 }
 0x3fc   : > { %5058 = vmatpush1.bf16.msra.mxu1 %v17398_v14 }
 0x3fd   : > { %5059 = vmatprep.subr.bf16.mxu1 %v17403_v15  ;;  %v569_v15 = vsel %vm19616_vm11, 0, %v568_v0  ;;  %v17472_v0 = vld [vmem:[#allocation15 + $0x72c] ss:$24 sps:$4 sm:$0xff]  }
 0x3fe   : > { %570 = vst [vmem:[#allocation4] sm:$0x11] %v569_v15  ;;  %v627_v15 = vld [vmem:[#allocation4] sm:$0x88] }
 0x400   : > { %5060 = vmatpush1.bf16.msra.mxu1 %v17401_v2  ;;  %v571_v2 = vld [vmem:[#allocation4 + $0x8] sm:$0x11] }
 0x401   : > { %5061 = vmatprep.subr.bf16.mxu1 %v17406_v18 }
 0x404   : > { %5062 = vmatpush1.bf16.msra.mxu1 %v17404_v6 }
 0x405   : > { %5063 = vmatprep.subr.bf16.mxu1 %v17409_v20  ;;  %v572_v20 = vsel %vm19616_vm11, 0, %v571_v2  ;;  %v630_v2 = vld [vmem:[#allocation4 + $0x8] sm:$0x88] }
 0x406   : > { %573 = vst [vmem:[#allocation4 + $0x8] sm:$0x11] %v572_v20  ;;  %v640_v20 = vld [vmem:[#allocation4 + $0x10] sm:$0x22] }
 0x408   : > { %5064 = vmatpush1.bf16.msra.mxu1 %v17407_v25  ;;  %v582_v25 = vld [vmem:[#allocation4 + $0x8] sm:$0x44] }
 0x409   : > { %5065 = vmatprep.subr.bf16.mxu1 %v17412_v26 }
 0x40c   : > { %5066 = vmatpush1.bf16.msra.mxu1 %v17410_v29 }
 0x40d   : > { %5067 = vmatprep.subr.bf16.mxu1 %v17415_v30  ;;  %v583_v30 = vsel %vm19626_vm0, 0, %v582_v25  ;;  %v643_v25 = vld [vmem:[#allocation4 + $0x18] sm:$0x22] }
 0x40e   : > { %584 = vst [vmem:[#allocation4 + $0x8] sm:$0x44] %v583_v30  ;;  %v17476_v30 = vld [vmem:[#allocation15 + $0x758] ss:$24 sps:$4 sm:$0xff]  }
 0x410   : > { %5068 = vmatpush1.bf16.msra.mxu1 %v17413_v31 }
 0x411   : > { %5069 = vmatprep.subr.bf16.mxu1 %v17418_v35 }
 0x414   : > { %5070 = vmatpush1.bf16.msra.mxu1 %v17416_v37 }
 0x415   : > { %5071 = vmatprep.subr.bf16.mxu1 %v17421_v34 }
 0x418   : > { %5072 = vmatpush1.bf16.msra.mxu1 %v17419_v38 }
 0x419   : > { %5073 = vmatprep.subr.bf16.mxu1 %v17424_v42 }
 0x41c   : > { %5074 = vmatpush1.bf16.msra.mxu1 %v17422_v43 }
 0x41d   : > { %5075 = vmatprep.subr.bf16.mxu1 %v17427_v44 }
 0x420   : > { %5076 = vmatpush1.bf16.msra.mxu1 %v17425_v39 }
 0x421   : > { %5077 = vmatprep.subr.bf16.mxu1 %v17430_v63 }
 0x424   : > { %5078 = vmatpush1.bf16.msra.mxu1 %v17428_v41 }
 0x427   : > { %5080 = vmatmul.mubr.bf16.vlgmr.msra.gmra.mrb[8].mxu1 %v19792_v36 }
 0x47d   : > { %v4995_v40 = vpop.f32.mrb[4].mxu0 }
 0x47e   : > { %v16291_v48 = vadd.f32 %v4995_v40, %v19767_v58  ;;  %v4997_v49 = vpop.f32.mrb[5].mxu0 }
 0x47f   : > { %v16292_v50 = vadd.f32 %v4997_v49, %v19769_v28  ;;  %v4999_v51 = vpop.f32.mrb[6].mxu0  ;;  %v17431_v49 = vld [vmem:[#allocation15 + $0x600] ss:$24 sps:$4 sm:$0xff]  }
 0x480   : > { %v19807_v52 = vadd.f32 %v16291_v48, %v5103_v46  ;;  %v16293_v36 = vadd.f32 %v4999_v51, %v19771_v61  ;;  %v5001_v53 = vpop.f32.mrb[7].mxu0  ;;  %v17436_v48 = vld [vmem:[#allocation15 + $0x60c] ss:$24 sps:$4 sm:$0xff]  }
 0x481   : > { %v19810_v54 = vadd.f32 %v16292_v50, %v5107_v47  ;;  %v16294_v55 = vadd.f32 %v5001_v53, %v19773_v33  ;;  %v17434_v50 = vld [vmem:[#allocation15 + $0x608] ss:$24 sps:$4 sm:$0xff]   ;;  %7011 = vmatprep.subr.bf16.mxu1 %v17436_v48  ;;  %v17439_v51 = vld [vmem:[#allocation15 + $0x634] ss:$24 sps:$4 sm:$0xff]  }
 0x482   : > { %v5129_v56 = vsel %vm20624_vm1, %v19807_v52, 0.0  ;;  %v19815_v57 = vadd.f32 %v16293_v36, %v5103_v46  ;;  %v5282_v16 = vrot.slane %v19807_v52, 5  ;;  %7012 = vmatpush1.bf16.msra.mxu1 %v17434_v50  ;;  %v17442_v36 = vld [vmem:[#allocation15 + $0x63c] ss:$24 sps:$4 sm:$0xff]   ;;  %v17437_v53 = vld [vmem:[#allocation15 + $0x630] ss:$24 sps:$4 sm:$0xff]  }
 0x483   : > { %v5130_v58 = vrot.slane %v5129_v56, 4  ;;  %v5136_v59 = vsel %vm20624_vm1, %v19810_v54, 0.0  ;;  %v19819_v28 = vadd.f32 %v16294_v55, %v5107_v47  ;;  %v5285_v17 = vrot.slane %v19810_v54, 5  ;;  %v17433_v47 = vld [vmem:[#allocation15 + $0x604] ss:$24 sps:$4 sm:$0xff]   ;;  %7013 = vmatprep.subr.bf16.mxu1 %v17442_v36 }
 0x484   : > { %v5137_v60 = vrot.slane %v5136_v59, 4  ;;  %v5283_v61 = vrot.slane %v19815_v57, 5  ;;  %6925 = vmatprep.subr.bf16.mxu0 %v17433_v47  ;;  %v17440_v55 = vld [vmem:[#allocation15 + $0x638] ss:$24 sps:$4 sm:$0xff]   ;;  %v17493_v47 = vld [vmem:[#allocation15 + $0x7e4] ss:$24 sps:$4 sm:$0xff]  }
 0x485   : > { %v5131_v4 = vadd.f32 %v5130_v58, %v5129_v56  ;;  %v5286_v33 = vrot.slane %v19819_v28, 5  ;;  %6926 = vmatpush1.bf16.msra.mxu0 %v17431_v49  ;;  %v17445_v56 = vld [vmem:[#allocation15 + $0x664] ss:$24 sps:$4 sm:$0xff]   ;;  %v17491_v49 = vld [vmem:[#allocation15 + $0x7e0] ss:$24 sps:$4 sm:$0xff]  }
 0x486   : > { %v5138_v3 = vadd.f32 %v5137_v60, %v5136_v59  ;;  %v5284_v5 = vsel %vm20623_vm9, %v5282_v16, %v5283_v61  ;;  %6927 = vmatprep.subr.bf16.mxu0 %v17439_v51  ;;  %7014 = vmatpush1.bf16.msra.mxu1 %v17440_v55  ;;  %v17448_v58 = vld [vmem:[#allocation15 + $0x66c] ss:$24 sps:$4 sm:$0xff]   ;;  %v17443_v59 = vld [vmem:[#allocation15 + $0x660] ss:$24 sps:$4 sm:$0xff]   ;;  %v17454_v61 = vld [vmem:[#allocation15 + $0x69c] ss:$24 sps:$4 sm:$0xff]  }
 0x487   : > { %v5132_v7 = vrot.slane %v5131_v4, 2  ;;  %v5298_v8 = vsel %vm20624_vm1, %v5284_v5, 0.0  ;;  %v5287_v1 = vsel %vm20623_vm9, %v5285_v17, %v5286_v33  ;;  %v17446_v16 = vld [vmem:[#allocation15 + $0x668] ss:$24 sps:$4 sm:$0xff]   ;;  %7015 = vmatprep.subr.bf16.mxu1 %v17448_v58  ;;  %v17451_v60 = vld [vmem:[#allocation15 + $0x694] ss:$24 sps:$4 sm:$0xff]   ;;  %vm635_vm9 = vmand %vm633_vm8, %vm634_vm6 }
 0x488   : > { %v5139_v9 = vrot.slane %v5138_v3, 2  ;;  %v5299_v11 = vrot.slane %v5298_v8, 4  ;;  %v5305_v12 = vsel %vm20624_vm1, %v5287_v1, 0.0  ;;  %v17452_v17 = vld [vmem:[#allocation15 + $0x698] ss:$24 sps:$4 sm:$0xff]  }
 0x489   : > { %v5133_v13 = vadd.f32 %v5132_v7, %v5131_v4  ;;  %v5306_v14 = vrot.slane %v5305_v12, 4  ;;  %6928 = vmatpush1.bf16.msra.mxu0 %v17437_v53  ;;  %v17449_v4 = vld [vmem:[#allocation15 + $0x690] ss:$24 sps:$4 sm:$0xff]   ;;  %v17457_v33 = vld [vmem:[#allocation15 + $0x6c4] ss:$24 sps:$4 sm:$0xff]  }
 0x48a   : > { %v5140_v18 = vadd.f32 %v5139_v9, %v5138_v3  ;;  %v5300_v6 = vadd.f32 %v5299_v11, %v5298_v8  ;;  %6929 = vmatprep.subr.bf16.mxu0 %v17445_v56  ;;  %7016 = vmatpush1.bf16.msra.mxu1 %v17446_v16  ;;  %v17460_v3 = vld [vmem:[#allocation15 + $0x6cc] ss:$24 sps:$4 sm:$0xff]   ;;  %v17455_v5 = vld [vmem:[#allocation15 + $0x6c0] ss:$24 sps:$4 sm:$0xff]   ;;  %v17466_v1 = vld [vmem:[#allocation15 + $0x6fc] ss:$24 sps:$4 sm:$0xff]  }
 0x48b   : > { %v5134_v26 = vrot.slane %v5133_v13, 1  ;;  %v5307_v29 = vadd.f32 %v5306_v14, %v5305_v12  ;;  %7017 = vmatprep.subr.bf16.mxu1 %v17454_v61  ;;  %v17458_v7 = vld [vmem:[#allocation15 + $0x6c8] ss:$24 sps:$4 sm:$0xff]   ;;  %v17463_v8 = vld [vmem:[#allocation15 + $0x6f4] ss:$24 sps:$4 sm:$0xff]  }
 0x48c   : > { %v5141_v31 = vrot.slane %v5140_v18, 1  ;;  %v5301_v35 = vrot.slane %v5300_v6, 2  ;;  %v17461_v9 = vld [vmem:[#allocation15 + $0x6f0] ss:$24 sps:$4 sm:$0xff]   ;;  %v17469_v12 = vld [vmem:[#allocation15 + $0x724] ss:$24 sps:$4 sm:$0xff]  }
 0x48d   : > { %v5135_v37 = vadd.f32 %v5134_v26, %v5133_v13  ;;  %v5308_v34 = vrot.slane %v5307_v29, 2  ;;  %6930 = vmatpush1.bf16.msra.mxu0 %v17443_v59  ;;  %v17464_v11 = vld [vmem:[#allocation15 + $0x6f8] ss:$24 sps:$4 sm:$0xff]   ;;  %v17470_v14 = vld [vmem:[#allocation15 + $0x728] ss:$24 sps:$4 sm:$0xff]  }
 0x48e   : > { %v5142_v38 = vadd.f32 %v5141_v31, %v5140_v18  ;;  %v5302_v42 = vadd.f32 %v5301_v35, %v5300_v6  ;;  %6931 = vmatprep.subr.bf16.mxu0 %v17451_v60  ;;  %7018 = vmatpush1.bf16.msra.mxu1 %v17452_v17  ;;  %v17467_v13 = vld [vmem:[#allocation15 + $0x720] ss:$24 sps:$4 sm:$0xff]   ;;  %v628_v18 = vsel %vm626_vm14, 0, %v627_v15  ;;  %v631_v6 = vsel %vm626_vm14, 0, %v630_v2  ;;  %v17473_v26 = vld [vmem:[#allocation15 + $0x750] ss:$24 sps:$4 sm:$0xff]   ;;  %vm20672_vm14 = vmmov %vm20670_vm5 }
 0x48f   : > { %v5309_v43 = vadd.f32 %v5308_v34, %v5307_v29  ;;  %7019 = vmatprep.subr.bf16.mxu1 %v17460_v3  ;;  %vm637_vm1 = vsmask.f32 7958  ;;  %629 = vst [vmem:[#allocation4] sm:$0x88] %v628_v18  ;;  %632 = vst [vmem:[#allocation4 + $0x8] sm:$0x88] %v631_v6  ;;  %v5111_v15 = vrot.slane %v19799_v45, %v19690_v23  ;;  %v5115_v2 = vrot.slane %v19799_v45, %v19693_v24 }
 0x490   : > { %v19835_v44 = vadd.f32 %v5142_v38, %v5135_v37  ;;  %v5303_v39 = vrot.slane %v5302_v42, 1  ;;  %vm638_vm0 = vmand %vm636_vm12, %vm637_vm1  ;;  %v17475_v29 = vld [vmem:[#allocation15 + $0x754] ss:$24 sps:$4 sm:$0xff]   ;;  %v17481_v34 = vld [vmem:[#allocation15 + $0x784] ss:$24 sps:$4 sm:$0xff]  }
 0x491   : > { %v5310_v63 = vrot.slane %v5309_v43, 1  ;;  %6932 = vmatpush1.bf16.msra.mxu0 %v17449_v4  ;;  %vm639_vm2 = vmor %vm638_vm0, %vm635_vm9  ;;  %v17478_v37 = vld [vmem:[#allocation15 + $0x75c] ss:$24 sps:$4 sm:$0xff]   ;;  %v17484_v38 = vld [vmem:[#allocation15 + $0x78c] ss:$24 sps:$4 sm:$0xff]  }
 0x492   : > { %v5304_v41 = vadd.f32 %v5303_v39, %v5302_v42  ;;  %6933 = vmatprep.subr.bf16.mxu0 %v17457_v33  ;;  %7020 = vmatpush1.bf16.msra.mxu1 %v17458_v7  ;;  %v641_v31 = vsel %vm639_vm2, 0, %v640_v20  ;;  %v644_v35 = vsel %vm639_vm2, 0, %v643_v25  ;;  %v17479_v42 = vld [vmem:[#allocation15 + $0x780] ss:$24 sps:$4 sm:$0xff]   ;;  %v17487_v39 = vld [vmem:[#allocation15 + $0x7b4] ss:$24 sps:$4 sm:$0xff]  }
 0x493   : > { %v5311_v46 = vadd.f32 %v5310_v63, %v5309_v43  ;;  %7021 = vmatprep.subr.bf16.mxu1 %v17466_v1  ;;  %642 = vst [vmem:[#allocation4 + $0x10] sm:$0x22] %v641_v31  ;;  %645 = vst [vmem:[#allocation4 + $0x18] sm:$0x22] %v644_v35  ;;  %v17482_v43 = vld [vmem:[#allocation15 + $0x788] ss:$24 sps:$4 sm:$0xff]  }
 0x494   : > { %v17490_v63 = vld [vmem:[#allocation15 + $0x7bc] ss:$24 sps:$4 sm:$0xff]   ;;  %v17496_v48 = vld [vmem:[#allocation15 + $0x7ec] ss:$24 sps:$4 sm:$0xff]   ;;  %v17494_v50 = vld [vmem:[#allocation15 + $0x7e8] ss:$24 sps:$4 sm:$0xff]  }
 0x495   : > { %v19837_v40 = vadd.f32 %v5311_v46, %v5304_v41  ;;  %6934 = vmatpush1.bf16.msra.mxu0 %v17455_v5  ;;  %v17485_v41 = vld [vmem:[#allocation15 + $0x7b0] ss:$24 sps:$4 sm:$0xff]   ;;  %vm5504_vm0 = vsmask.f32 7950  ;;  %vm5506_vm9 = vsmask.f32 7966 }
 0x496   : > { %6935 = vmatprep.subr.bf16.mxu0 %v17463_v8  ;;  %7022 = vmatpush1.bf16.msra.mxu1 %v17464_v11  ;;  %v17488_v46 = vld [vmem:[#allocation15 + $0x7b8] ss:$24 sps:$4 sm:$0xff]   ;;  %v17499_v51 = vld [vmem:[#allocation15 + $0x814] ss:$24 sps:$4 sm:$0xff]   ;;  %vm19842_vm12 = vmand %vm620_vm3, %vm5504_vm0  ;;  %vm20668_vm3 = vcmask 1043456  }
 0x497   : > { %7023 = vmatprep.subr.bf16.mxu1 %v17472_v0  ;;  %vm19847_vm1 = vmand %vm623_vm4, %vm5506_vm9  ;;  %v17497_v55 = vld [vmem:[#allocation15 + $0x810] ss:$24 sps:$4 sm:$0xff]   ;;  %v17502_v58 = vld [vmem:[#allocation15 + $0x81c] ss:$24 sps:$4 sm:$0xff]  }
 0x498   : > { %v17500_v56 = vld [vmem:[#allocation15 + $0x818] ss:$24 sps:$4 sm:$0xff]   ;;  %v17505_v59 = vld [vmem:[#allocation15 + $0x844] ss:$24 sps:$4 sm:$0xff]   ;;  %v17506_v61 = vld [vmem:[#allocation15 + $0x848] ss:$24 sps:$4 sm:$0xff]  }
 0x499   : > { %6936 = vmatpush1.bf16.msra.mxu0 %v17461_v9  ;;  %v17503_v16 = vld [vmem:[#allocation15 + $0x840] ss:$24 sps:$4 sm:$0xff]   ;;  %v17508_v60 = vld [vmem:[#allocation15 + $0x84c] ss:$24 sps:$4 sm:$0xff]   ;;  %v17514_v17 = vld [vmem:[#allocation15 + $0x87c] ss:$24 sps:$4 sm:$0xff]  }
 0x49a   : > { %6937 = vmatprep.subr.bf16.mxu0 %v17469_v12  ;;  %7024 = vmatpush1.bf16.msra.mxu1 %v17470_v14  ;;  %v17511_v4 = vld [vmem:[#allocation15 + $0x874] ss:$24 sps:$4 sm:$0xff]   ;;  %v17509_v33 = vld [vmem:[#allocation15 + $0x870] ss:$24 sps:$4 sm:$0xff]   ;;  %v17517_v5 = vld [vmem:[#allocation15 + $0x8a4] ss:$24 sps:$4 sm:$0xff]  }
 0x49b   : > { %7025 = vmatprep.subr.bf16.mxu1 %v17478_v37  ;;  %v17512_v3 = vld [vmem:[#allocation15 + $0x878] ss:$24 sps:$4 sm:$0xff]   ;;  %v17520_v7 = vld [vmem:[#allocation15 + $0x8ac] ss:$24 sps:$4 sm:$0xff]   ;;  %v17518_v1 = vld [vmem:[#allocation15 + $0x8a8] ss:$24 sps:$4 sm:$0xff]  }
 0x49c   : > { %v17515_v8 = vld [vmem:[#allocation15 + $0x8a0] ss:$24 sps:$4 sm:$0xff]   ;;  %v17523_v9 = vld [vmem:[#allocation15 + $0x8d4] ss:$24 sps:$4 sm:$0xff]   ;;  %v17521_v12 = vld [vmem:[#allocation15 + $0x8d0] ss:$24 sps:$4 sm:$0xff]  }
 0x49d   : > { %6938 = vmatpush1.bf16.msra.mxu0 %v17467_v13  ;;  %v17526_v11 = vld [vmem:[#allocation15 + $0x8dc] ss:$24 sps:$4 sm:$0xff]   ;;  %v17524_v0 = vld [vmem:[#allocation15 + $0x8d8] ss:$24 sps:$4 sm:$0xff]   ;;  %v17535_v14 = vld [vmem:[#allocation15 + $0x90c] ss:$24 sps:$4 sm:$0xff]  }
 0x49e   : > { %6939 = vmatprep.subr.bf16.mxu0 %v17475_v29  ;;  %7026 = vmatpush1.bf16.msra.mxu1 %v17476_v30  ;;  %v17532_v13 = vld [vmem:[#allocation15 + $0x904] ss:$24 sps:$4 sm:$0xff]   ;;  %vm20669_vm4 = vmmov %vm20668_vm3 }
 0x49f   : > { %7027 = vmatprep.subr.bf16.mxu1 %v17484_v38  ;;  %vm20671_vm13 = vmmov %vm20668_vm3 }
 0x4a0   : > { %vm20673_vm8 = vmmov %vm20668_vm3 }
 0x4a1   : > { %6940 = vmatpush1.bf16.msra.mxu0 %v17473_v26  ;;  %vm20674_vm6 = vmmov %vm20668_vm3 }
 0x4a2   : > { %6941 = vmatprep.subr.bf16.mxu0 %v17481_v34  ;;  %7028 = vmatpush1.bf16.msra.mxu1 %v17482_v43  ;;  %vm20675_vm2 = vmmov %vm20668_vm3 }
 0x4a3   : > { %7029 = vmatprep.subr.bf16.mxu1 %v17490_v63  ;;  %vm20676_vm0 = vmmov %vm20675_vm2 }
 0x4a4   : > { %vm20677_vm9 = vmmov %vm20676_vm0 }
 0x4a5   : > { %6942 = vmatpush1.bf16.msra.mxu0 %v17479_v42 }
 0x4a6   : > { %6943 = vmatprep.subr.bf16.mxu0 %v17487_v39  ;;  %7030 = vmatpush1.bf16.msra.mxu1 %v17488_v46 }
 0x4a7   : > { %7031 = vmatprep.subr.bf16.mxu1 %v17496_v48 }
 0x4a9   : > { %6944 = vmatpush1.bf16.msra.mxu0 %v17485_v41 }
 0x4aa   : > { %6945 = vmatprep.subr.bf16.mxu0 %v17493_v47  ;;  %7032 = vmatpush1.bf16.msra.mxu1 %v17494_v50 }
 0x4ab   : > { %7033 = vmatprep.subr.bf16.mxu1 %v17502_v58 }
 0x4ad   : > { %6946 = vmatpush1.bf16.msra.mxu0 %v17491_v49 }
 0x4ae   : > { %6947 = vmatprep.subr.bf16.mxu0 %v17499_v51  ;;  %7034 = vmatpush1.bf16.msra.mxu1 %v17500_v56 }
 0x4af   : > { %7035 = vmatprep.subr.bf16.mxu1 %v17508_v60 }
 0x4b1   : > { %6948 = vmatpush1.bf16.msra.mxu0 %v17497_v55 }
 0x4b2   : > { %6949 = vmatprep.subr.bf16.mxu0 %v17505_v59  ;;  %7036 = vmatpush1.bf16.msra.mxu1 %v17506_v61 }
 0x4b3   : > { %7037 = vmatprep.subr.bf16.mxu1 %v17514_v17 }
 0x4b5   : > { %6950 = vmatpush1.bf16.msra.mxu0 %v17503_v16 }
 0x4b6   : > { %6951 = vmatprep.subr.bf16.mxu0 %v17511_v4  ;;  %7038 = vmatpush1.bf16.msra.mxu1 %v17512_v3 }
 0x4b7   : > { %7039 = vmatprep.subr.bf16.mxu1 %v17520_v7 }
 0x4b9   : > { %6952 = vmatpush1.bf16.msra.mxu0 %v17509_v33 }
 0x4ba   : > { %6953 = vmatprep.subr.bf16.mxu0 %v17517_v5  ;;  %7040 = vmatpush1.bf16.msra.mxu1 %v17518_v1 }
 0x4bb   : > { %7041 = vmatprep.subr.bf16.mxu1 %v17526_v11 }
 0x4bd   : > { %6954 = vmatpush1.bf16.msra.mxu0 %v17515_v8 }
 0x4be   : > { %6955 = vmatprep.subr.bf16.mxu0 %v17523_v9  ;;  %7042 = vmatpush1.bf16.msra.mxu1 %v17524_v0 }
 0x4bf   : > { %7054 = vmatprep.subr.bf16.mxu1 %v17535_v14 }
 0x4c1   : > { %6956 = vmatpush1.bf16.msra.mxu0 %v17521_v12 }
 0x4c2   : > { %6968 = vmatprep.subr.bf16.mxu0 %v17532_v13 }
 0x4fa   : > { %v5081_v18 = vpop.f32.mrb[8].mxu1 }
 0x4fb   : > { %v19859_v6 = vadd.f32 %v5111_v15, %v5081_v18  ;;  %v5083_v20 = vpop.f32.mrb[9].mxu1 }
 0x4fc   : > { %v19861_v25 = vadd.f32 %v5115_v2, %v5083_v20  ;;  %v5085_v26 = vpop.f32.mrb[10].mxu1 }
 0x4fd   : > { %v5143_v29 = vsel %vm20668_vm3, %v19859_v6, 0.0  ;;  %v19865_v30 = vadd.f32 %v5111_v15, %v5085_v26  ;;  %v5087_v31 = vpop.f32.mrb[11].mxu1  ;;  %v5288_v45 = vrot.slane %v19859_v6, 5  ;;  %vm20678_vm3 = vmmov %vm20670_vm5 }
 0x4fe   : > { %v5144_v35 = vrot.slane %v5143_v29, 4  ;;  %v5150_v37 = vsel %vm20669_vm4, %v19861_v25, 0.0  ;;  %v19869_v34 = vadd.f32 %v5115_v2, %v5087_v31  ;;  %v5291_v39 = vrot.slane %v19861_v25, 5  ;;  %vm20679_vm4 = vmmov %vm20678_vm3 }
 0x4ff   : > { %v5151_v38 = vrot.slane %v5150_v37, 4  ;;  %v5289_v42 = vrot.slane %v19865_v30, 5 }
 0x500   : > { %v5145_v43 = vadd.f32 %v5144_v35, %v5143_v29  ;;  %v5292_v63 = vrot.slane %v19869_v34, 5 }
 0x501   : > { %v5152_v41 = vadd.f32 %v5151_v38, %v5150_v37  ;;  %v5290_v46 = vsel %vm20670_vm5, %v5288_v45, %v5289_v42  ;;  %vm20680_vm5 = vmmov %vm20678_vm3 }
 0x502   : > { %v5146_v47 = vrot.slane %v5145_v43, 2  ;;  %v5312_v48 = vsel %vm20671_vm13, %v5290_v46, 0.0  ;;  %v5293_v49 = vsel %vm20672_vm14, %v5291_v39, %v5292_v63  ;;  %vm20681_vm13 = vmmov %vm20676_vm0 }
 0x503   : > { %v5153_v50 = vrot.slane %v5152_v41, 2  ;;  %v5313_v51 = vrot.slane %v5312_v48, 4  ;;  %v5319_v55 = vsel %vm20673_vm8, %v5293_v49, 0.0  ;;  %vm20682_vm14 = vmmov %vm20676_vm0 }
 0x504   : > { %v5147_v56 = vadd.f32 %v5146_v47, %v5145_v43  ;;  %v5320_v58 = vrot.slane %v5319_v55, 4  ;;  %vm20683_vm8 = vmmov %vm20678_vm3 }
 0x505   : > { %v5154_v59 = vadd.f32 %v5153_v50, %v5152_v41  ;;  %v5314_v16 = vadd.f32 %v5313_v51, %v5312_v48 }
 0x506   : > { %v5148_v60 = vrot.slane %v5147_v56, 1  ;;  %v5321_v61 = vadd.f32 %v5320_v58, %v5319_v55 }
 0x507   : > { %v5155_v4 = vrot.slane %v5154_v59, 1  ;;  %v5315_v17 = vrot.slane %v5314_v16, 2 }
 0x508   : > { %v5149_v33 = vadd.f32 %v5148_v60, %v5147_v56  ;;  %v5322_v3 = vrot.slane %v5321_v61, 2 }
 0x509   : > { %v5156_v5 = vadd.f32 %v5155_v4, %v5154_v59  ;;  %v5316_v7 = vadd.f32 %v5315_v17, %v5314_v16 }
 0x50a   : > { %v5323_v8 = vadd.f32 %v5322_v3, %v5321_v61 }
 0x50b   : > { %v5158_v1 = vadd.f32 %v5156_v5, %v5149_v33  ;;  %v5317_v9 = vrot.slane %v5316_v7, 1 }
 0x50c   : > { %v5324_v11 = vrot.slane %v5323_v8, 1 }
 0x50d   : > { %v5159_v12 = vadd.f32 %v5158_v1, %v19835_v44  ;;  %v5318_v0 = vadd.f32 %v5317_v9, %v5316_v7 }
 0x50e   : > { %v5325_v13 = vadd.f32 %v5324_v11, %v5323_v8 }
 0x50f   : > { %v5160_v14 = vmul.f32 0.0625, %v5159_v12 }
 0x510   : > { %v5327_v15 = vadd.f32 %v5325_v13, %v5318_v0 }
 0x511   : > { %v5164_v2 = vrot.slane %v5160_v14, %v19684_v21 }
 0x512   : > { %v5328_v18 = vadd.f32 %v5327_v15, %v19837_v40 }
 0x513   : > { %v19883_v20 = vsub.f32 %v19807_v52, %v5164_v2  ;;  %v19886_v26 = vsub.f32 %v19810_v54, %v5164_v2  ;;  %v19889_v29 = vsub.f32 %v19859_v6, %v5164_v2  ;;  %v19892_v31 = vsub.f32 %v19861_v25, %v5164_v2 }
 0x514   : > { %v5329_v44 = vmul.f32 0.0625, %v5328_v18 }
 0x515   : > { %v5169_v35 = vmul.f32 %v19883_v20, %v19883_v20  ;;  %v5170_v37 = vmul.f32 %v19886_v26, %v19886_v26  ;;  %v5171_v40 = vmul.f32 %v19889_v29, %v19889_v29  ;;  %v5172_v45 = vmul.f32 %v19892_v31, %v19892_v31 }
 0x516   : > { %v5333_v38 = vrot.slane %v5329_v44, %v19684_v21 }
 0x517   : > { %v5173_v42 = vsel %vm20674_vm6, %v5169_v35, 0.0  ;;  %v5180_v43 = vsel %vm20675_vm2, %v5170_v37, 0.0  ;;  %v5187_v39 = vsel %vm20676_vm0, %v5171_v40, 0.0  ;;  %v5194_v63 = vsel %vm20677_vm9, %v5172_v45, 0.0  ;;  %vm20684_vm6 = vmmov %vm20676_vm0 }
 0x518   : > { %v5174_v41 = vrot.slane %v5173_v42, 4  ;;  %v5181_v46 = vrot.slane %v5180_v43, 4  ;;  %v5188_v47 = vrot.slane %v5187_v39, 4  ;;  %v5195_v48 = vrot.slane %v5194_v63, 4  ;;  %vm20685_vm2 = vmmov %vm20676_vm0 }
 0x519   : > { %v19908_v49 = vsub.f32 %v19807_v52, %v5333_v38  ;;  %v19911_v50 = vsub.f32 %v19810_v54, %v5333_v38  ;;  %v19914_v51 = vsub.f32 %v19859_v6, %v5333_v38  ;;  %v19917_v55 = vsub.f32 %v19861_v25, %v5333_v38 }
 0x51a   : > { %v5175_v56 = vadd.f32 %v5174_v41, %v5173_v42  ;;  %v5182_v58 = vadd.f32 %v5181_v46, %v5180_v43  ;;  %v5189_v59 = vadd.f32 %v5188_v47, %v5187_v39  ;;  %v5196_v16 = vadd.f32 %v5195_v48, %v5194_v63 }
 0x51b   : > { %v19920_v60 = vsub.f32 %v19815_v57, %v5333_v38  ;;  %v19923_v61 = vsub.f32 %v19819_v28, %v5333_v38  ;;  %v19926_v52 = vsub.f32 %v19865_v30, %v5333_v38  ;;  %v19929_v54 = vsub.f32 %v19869_v34, %v5333_v38 }
 0x51c   : > { %v5176_v6 = vrot.slane %v5175_v56, 2  ;;  %v5183_v4 = vrot.slane %v5182_v58, 2  ;;  %v5190_v25 = vrot.slane %v5189_v59, 2  ;;  %v5197_v17 = vrot.slane %v5196_v16, 2 }
 0x51d   : > { %v5342_v33 = vmul.f32 %v19908_v49, %v19908_v49  ;;  %v5343_v57 = vmul.f32 %v19911_v50, %v19911_v50  ;;  %v5344_v28 = vmul.f32 %v19914_v51, %v19914_v51  ;;  %v5345_v30 = vmul.f32 %v19917_v55, %v19917_v55 }
 0x51e   : > { %v5177_v3 = vadd.f32 %v5176_v6, %v5175_v56  ;;  %v5184_v5 = vadd.f32 %v5183_v4, %v5182_v58  ;;  %v5191_v34 = vadd.f32 %v5190_v25, %v5189_v59  ;;  %v5198_v7 = vadd.f32 %v5197_v17, %v5196_v16 }
 0x51f   : > { %v5346_v8 = vmul.f32 %v19920_v60, %v19920_v60  ;;  %v5347_v1 = vmul.f32 %v19923_v61, %v19923_v61  ;;  %v5348_v9 = vmul.f32 %v19926_v52, %v19926_v52  ;;  %v5349_v11 = vmul.f32 %v19929_v54, %v19929_v54 }
 0x520   : > { %v5178_v12 = vrot.slane %v5177_v3, 1  ;;  %v5185_v0 = vrot.slane %v5184_v5, 1  ;;  %v5192_v13 = vrot.slane %v5191_v34, 1  ;;  %v5199_v14 = vrot.slane %v5198_v7, 1 }
 0x521   : > { %v5358_v15 = vrot.slane %v5342_v33, 5  ;;  %v5359_v2 = vrot.slane %v5346_v8, 5  ;;  %v5361_v18 = vrot.slane %v5343_v57, 5  ;;  %v5362_v44 = vrot.slane %v5347_v1, 5 }
 0x522   : > { %v5179_v35 = vadd.f32 %v5178_v12, %v5177_v3  ;;  %v5186_v37 = vadd.f32 %v5185_v0, %v5184_v5  ;;  %v5193_v40 = vadd.f32 %v5192_v13, %v5191_v34  ;;  %v5200_v45 = vadd.f32 %v5199_v14, %v5198_v7 }
 0x523   : > { %v5360_v38 = vsel %vm20678_vm3, %v5358_v15, %v5359_v2  ;;  %v5363_v42 = vsel %vm20679_vm4, %v5361_v18, %v5362_v44  ;;  %v5364_v43 = vrot.slane %v5344_v28, 5  ;;  %v5365_v39 = vrot.slane %v5348_v9, 5 }
 0x524   : > { %v5201_v63 = vadd.f32 %v5186_v37, %v5179_v35  ;;  %v5202_v41 = vadd.f32 %v5200_v45, %v5193_v40  ;;  %v5367_v46 = vrot.slane %v5345_v30, 5  ;;  %v5368_v47 = vrot.slane %v5349_v11, 5 }
 0x525   : > { %v5366_v48 = vsel %vm20680_vm5, %v5364_v43, %v5365_v39  ;;  %v5374_v56 = vsel %vm20681_vm13, %v5360_v38, 0.0  ;;  %v5381_v58 = vsel %vm20682_vm14, %v5363_v42, 0.0  ;;  %vm5516_vm13 = vsmask.f32 1280 }
 0x526   : > { %v5203_v59 = vadd.f32 %v5202_v41, %v5201_v63  ;;  %v5369_v16 = vsel %vm20683_vm8, %v5367_v46, %v5368_v47  ;;  %v5375_v6 = vrot.slane %v5374_v56, 4  ;;  %v5382_v4 = vrot.slane %v5381_v58, 4  ;;  %vm20687_vm8 = vmmov %vm20680_vm5 }
 0x527   : > { %v5388_v25 = vsel %vm20684_vm6, %v5366_v48, 0.0  ;;  %v5395_v17 = vsel %vm20685_vm2, %v5369_v16, 0.0  ;;  %vm20686_vm14 = vcmask 1046532  }
 0x528   : > { %v5204_v33 = vmul.f32 0.0625, %v5203_v59  ;;  %v5376_v57 = vadd.f32 %v5375_v6, %v5374_v56  ;;  %v5383_v28 = vadd.f32 %v5382_v4, %v5381_v58  ;;  %v5389_v30 = vrot.slane %v5388_v25, 4  ;;  %vm19988_vm5 = vmor %vm20687_vm8, %vm20686_vm14 }
 0x529   : > { %v5396_v3 = vrot.slane %v5395_v17, 4  ;;  %vm20694_vm14 = vcmask 1045508  }
 0x52a   : > { %v5205_v5 = vadd.f32 1e-05, %v5204_v33  ;;  %v5377_v34 = vrot.slane %v5376_v57, 2  ;;  %v5384_v7 = vrot.slane %v5383_v28, 2  ;;  %v5390_v8 = vadd.f32 %v5389_v30, %v5388_v25 }
 0x52b   : > { %v5397_v1 = vadd.f32 %v5396_v3, %v5395_v17 }
 0x52c   : > { %18802 = vrsqrt.f32 %v5205_v5  ;;  %v5378_v9 = vadd.f32 %v5377_v34, %v5376_v57  ;;  %v5385_v11 = vadd.f32 %v5384_v7, %v5383_v28  ;;  %v5391_v12 = vrot.slane %v5390_v8, 2 }
 0x52d   : > { %v5398_v0 = vrot.slane %v5397_v1, 2 }
 0x52e   : > { %v5379_v13 = vrot.slane %v5378_v9, 1  ;;  %v5386_v14 = vrot.slane %v5385_v11, 1  ;;  %v5392_v15 = vadd.f32 %v5391_v12, %v5390_v8  ;;  %v5267_v8 = vld [vmem:[#allocation4] sm:$0x77] }
 0x52f   : > { %v5399_v2 = vadd.f32 %v5398_v0, %v5397_v1 }
 0x530   : > { %v5380_v18 = vadd.f32 %v5379_v13, %v5378_v9  ;;  %v5387_v44 = vadd.f32 %v5386_v14, %v5385_v11  ;;  %v5393_v35 = vrot.slane %v5392_v15, 1  ;;  %v5270_v9 = vld [vmem:[#allocation4 + $0x8] sm:$0x77] }
 0x531   : > { %v5400_v37 = vrot.slane %v5399_v2, 1 }
 0x532   : > { %v5394_v40 = vadd.f32 %v5393_v35, %v5392_v15  ;;  %v5402_v45 = vadd.f32 %v5387_v44, %v5380_v18 }
 0x533   : > { %v5401_v38 = vadd.f32 %v5400_v37, %v5399_v2 }
 0x535   : > { %v5403_v42 = vadd.f32 %v5401_v38, %v5394_v40 }
 0x536   : > { %v18803_v43 = vpop.eup %18802 }
 0x537   : > { %v5210_v39 = vrot.slane %v18803_v43, %v19684_v21  ;;  %v5404_v63 = vadd.f32 %v5403_v42, %v5402_v45 }
 0x539   : > { %v5211_v41 = vmul.f32 %v5210_v39, %v19883_v20  ;;  %v5212_v46 = vmul.f32 %v5210_v39, %v19886_v26  ;;  %v5213_v47 = vmul.f32 %v5210_v39, %v19889_v29  ;;  %v5214_v48 = vmul.f32 %v5210_v39, %v19892_v31 }
 0x53a   : > { %v5405_v56 = vmul.f32 0.0625, %v5404_v63 }
 0x53b   : > { %vm5215_vm0 = vcmp.ge.f32.partialorder %v5211_v41, 0.0  ;;  %vm5216_vm9 = vcmp.ge.f32.partialorder %v5212_v46, 0.0  ;;  %vm5217_vm3 = vcmp.ge.f32.partialorder %v5213_v47, 0.0  ;;  %vm5218_vm4 = vcmp.ge.f32.partialorder %v5214_v48, 0.0 }
 0x53c   : > { %v5219_v58 = vmul.f32 0.2, %v5211_v41  ;;  %v5220_v59 = vmul.f32 0.2, %v5212_v46  ;;  %v5221_v16 = vmul.f32 0.2, %v5213_v47 }
 0x53d   : > { %v5222_v6 = vmul.f32 0.2, %v5214_v48  ;;  %v5406_v4 = vadd.f32 1e-05, %v5405_v56  ;;  %v17553_v56 = vld [vmem:[#allocation15 + $0x994] ss:$24 sps:$4 sm:$0xff]  }
 0x53e   : > { %v5223_v25 = vsel %vm5215_vm0, %v5211_v41, %v5219_v58  ;;  %v5224_v17 = vsel %vm5216_vm9, %v5212_v46, %v5220_v59  ;;  %v5225_v20 = vsel %vm5217_vm3, %v5213_v47, %v5221_v16 }
 0x53f   : > { %v5226_v33 = vsel %vm5218_vm4, %v5214_v48, %v5222_v6  ;;  %v16009_v26 = vpack.c.bf16 %v5224_v17, %v5223_v25  ;;  %18804 = vrsqrt.f32 %v5406_v4  ;;  %v5231_v29 = vcombine.low %v5223_v25, %v5224_v17  ;;  %v17562_v4 = vld [vmem:[#allocation15 + $0x9cc] ss:$24 sps:$4 sm:$0xff]  }
 0x540   : > { %v5232_v57 = vcombine.low %v5225_v20, %v5226_v33  ;;  %v16010_v31 = vpack.c.bf16 %v5226_v33, %v5225_v20 }
 0x541   : > { %v5252_v28 = vshrl.u32 %v16009_v26, 16  ;;  %5235 = vst [vmem:[%s19961_s10] sm:$0xff] %v5231_v29  ;;  %v5255_v5 = vshll.u32 %v16009_v26, 16  ;;  %v5509_v26 = vld [vmem:[#allocation4] sm:$0x88]  ;;  %v17566_v29 = vld [vmem:[#allocation15 + $0x9f8] ss:$24 sps:$4 sm:$0xff]  }
 0x542   : > { %5236 = vst [vmem:[%s19961_s10 + $0x8] sm:$0xff] %v5232_v57  ;;  %v5259_v30 = vshrl.u32 %v16010_v31, 16  ;;  %v5262_v7 = vshll.u32 %v16010_v31, 16 }
 0x543   : > { %v5254_v3 = vrot.slane %v5252_v28, 7 }
 0x544   : > { %v5261_v34 = vrot.slane %v5259_v30, 7 }
 0x545   : > { %v5257_v1 = vor.u32 %v5255_v5, %v5254_v3  ;;  %v5512_v3 = vld [vmem:[#allocation4 + $0x8] sm:$0x88] }
 0x546   : > { %v5264_v11 = vor.u32 %v5262_v7, %v5261_v34 }
 0x547   : > { %v5268_v12 = vsel %vm19709_vm10, %v5257_v1, %v5267_v8 }
 0x548   : > { %v5271_v0 = vsel %vm19709_vm10, %v5264_v11, %v5270_v9  ;;  %5269 = vst [vmem:[#allocation4] sm:$0x77] %v5268_v12  ;;  %v5522_v11 = vld [vmem:[#allocation4 + $0x10] sm:$0x33]  ;;  %v5525_v12 = vld [vmem:[#allocation4 + $0x18] sm:$0x33] }
 0x549   : > { %v18805_v13 = vpop.eup %18804  ;;  %5272 = vst [vmem:[#allocation4 + $0x8] sm:$0x77] %v5271_v0 }
 0x54a   : > { %v5411_v14 = vrot.slane %v18805_v13, %v19684_v21 }
 0x54c   : > { %v5412_v15 = vmul.f32 %v5411_v14, %v19908_v49  ;;  %v5413_v2 = vmul.f32 %v5411_v14, %v19911_v50  ;;  %v5414_v18 = vmul.f32 %v5411_v14, %v19914_v51  ;;  %v5415_v44 = vmul.f32 %v5411_v14, %v19917_v55 }
 0x54d   : > { %v5416_v10 = vmul.f32 %v5411_v14, %v19920_v60  ;;  %v5417_v35 = vmul.f32 %v5411_v14, %v19923_v61  ;;  %v5418_v37 = vmul.f32 %v5411_v14, %v19926_v52  ;;  %v5419_v40 = vmul.f32 %v5411_v14, %v19929_v54 }
 0x54e   : > { %vm5420_vm10 = vcmp.ge.f32.partialorder %v5412_v15, 0.0  ;;  %vm5421_vm6 = vcmp.ge.f32.partialorder %v5413_v2, 0.0  ;;  %vm5422_vm2 = vcmp.ge.f32.partialorder %v5414_v18, 0.0  ;;  %vm5423_vm0 = vcmp.ge.f32.partialorder %v5415_v44, 0.0 }
 0x54f   : > { %vm5424_vm9 = vcmp.ge.f32.partialorder %v5416_v10, 0.0  ;;  %vm5425_vm3 = vcmp.ge.f32.partialorder %v5417_v35, 0.0  ;;  %vm5426_vm4 = vcmp.ge.f32.partialorder %v5418_v37, 0.0  ;;  %vm5427_vm7 = vcmp.ge.f32.partialorder %v5419_v40, 0.0 }
 0x550   : > { %v5428_v49 = vmul.f32 0.2, %v5412_v15  ;;  %v5429_v50 = vmul.f32 0.2, %v5413_v2  ;;  %v5430_v51 = vmul.f32 0.2, %v5414_v18 }
 0x551   : > { %v5431_v55 = vmul.f32 0.2, %v5415_v44  ;;  %v5432_v45 = vmul.f32 0.2, %v5416_v10  ;;  %v5433_v60 = vmul.f32 0.2, %v5417_v35 }
 0x552   : > { %v5434_v38 = vmul.f32 0.2, %v5418_v37  ;;  %v5435_v61 = vmul.f32 0.2, %v5419_v40  ;;  %v5436_v52 = vsel %vm5420_vm10, %v5412_v15, %v5428_v49  ;;  %v5437_v54 = vsel %vm5421_vm6, %v5413_v2, %v5429_v50 }
 0x553   : > { %v5438_v42 = vsel %vm5422_vm2, %v5414_v18, %v5430_v51  ;;  %v5439_v43 = vsel %vm5423_vm0, %v5415_v44, %v5431_v55  ;;  %v5440_v39 = vsel %vm5424_vm9, %v5416_v10, %v5432_v45  ;;  %v5441_v63 = vsel %vm5425_vm3, %v5417_v35, %v5433_v60  ;;  %vm20699_vm3 = vmor %vm19847_vm1, %vm19842_vm12  ;;  %v17530_v60 = vld [vmem:[#allocation15 + $0x900] ss:$24 sps:$4 sm:$0xff]  }
 0x554   : > { %v5442_v41 = vsel %vm5426_vm4, %v5418_v37, %v5434_v38  ;;  %v5443_v46 = vsel %vm5427_vm7, %v5419_v40, %v5435_v61  ;;  %v5452_v47 = vcombine.high %v5436_v52, %v5437_v54  ;;  %v5453_v48 = vcombine.high %v5438_v42, %v5439_v43  ;;  %v17533_v38 = vld [vmem:[#allocation15 + $0x908] ss:$24 sps:$4 sm:$0xff]  }
 0x555   : > { %v5454_v58 = vcombine.low %v5440_v39, %v5441_v63  ;;  %v5455_v59 = vcombine.low %v5442_v41, %v5443_v46  ;;  %v16011_v16 = vpack.c.bf16 %v5437_v54, %v5436_v52  ;;  %v16012_v6 = vpack.c.bf16 %v5439_v43, %v5438_v42  ;;  %v17541_v54 = vld [vmem:[#allocation15 + $0x934] ss:$24 sps:$4 sm:$0xff]  }
 0x556   : > { %vm20690_vm10 = vcmask 1041408   ;;  %v14990_v25 = vrot.slane %v5452_v47, 9  ;;  %v14991_v17 = vrot.slane %v5453_v48, 9  ;;  %v16013_v20 = vpack.c.bf16 %v5441_v63, %v5440_v39  ;;  %v17544_v42 = vld [vmem:[#allocation15 + $0x93c] ss:$24 sps:$4 sm:$0xff]  }
 0x557   : > { %vm19994_vm6 = vmand %vm20690_vm10, %vm5516_vm13  ;;  %v16014_v33 = vpack.c.bf16 %v5443_v46, %v5442_v41  ;;  %vm20693_vm7 = vsmask.f32 5376  ;;  %v5460_v57 = vrot.slane %v5454_v58, 5  ;;  %v5464_v31 = vrot.slane %v5455_v59, 5  ;;  %v17539_v39 = vld [vmem:[#allocation15 + $0x930] ss:$24 sps:$4 sm:$0xff]  }
 0x558   : > { %vm20000_vm8 = vmand %vm20694_vm14, %vm20693_vm7  ;;  %v5492_v28 = vrot.slane %v16011_v16, 7  ;;  %v5493_v30 = vrot.slane %v16012_v6, 7  ;;  %vm20697_vm13 = vcmask 1044484   ;;  %vm20698_vm2 = vcmask 1040384   ;;  %v17542_v63 = vld [vmem:[#allocation15 + $0x938] ss:$24 sps:$4 sm:$0xff]  }
 0x559   : > { %vm5491_vm0 = vmor %vm20698_vm2, %vm20697_vm13  ;;  %v5495_v5 = vrot.slane %v16013_v20, 7  ;;  %v5498_v34 = vrot.slane %v16014_v33, 7  ;;  %v5461_v7 = vsel %vm19988_vm5, %v14990_v25, %v5460_v57  ;;  %v5465_v8 = vsel %vm19988_vm5, %v14991_v17, %v5464_v31  ;;  %v17547_v41 = vld [vmem:[#allocation15 + $0x964] ss:$24 sps:$4 sm:$0xff]   ;;  %v17545_v47 = vld [vmem:[#allocation15 + $0x960] ss:$24 sps:$4 sm:$0xff]  }
 0x55a   : > { %v5494_v1 = vrot.slane %v5492_v28, 4  ;;  %v5497_v9 = vrot.slane %v5493_v30, 4  ;;  %vm5521_vm9 = vmor %vm20000_vm8, %vm19994_vm6  ;;  %14992 = vst [vmem:[%s19961_s10 + $0x10] sm:$0xff] %v5461_v7  ;;  %v5510_v0 = vsel %vm20699_vm3, %v5492_v28, %v5509_v26  ;;  %v17550_v46 = vld [vmem:[#allocation15 + $0x96c] ss:$24 sps:$4 sm:$0xff]   ;;  %vm20703_vm4 = vcmask 1042432  }
 0x55b   : > { %14993 = vst [vmem:[%s19961_s10 + $0x18] sm:$0xff] %v5465_v8  ;;  %vm20700_vm5 = vmmov %vm20699_vm3  ;;  %v17548_v48 = vld [vmem:[#allocation15 + $0x968] ss:$24 sps:$4 sm:$0xff]   ;;  %v17556_v58 = vld [vmem:[#allocation15 + $0x99c] ss:$24 sps:$4 sm:$0xff]   ;;  %s19087_s10 = scalar_lea.vmem %s19086_s12, 1024 }
 0x55c   : > { %v5513_v13 = vsel %vm20700_vm5, %v5493_v30, %v5512_v3  ;;  %v5496_v14 = vsel %vm5491_vm0, %v5494_v1, %v5495_v5  ;;  %v5499_v15 = vsel %vm5491_vm0, %v5497_v9, %v5498_v34  ;;  %5511 = vst [vmem:[#allocation4] sm:$0x88] %v5510_v0  ;;  %v17551_v59 = vld [vmem:[#allocation15 + $0x990] ss:$24 sps:$4 sm:$0xff]   ;;  %v17559_v6 = vld [vmem:[#allocation15 + $0x9c4] ss:$24 sps:$4 sm:$0xff]   ;;  %vm20701_vm12 = vmmov %vm20690_vm10  ;;  %p19089_p4 = scmp.lt.s32.totalorder %s19087_s10, %s19081_s11 }
 0x55d   : > { %5514 = vst [vmem:[#allocation4 + $0x8] sm:$0x88] %v5513_v13  ;;  %v5523_v2 = vsel %vm5521_vm9, %v5496_v14, %v5522_v11  ;;  %v5526_v18 = vsel %vm5521_vm9, %v5499_v15, %v5525_v12  ;;  %v17554_v16 = vld [vmem:[#allocation15 + $0x998] ss:$24 sps:$4 sm:$0xff]   ;;  %v17560_v17 = vld [vmem:[#allocation15 + $0x9c8] ss:$24 sps:$4 sm:$0xff]   ;;  %vm20702_vm1 = vmmov %vm20690_vm10 }
 0x55e   : > { %5524 = vst [vmem:[#allocation4 + $0x10] sm:$0x33] %v5523_v2  ;;  %5527 = vst [vmem:[#allocation4 + $0x18] sm:$0x33] %v5526_v18  ;;  %v17557_v25 = vld [vmem:[#allocation15 + $0x9c0] ss:$24 sps:$4 sm:$0xff]   ;;  %p19090_p10 = por %p19089_p4, %p19088_p8 }
 0x55f   : > { %v17565_v20 = vld [vmem:[#allocation15 + $0x9f4] ss:$24 sps:$4 sm:$0xff]   ;;  %v17563_v26 = vld [vmem:[#allocation15 + $0x9f0] ss:$24 sps:$4 sm:$0xff]   ;;  %v17571_v57 = vld [vmem:[#allocation15 + $0xa24] ss:$24 sps:$4 sm:$0xff]  }
 0x560   : > { %v17568_v33 = vld [vmem:[#allocation15 + $0x9fc] ss:$24 sps:$4 sm:$0xff]   ;;  %v17574_v31 = vld [vmem:[#allocation15 + $0xa2c] ss:$24 sps:$4 sm:$0xff]   ;;  %v17569_v28 = vld [vmem:[#allocation15 + $0xa20] ss:$24 sps:$4 sm:$0xff]   ;;  %p19091_p11 = pnand %p19090_p10, %p19084_p2 }
 0x561   : > { %v17572_v30 = vld [vmem:[#allocation15 + $0xa28] ss:$24 sps:$4 sm:$0xff]   ;;  %v17577_v3 = vld [vmem:[#allocation15 + $0xa54] ss:$24 sps:$4 sm:$0xff]   ;;  %v17578_v7 = vld [vmem:[#allocation15 + $0xa58] ss:$24 sps:$4 sm:$0xff]  }
 0x562   : > { %v17580_v5 = vld [vmem:[#allocation15 + $0xa5c] ss:$24 sps:$4 sm:$0xff]   ;;  %v17575_v34 = vld [vmem:[#allocation15 + $0xa50] ss:$24 sps:$4 sm:$0xff]   ;;  %v17586_v1 = vld [vmem:[#allocation15 + $0xa8c] ss:$24 sps:$4 sm:$0xff]  }
 0x563   : > { %v17583_v8 = vld [vmem:[#allocation15 + $0xa84] ss:$24 sps:$4 sm:$0xff]   ;;  %v17581_v9 = vld [vmem:[#allocation15 + $0xa80] ss:$24 sps:$4 sm:$0xff]   ;;  %v17589_v12 = vld [vmem:[#allocation15 + $0xab4] ss:$24 sps:$4 sm:$0xff]  }
 0x564   : > { %v17584_v11 = vld [vmem:[#allocation15 + $0xa88] ss:$24 sps:$4 sm:$0xff]   ;;  %v17592_v0 = vld [vmem:[#allocation15 + $0xabc] ss:$24 sps:$4 sm:$0xff]   ;;  %v17590_v14 = vld [vmem:[#allocation15 + $0xab8] ss:$24 sps:$4 sm:$0xff]  }
 0x565   : > { %v20026_v44 = vld [vmem:[#allocation4] ss:$16 sps:$4 sm:$0x1f]   ;;  %v20028_v10 = vld [vmem:[#allocation4 + $0x4] ss:$16 sps:$4 sm:$0x1f]   ;;  %vm20704_vm10 = vmmov %vm20703_vm4 }
 0x566   : > { %v5936_v35 = vshll.u32 %v20026_v44, 16  ;;  %v5943_v53 = vshll.u32 %v20028_v10, 16  ;;  %v20032_v37 = vld [vmem:[#allocation4 + $0xc] ss:$16 sps:$4 sm:$0x1f]   ;;  %v5934_v36 = vshrl.u32 %v20026_v44, 16  ;;  %vm20705_vm6 = vmmov %vm20703_vm4 }
 0x567   : > { %v5941_v49 = vshrl.u32 %v20028_v10, 16  ;;  %v5957_v51 = vshll.u32 %v20032_v37, 16  ;;  %v5955_v52 = vshrl.u32 %v20032_v37, 16  ;;  %v17587_v13 = vld [vmem:[#allocation15 + $0xab0] ss:$24 sps:$4 sm:$0xff]   ;;  %vm20706_vm7 = vmmov %vm20703_vm4 }
 0x568   : > { %v5938_v40 = vrot.slane %v5936_v35, 1  ;;  %v5945_v50 = vrot.slane %v5943_v53, 1  ;;  %v17595_v15 = vld [vmem:[#allocation15 + $0xae4] ss:$24 sps:$4 sm:$0xff]   ;;  %v17593_v18 = vld [vmem:[#allocation15 + $0xae0] ss:$24 sps:$4 sm:$0xff]   ;;  %vm20707_vm14 = vmmov %vm20703_vm4 }
 0x569   : > { %v5959_v61 = vrot.slane %v5957_v51, 1  ;;  %v17598_v2 = vld [vmem:[#allocation15 + $0xaec] ss:$24 sps:$4 sm:$0xff]   ;;  %v17596_v35 = vld [vmem:[#allocation15 + $0xae8] ss:$24 sps:$4 sm:$0xff]   ;;  %vm20708_vm8 = vmmov %vm20703_vm4 }
 0x56a   : > { %v20037_v55 = vor.u32 %v5938_v40, %v5934_v36  ;;  %v20039_v45 = vor.u32 %v5945_v50, %v5941_v49  ;;  %v17601_v53 = vld [vmem:[#allocation15 + $0xb14] ss:$24 sps:$4 sm:$0xff]   ;;  %v17599_v40 = vld [vmem:[#allocation15 + $0xb10] ss:$24 sps:$4 sm:$0xff]   ;;  %v17607_v50 = vld [vmem:[#allocation15 + $0xb44] ss:$24 sps:$4 sm:$0xff]  }
 0x56b   : > { %v20046_v43 = vor.u32 %v5959_v61, %v5955_v52  ;;  %v17604_v36 = vld [vmem:[#allocation15 + $0xb1c] ss:$24 sps:$4 sm:$0xff]   ;;  %v17602_v49 = vld [vmem:[#allocation15 + $0xb18] ss:$24 sps:$4 sm:$0xff]   ;;  %v17610_v51 = vld [vmem:[#allocation15 + $0xb4c] ss:$24 sps:$4 sm:$0xff]  }
 0x56c   : > { %6957 = vmatprep.mubr.bf16.mxu0 %v20039_v45  ;;  %7043 = vmatprep.mubr.bf16.mxu1 %v20039_v45  ;;  %v17613_v61 = vld [vmem:[#allocation15 + $0xb74] ss:$24 sps:$4 sm:$0xff]   ;;  %vm20709_vm13 = vmmov %vm20702_vm1 }
 0x56d   : > { %6958 = vmatmul.mubr.bf16.vlgmr.msra.gmra.mrb[8].mxu0 %v20037_v55  ;;  %7044 = vmatmul.mubr.bf16.vlgmr.msra.gmra.mrb[12].mxu1 %v20037_v55  ;;  %v17616_v52 = vld [vmem:[#allocation15 + $0xb7c] ss:$24 sps:$4 sm:$0xff]   ;;  %vm20710_vm2 = vmmov %vm20703_vm4 }
 0x56e   : > { %6969 = vmatpush1.bf16.msra.mxu0 %v17530_v60  ;;  %7055 = vmatpush1.bf16.msra.mxu1 %v17533_v38  ;;  %v17605_v60 = vld [vmem:[#allocation15 + $0xb40] ss:$24 sps:$4 sm:$0xff]   ;;  %vm20711_vm0 = vmmov %vm20702_vm1 }
 0x56f   : > { %7000 = vmatprep.mubr.bf16.mxu0 %v20046_v43  ;;  %7086 = vmatprep.mubr.bf16.mxu1 %v20046_v43  ;;  %v17608_v38 = vld [vmem:[#allocation15 + $0xb48] ss:$24 sps:$4 sm:$0xff]   ;;  %vm20712_vm9 = vmmov %vm20710_vm2 }
 0x570   : > { %6970 = vmatprep.subr.bf16.mxu0 %v17541_v54  ;;  %7056 = vmatprep.subr.bf16.mxu1 %v17544_v42  ;;  %v17611_v54 = vld [vmem:[#allocation15 + $0xb70] ss:$24 sps:$4 sm:$0xff]   ;;  %vm20714_vm3 = vmmov %vm20710_vm2 }
 0x571   : > { %v17614_v42 = vld [vmem:[#allocation15 + $0xb78] ss:$24 sps:$4 sm:$0xff]   ;;  %vm20715_vm5 = vmmov %vm20710_vm2 }
 0x572   : > { %6971 = vmatpush1.bf16.msra.mxu0 %v17539_v39  ;;  %7057 = vmatpush1.bf16.msra.mxu1 %v17542_v63  ;;  %v17619_v39 = vld [vmem:[#allocation15 + $0xba4] ss:$24 sps:$4 sm:$0xff]   ;;  %v20050_v63 = vld [vmem:[#allocation4 + $0x8] ss:$16 sps:$4 sm:$0x1f]  }
 0x573   : > { %6972 = vmatprep.subr.bf16.mxu0 %v17547_v41  ;;  %7058 = vmatprep.subr.bf16.mxu1 %v17550_v46  ;;  %v17622_v41 = vld [vmem:[#allocation15 + $0xbac] ss:$24 sps:$4 sm:$0xff]   ;;  %v17617_v46 = vld [vmem:[#allocation15 + $0xba0] ss:$24 sps:$4 sm:$0xff]  }
 0x576   : > { %6973 = vmatpush1.bf16.msra.mxu0 %v17545_v47  ;;  %7059 = vmatpush1.bf16.msra.mxu1 %v17548_v48  ;;  %v17620_v47 = vld [vmem:[#allocation15 + $0xba8] ss:$24 sps:$4 sm:$0xff]   ;;  %v17625_v48 = vld [vmem:[#allocation15 + $0xbd4] ss:$24 sps:$4 sm:$0xff]  }
 0x577   : > { %6974 = vmatprep.subr.bf16.mxu0 %v17553_v56  ;;  %7060 = vmatprep.subr.bf16.mxu1 %v17556_v58  ;;  %v17628_v56 = vld [vmem:[#allocation15 + $0xbdc] ss:$24 sps:$4 sm:$0xff]   ;;  %v5950_v58 = vshll.u32 %v20050_v63, 16 }
 0x57a   : > { %6975 = vmatpush1.bf16.msra.mxu0 %v17551_v59  ;;  %7061 = vmatpush1.bf16.msra.mxu1 %v17554_v16  ;;  %v17623_v59 = vld [vmem:[#allocation15 + $0xbd0] ss:$24 sps:$4 sm:$0xff]  }
 0x57b   : > { %6976 = vmatprep.subr.bf16.mxu0 %v17559_v6  ;;  %7062 = vmatprep.subr.bf16.mxu1 %v17562_v4  ;;  %v17626_v16 = vld [vmem:[#allocation15 + $0xbd8] ss:$24 sps:$4 sm:$0xff]   ;;  %v5952_v6 = vrot.slane %v5950_v58, 1  ;;  %v17631_v4 = vld [vmem:[#allocation15 + $0x614] ss:$24 sps:$4 sm:$0xff]  }
 0x57c   : > { %v17697_v58 = vld [vmem:[#allocation15 + $0x824] ss:$24 sps:$4 sm:$0xff]  }
 0x57e   : > { %6977 = vmatpush1.bf16.msra.mxu0 %v17557_v25  ;;  %7063 = vmatpush1.bf16.msra.mxu1 %v17560_v17  ;;  %v17634_v25 = vld [vmem:[#allocation15 + $0xc] ss:$24 sps:$4 sm:$0xff]   ;;  %v5948_v17 = vshrl.u32 %v20050_v63, 16 }
 0x57f   : > { %6978 = vmatprep.subr.bf16.mxu0 %v17565_v20  ;;  %7064 = vmatprep.subr.bf16.mxu1 %v17568_v33  ;;  %v17629_v20 = vld [vmem:[#allocation15 + $0x610] ss:$24 sps:$4 sm:$0xff]  }
 0x580   : > { %v20054_v33 = vor.u32 %v5952_v6, %v5948_v17  ;;  %v17698_v6 = vld [vmem:[#allocation15 + $0x218] ss:$24 sps:$4 sm:$0xff]  }
 0x581   : > { %v17701_v17 = vld [vmem:[#allocation15 + $0x850] ss:$24 sps:$4 sm:$0xff]  }
 0x582   : > { %6979 = vmatpush1.bf16.msra.mxu0 %v17563_v26  ;;  %7065 = vmatpush1.bf16.msra.mxu1 %v17566_v29  ;;  %v17632_v26 = vld [vmem:[#allocation15 + $0x8] ss:$24 sps:$4 sm:$0xff]   ;;  %v17637_v29 = vld [vmem:[#allocation15 + $0x644] ss:$24 sps:$4 sm:$0xff]  }
 0x583   : > { %6980 = vmatprep.subr.bf16.mxu0 %v17571_v57  ;;  %7066 = vmatprep.subr.bf16.mxu1 %v17574_v31  ;;  %v17640_v57 = vld [vmem:[#allocation15 + $0x3c] ss:$24 sps:$4 sm:$0xff]   ;;  %v17635_v31 = vld [vmem:[#allocation15 + $0x640] ss:$24 sps:$4 sm:$0xff]  }
 0x586   : > { %6981 = vmatpush1.bf16.msra.mxu0 %v17569_v28  ;;  %7067 = vmatpush1.bf16.msra.mxu1 %v17572_v30  ;;  %v17638_v28 = vld [vmem:[#allocation15 + $0x38] ss:$24 sps:$4 sm:$0xff]   ;;  %v17643_v30 = vld [vmem:[#allocation15 + $0x674] ss:$24 sps:$4 sm:$0xff]  }
 0x587   : > { %6982 = vmatprep.subr.bf16.mxu0 %v17577_v3  ;;  %7068 = vmatprep.subr.bf16.mxu1 %v17580_v5  ;;  %v17646_v3 = vld [vmem:[#allocation15 + $0x6c] ss:$24 sps:$4 sm:$0xff]   ;;  %v17641_v5 = vld [vmem:[#allocation15 + $0x670] ss:$24 sps:$4 sm:$0xff]  }
 0x58a   : > { %6983 = vmatpush1.bf16.msra.mxu0 %v17575_v34  ;;  %7069 = vmatpush1.bf16.msra.mxu1 %v17578_v7  ;;  %v17644_v34 = vld [vmem:[#allocation15 + $0x68] ss:$24 sps:$4 sm:$0xff]   ;;  %v17649_v7 = vld [vmem:[#allocation15 + $0x6a4] ss:$24 sps:$4 sm:$0xff]  }
 0x58b   : > { %6984 = vmatprep.subr.bf16.mxu0 %v17583_v8  ;;  %7070 = vmatprep.subr.bf16.mxu1 %v17586_v1  ;;  %v17652_v8 = vld [vmem:[#allocation15 + $0x9c] ss:$24 sps:$4 sm:$0xff]   ;;  %v17647_v1 = vld [vmem:[#allocation15 + $0x6a0] ss:$24 sps:$4 sm:$0xff]  }
 0x58e   : > { %6985 = vmatpush1.bf16.msra.mxu0 %v17581_v9  ;;  %7071 = vmatpush1.bf16.msra.mxu1 %v17584_v11  ;;  %v17655_v9 = vld [vmem:[#allocation15 + $0x6d4] ss:$24 sps:$4 sm:$0xff]  }
 0x58f   : > { %6986 = vmatprep.subr.bf16.mxu0 %v17589_v12  ;;  %7072 = vmatprep.subr.bf16.mxu1 %v17592_v0  ;;  %v17658_v11 = vld [vmem:[#allocation15 + $0xcc] ss:$24 sps:$4 sm:$0xff]   ;;  %v17653_v12 = vld [vmem:[#allocation15 + $0x6d0] ss:$24 sps:$4 sm:$0xff]  }
 0x590   : > { %v17656_v0 = vld [vmem:[#allocation15 + $0xc8] ss:$24 sps:$4 sm:$0xff]  }
 0x592   : > { %6987 = vmatpush1.bf16.msra.mxu0 %v17587_v13  ;;  %7073 = vmatpush1.bf16.msra.mxu1 %v17590_v14  ;;  %v17661_v13 = vld [vmem:[#allocation15 + $0x704] ss:$24 sps:$4 sm:$0xff]  }
 0x593   : > { %6988 = vmatprep.subr.bf16.mxu0 %v17595_v15  ;;  %7074 = vmatprep.subr.bf16.mxu1 %v17598_v2  ;;  %v17664_v14 = vld [vmem:[#allocation15 + $0xfc] ss:$24 sps:$4 sm:$0xff]   ;;  %v17659_v15 = vld [vmem:[#allocation15 + $0x700] ss:$24 sps:$4 sm:$0xff]  }
 0x594   : > { %v17662_v2 = vld [vmem:[#allocation15 + $0xf8] ss:$24 sps:$4 sm:$0xff]  }
 0x596   : > { %6989 = vmatpush1.bf16.msra.mxu0 %v17593_v18  ;;  %7075 = vmatpush1.bf16.msra.mxu1 %v17596_v35  ;;  %v17667_v18 = vld [vmem:[#allocation15 + $0x734] ss:$24 sps:$4 sm:$0xff]  }
 0x597   : > { %6990 = vmatprep.subr.bf16.mxu0 %v17601_v53  ;;  %7076 = vmatprep.subr.bf16.mxu1 %v17604_v36  ;;  %v17670_v35 = vld [vmem:[#allocation15 + $0x12c] ss:$24 sps:$4 sm:$0xff]   ;;  %v17665_v53 = vld [vmem:[#allocation15 + $0x730] ss:$24 sps:$4 sm:$0xff]  }
 0x598   : > { %v17668_v36 = vld [vmem:[#allocation15 + $0x128] ss:$24 sps:$4 sm:$0xff]  }
 0x59a   : > { %6991 = vmatpush1.bf16.msra.mxu0 %v17599_v40  ;;  %7077 = vmatpush1.bf16.msra.mxu1 %v17602_v49  ;;  %v17673_v40 = vld [vmem:[#allocation15 + $0x764] ss:$24 sps:$4 sm:$0xff]  }
 0x59b   : > { %6992 = vmatprep.subr.bf16.mxu0 %v17607_v50  ;;  %7078 = vmatprep.subr.bf16.mxu1 %v17610_v51  ;;  %v17676_v49 = vld [vmem:[#allocation15 + $0x15c] ss:$24 sps:$4 sm:$0xff]   ;;  %v17671_v50 = vld [vmem:[#allocation15 + $0x760] ss:$24 sps:$4 sm:$0xff]  }
 0x59c   : > { %v17674_v51 = vld [vmem:[#allocation15 + $0x158] ss:$24 sps:$4 sm:$0xff]  }
 0x59e   : > { %6993 = vmatpush1.bf16.msra.mxu0 %v17605_v60  ;;  %7079 = vmatpush1.bf16.msra.mxu1 %v17608_v38  ;;  %v17679_v60 = vld [vmem:[#allocation15 + $0x794] ss:$24 sps:$4 sm:$0xff]  }
 0x59f   : > { %6994 = vmatprep.subr.bf16.mxu0 %v17613_v61  ;;  %7080 = vmatprep.subr.bf16.mxu1 %v17616_v52  ;;  %v17682_v38 = vld [vmem:[#allocation15 + $0x18c] ss:$24 sps:$4 sm:$0xff]   ;;  %v17677_v61 = vld [vmem:[#allocation15 + $0x790] ss:$24 sps:$4 sm:$0xff]  }
 0x5a0   : > { %v17680_v52 = vld [vmem:[#allocation15 + $0x188] ss:$24 sps:$4 sm:$0xff]  }
 0x5a2   : > { %6995 = vmatpush1.bf16.msra.mxu0 %v17611_v54  ;;  %7081 = vmatpush1.bf16.msra.mxu1 %v17614_v42  ;;  %v17685_v54 = vld [vmem:[#allocation15 + $0x7c4] ss:$24 sps:$4 sm:$0xff]  }
 0x5a3   : > { %6996 = vmatprep.subr.bf16.mxu0 %v17619_v39  ;;  %7082 = vmatprep.subr.bf16.mxu1 %v17622_v41  ;;  %v17688_v42 = vld [vmem:[#allocation15 + $0x1bc] ss:$24 sps:$4 sm:$0xff]   ;;  %v17683_v39 = vld [vmem:[#allocation15 + $0x7c0] ss:$24 sps:$4 sm:$0xff]  }
 0x5a4   : > { %v17686_v41 = vld [vmem:[#allocation15 + $0x1b8] ss:$24 sps:$4 sm:$0xff]  }
 0x5a6   : > { %6997 = vmatpush1.bf16.msra.mxu0 %v17617_v46  ;;  %7083 = vmatpush1.bf16.msra.mxu1 %v17620_v47  ;;  %v17691_v46 = vld [vmem:[#allocation15 + $0x7f4] ss:$24 sps:$4 sm:$0xff]  }
 0x5a7   : > { %6998 = vmatprep.subr.bf16.mxu0 %v17625_v48  ;;  %7084 = vmatprep.subr.bf16.mxu1 %v17628_v56  ;;  %v17694_v47 = vld [vmem:[#allocation15 + $0x1ec] ss:$24 sps:$4 sm:$0xff]   ;;  %v17689_v48 = vld [vmem:[#allocation15 + $0x7f0] ss:$24 sps:$4 sm:$0xff]  }
 0x5a8   : > { %v17692_v56 = vld [vmem:[#allocation15 + $0x1e8] ss:$24 sps:$4 sm:$0xff]  }
 0x5aa   : > { %6999 = vmatpush1.bf16.msra.mxu0 %v17623_v59  ;;  %7085 = vmatpush1.bf16.msra.mxu1 %v17626_v16  ;;  %v17700_v59 = vld [vmem:[#allocation15 + $0x21c] ss:$24 sps:$4 sm:$0xff]   ;;  %v17695_v16 = vld [vmem:[#allocation15 + $0x820] ss:$24 sps:$4 sm:$0xff]  }
 0x5ab   : > { %7097 = vmatprep.subr.bf16.mxu0 %v17631_v4  ;;  %8233 = vmatprep.subr.bf16.mxu1 %v17634_v25  ;;  %v17703_v4 = vld [vmem:[#allocation15 + $0x854] ss:$24 sps:$4 sm:$0xff]  }
 0x5ac   : > { %v17706_v25 = vld [vmem:[#allocation15 + $0x24c] ss:$24 sps:$4 sm:$0xff]  }
 0x5ad   : > { %7001 = vmatmul.mubr.bf16.vlgmr.msra.gmra.mrb[8].mxu0 %v20054_v33  ;;  %7087 = vmatmul.mubr.bf16.vlgmr.msra.gmra.mrb[12].mxu1 %v20054_v33 }
 0x5ae   : > { %7098 = vmatpush1.bf16.msra.mxu0 %v17629_v20  ;;  %7129 = vmatprep.mubr.bf16.mxu0 %v20039_v45  ;;  %v17650_v45 = vld [vmem:[#allocation15 + $0x98] ss:$24 sps:$4 sm:$0xff]   ;;  %v17704_v20 = vld [vmem:[#allocation15 + $0x248] ss:$24 sps:$4 sm:$0xff]  }
 0x5af   : > { %8234 = vmatpush1.bf16.msra.mxu1 %v17632_v26  ;;  %8265 = vmatprep.mubr.bf16.mxu1 %v20028_v10  ;;  %v17709_v26 = vld [vmem:[#allocation15 + $0x884] ss:$24 sps:$4 sm:$0xff]  }
 0x5b0   : > { %7099 = vmatprep.subr.bf16.mxu0 %v17637_v29  ;;  %8235 = vmatprep.subr.bf16.mxu1 %v17640_v57  ;;  %v17712_v29 = vld [vmem:[#allocation15 + $0x27c] ss:$24 sps:$4 sm:$0xff]   ;;  %v17707_v57 = vld [vmem:[#allocation15 + $0x880] ss:$24 sps:$4 sm:$0xff]  }
 0x5b2   : > { %7100 = vmatpush1.bf16.msra.mxu0 %v17635_v31  ;;  %v17710_v31 = vld [vmem:[#allocation15 + $0x278] ss:$24 sps:$4 sm:$0xff]  }
 0x5b3   : > { %8236 = vmatpush1.bf16.msra.mxu1 %v17638_v28  ;;  %7101 = vmatprep.subr.bf16.mxu0 %v17643_v30  ;;  %v17715_v28 = vld [vmem:[#allocation15 + $0x8b4] ss:$24 sps:$4 sm:$0xff]  }
 0x5b4   : > { %8237 = vmatprep.subr.bf16.mxu1 %v17646_v3  ;;  %v17718_v30 = vld [vmem:[#allocation15 + $0x2ac] ss:$24 sps:$4 sm:$0xff]   ;;  %v17713_v3 = vld [vmem:[#allocation15 + $0x8b0] ss:$24 sps:$4 sm:$0xff]  }
 0x5b6   : > { %7102 = vmatpush1.bf16.msra.mxu0 %v17641_v5  ;;  %v17716_v5 = vld [vmem:[#allocation15 + $0x2a8] ss:$24 sps:$4 sm:$0xff]  }
 0x5b7   : > { %8238 = vmatpush1.bf16.msra.mxu1 %v17644_v34  ;;  %7103 = vmatprep.subr.bf16.mxu0 %v17649_v7  ;;  %v17721_v34 = vld [vmem:[#allocation15 + $0x8e4] ss:$24 sps:$4 sm:$0xff]  }
 0x5b8   : > { %8239 = vmatprep.subr.bf16.mxu1 %v17652_v8  ;;  %v17724_v7 = vld [vmem:[#allocation15 + $0x2dc] ss:$24 sps:$4 sm:$0xff]   ;;  %v17719_v8 = vld [vmem:[#allocation15 + $0x8e0] ss:$24 sps:$4 sm:$0xff]  }
 0x5ba   : > { %7104 = vmatpush1.bf16.msra.mxu0 %v17647_v1  ;;  %v17722_v1 = vld [vmem:[#allocation15 + $0x2d8] ss:$24 sps:$4 sm:$0xff]  }
 0x5bb   : > { %8240 = vmatpush1.bf16.msra.mxu1 %v17650_v45  ;;  %7105 = vmatprep.subr.bf16.mxu0 %v17655_v9  ;;  %v17727_v45 = vld [vmem:[#allocation15 + $0x914] ss:$24 sps:$4 sm:$0xff]  }
 0x5bc   : > { %8241 = vmatprep.subr.bf16.mxu1 %v17658_v11  ;;  %v17730_v9 = vld [vmem:[#allocation15 + $0x30c] ss:$24 sps:$4 sm:$0xff]   ;;  %v17725_v11 = vld [vmem:[#allocation15 + $0x910] ss:$24 sps:$4 sm:$0xff]  }
 0x5be   : > { %7106 = vmatpush1.bf16.msra.mxu0 %v17653_v12  ;;  %v17728_v12 = vld [vmem:[#allocation15 + $0x308] ss:$24 sps:$4 sm:$0xff]  }
 0x5bf   : > { %8242 = vmatpush1.bf16.msra.mxu1 %v17656_v0  ;;  %7107 = vmatprep.subr.bf16.mxu0 %v17661_v13  ;;  %v17733_v0 = vld [vmem:[#allocation15 + $0x944] ss:$24 sps:$4 sm:$0xff]  }
 0x5c0   : > { %8243 = vmatprep.subr.bf16.mxu1 %v17664_v14  ;;  %v17736_v13 = vld [vmem:[#allocation15 + $0x33c] ss:$24 sps:$4 sm:$0xff]   ;;  %v17731_v14 = vld [vmem:[#allocation15 + $0x940] ss:$24 sps:$4 sm:$0xff]  }
 0x5c2   : > { %7108 = vmatpush1.bf16.msra.mxu0 %v17659_v15  ;;  %v17734_v15 = vld [vmem:[#allocation15 + $0x338] ss:$24 sps:$4 sm:$0xff]  }
 0x5c3   : > { %8244 = vmatpush1.bf16.msra.mxu1 %v17662_v2  ;;  %7109 = vmatprep.subr.bf16.mxu0 %v17667_v18  ;;  %v17739_v2 = vld [vmem:[#allocation15 + $0x974] ss:$24 sps:$4 sm:$0xff]  }
 0x5c4   : > { %8245 = vmatprep.subr.bf16.mxu1 %v17670_v35  ;;  %v17742_v18 = vld [vmem:[#allocation15 + $0x36c] ss:$24 sps:$4 sm:$0xff]   ;;  %v17737_v35 = vld [vmem:[#allocation15 + $0x970] ss:$24 sps:$4 sm:$0xff]  }
 0x5c6   : > { %7110 = vmatpush1.bf16.msra.mxu0 %v17665_v53  ;;  %v17745_v53 = vld [vmem:[#allocation15 + $0x9a4] ss:$24 sps:$4 sm:$0xff]  }
 0x5c7   : > { %8246 = vmatpush1.bf16.msra.mxu1 %v17668_v36  ;;  %7111 = vmatprep.subr.bf16.mxu0 %v17673_v40  ;;  %v17743_v36 = vld [vmem:[#allocation15 + $0x9a0] ss:$24 sps:$4 sm:$0xff]   ;;  %v17751_v40 = vld [vmem:[#allocation15 + $0x9d4] ss:$24 sps:$4 sm:$0xff]  }
 0x5c8   : > { %8247 = vmatprep.subr.bf16.mxu1 %v17676_v49  ;;  %v17754_v49 = vld [vmem:[#allocation15 + $0x3cc] ss:$24 sps:$4 sm:$0xff]  }
 0x5ca   : > { %7112 = vmatpush1.bf16.msra.mxu0 %v17671_v50  ;;  %v17752_v50 = vld [vmem:[#allocation15 + $0x3c8] ss:$24 sps:$4 sm:$0xff]  }
 0x5cb   : > { %8248 = vmatpush1.bf16.msra.mxu1 %v17674_v51  ;;  %7113 = vmatprep.subr.bf16.mxu0 %v17679_v60  ;;  %v17757_v51 = vld [vmem:[#allocation15 + $0xa04] ss:$24 sps:$4 sm:$0xff]  }
 0x5cc   : > { %8249 = vmatprep.subr.bf16.mxu1 %v17682_v38  ;;  %v17760_v60 = vld [vmem:[#allocation15 + $0x3fc] ss:$24 sps:$4 sm:$0xff]   ;;  %v17755_v38 = vld [vmem:[#allocation15 + $0xa00] ss:$24 sps:$4 sm:$0xff]  }
 0x5ce   : > { %7114 = vmatpush1.bf16.msra.mxu0 %v17677_v61  ;;  %v17758_v61 = vld [vmem:[#allocation15 + $0x3f8] ss:$24 sps:$4 sm:$0xff]  }
 0x5cf   : > { %8250 = vmatpush1.bf16.msra.mxu1 %v17680_v52  ;;  %7115 = vmatprep.subr.bf16.mxu0 %v17685_v54  ;;  %v17763_v52 = vld [vmem:[#allocation15 + $0xa34] ss:$24 sps:$4 sm:$0xff]  }
 0x5d0   : > { %8251 = vmatprep.subr.bf16.mxu1 %v17688_v42  ;;  %v17766_v54 = vld [vmem:[#allocation15 + $0x42c] ss:$24 sps:$4 sm:$0xff]   ;;  %v17761_v42 = vld [vmem:[#allocation15 + $0xa30] ss:$24 sps:$4 sm:$0xff]  }
 0x5d2   : > { %7116 = vmatpush1.bf16.msra.mxu0 %v17683_v39  ;;  %v17764_v39 = vld [vmem:[#allocation15 + $0x428] ss:$24 sps:$4 sm:$0xff]  }
 0x5d3   : > { %8252 = vmatpush1.bf16.msra.mxu1 %v17686_v41  ;;  %7117 = vmatprep.subr.bf16.mxu0 %v17691_v46  ;;  %v17769_v41 = vld [vmem:[#allocation15 + $0xa64] ss:$24 sps:$4 sm:$0xff]  }
 0x5d4   : > { %8253 = vmatprep.subr.bf16.mxu1 %v17694_v47  ;;  %v17772_v46 = vld [vmem:[#allocation15 + $0x45c] ss:$24 sps:$4 sm:$0xff]   ;;  %v17767_v47 = vld [vmem:[#allocation15 + $0xa60] ss:$24 sps:$4 sm:$0xff]  }
 0x5d6   : > { %7118 = vmatpush1.bf16.msra.mxu0 %v17689_v48  ;;  %v17770_v48 = vld [vmem:[#allocation15 + $0x458] ss:$24 sps:$4 sm:$0xff]  }
 0x5d7   : > { %8254 = vmatpush1.bf16.msra.mxu1 %v17692_v56  ;;  %7119 = vmatprep.subr.bf16.mxu0 %v17697_v58  ;;  %v17775_v56 = vld [vmem:[#allocation15 + $0xa94] ss:$24 sps:$4 sm:$0xff]  }
 0x5d8   : > { %8255 = vmatprep.subr.bf16.mxu1 %v17700_v59  ;;  %v17778_v58 = vld [vmem:[#allocation15 + $0x48c] ss:$24 sps:$4 sm:$0xff]   ;;  %v17773_v59 = vld [vmem:[#allocation15 + $0xa90] ss:$24 sps:$4 sm:$0xff]  }
 0x5da   : > { %7120 = vmatpush1.bf16.msra.mxu0 %v17695_v16  ;;  %v17776_v16 = vld [vmem:[#allocation15 + $0x488] ss:$24 sps:$4 sm:$0xff]  }
 0x5db   : > { %8256 = vmatpush1.bf16.msra.mxu1 %v17698_v6  ;;  %7121 = vmatprep.subr.bf16.mxu0 %v17703_v4  ;;  %v17781_v6 = vld [vmem:[#allocation15 + $0xac4] ss:$24 sps:$4 sm:$0xff]  }
 0x5dc   : > { %8257 = vmatprep.subr.bf16.mxu1 %v17706_v25  ;;  %v17784_v4 = vld [vmem:[#allocation15 + $0x4bc] ss:$24 sps:$4 sm:$0xff]   ;;  %v17779_v25 = vld [vmem:[#allocation15 + $0xac0] ss:$24 sps:$4 sm:$0xff]  }
 0x5de   : > { %7122 = vmatpush1.bf16.msra.mxu0 %v17701_v17  ;;  %v17782_v17 = vld [vmem:[#allocation15 + $0x4b8] ss:$24 sps:$4 sm:$0xff]  }
 0x5df   : > { %8258 = vmatpush1.bf16.msra.mxu1 %v17704_v20  ;;  %7123 = vmatprep.subr.bf16.mxu0 %v17709_v26  ;;  %v17787_v20 = vld [vmem:[#allocation15 + $0xaf4] ss:$24 sps:$4 sm:$0xff]  }
 0x5e0   : > { %8259 = vmatprep.subr.bf16.mxu1 %v17712_v29  ;;  %v17790_v26 = vld [vmem:[#allocation15 + $0x4ec] ss:$24 sps:$4 sm:$0xff]   ;;  %v17785_v29 = vld [vmem:[#allocation15 + $0xaf0] ss:$24 sps:$4 sm:$0xff]  }
 0x5e2   : > { %7124 = vmatpush1.bf16.msra.mxu0 %v17707_v57  ;;  %v17788_v57 = vld [vmem:[#allocation15 + $0x4e8] ss:$24 sps:$4 sm:$0xff]  }
 0x5e3   : > { %8260 = vmatpush1.bf16.msra.mxu1 %v17710_v31  ;;  %7125 = vmatprep.subr.bf16.mxu0 %v17715_v28  ;;  %v17793_v31 = vld [vmem:[#allocation15 + $0xb24] ss:$24 sps:$4 sm:$0xff]  }
 0x5e4   : > { %8261 = vmatprep.subr.bf16.mxu1 %v17718_v30  ;;  %v17796_v28 = vld [vmem:[#allocation15 + $0x51c] ss:$24 sps:$4 sm:$0xff]   ;;  %v17791_v30 = vld [vmem:[#allocation15 + $0xb20] ss:$24 sps:$4 sm:$0xff]  }
 0x5e6   : > { %7126 = vmatpush1.bf16.msra.mxu0 %v17713_v3  ;;  %v17794_v3 = vld [vmem:[#allocation15 + $0x518] ss:$24 sps:$4 sm:$0xff]  }
 0x5e7   : > { %8262 = vmatpush1.bf16.msra.mxu1 %v17716_v5  ;;  %7127 = vmatprep.subr.bf16.mxu0 %v17721_v34  ;;  %v17799_v5 = vld [vmem:[#allocation15 + $0xb54] ss:$24 sps:$4 sm:$0xff]  }
 0x5e8   : > { %8263 = vmatprep.subr.bf16.mxu1 %v17724_v7  ;;  %v17802_v34 = vld [vmem:[#allocation15 + $0x54c] ss:$24 sps:$4 sm:$0xff]   ;;  %v17797_v7 = vld [vmem:[#allocation15 + $0xb50] ss:$24 sps:$4 sm:$0xff]  }
 0x5ea   : > { %7128 = vmatpush1.bf16.msra.mxu0 %v17719_v8  ;;  %v17800_v8 = vld [vmem:[#allocation15 + $0x548] ss:$24 sps:$4 sm:$0xff]  }
 0x5eb   : > { %8264 = vmatpush1.bf16.msra.mxu1 %v17722_v1  ;;  %7140 = vmatprep.subr.bf16.mxu0 %v17727_v45  ;;  %v17805_v1 = vld [vmem:[#allocation15 + $0xb84] ss:$24 sps:$4 sm:$0xff]  }
 0x5ec   : > { %8276 = vmatprep.subr.bf16.mxu1 %v17730_v9  ;;  %v17808_v45 = vld [vmem:[#allocation15 + $0x57c] ss:$24 sps:$4 sm:$0xff]   ;;  %v17803_v9 = vld [vmem:[#allocation15 + $0xb80] ss:$24 sps:$4 sm:$0xff]  }
 0x5ed   : > { %7130 = vmatmul.mubr.bf16.vlgmr.msra.gmra.mrb[12].mxu0 %v20037_v55  ;;  %v17740_v55 = vld [vmem:[#allocation15 + $0x368] ss:$24 sps:$4 sm:$0xff]  }
 0x5ee   : > { %8266 = vmatmul.mubr.bf16.vlgmr.msra.gmra.mrb[12].mxu1 %v20026_v44  ;;  %7141 = vmatpush1.bf16.msra.mxu0 %v17725_v11  ;;  %v17748_v44 = vld [vmem:[#allocation15 + $0x39c] ss:$24 sps:$4 sm:$0xff]   ;;  %v17806_v11 = vld [vmem:[#allocation15 + $0x578] ss:$24 sps:$4 sm:$0xff]  }
 0x5ef   : > { %7172 = vmatprep.mubr.bf16.mxu0 %v20046_v43  ;;  %8277 = vmatpush1.bf16.msra.mxu1 %v17728_v12  ;;  %v17746_v43 = vld [vmem:[#allocation15 + $0x398] ss:$24 sps:$4 sm:$0xff]   ;;  %v17811_v12 = vld [vmem:[#allocation15 + $0xbb4] ss:$24 sps:$4 sm:$0xff]  }
 0x5f0   : > { %8308 = vmatprep.mubr.bf16.mxu1 %v20032_v37  ;;  %7142 = vmatprep.subr.bf16.mxu0 %v17733_v0  ;;  %v17749_v37 = vld [vmem:[#allocation15 + $0x9d0] ss:$24 sps:$4 sm:$0xff]   ;;  %v17814_v0 = vld [vmem:[#allocation15 + $0x5ac] ss:$24 sps:$4 sm:$0xff]  }
 0x5f1   : > { %8278 = vmatprep.subr.bf16.mxu1 %v17736_v13  ;;  %v17809_v13 = vld [vmem:[#allocation15 + $0xbb0] ss:$24 sps:$4 sm:$0xff]  }
 0x5f2   : > { %7143 = vmatpush1.bf16.msra.mxu0 %v17731_v14  ;;  %v17812_v14 = vld [vmem:[#allocation15 + $0x5a8] ss:$24 sps:$4 sm:$0xff]  }
 0x5f3   : > { %8279 = vmatpush1.bf16.msra.mxu1 %v17734_v15  ;;  %7144 = vmatprep.subr.bf16.mxu0 %v17739_v2  ;;  %v17817_v15 = vld [vmem:[#allocation15 + $0xbe4] ss:$24 sps:$4 sm:$0xff]  }
 0x5f4   : > { %8280 = vmatprep.subr.bf16.mxu1 %v17742_v18  ;;  %v17820_v2 = vld [vmem:[#allocation15 + $0x5dc] ss:$24 sps:$4 sm:$0xff]   ;;  %v17815_v18 = vld [vmem:[#allocation15 + $0xbe0] ss:$24 sps:$4 sm:$0xff]  }
 0x5f6   : > { %7145 = vmatpush1.bf16.msra.mxu0 %v17737_v35  ;;  %v17818_v35 = vld [vmem:[#allocation15 + $0x5d8] ss:$24 sps:$4 sm:$0xff]  }
 0x5f7   : > { %8281 = vmatpush1.bf16.msra.mxu1 %v17740_v55  ;;  %7146 = vmatprep.subr.bf16.mxu0 %v17745_v53  ;;  %v17823_v55 = vld [vmem:[#allocation15 + $0x4] ss:$24 sps:$4 sm:$0xff]  }
 0x5f8   : > { %8282 = vmatprep.subr.bf16.mxu1 %v17748_v44  ;;  %v17826_v53 = vld [vmem:[#allocation15 + $0xc0c] ss:$24 sps:$4 sm:$0xff]   ;;  %v17821_v44 = vld [vmem:[#allocation15] ss:$24 sps:$4 sm:$0xff]  }
 0x5fa   : > { %7147 = vmatpush1.bf16.msra.mxu0 %v17743_v36  ;;  %v20064_v36 = vld [vmem:[#allocation4 + $0x4] ss:$16 sps:$4 sm:$0x3e]  }
 0x5fb   : > { %8283 = vmatpush1.bf16.msra.mxu1 %v17746_v43  ;;  %7148 = vmatprep.subr.bf16.mxu0 %v17751_v40  ;;  %v17824_v43 = vld [vmem:[#allocation15 + $0xc08] ss:$24 sps:$4 sm:$0xff]   ;;  %v17832_v40 = vld [vmem:[#allocation15 + $0x34] ss:$24 sps:$4 sm:$0xff]  }
 0x5fc   : > { %8284 = vmatprep.subr.bf16.mxu1 %v17754_v49  ;;  %v17835_v49 = vld [vmem:[#allocation15 + $0xc3c] ss:$24 sps:$4 sm:$0xff]  }
 0x5fe   : > { %7149 = vmatpush1.bf16.msra.mxu0 %v17749_v37  ;;  %v20069_v37 = vrot.slane %v20064_v36, 1 }
 0x5ff   : > { %8285 = vmatpush1.bf16.msra.mxu1 %v17752_v50  ;;  %7150 = vmatprep.subr.bf16.mxu0 %v17757_v51  ;;  %v17830_v50 = vld [vmem:[#allocation15 + $0x30] ss:$24 sps:$4 sm:$0xff]  }
 0x600   : > { %8286 = vmatprep.subr.bf16.mxu1 %v17760_v60  ;;  %v17833_v51 = vld [vmem:[#allocation15 + $0xc38] ss:$24 sps:$4 sm:$0xff]   ;;  %v17838_v60 = vld [vmem:[#allocation15 + $0x64] ss:$24 sps:$4 sm:$0xff]  }
 0x602   : > { %7151 = vmatpush1.bf16.msra.mxu0 %v17755_v38  ;;  %v17841_v38 = vld [vmem:[#allocation15 + $0xc6c] ss:$24 sps:$4 sm:$0xff]  }
 0x603   : > { %8287 = vmatpush1.bf16.msra.mxu1 %v17758_v61  ;;  %7152 = vmatprep.subr.bf16.mxu0 %v17763_v52  ;;  %v17844_v61 = vld [vmem:[#allocation15 + $0x94] ss:$24 sps:$4 sm:$0xff]  }
 0x604   : > { %8288 = vmatprep.subr.bf16.mxu1 %v17766_v54  ;;  %v17847_v52 = vld [vmem:[#allocation15 + $0xc9c] ss:$24 sps:$4 sm:$0xff]   ;;  %v17842_v54 = vld [vmem:[#allocation15 + $0x90] ss:$24 sps:$4 sm:$0xff]  }
 0x606   : > { %7153 = vmatpush1.bf16.msra.mxu0 %v17761_v42  ;;  %v17850_v42 = vld [vmem:[#allocation15 + $0xc4] ss:$24 sps:$4 sm:$0xff]  }
 0x607   : > { %8289 = vmatpush1.bf16.msra.mxu1 %v17764_v39  ;;  %7154 = vmatprep.subr.bf16.mxu0 %v17769_v41  ;;  %v17853_v39 = vld [vmem:[#allocation15 + $0xccc] ss:$24 sps:$4 sm:$0xff]   ;;  %v17848_v41 = vld [vmem:[#allocation15 + $0xc0] ss:$24 sps:$4 sm:$0xff]  }
 0x608   : > { %8290 = vmatprep.subr.bf16.mxu1 %v17772_v46  ;;  %v17851_v46 = vld [vmem:[#allocation15 + $0xcc8] ss:$24 sps:$4 sm:$0xff]  }
 0x60a   : > { %7155 = vmatpush1.bf16.msra.mxu0 %v17767_v47  ;;  %v17856_v47 = vld [vmem:[#allocation15 + $0xf4] ss:$24 sps:$4 sm:$0xff]  }
 0x60b   : > { %8291 = vmatpush1.bf16.msra.mxu1 %v17770_v48  ;;  %7156 = vmatprep.subr.bf16.mxu0 %v17775_v56  ;;  %v17859_v48 = vld [vmem:[#allocation15 + $0xcfc] ss:$24 sps:$4 sm:$0xff]   ;;  %v17854_v56 = vld [vmem:[#allocation15 + $0xf0] ss:$24 sps:$4 sm:$0xff]  }
 0x60c   : > { %8292 = vmatprep.subr.bf16.mxu1 %v17778_v58  ;;  %v17857_v58 = vld [vmem:[#allocation15 + $0xcf8] ss:$24 sps:$4 sm:$0xff]  }
 0x60e   : > { %7157 = vmatpush1.bf16.msra.mxu0 %v17773_v59  ;;  %v17862_v59 = vld [vmem:[#allocation15 + $0x124] ss:$24 sps:$4 sm:$0xff]  }
 0x60f   : > { %8293 = vmatpush1.bf16.msra.mxu1 %v17776_v16  ;;  %7158 = vmatprep.subr.bf16.mxu0 %v17781_v6  ;;  %v17865_v16 = vld [vmem:[#allocation15 + $0xd2c] ss:$24 sps:$4 sm:$0xff]   ;;  %v17860_v6 = vld [vmem:[#allocation15 + $0x120] ss:$24 sps:$4 sm:$0xff]  }
 0x610   : > { %8294 = vmatprep.subr.bf16.mxu1 %v17784_v4  ;;  %v17863_v4 = vld [vmem:[#allocation15 + $0xd28] ss:$24 sps:$4 sm:$0xff]  }
 0x612   : > { %7159 = vmatpush1.bf16.msra.mxu0 %v17779_v25  ;;  %v17868_v25 = vld [vmem:[#allocation15 + $0x154] ss:$24 sps:$4 sm:$0xff]  }
 0x613   : > { %8295 = vmatpush1.bf16.msra.mxu1 %v17782_v17  ;;  %7160 = vmatprep.subr.bf16.mxu0 %v17787_v20  ;;  %v17871_v17 = vld [vmem:[#allocation15 + $0xd5c] ss:$24 sps:$4 sm:$0xff]   ;;  %v17866_v20 = vld [vmem:[#allocation15 + $0x150] ss:$24 sps:$4 sm:$0xff]  }
 0x614   : > { %8296 = vmatprep.subr.bf16.mxu1 %v17790_v26  ;;  %v17869_v26 = vld [vmem:[#allocation15 + $0xd58] ss:$24 sps:$4 sm:$0xff]  }
 0x616   : > { %7161 = vmatpush1.bf16.msra.mxu0 %v17785_v29  ;;  %v17874_v29 = vld [vmem:[#allocation15 + $0x184] ss:$24 sps:$4 sm:$0xff]  }
 0x617   : > { %8297 = vmatpush1.bf16.msra.mxu1 %v17788_v57  ;;  %7162 = vmatprep.subr.bf16.mxu0 %v17793_v31  ;;  %v17877_v57 = vld [vmem:[#allocation15 + $0xd8c] ss:$24 sps:$4 sm:$0xff]   ;;  %v17872_v31 = vld [vmem:[#allocation15 + $0x180] ss:$24 sps:$4 sm:$0xff]  }
 0x618   : > { %8298 = vmatprep.subr.bf16.mxu1 %v17796_v28  ;;  %v17875_v28 = vld [vmem:[#allocation15 + $0xd88] ss:$24 sps:$4 sm:$0xff]  }
 0x61a   : > { %7163 = vmatpush1.bf16.msra.mxu0 %v17791_v30  ;;  %v17880_v30 = vld [vmem:[#allocation15 + $0x1b4] ss:$24 sps:$4 sm:$0xff]  }
 0x61b   : > { %8299 = vmatpush1.bf16.msra.mxu1 %v17794_v3  ;;  %7164 = vmatprep.subr.bf16.mxu0 %v17799_v5  ;;  %v17883_v3 = vld [vmem:[#allocation15 + $0xdbc] ss:$24 sps:$4 sm:$0xff]   ;;  %v17878_v5 = vld [vmem:[#allocation15 + $0x1b0] ss:$24 sps:$4 sm:$0xff]  }
 0x61c   : > { %8300 = vmatprep.subr.bf16.mxu1 %v17802_v34  ;;  %v17881_v34 = vld [vmem:[#allocation15 + $0xdb8] ss:$24 sps:$4 sm:$0xff]  }
 0x61e   : > { %7165 = vmatpush1.bf16.msra.mxu0 %v17797_v7  ;;  %v17886_v7 = vld [vmem:[#allocation15 + $0x1e4] ss:$24 sps:$4 sm:$0xff]  }
 0x61f   : > { %8301 = vmatpush1.bf16.msra.mxu1 %v17800_v8  ;;  %7166 = vmatprep.subr.bf16.mxu0 %v17805_v1  ;;  %v17889_v8 = vld [vmem:[#allocation15 + $0xdec] ss:$24 sps:$4 sm:$0xff]   ;;  %v17884_v1 = vld [vmem:[#allocation15 + $0x1e0] ss:$24 sps:$4 sm:$0xff]  }
 0x620   : > { %8302 = vmatprep.subr.bf16.mxu1 %v17808_v45  ;;  %v17887_v45 = vld [vmem:[#allocation15 + $0xde8] ss:$24 sps:$4 sm:$0xff]  }
 0x622   : > { %7167 = vmatpush1.bf16.msra.mxu0 %v17803_v9  ;;  %v17892_v9 = vld [vmem:[#allocation15 + $0x214] ss:$24 sps:$4 sm:$0xff]  }
 0x623   : > { %8303 = vmatpush1.bf16.msra.mxu1 %v17806_v11  ;;  %7168 = vmatprep.subr.bf16.mxu0 %v17811_v12  ;;  %v17895_v11 = vld [vmem:[#allocation15 + $0xe1c] ss:$24 sps:$4 sm:$0xff]   ;;  %v17890_v12 = vld [vmem:[#allocation15 + $0x210] ss:$24 sps:$4 sm:$0xff]  }
 0x624   : > { %8304 = vmatprep.subr.bf16.mxu1 %v17814_v0  ;;  %v17893_v0 = vld [vmem:[#allocation15 + $0xe18] ss:$24 sps:$4 sm:$0xff]  }
 0x626   : > { %7169 = vmatpush1.bf16.msra.mxu0 %v17809_v13  ;;  %v17898_v13 = vld [vmem:[#allocation15 + $0x244] ss:$24 sps:$4 sm:$0xff]  }
 0x627   : > { %8305 = vmatpush1.bf16.msra.mxu1 %v17812_v14  ;;  %7170 = vmatprep.subr.bf16.mxu0 %v17817_v15  ;;  %v17901_v14 = vld [vmem:[#allocation15 + $0xe4c] ss:$24 sps:$4 sm:$0xff]   ;;  %v17896_v15 = vld [vmem:[#allocation15 + $0x240] ss:$24 sps:$4 sm:$0xff]  }
 0x628   : > { %8306 = vmatprep.subr.bf16.mxu1 %v17820_v2  ;;  %v17899_v2 = vld [vmem:[#allocation15 + $0xe48] ss:$24 sps:$4 sm:$0xff]  }
 0x62a   : > { %7171 = vmatpush1.bf16.msra.mxu0 %v17815_v18  ;;  %v17904_v18 = vld [vmem:[#allocation15 + $0x274] ss:$24 sps:$4 sm:$0xff]  }
 0x62b   : > { %8307 = vmatpush1.bf16.msra.mxu1 %v17818_v35  ;;  %8147 = vmatprep.subr.bf16.mxu0 %v17823_v55  ;;  %v17907_v35 = vld [vmem:[#allocation15 + $0xe7c] ss:$24 sps:$4 sm:$0xff]   ;;  %v17902_v55 = vld [vmem:[#allocation15 + $0x270] ss:$24 sps:$4 sm:$0xff]  }
 0x62c   : > { %9672 = vmatprep.subr.bf16.mxu1 %v17826_v53  ;;  %v17905_v53 = vld [vmem:[#allocation15 + $0xe78] ss:$24 sps:$4 sm:$0xff]  }
 0x62d   : > { %7173 = vmatmul.mubr.bf16.vlgmr.msra.gmra.mrb[12].mxu0 %v20054_v33  ;;  %v17836_v33 = vld [vmem:[#allocation15 + $0x60] ss:$24 sps:$4 sm:$0xff]  }
 0x62e   : > { %8309 = vmatmul.mubr.bf16.vlgmr.msra.gmra.mrb[12].mxu1 %v20050_v63  ;;  %8148 = vmatpush1.bf16.msra.mxu0 %v17821_v44  ;;  %v17839_v63 = vld [vmem:[#allocation15 + $0xc68] ss:$24 sps:$4 sm:$0xff]   ;;  %v17910_v44 = vld [vmem:[#allocation15 + $0x2a4] ss:$24 sps:$4 sm:$0xff]  }
 0x62f   : > { %8179 = vmatprep.mubr.bf16.mxu0 %v20028_v10  ;;  %9673 = vmatpush1.bf16.msra.mxu1 %v17824_v43  ;;  %v17845_v10 = vld [vmem:[#allocation15 + $0xc98] ss:$24 sps:$4 sm:$0xff]   ;;  %v17913_v43 = vld [vmem:[#allocation15 + $0xeac] ss:$24 sps:$4 sm:$0xff]  }
 0x630   : > { %9704 = vmatprep.mubr.bf16.mxu1 %v20069_v37  ;;  %8149 = vmatprep.subr.bf16.mxu0 %v17832_v40  ;;  %v17908_v40 = vld [vmem:[#allocation15 + $0x2a0] ss:$24 sps:$4 sm:$0xff]  }
 0x631   : > { %9674 = vmatprep.subr.bf16.mxu1 %v17835_v49  ;;  %v17911_v49 = vld [vmem:[#allocation15 + $0xea8] ss:$24 sps:$4 sm:$0xff]  }
 0x632   : > { %8150 = vmatpush1.bf16.msra.mxu0 %v17830_v50  ;;  %v17916_v50 = vld [vmem:[#allocation15 + $0x2d4] ss:$24 sps:$4 sm:$0xff]  }
 0x633   : > { %9675 = vmatpush1.bf16.msra.mxu1 %v17833_v51  ;;  %8151 = vmatprep.subr.bf16.mxu0 %v17838_v60  ;;  %v17919_v51 = vld [vmem:[#allocation15 + $0xedc] ss:$24 sps:$4 sm:$0xff]   ;;  %v17914_v60 = vld [vmem:[#allocation15 + $0x2d0] ss:$24 sps:$4 sm:$0xff]  }
 0x634   : > { %9676 = vmatprep.subr.bf16.mxu1 %v17841_v38  ;;  %v17917_v38 = vld [vmem:[#allocation15 + $0xed8] ss:$24 sps:$4 sm:$0xff]  }
 0x636   : > { %8152 = vmatpush1.bf16.msra.mxu0 %v17836_v33  ;;  %v17922_v33 = vld [vmem:[#allocation15 + $0x304] ss:$24 sps:$4 sm:$0xff]  }
 0x637   : > { %9677 = vmatpush1.bf16.msra.mxu1 %v17839_v63  ;;  %8153 = vmatprep.subr.bf16.mxu0 %v17844_v61  ;;  %v20073_v63 = vld [vmem:[#allocation4] ss:$16 sps:$4 sm:$0x3e]   ;;  %v17925_v61 = vld [vmem:[#allocation15 + $0xf0c] ss:$24 sps:$4 sm:$0xff]  }
 0x638   : > { %9678 = vmatprep.subr.bf16.mxu1 %v17847_v52  ;;  %v17920_v52 = vld [vmem:[#allocation15 + $0x300] ss:$24 sps:$4 sm:$0xff]  }
 0x63a   : > { %8154 = vmatpush1.bf16.msra.mxu0 %v17842_v54  ;;  %v20075_v54 = vld [vmem:[#allocation4 + $0xc] ss:$16 sps:$4 sm:$0x3e]  }
 0x63b   : > { %9679 = vmatpush1.bf16.msra.mxu1 %v17845_v10  ;;  %8155 = vmatprep.subr.bf16.mxu0 %v17850_v42  ;;  %v17923_v10 = vld [vmem:[#allocation15 + $0xf08] ss:$24 sps:$4 sm:$0xff]   ;;  %v20078_v42 = vrot.slane %v20073_v63, 1 }
 0x63c   : > { %9680 = vmatprep.subr.bf16.mxu1 %v17853_v39  ;;  %v17931_v39 = vld [vmem:[#allocation15 + $0x334] ss:$24 sps:$4 sm:$0xff]  }
 0x63e   : > { %8156 = vmatpush1.bf16.msra.mxu0 %v17848_v41  ;;  %v20080_v41 = vld [vmem:[#allocation4] ss:$16 sps:$4 sm:$0x1f]  }
 0x63f   : > { %9681 = vmatpush1.bf16.msra.mxu1 %v17851_v46  ;;  %8157 = vmatprep.subr.bf16.mxu0 %v17856_v47  ;;  %v17934_v46 = vld [vmem:[#allocation15 + $0xf3c] ss:$24 sps:$4 sm:$0xff]   ;;  %v20085_v47 = vrot.slane %v20075_v54, 1 }
 0x640   : > { %9682 = vmatprep.subr.bf16.mxu1 %v17859_v48  ;;  %v17929_v48 = vld [vmem:[#allocation15 + $0x330] ss:$24 sps:$4 sm:$0xff]  }
 0x642   : > { %8158 = vmatpush1.bf16.msra.mxu0 %v17854_v56  ;;  %v20087_v56 = vld [vmem:[#allocation4 + $0xc] ss:$16 sps:$4 sm:$0x1f]  }
 0x643   : > { %9683 = vmatpush1.bf16.msra.mxu1 %v17857_v58  ;;  %8159 = vmatprep.subr.bf16.mxu0 %v17862_v59  ;;  %v17932_v58 = vld [vmem:[#allocation15 + $0xf38] ss:$24 sps:$4 sm:$0xff]   ;;  %v17937_v59 = vld [vmem:[#allocation15 + $0x364] ss:$24 sps:$4 sm:$0xff]  }
 0x644   : > { %9684 = vmatprep.subr.bf16.mxu1 %v17865_v16  ;;  %v17940_v16 = vld [vmem:[#allocation15 + $0xf6c] ss:$24 sps:$4 sm:$0xff]  }
 0x646   : > { %8160 = vmatpush1.bf16.msra.mxu0 %v17860_v6  ;;  %v17935_v6 = vld [vmem:[#allocation15 + $0x360] ss:$24 sps:$4 sm:$0xff]  }
 0x647   : > { %9685 = vmatpush1.bf16.msra.mxu1 %v17863_v4  ;;  %8161 = vmatprep.subr.bf16.mxu0 %v17868_v25  ;;  %v17938_v4 = vld [vmem:[#allocation15 + $0xf68] ss:$24 sps:$4 sm:$0xff]   ;;  %v17943_v25 = vld [vmem:[#allocation15 + $0x394] ss:$24 sps:$4 sm:$0xff]  }
 0x648   : > { %9686 = vmatprep.subr.bf16.mxu1 %v17871_v17  ;;  %v17946_v17 = vld [vmem:[#allocation15 + $0xf9c] ss:$24 sps:$4 sm:$0xff]  }
 0x64a   : > { %8162 = vmatpush1.bf16.msra.mxu0 %v17866_v20  ;;  %v17941_v20 = vld [vmem:[#allocation15 + $0x390] ss:$24 sps:$4 sm:$0xff]  }
 0x64b   : > { %9687 = vmatpush1.bf16.msra.mxu1 %v17869_v26  ;;  %8163 = vmatprep.subr.bf16.mxu0 %v17874_v29  ;;  %v17944_v26 = vld [vmem:[#allocation15 + $0xf98] ss:$24 sps:$4 sm:$0xff]   ;;  %v17949_v29 = vld [vmem:[#allocation15 + $0x3c4] ss:$24 sps:$4 sm:$0xff]  }
 0x64c   : > { %9688 = vmatprep.subr.bf16.mxu1 %v17877_v57  ;;  %v17952_v57 = vld [vmem:[#allocation15 + $0xfcc] ss:$24 sps:$4 sm:$0xff]  }
 0x64e   : > { %8164 = vmatpush1.bf16.msra.mxu0 %v17872_v31  ;;  %v17947_v31 = vld [vmem:[#allocation15 + $0x3c0] ss:$24 sps:$4 sm:$0xff]  }
 0x64f   : > { %9689 = vmatpush1.bf16.msra.mxu1 %v17875_v28  ;;  %8165 = vmatprep.subr.bf16.mxu0 %v17880_v30  ;;  %v17950_v28 = vld [vmem:[#allocation15 + $0xfc8] ss:$24 sps:$4 sm:$0xff]   ;;  %v17955_v30 = vld [vmem:[#allocation15 + $0x3f4] ss:$24 sps:$4 sm:$0xff]  }
 0x650   : > { %9690 = vmatprep.subr.bf16.mxu1 %v17883_v3  ;;  %v17958_v3 = vld [vmem:[#allocation15 + $0xffc] ss:$24 sps:$4 sm:$0xff]  }
 0x652   : > { %8166 = vmatpush1.bf16.msra.mxu0 %v17878_v5  ;;  %v17953_v5 = vld [vmem:[#allocation15 + $0x3f0] ss:$24 sps:$4 sm:$0xff]  }
 0x653   : > { %9691 = vmatpush1.bf16.msra.mxu1 %v17881_v34  ;;  %8167 = vmatprep.subr.bf16.mxu0 %v17886_v7  ;;  %v17956_v34 = vld [vmem:[#allocation15 + $0xff8] ss:$24 sps:$4 sm:$0xff]   ;;  %v17961_v7 = vld [vmem:[#allocation15 + $0x424] ss:$24 sps:$4 sm:$0xff]  }
 0x654   : > { %9692 = vmatprep.subr.bf16.mxu1 %v17889_v8  ;;  %v17964_v8 = vld [vmem:[#allocation15 + $0x102c] ss:$24 sps:$4 sm:$0xff]  }
 0x656   : > { %8168 = vmatpush1.bf16.msra.mxu0 %v17884_v1  ;;  %v17959_v1 = vld [vmem:[#allocation15 + $0x420] ss:$24 sps:$4 sm:$0xff]  }
 0x657   : > { %9693 = vmatpush1.bf16.msra.mxu1 %v17887_v45  ;;  %8169 = vmatprep.subr.bf16.mxu0 %v17892_v9  ;;  %v17962_v45 = vld [vmem:[#allocation15 + $0x1028] ss:$24 sps:$4 sm:$0xff]   ;;  %v17967_v9 = vld [vmem:[#allocation15 + $0x454] ss:$24 sps:$4 sm:$0xff]  }
 0x658   : > { %9694 = vmatprep.subr.bf16.mxu1 %v17895_v11  ;;  %v17970_v11 = vld [vmem:[#allocation15 + $0x105c] ss:$24 sps:$4 sm:$0xff]  }
 0x65a   : > { %8170 = vmatpush1.bf16.msra.mxu0 %v17890_v12  ;;  %v17965_v12 = vld [vmem:[#allocation15 + $0x450] ss:$24 sps:$4 sm:$0xff]  }
 0x65b   : > { %9695 = vmatpush1.bf16.msra.mxu1 %v17893_v0  ;;  %8171 = vmatprep.subr.bf16.mxu0 %v17898_v13  ;;  %v17968_v0 = vld [vmem:[#allocation15 + $0x1058] ss:$24 sps:$4 sm:$0xff]   ;;  %v17973_v13 = vld [vmem:[#allocation15 + $0x484] ss:$24 sps:$4 sm:$0xff]  }
 0x65c   : > { %9696 = vmatprep.subr.bf16.mxu1 %v17901_v14  ;;  %v17976_v14 = vld [vmem:[#allocation15 + $0x108c] ss:$24 sps:$4 sm:$0xff]  }
 0x65e   : > { %8172 = vmatpush1.bf16.msra.mxu0 %v17896_v15  ;;  %v17971_v15 = vld [vmem:[#allocation15 + $0x480] ss:$24 sps:$4 sm:$0xff]  }
 0x65f   : > { %9697 = vmatpush1.bf16.msra.mxu1 %v17899_v2  ;;  %8173 = vmatprep.subr.bf16.mxu0 %v17904_v18  ;;  %v17974_v2 = vld [vmem:[#allocation15 + $0x1088] ss:$24 sps:$4 sm:$0xff]   ;;  %v17979_v18 = vld [vmem:[#allocation15 + $0x4b4] ss:$24 sps:$4 sm:$0xff]  }
 0x660   : > { %9698 = vmatprep.subr.bf16.mxu1 %v17907_v35  ;;  %v17982_v35 = vld [vmem:[#allocation15 + $0x10bc] ss:$24 sps:$4 sm:$0xff]  }
 0x662   : > { %8174 = vmatpush1.bf16.msra.mxu0 %v17902_v55  ;;  %v17977_v55 = vld [vmem:[#allocation15 + $0x4b0] ss:$24 sps:$4 sm:$0xff]  }
 0x663   : > { %9699 = vmatpush1.bf16.msra.mxu1 %v17905_v53  ;;  %8175 = vmatprep.subr.bf16.mxu0 %v17910_v44  ;;  %v17980_v53 = vld [vmem:[#allocation15 + $0x10b8] ss:$24 sps:$4 sm:$0xff]   ;;  %v17985_v44 = vld [vmem:[#allocation15 + $0x4e4] ss:$24 sps:$4 sm:$0xff]  }
 0x664   : > { %9700 = vmatprep.subr.bf16.mxu1 %v17913_v43  ;;  %v17988_v43 = vld [vmem:[#allocation15 + $0x10ec] ss:$24 sps:$4 sm:$0xff]  }
 0x666   : > { %8176 = vmatpush1.bf16.msra.mxu0 %v17908_v40  ;;  %v17983_v40 = vld [vmem:[#allocation15 + $0x4e0] ss:$24 sps:$4 sm:$0xff]  }
 0x667   : > { %9701 = vmatpush1.bf16.msra.mxu1 %v17911_v49  ;;  %8177 = vmatprep.subr.bf16.mxu0 %v17916_v50  ;;  %v17986_v49 = vld [vmem:[#allocation15 + $0x10e8] ss:$24 sps:$4 sm:$0xff]   ;;  %v17991_v50 = vld [vmem:[#allocation15 + $0x514] ss:$24 sps:$4 sm:$0xff]  }
 0x668   : > { %9702 = vmatprep.subr.bf16.mxu1 %v17919_v51  ;;  %v17994_v51 = vld [vmem:[#allocation15 + $0x111c] ss:$24 sps:$4 sm:$0xff]  }
 0x66a   : > { %8178 = vmatpush1.bf16.msra.mxu0 %v17914_v60  ;;  %v17989_v60 = vld [vmem:[#allocation15 + $0x510] ss:$24 sps:$4 sm:$0xff]  }
 0x66b   : > { %9703 = vmatpush1.bf16.msra.mxu1 %v17917_v38  ;;  %8190 = vmatprep.subr.bf16.mxu0 %v17922_v33  ;;  %v17992_v38 = vld [vmem:[#allocation15 + $0x1118] ss:$24 sps:$4 sm:$0xff]   ;;  %v17997_v33 = vld [vmem:[#allocation15 + $0x544] ss:$24 sps:$4 sm:$0xff]  }
 0x66c   : > { %9715 = vmatprep.subr.bf16.mxu1 %v17925_v61  ;;  %v18000_v61 = vld [vmem:[#allocation15 + $0x114c] ss:$24 sps:$4 sm:$0xff]  }
 0x66d   : > { %8180 = vmatmul.mubr.bf16.vlgmr.msra.gmra.mrb[8].mxu0 %v20080_v41 }
 0x66e   : > { %9705 = vmatmul.mubr.bf16.vlgmr.msra.gmra.mrb[12].mxu1 %v20078_v42  ;;  %8191 = vmatpush1.bf16.msra.mxu0 %v17920_v52  ;;  %v17995_v52 = vld [vmem:[#allocation15 + $0x540] ss:$24 sps:$4 sm:$0xff]  }
 0x66f   : > { %8222 = vmatprep.mubr.bf16.mxu0 %v20087_v56  ;;  %9716 = vmatpush1.bf16.msra.mxu1 %v17923_v10  ;;  %v17998_v10 = vld [vmem:[#allocation15 + $0x1148] ss:$24 sps:$4 sm:$0xff]  }
 0x670   : > { %9747 = vmatprep.mubr.bf16.mxu1 %v20085_v47  ;;  %8192 = vmatprep.subr.bf16.mxu0 %v17931_v39  ;;  %v18003_v39 = vld [vmem:[#allocation15 + $0x574] ss:$24 sps:$4 sm:$0xff]  }
 0x671   : > { %9717 = vmatprep.subr.bf16.mxu1 %v17934_v46  ;;  %v18006_v46 = vld [vmem:[#allocation15 + $0x117c] ss:$24 sps:$4 sm:$0xff]  }
 0x672   : > { %8193 = vmatpush1.bf16.msra.mxu0 %v17929_v48  ;;  %v18001_v48 = vld [vmem:[#allocation15 + $0x570] ss:$24 sps:$4 sm:$0xff]  }
 0x673   : > { %9718 = vmatpush1.bf16.msra.mxu1 %v17932_v58  ;;  %8194 = vmatprep.subr.bf16.mxu0 %v17937_v59  ;;  %v18004_v58 = vld [vmem:[#allocation15 + $0x1178] ss:$24 sps:$4 sm:$0xff]   ;;  %v18009_v59 = vld [vmem:[#allocation15 + $0x5a4] ss:$24 sps:$4 sm:$0xff]  }
 0x674   : > { %9719 = vmatprep.subr.bf16.mxu1 %v17940_v16  ;;  %v18012_v16 = vld [vmem:[#allocation15 + $0x11ac] ss:$24 sps:$4 sm:$0xff]  }
 0x676   : > { %8195 = vmatpush1.bf16.msra.mxu0 %v17935_v6  ;;  %v18007_v6 = vld [vmem:[#allocation15 + $0x5a0] ss:$24 sps:$4 sm:$0xff]  }
 0x677   : > { %9720 = vmatpush1.bf16.msra.mxu1 %v17938_v4  ;;  %8196 = vmatprep.subr.bf16.mxu0 %v17943_v25  ;;  %v18010_v4 = vld [vmem:[#allocation15 + $0x11a8] ss:$24 sps:$4 sm:$0xff]   ;;  %v18015_v25 = vld [vmem:[#allocation15 + $0x5d4] ss:$24 sps:$4 sm:$0xff]  }
 0x678   : > { %9721 = vmatprep.subr.bf16.mxu1 %v17946_v17  ;;  %v18018_v17 = vld [vmem:[#allocation15 + $0x11dc] ss:$24 sps:$4 sm:$0xff]  }
 0x67a   : > { %8197 = vmatpush1.bf16.msra.mxu0 %v17941_v20  ;;  %v18013_v20 = vld [vmem:[#allocation15 + $0x5d0] ss:$24 sps:$4 sm:$0xff]  }
 0x67b   : > { %9722 = vmatpush1.bf16.msra.mxu1 %v17944_v26  ;;  %8198 = vmatprep.subr.bf16.mxu0 %v17949_v29  ;;  %v10058_v26 = vshrl.u32 %v20064_v36, 16  ;;  %v10061_v29 = vshll.u32 %v20064_v36, 16  ;;  %v18027_v36 = vld [vmem:[#allocation15 + $0x44] ss:$24 sps:$4 sm:$0xff]  }
 0x67c   : > { %9723 = vmatprep.subr.bf16.mxu1 %v17952_v57  ;;  %v18016_v57 = vld [vmem:[#allocation15 + $0x11d8] ss:$24 sps:$4 sm:$0xff]  }
 0x67e   : > { %8199 = vmatpush1.bf16.msra.mxu0 %v17947_v31  ;;  %v18021_v31 = vld [vmem:[#allocation15 + $0x14] ss:$24 sps:$4 sm:$0xff]  }
 0x67f   : > { %9724 = vmatpush1.bf16.msra.mxu1 %v17950_v28  ;;  %8200 = vmatprep.subr.bf16.mxu0 %v17955_v30  ;;  %v20093_v28 = vld [vmem:[#allocation4 + $0x8] ss:$16 sps:$4 sm:$0x3e]   ;;  %v18024_v30 = vld [vmem:[#allocation15 + $0x120c] ss:$24 sps:$4 sm:$0xff]  }
 0x680   : > { %9725 = vmatprep.subr.bf16.mxu1 %v17958_v3  ;;  %v18019_v3 = vld [vmem:[#allocation15 + $0x10] ss:$24 sps:$4 sm:$0xff]  }
 0x682   : > { %8201 = vmatpush1.bf16.msra.mxu0 %v17953_v5  ;;  %v10060_v5 = vrot.slane %v10058_v26, 1  ;;  %v18076_v26 = vld [vmem:[#allocation15 + $0x13b8] ss:$24 sps:$4 sm:$0xff]  }
 0x683   : > { %9726 = vmatpush1.bf16.msra.mxu1 %v17956_v34  ;;  %8202 = vmatprep.subr.bf16.mxu0 %v17961_v7  ;;  %v10063_v34 = vrot.slane %v10061_v29, 2  ;;  %v18022_v7 = vld [vmem:[#allocation15 + $0x1208] ss:$24 sps:$4 sm:$0xff]   ;;  %v18081_v29 = vld [vmem:[#allocation15 + $0x1f4] ss:$24 sps:$4 sm:$0xff]  }
 0x684   : > { %9727 = vmatprep.subr.bf16.mxu1 %v17964_v8  ;;  %v20096_v8 = vrot.slane %v20093_v28, 1 }
 0x686   : > { %8203 = vmatpush1.bf16.msra.mxu0 %v17959_v1  ;;  %v20098_v1 = vld [vmem:[#allocation4 + $0x8] ss:$16 sps:$4 sm:$0x1f]  }
 0x687   : > { %9728 = vmatpush1.bf16.msra.mxu1 %v17962_v45  ;;  %8204 = vmatprep.subr.bf16.mxu0 %v17967_v9  ;;  %v18030_v45 = vld [vmem:[#allocation15 + $0x123c] ss:$24 sps:$4 sm:$0xff]   ;;  %v20102_v9 = vor.u32 %v10063_v34, %v10060_v5  ;;  %v18085_v34 = vld [vmem:[#allocation15 + $0x220] ss:$24 sps:$4 sm:$0xff]  }
 0x688   : > { %9729 = vmatprep.subr.bf16.mxu1 %v17970_v11  ;;  %v18025_v11 = vld [vmem:[#allocation15 + $0x40] ss:$24 sps:$4 sm:$0xff]   ;;  %v18090_v5 = vld [vmem:[#allocation15 + $0x141c] ss:$24 sps:$4 sm:$0xff]  }
 0x68a   : > { %8205 = vmatpush1.bf16.msra.mxu0 %v17965_v12  ;;  %v18826_v12 = vld [vmem:[#allocation4 + $0x4] ss:$16 sps:$4 sm:$0x1f]  }
 0x68b   : > { %9730 = vmatpush1.bf16.msra.mxu1 %v17968_v0  ;;  %8206 = vmatprep.subr.bf16.mxu0 %v17973_v13  ;;  %v18028_v0 = vld [vmem:[#allocation15 + $0x1238] ss:$24 sps:$4 sm:$0xff]   ;;  %v18033_v13 = vld [vmem:[#allocation15 + $0x74] ss:$24 sps:$4 sm:$0xff]  }
 0x68c   : > { %9731 = vmatprep.subr.bf16.mxu1 %v17976_v14  ;;  %v18036_v14 = vld [vmem:[#allocation15 + $0x126c] ss:$24 sps:$4 sm:$0xff]  }
 0x68e   : > { %8207 = vmatpush1.bf16.msra.mxu0 %v17971_v15  ;;  %v18031_v15 = vld [vmem:[#allocation15 + $0x70] ss:$24 sps:$4 sm:$0xff]  }
 0x68f   : > { %9732 = vmatpush1.bf16.msra.mxu1 %v17974_v2  ;;  %8208 = vmatprep.subr.bf16.mxu0 %v17979_v18  ;;  %v18034_v2 = vld [vmem:[#allocation15 + $0x1268] ss:$24 sps:$4 sm:$0xff]   ;;  %v18039_v18 = vld [vmem:[#allocation15 + $0xa4] ss:$24 sps:$4 sm:$0xff]  }
 0x690   : > { %9733 = vmatprep.subr.bf16.mxu1 %v17982_v35  ;;  %v18042_v35 = vld [vmem:[#allocation15 + $0x129c] ss:$24 sps:$4 sm:$0xff]  }
 0x692   : > { %8209 = vmatpush1.bf16.msra.mxu0 %v17977_v55  ;;  %v18037_v55 = vld [vmem:[#allocation15 + $0xa0] ss:$24 sps:$4 sm:$0xff]  }
 0x693   : > { %9734 = vmatpush1.bf16.msra.mxu1 %v17980_v53  ;;  %8210 = vmatprep.subr.bf16.mxu0 %v17985_v44  ;;  %v18040_v53 = vld [vmem:[#allocation15 + $0x1298] ss:$24 sps:$4 sm:$0xff]   ;;  %v18045_v44 = vld [vmem:[#allocation15 + $0xd4] ss:$24 sps:$4 sm:$0xff]  }
 0x694   : > { %9735 = vmatprep.subr.bf16.mxu1 %v17988_v43  ;;  %v18048_v43 = vld [vmem:[#allocation15 + $0x12cc] ss:$24 sps:$4 sm:$0xff]  }
 0x696   : > { %8211 = vmatpush1.bf16.msra.mxu0 %v17983_v40  ;;  %v18043_v40 = vld [vmem:[#allocation15 + $0xd0] ss:$24 sps:$4 sm:$0xff]  }
 0x697   : > { %9736 = vmatpush1.bf16.msra.mxu1 %v17986_v49  ;;  %8212 = vmatprep.subr.bf16.mxu0 %v17991_v50  ;;  %v18046_v49 = vld [vmem:[#allocation15 + $0x12c8] ss:$24 sps:$4 sm:$0xff]   ;;  %v18051_v50 = vld [vmem:[#allocation15 + $0x104] ss:$24 sps:$4 sm:$0xff]  }
 0x698   : > { %9737 = vmatprep.subr.bf16.mxu1 %v17994_v51  ;;  %v18054_v51 = vld [vmem:[#allocation15 + $0x12fc] ss:$24 sps:$4 sm:$0xff]  }
 0x69a   : > { %8213 = vmatpush1.bf16.msra.mxu0 %v17989_v60  ;;  %v18049_v60 = vld [vmem:[#allocation15 + $0x100] ss:$24 sps:$4 sm:$0xff]  }
 0x69b   : > { %9738 = vmatpush1.bf16.msra.mxu1 %v17992_v38  ;;  %8214 = vmatprep.subr.bf16.mxu0 %v17997_v33  ;;  %v18052_v38 = vld [vmem:[#allocation15 + $0x12f8] ss:$24 sps:$4 sm:$0xff]   ;;  %v18057_v33 = vld [vmem:[#allocation15 + $0x134] ss:$24 sps:$4 sm:$0xff]  }
 0x69c   : > { %9739 = vmatprep.subr.bf16.mxu1 %v18000_v61  ;;  %v18060_v61 = vld [vmem:[#allocation15 + $0x132c] ss:$24 sps:$4 sm:$0xff]  }
 0x69e   : > { %8215 = vmatpush1.bf16.msra.mxu0 %v17995_v52  ;;  %v18055_v52 = vld [vmem:[#allocation15 + $0x130] ss:$24 sps:$4 sm:$0xff]  }
 0x69f   : > { %9740 = vmatpush1.bf16.msra.mxu1 %v17998_v10  ;;  %8216 = vmatprep.subr.bf16.mxu0 %v18003_v39  ;;  %v18058_v10 = vld [vmem:[#allocation15 + $0x1328] ss:$24 sps:$4 sm:$0xff]   ;;  %v18063_v39 = vld [vmem:[#allocation15 + $0x164] ss:$24 sps:$4 sm:$0xff]  }
 0x6a0   : > { %9741 = vmatprep.subr.bf16.mxu1 %v18006_v46  ;;  %v18066_v46 = vld [vmem:[#allocation15 + $0x135c] ss:$24 sps:$4 sm:$0xff]  }
 0x6a2   : > { %8217 = vmatpush1.bf16.msra.mxu0 %v18001_v48  ;;  %v18061_v48 = vld [vmem:[#allocation15 + $0x160] ss:$24 sps:$4 sm:$0xff]  }
 0x6a3   : > { %9742 = vmatpush1.bf16.msra.mxu1 %v18004_v58  ;;  %8218 = vmatprep.subr.bf16.mxu0 %v18009_v59  ;;  %v18064_v58 = vld [vmem:[#allocation15 + $0x1358] ss:$24 sps:$4 sm:$0xff]   ;;  %v18069_v59 = vld [vmem:[#allocation15 + $0x194] ss:$24 sps:$4 sm:$0xff]  }
 0x6a4   : > { %9743 = vmatprep.subr.bf16.mxu1 %v18012_v16  ;;  %v18072_v16 = vld [vmem:[#allocation15 + $0x138c] ss:$24 sps:$4 sm:$0xff]  }
 0x6a6   : > { %8219 = vmatpush1.bf16.msra.mxu0 %v18007_v6  ;;  %v18067_v6 = vld [vmem:[#allocation15 + $0x190] ss:$24 sps:$4 sm:$0xff]  }
 0x6a7   : > { %9744 = vmatpush1.bf16.msra.mxu1 %v18010_v4  ;;  %8220 = vmatprep.subr.bf16.mxu0 %v18015_v25  ;;  %v18070_v4 = vld [vmem:[#allocation15 + $0x1388] ss:$24 sps:$4 sm:$0xff]   ;;  %v18075_v25 = vld [vmem:[#allocation15 + $0x1c4] ss:$24 sps:$4 sm:$0xff]  }
 0x6a8   : > { %9745 = vmatprep.subr.bf16.mxu1 %v18018_v17  ;;  %v18078_v17 = vld [vmem:[#allocation15 + $0x13bc] ss:$24 sps:$4 sm:$0xff]  }
 0x6aa   : > { %8221 = vmatpush1.bf16.msra.mxu0 %v18013_v20  ;;  %v18073_v20 = vld [vmem:[#allocation15 + $0x1c0] ss:$24 sps:$4 sm:$0xff]  }
 0x6ab   : > { %9746 = vmatpush1.bf16.msra.mxu1 %v18016_v57  ;;  %8319 = vmatprep.subr.bf16.mxu0 %v18021_v31  ;;  %v18084_v57 = vld [vmem:[#allocation15 + $0x13ec] ss:$24 sps:$4 sm:$0xff]   ;;  %v18079_v31 = vld [vmem:[#allocation15 + $0x1f0] ss:$24 sps:$4 sm:$0xff]  }
 0x6ac   : > { %11131 = vmatprep.subr.bf16.mxu1 %v18024_v30  ;;  %v18082_v30 = vld [vmem:[#allocation15 + $0x13e8] ss:$24 sps:$4 sm:$0xff]  }
 0x6ad   : > { %8223 = vmatmul.mubr.bf16.vlgmr.msra.gmra.mrb[8].mxu0 %v20098_v1 }
 0x6ae   : > { %9748 = vmatmul.mubr.bf16.vlgmr.msra.gmra.mrb[12].mxu1 %v20096_v8  ;;  %8320 = vmatpush1.bf16.msra.mxu0 %v18019_v3  ;;  %v18087_v3 = vld [vmem:[#allocation15 + $0x224] ss:$24 sps:$4 sm:$0xff]  }
 0x6af   : > { %8351 = vmatprep.mubr.bf16.mxu0 %v18826_v12  ;;  %11132 = vmatpush1.bf16.msra.mxu1 %v18022_v7  ;;  %v18088_v7 = vld [vmem:[#allocation15 + $0x1418] ss:$24 sps:$4 sm:$0xff]   ;;  %v18094_v12 = vld [vmem:[#allocation15 + $0x1448] ss:$24 sps:$4 sm:$0xff]  }
 0x6b0   : > { %11163 = vmatprep.mubr.bf16.mxu1 %v20102_v9  ;;  %8321 = vmatprep.subr.bf16.mxu0 %v18027_v36  ;;  %v18093_v36 = vld [vmem:[#allocation15 + $0x254] ss:$24 sps:$4 sm:$0xff]  }
 0x6b1   : > { %11133 = vmatprep.subr.bf16.mxu1 %v18030_v45  ;;  %v18096_v45 = vld [vmem:[#allocation15 + $0x144c] ss:$24 sps:$4 sm:$0xff]  }
 0x6b2   : > { %8322 = vmatpush1.bf16.msra.mxu0 %v18025_v11  ;;  %v18091_v11 = vld [vmem:[#allocation15 + $0x250] ss:$24 sps:$4 sm:$0xff]  }
 0x6b3   : > { %11134 = vmatpush1.bf16.msra.mxu1 %v18028_v0  ;;  %8323 = vmatprep.subr.bf16.mxu0 %v18033_v13  ;;  %v18099_v0 = vld [vmem:[#allocation15 + $0x284] ss:$24 sps:$4 sm:$0xff]  }
 0x6b4   : > { %11135 = vmatprep.subr.bf16.mxu1 %v18036_v14  ;;  %v18102_v13 = vld [vmem:[#allocation15 + $0x147c] ss:$24 sps:$4 sm:$0xff]   ;;  %v18097_v14 = vld [vmem:[#allocation15 + $0x280] ss:$24 sps:$4 sm:$0xff]  }
 0x6b6   : > { %8324 = vmatpush1.bf16.msra.mxu0 %v18031_v15  ;;  %v18100_v15 = vld [vmem:[#allocation15 + $0x1478] ss:$24 sps:$4 sm:$0xff]  }
 0x6b7   : > { %11136 = vmatpush1.bf16.msra.mxu1 %v18034_v2  ;;  %8325 = vmatprep.subr.bf16.mxu0 %v18039_v18  ;;  %v18105_v2 = vld [vmem:[#allocation15 + $0x2b4] ss:$24 sps:$4 sm:$0xff]  }
 0x6b8   : > { %11137 = vmatprep.subr.bf16.mxu1 %v18042_v35  ;;  %v18108_v18 = vld [vmem:[#allocation15 + $0x14ac] ss:$24 sps:$4 sm:$0xff]   ;;  %v18103_v35 = vld [vmem:[#allocation15 + $0x2b0] ss:$24 sps:$4 sm:$0xff]  }
 0x6ba   : > { %8326 = vmatpush1.bf16.msra.mxu0 %v18037_v55  ;;  %v18106_v55 = vld [vmem:[#allocation15 + $0x14a8] ss:$24 sps:$4 sm:$0xff]  }
 0x6bb   : > { %11138 = vmatpush1.bf16.msra.mxu1 %v18040_v53  ;;  %8327 = vmatprep.subr.bf16.mxu0 %v18045_v44  ;;  %v18111_v53 = vld [vmem:[#allocation15 + $0x2e4] ss:$24 sps:$4 sm:$0xff]  }
 0x6bc   : > { %11139 = vmatprep.subr.bf16.mxu1 %v18048_v43  ;;  %v18114_v44 = vld [vmem:[#allocation15 + $0x14dc] ss:$24 sps:$4 sm:$0xff]   ;;  %v10050_v43 = vshrl.u32 %v20073_v63, 16 }
 0x6be   : > { %8328 = vmatpush1.bf16.msra.mxu0 %v18043_v40  ;;  %v10053_v40 = vshll.u32 %v20073_v63, 16  ;;  %v18118_v63 = vld [vmem:[#allocation15 + $0x1508] ss:$24 sps:$4 sm:$0xff]  }
 0x6bf   : > { %11140 = vmatpush1.bf16.msra.mxu1 %v18046_v49  ;;  %8329 = vmatprep.subr.bf16.mxu0 %v18051_v50  ;;  %v18109_v49 = vld [vmem:[#allocation15 + $0x2e0] ss:$24 sps:$4 sm:$0xff]   ;;  %v10074_v50 = vshrl.u32 %v20075_v54, 16 }
 0x6c0   : > { %11141 = vmatprep.subr.bf16.mxu1 %v18054_v51  ;;  %v10077_v51 = vshll.u32 %v20075_v54, 16  ;;  %v18126_v54 = vld [vmem:[#allocation15 + $0x153c] ss:$24 sps:$4 sm:$0xff]  }
 0x6c2   : > { %8330 = vmatpush1.bf16.msra.mxu0 %v18049_v60  ;;  %v18112_v60 = vld [vmem:[#allocation15 + $0x14d8] ss:$24 sps:$4 sm:$0xff]  }
 0x6c3   : > { %11142 = vmatpush1.bf16.msra.mxu1 %v18052_v38  ;;  %8331 = vmatprep.subr.bf16.mxu0 %v18057_v33  ;;  %v18117_v38 = vld [vmem:[#allocation15 + $0x314] ss:$24 sps:$4 sm:$0xff]   ;;  %v10052_v33 = vrot.slane %v10050_v43, 1 }
 0x6c4   : > { %11143 = vmatprep.subr.bf16.mxu1 %v18060_v61  ;;  %v10055_v61 = vrot.slane %v10053_v40, 2  ;;  %v18174_v43 = vld [vmem:[#allocation15 + $0x16bc] ss:$24 sps:$4 sm:$0xff]   ;;  %v18169_v40 = vld [vmem:[#allocation15 + $0x4c0] ss:$24 sps:$4 sm:$0xff]  }
 0x6c6   : > { %8332 = vmatpush1.bf16.msra.mxu0 %v18055_v52  ;;  %v18120_v52 = vld [vmem:[#allocation15 + $0x150c] ss:$24 sps:$4 sm:$0xff]  }
 0x6c7   : > { %11144 = vmatpush1.bf16.msra.mxu1 %v18058_v10  ;;  %8333 = vmatprep.subr.bf16.mxu0 %v18063_v39  ;;  %v18115_v10 = vld [vmem:[#allocation15 + $0x310] ss:$24 sps:$4 sm:$0xff]   ;;  %v10076_v39 = vrot.slane %v10074_v50, 1  ;;  %v18177_v50 = vld [vmem:[#allocation15 + $0x4f4] ss:$24 sps:$4 sm:$0xff]  }
 0x6c8   : > { %11145 = vmatprep.subr.bf16.mxu1 %v18066_v46  ;;  %v10079_v46 = vrot.slane %v10077_v51, 2  ;;  %v18180_v51 = vld [vmem:[#allocation15 + $0x16ec] ss:$24 sps:$4 sm:$0xff]  }
 0x6ca   : > { %8334 = vmatpush1.bf16.msra.mxu0 %v18061_v48  ;;  %v20109_v48 = vor.u32 %v10055_v61, %v10052_v33  ;;  %v18183_v33 = vld [vmem:[#allocation15 + $0x524] ss:$24 sps:$4 sm:$0xff]  }
 0x6cb   : > { %11146 = vmatpush1.bf16.msra.mxu1 %v18064_v58  ;;  %8335 = vmatprep.subr.bf16.mxu0 %v18069_v59  ;;  %v18123_v58 = vld [vmem:[#allocation15 + $0x344] ss:$24 sps:$4 sm:$0xff]   ;;  %v20113_v59 = vor.u32 %v10079_v46, %v10076_v39  ;;  %v18189_v39 = vld [vmem:[#allocation15 + $0x554] ss:$24 sps:$4 sm:$0xff]  }
 0x6cc   : > { %11147 = vmatprep.subr.bf16.mxu1 %v18072_v16  ;;  %v18121_v16 = vld [vmem:[#allocation15 + $0x340] ss:$24 sps:$4 sm:$0xff]   ;;  %v18186_v61 = vld [vmem:[#allocation15 + $0x171c] ss:$24 sps:$4 sm:$0xff]   ;;  %v18192_v46 = vld [vmem:[#allocation15 + $0x174c] ss:$24 sps:$4 sm:$0xff]  }
 0x6ce   : > { %8336 = vmatpush1.bf16.msra.mxu0 %v18067_v6  ;;  %v18124_v6 = vld [vmem:[#allocation15 + $0x1538] ss:$24 sps:$4 sm:$0xff]  }
 0x6cf   : > { %11148 = vmatpush1.bf16.msra.mxu1 %v18070_v4  ;;  %8337 = vmatprep.subr.bf16.mxu0 %v18075_v25  ;;  %v18129_v4 = vld [vmem:[#allocation15 + $0x374] ss:$24 sps:$4 sm:$0xff]  }
 0x6d0   : > { %11149 = vmatprep.subr.bf16.mxu1 %v18078_v17  ;;  %v18132_v25 = vld [vmem:[#allocation15 + $0x156c] ss:$24 sps:$4 sm:$0xff]   ;;  %v18127_v17 = vld [vmem:[#allocation15 + $0x370] ss:$24 sps:$4 sm:$0xff]  }
 0x6d2   : > { %8338 = vmatpush1.bf16.msra.mxu0 %v18073_v20  ;;  %v18135_v20 = vld [vmem:[#allocation15 + $0x3a4] ss:$24 sps:$4 sm:$0xff]  }
 0x6d3   : > { %11150 = vmatpush1.bf16.msra.mxu1 %v18076_v26  ;;  %8339 = vmatprep.subr.bf16.mxu0 %v18081_v29  ;;  %v18138_v26 = vld [vmem:[#allocation15 + $0x159c] ss:$24 sps:$4 sm:$0xff]   ;;  %v18133_v29 = vld [vmem:[#allocation15 + $0x3a0] ss:$24 sps:$4 sm:$0xff]  }
 0x6d4   : > { %11151 = vmatprep.subr.bf16.mxu1 %v18084_v57  ;;  %v18141_v57 = vld [vmem:[#allocation15 + $0x3d4] ss:$24 sps:$4 sm:$0xff]  }
 0x6d6   : > { %8340 = vmatpush1.bf16.msra.mxu0 %v18079_v31  ;;  %v18144_v31 = vld [vmem:[#allocation15 + $0x15cc] ss:$24 sps:$4 sm:$0xff]  }
 0x6d7   : > { %11152 = vmatpush1.bf16.msra.mxu1 %v18082_v30  ;;  %8341 = vmatprep.subr.bf16.mxu0 %v18087_v3  ;;  %v18139_v30 = vld [vmem:[#allocation15 + $0x3d0] ss:$24 sps:$4 sm:$0xff]  }
 0x6d8   : > { %11153 = vmatprep.subr.bf16.mxu1 %v18090_v5  ;;  %v18142_v3 = vld [vmem:[#allocation15 + $0x15c8] ss:$24 sps:$4 sm:$0xff]   ;;  %v18147_v5 = vld [vmem:[#allocation15 + $0x404] ss:$24 sps:$4 sm:$0xff]  }
 0x6da   : > { %8342 = vmatpush1.bf16.msra.mxu0 %v18085_v34  ;;  %v18150_v34 = vld [vmem:[#allocation15 + $0x15fc] ss:$24 sps:$4 sm:$0xff]  }
 0x6db   : > { %11154 = vmatpush1.bf16.msra.mxu1 %v18088_v7  ;;  %8343 = vmatprep.subr.bf16.mxu0 %v18093_v36  ;;  %v18145_v7 = vld [vmem:[#allocation15 + $0x400] ss:$24 sps:$4 sm:$0xff]  }
 0x6dc   : > { %11155 = vmatprep.subr.bf16.mxu1 %v18096_v45  ;;  %v18148_v36 = vld [vmem:[#allocation15 + $0x15f8] ss:$24 sps:$4 sm:$0xff]   ;;  %v18153_v45 = vld [vmem:[#allocation15 + $0x434] ss:$24 sps:$4 sm:$0xff]  }
 0x6de   : > { %8344 = vmatpush1.bf16.msra.mxu0 %v18091_v11  ;;  %v18156_v11 = vld [vmem:[#allocation15 + $0x162c] ss:$24 sps:$4 sm:$0xff]  }
 0x6df   : > { %11156 = vmatpush1.bf16.msra.mxu1 %v18094_v12  ;;  %8345 = vmatprep.subr.bf16.mxu0 %v18099_v0  ;;  %v18151_v12 = vld [vmem:[#allocation15 + $0x430] ss:$24 sps:$4 sm:$0xff]  }
 0x6e0   : > { %11157 = vmatprep.subr.bf16.mxu1 %v18102_v13  ;;  %v18154_v0 = vld [vmem:[#allocation15 + $0x1628] ss:$24 sps:$4 sm:$0xff]   ;;  %v18159_v13 = vld [vmem:[#allocation15 + $0x464] ss:$24 sps:$4 sm:$0xff]  }
 0x6e2   : > { %8346 = vmatpush1.bf16.msra.mxu0 %v18097_v14  ;;  %v18162_v14 = vld [vmem:[#allocation15 + $0x165c] ss:$24 sps:$4 sm:$0xff]  }
 0x6e3   : > { %11158 = vmatpush1.bf16.msra.mxu1 %v18100_v15  ;;  %8347 = vmatprep.subr.bf16.mxu0 %v18105_v2  ;;  %v18157_v15 = vld [vmem:[#allocation15 + $0x460] ss:$24 sps:$4 sm:$0xff]  }
 0x6e4   : > { %11159 = vmatprep.subr.bf16.mxu1 %v18108_v18  ;;  %v18160_v2 = vld [vmem:[#allocation15 + $0x1658] ss:$24 sps:$4 sm:$0xff]   ;;  %v18165_v18 = vld [vmem:[#allocation15 + $0x494] ss:$24 sps:$4 sm:$0xff]  }
 0x6e6   : > { %8348 = vmatpush1.bf16.msra.mxu0 %v18103_v35  ;;  %v18168_v35 = vld [vmem:[#allocation15 + $0x168c] ss:$24 sps:$4 sm:$0xff]  }
 0x6e7   : > { %11160 = vmatpush1.bf16.msra.mxu1 %v18106_v55  ;;  %8349 = vmatprep.subr.bf16.mxu0 %v18111_v53  ;;  %v18163_v55 = vld [vmem:[#allocation15 + $0x490] ss:$24 sps:$4 sm:$0xff]  }
 0x6e8   : > { %11161 = vmatprep.subr.bf16.mxu1 %v18114_v44  ;;  %v18166_v53 = vld [vmem:[#allocation15 + $0x1688] ss:$24 sps:$4 sm:$0xff]   ;;  %v18171_v44 = vld [vmem:[#allocation15 + $0x4c4] ss:$24 sps:$4 sm:$0xff]  }
 0x6ea   : > { %8350 = vmatpush1.bf16.msra.mxu0 %v18109_v49  ;;  %v18172_v49 = vld [vmem:[#allocation15 + $0x16b8] ss:$24 sps:$4 sm:$0xff]  }
 0x6eb   : > { %11162 = vmatpush1.bf16.msra.mxu1 %v18112_v60  ;;  %8362 = vmatprep.subr.bf16.mxu0 %v18117_v38  ;;  %v18175_v60 = vld [vmem:[#allocation15 + $0x4f0] ss:$24 sps:$4 sm:$0xff]  }
 0x6ec   : > { %11174 = vmatprep.subr.bf16.mxu1 %v18120_v52  ;;  %v18178_v38 = vld [vmem:[#allocation15 + $0x16e8] ss:$24 sps:$4 sm:$0xff]  }
 0x6ed   : > { %8352 = vmatmul.mubr.bf16.vlgmr.msra.gmra.mrb[12].mxu0 %v20080_v41  ;;  %v18130_v41 = vld [vmem:[#allocation15 + $0x1568] ss:$24 sps:$4 sm:$0xff]  }
 0x6ee   : > { %11164 = vmatmul.mubr.bf16.vlgmr.msra.gmra.mrb[12].mxu1 %v20109_v48  ;;  %8363 = vmatpush1.bf16.msra.mxu0 %v18115_v10  ;;  %v18181_v52 = vld [vmem:[#allocation15 + $0x520] ss:$24 sps:$4 sm:$0xff]  }
 0x6ef   : > { %8394 = vmatprep.mubr.bf16.mxu0 %v20087_v56  ;;  %11175 = vmatpush1.bf16.msra.mxu1 %v18118_v63  ;;  %v18136_v56 = vld [vmem:[#allocation15 + $0x1598] ss:$24 sps:$4 sm:$0xff]  }
 0x6f0   : > { %11206 = vmatprep.mubr.bf16.mxu1 %v20113_v59  ;;  %8364 = vmatprep.subr.bf16.mxu0 %v18123_v58  ;;  %v18184_v10 = vld [vmem:[#allocation15 + $0x1718] ss:$24 sps:$4 sm:$0xff]   ;;  %v18190_v58 = vld [vmem:[#allocation15 + $0x1748] ss:$24 sps:$4 sm:$0xff]  }
 0x6f1   : > { %11176 = vmatprep.subr.bf16.mxu1 %v18126_v54  ;;  %v18187_v63 = vld [vmem:[#allocation15 + $0x550] ss:$24 sps:$4 sm:$0xff]   ;;  %v18195_v54 = vld [vmem:[#allocation15 + $0x584] ss:$24 sps:$4 sm:$0xff]  }
 0x6f2   : > { %8365 = vmatpush1.bf16.msra.mxu0 %v18121_v16  ;;  %v18198_v16 = vld [vmem:[#allocation15 + $0x177c] ss:$24 sps:$4 sm:$0xff]  }
 0x6f3   : > { %11177 = vmatpush1.bf16.msra.mxu1 %v18124_v6  ;;  %8366 = vmatprep.subr.bf16.mxu0 %v18129_v4  ;;  %v18193_v6 = vld [vmem:[#allocation15 + $0x580] ss:$24 sps:$4 sm:$0xff]  }
 0x6f4   : > { %11178 = vmatprep.subr.bf16.mxu1 %v18132_v25  ;;  %v18196_v4 = vld [vmem:[#allocation15 + $0x1778] ss:$24 sps:$4 sm:$0xff]   ;;  %v18201_v25 = vld [vmem:[#allocation15 + $0x5b4] ss:$24 sps:$4 sm:$0xff]  }
 0x6f6   : > { %8367 = vmatpush1.bf16.msra.mxu0 %v18127_v17  ;;  %v18204_v17 = vld [vmem:[#allocation15 + $0x17ac] ss:$24 sps:$4 sm:$0xff]  }
 0x6f7   : > { %11179 = vmatpush1.bf16.msra.mxu1 %v18130_v41  ;;  %8368 = vmatprep.subr.bf16.mxu0 %v18135_v20  ;;  %v18199_v41 = vld [vmem:[#allocation15 + $0x5b0] ss:$24 sps:$4 sm:$0xff]  }
 0x6f8   : > { %11180 = vmatprep.subr.bf16.mxu1 %v18138_v26  ;;  %v18202_v20 = vld [vmem:[#allocation15 + $0x17a8] ss:$24 sps:$4 sm:$0xff]   ;;  %v18207_v26 = vld [vmem:[#allocation15 + $0x5e4] ss:$24 sps:$4 sm:$0xff]  }
 0x6fa   : > { %8369 = vmatpush1.bf16.msra.mxu0 %v18133_v29  ;;  %v18210_v29 = vld [vmem:[#allocation15 + $0x17dc] ss:$24 sps:$4 sm:$0xff]  }
 0x6fb   : > { %11181 = vmatpush1.bf16.msra.mxu1 %v18136_v56  ;;  %8370 = vmatprep.subr.bf16.mxu0 %v18141_v57  ;;  %v10066_v56 = vshrl.u32 %v20093_v28, 16  ;;  %v10069_v57 = vshll.u32 %v20093_v28, 16  ;;  %v18214_v28 = vld [vmem:[#allocation15 + $0xc30] ss:$24 sps:$4 sm:$0xff]  }
 0x6fc   : > { %11182 = vmatprep.subr.bf16.mxu1 %v18144_v31  ;;  %v18205_v31 = vld [vmem:[#allocation15 + $0x5e0] ss:$24 sps:$4 sm:$0xff]  }
 0x6fe   : > { %8371 = vmatpush1.bf16.msra.mxu0 %v18139_v30  ;;  %v18208_v30 = vld [vmem:[#allocation15 + $0x17d8] ss:$24 sps:$4 sm:$0xff]  }
 0x6ff   : > { %11183 = vmatpush1.bf16.msra.mxu1 %v18142_v3  ;;  %8372 = vmatprep.subr.bf16.mxu0 %v18147_v5  ;;  %v18213_v3 = vld [vmem:[#allocation15 + $0xc04] ss:$24 sps:$4 sm:$0xff]   ;;  %v10068_v5 = vrot.slane %v10066_v56, 1  ;;  %v18276_v56 = vld [vmem:[#allocation15 + $0xff4] ss:$24 sps:$4 sm:$0xff]  }
 0x700   : > { %11184 = vmatprep.subr.bf16.mxu1 %v18150_v34  ;;  %v10071_v34 = vrot.slane %v10069_v57, 2  ;;  %v18274_v57 = vld [vmem:[#allocation15 + $0xff0] ss:$24 sps:$4 sm:$0xff]  }
 0x702   : > { %8373 = vmatpush1.bf16.msra.mxu0 %v18145_v7  ;;  %v18211_v7 = vld [vmem:[#allocation15 + $0xc00] ss:$24 sps:$4 sm:$0xff]  }
 0x703   : > { %11185 = vmatpush1.bf16.msra.mxu1 %v18148_v36  ;;  %8374 = vmatprep.subr.bf16.mxu0 %v18153_v45  ;;  %v18216_v36 = vld [vmem:[#allocation15 + $0xc34] ss:$24 sps:$4 sm:$0xff]   ;;  %v20119_v45 = vor.u32 %v10071_v34, %v10068_v5  ;;  %v18280_v5 = vld [vmem:[#allocation15 + $0x1050] ss:$24 sps:$4 sm:$0xff]   ;;  %v18285_v34 = vld [vmem:[#allocation15 + $0x1084] ss:$24 sps:$4 sm:$0xff]  }
 0x704   : > { %11186 = vmatprep.subr.bf16.mxu1 %v18156_v11  ;;  %v18219_v11 = vld [vmem:[#allocation15 + $0xc64] ss:$24 sps:$4 sm:$0xff]  }
 0x706   : > { %8375 = vmatpush1.bf16.msra.mxu0 %v18151_v12  ;;  %v18217_v12 = vld [vmem:[#allocation15 + $0xc60] ss:$24 sps:$4 sm:$0xff]  }
 0x707   : > { %11187 = vmatpush1.bf16.msra.mxu1 %v18154_v0  ;;  %8376 = vmatprep.subr.bf16.mxu0 %v18159_v13  ;;  %v18222_v0 = vld [vmem:[#allocation15 + $0xc94] ss:$24 sps:$4 sm:$0xff]   ;;  %v18220_v13 = vld [vmem:[#allocation15 + $0xc90] ss:$24 sps:$4 sm:$0xff]  }
 0x708   : > { %11188 = vmatprep.subr.bf16.mxu1 %v18162_v14  ;;  %v18225_v14 = vld [vmem:[#allocation15 + $0xcc4] ss:$24 sps:$4 sm:$0xff]  }
 0x70a   : > { %8377 = vmatpush1.bf16.msra.mxu0 %v18157_v15  ;;  %v18223_v15 = vld [vmem:[#allocation15 + $0xcc0] ss:$24 sps:$4 sm:$0xff]  }
 0x70b   : > { %11189 = vmatpush1.bf16.msra.mxu1 %v18160_v2  ;;  %8378 = vmatprep.subr.bf16.mxu0 %v18165_v18  ;;  %v18226_v2 = vld [vmem:[#allocation15 + $0xcf0] ss:$24 sps:$4 sm:$0xff]   ;;  %v18231_v18 = vld [vmem:[#allocation15 + $0xd24] ss:$24 sps:$4 sm:$0xff]  }
 0x70c   : > { %11190 = vmatprep.subr.bf16.mxu1 %v18168_v35  ;;  %v18229_v35 = vld [vmem:[#allocation15 + $0xd20] ss:$24 sps:$4 sm:$0xff]  }
 0x70e   : > { %8379 = vmatpush1.bf16.msra.mxu0 %v18163_v55  ;;  %v18234_v55 = vld [vmem:[#allocation15 + $0xd54] ss:$24 sps:$4 sm:$0xff]  }
 0x70f   : > { %11191 = vmatpush1.bf16.msra.mxu1 %v18166_v53  ;;  %8380 = vmatprep.subr.bf16.mxu0 %v18171_v44  ;;  %v18232_v53 = vld [vmem:[#allocation15 + $0xd50] ss:$24 sps:$4 sm:$0xff]   ;;  %v18237_v44 = vld [vmem:[#allocation15 + $0xd84] ss:$24 sps:$4 sm:$0xff]  }
 0x710   : > { %11192 = vmatprep.subr.bf16.mxu1 %v18174_v43  ;;  %v18235_v43 = vld [vmem:[#allocation15 + $0xd80] ss:$24 sps:$4 sm:$0xff]  }
 0x712   : > { %8381 = vmatpush1.bf16.msra.mxu0 %v18169_v40  ;;  %v18240_v40 = vld [vmem:[#allocation15 + $0xdb4] ss:$24 sps:$4 sm:$0xff]  }
 0x713   : > { %11193 = vmatpush1.bf16.msra.mxu1 %v18172_v49  ;;  %8382 = vmatprep.subr.bf16.mxu0 %v18177_v50  ;;  %v18238_v49 = vld [vmem:[#allocation15 + $0xdb0] ss:$24 sps:$4 sm:$0xff]   ;;  %v18243_v50 = vld [vmem:[#allocation15 + $0xde4] ss:$24 sps:$4 sm:$0xff]  }
 0x714   : > { %11194 = vmatprep.subr.bf16.mxu1 %v18180_v51  ;;  %v18241_v51 = vld [vmem:[#allocation15 + $0xde0] ss:$24 sps:$4 sm:$0xff]  }
 0x716   : > { %8383 = vmatpush1.bf16.msra.mxu0 %v18175_v60  ;;  %v18246_v60 = vld [vmem:[#allocation15 + $0xe14] ss:$24 sps:$4 sm:$0xff]  }
 0x717   : > { %11195 = vmatpush1.bf16.msra.mxu1 %v18178_v38  ;;  %8384 = vmatprep.subr.bf16.mxu0 %v18183_v33  ;;  %v18244_v38 = vld [vmem:[#allocation15 + $0xe10] ss:$24 sps:$4 sm:$0xff]   ;;  %v18249_v33 = vld [vmem:[#allocation15 + $0xe44] ss:$24 sps:$4 sm:$0xff]  }
 0x718   : > { %11196 = vmatprep.subr.bf16.mxu1 %v18186_v61  ;;  %v18247_v61 = vld [vmem:[#allocation15 + $0xe40] ss:$24 sps:$4 sm:$0xff]  }
 0x71a   : > { %8385 = vmatpush1.bf16.msra.mxu0 %v18181_v52  ;;  %v18252_v52 = vld [vmem:[#allocation15 + $0xe74] ss:$24 sps:$4 sm:$0xff]  }
 0x71b   : > { %11197 = vmatpush1.bf16.msra.mxu1 %v18184_v10  ;;  %8386 = vmatprep.subr.bf16.mxu0 %v18189_v39  ;;  %v18250_v10 = vld [vmem:[#allocation15 + $0xe70] ss:$24 sps:$4 sm:$0xff]   ;;  %v18255_v39 = vld [vmem:[#allocation15 + $0xea4] ss:$24 sps:$4 sm:$0xff]  }
 0x71c   : > { %11198 = vmatprep.subr.bf16.mxu1 %v18192_v46  ;;  %v18253_v46 = vld [vmem:[#allocation15 + $0xea0] ss:$24 sps:$4 sm:$0xff]  }
 0x71e   : > { %8387 = vmatpush1.bf16.msra.mxu0 %v18187_v63  ;;  %v18258_v63 = vld [vmem:[#allocation15 + $0xed4] ss:$24 sps:$4 sm:$0xff]  }
 0x71f   : > { %11199 = vmatpush1.bf16.msra.mxu1 %v18190_v58  ;;  %8388 = vmatprep.subr.bf16.mxu0 %v18195_v54  ;;  %v18256_v58 = vld [vmem:[#allocation15 + $0xed0] ss:$24 sps:$4 sm:$0xff]   ;;  %v18261_v54 = vld [vmem:[#allocation15 + $0xf04] ss:$24 sps:$4 sm:$0xff]  }
 0x720   : > { %11200 = vmatprep.subr.bf16.mxu1 %v18198_v16  ;;  %v18259_v16 = vld [vmem:[#allocation15 + $0xf00] ss:$24 sps:$4 sm:$0xff]  }
 0x722   : > { %8389 = vmatpush1.bf16.msra.mxu0 %v18193_v6  ;;  %v18264_v6 = vld [vmem:[#allocation15 + $0xf34] ss:$24 sps:$4 sm:$0xff]  }
 0x723   : > { %11201 = vmatpush1.bf16.msra.mxu1 %v18196_v4  ;;  %8390 = vmatprep.subr.bf16.mxu0 %v18201_v25  ;;  %v18262_v4 = vld [vmem:[#allocation15 + $0xf30] ss:$24 sps:$4 sm:$0xff]   ;;  %v18267_v25 = vld [vmem:[#allocation15 + $0xf64] ss:$24 sps:$4 sm:$0xff]  }
 0x724   : > { %11202 = vmatprep.subr.bf16.mxu1 %v18204_v17  ;;  %v18265_v17 = vld [vmem:[#allocation15 + $0xf60] ss:$24 sps:$4 sm:$0xff]  }
 0x726   : > { %8391 = vmatpush1.bf16.msra.mxu0 %v18199_v41  ;;  %v18270_v41 = vld [vmem:[#allocation15 + $0xf94] ss:$24 sps:$4 sm:$0xff]  }
 0x727   : > { %11203 = vmatpush1.bf16.msra.mxu1 %v18202_v20  ;;  %8392 = vmatprep.subr.bf16.mxu0 %v18207_v26  ;;  %v18268_v20 = vld [vmem:[#allocation15 + $0xf90] ss:$24 sps:$4 sm:$0xff]   ;;  %v18273_v26 = vld [vmem:[#allocation15 + $0xfc4] ss:$24 sps:$4 sm:$0xff]  }
 0x728   : > { %11204 = vmatprep.subr.bf16.mxu1 %v18210_v29  ;;  %v18271_v29 = vld [vmem:[#allocation15 + $0xfc0] ss:$24 sps:$4 sm:$0xff]  }
 0x72a   : > { %8393 = vmatpush1.bf16.msra.mxu0 %v18205_v31  ;;  %v18279_v31 = vld [vmem:[#allocation15 + $0x1024] ss:$24 sps:$4 sm:$0xff]  }
 0x72b   : > { %11205 = vmatpush1.bf16.msra.mxu1 %v18208_v30  ;;  %9586 = vmatprep.subr.bf16.mxu0 %v18213_v3  ;;  %v18277_v30 = vld [vmem:[#allocation15 + $0x1020] ss:$24 sps:$4 sm:$0xff]   ;;  %v18282_v3 = vld [vmem:[#allocation15 + $0x1054] ss:$24 sps:$4 sm:$0xff]  }
 0x72d   : > { %8395 = vmatmul.mubr.bf16.vlgmr.msra.gmra.mrb[12].mxu0 %v20098_v1  ;;  %v18228_v1 = vld [vmem:[#allocation15 + $0xcf4] ss:$24 sps:$4 sm:$0xff]  }
 0x72e   : > { %11207 = vmatmul.mubr.bf16.vlgmr.msra.gmra.mrb[12].mxu1 %v20119_v45  ;;  %9587 = vmatpush1.bf16.msra.mxu0 %v18211_v7  ;;  %v18283_v7 = vld [vmem:[#allocation15 + $0x1080] ss:$24 sps:$4 sm:$0xff]  }
 0x72f   : > { %9618 = vmatprep.mubr.bf16.mxu0 %v20069_v37  ;;  %9588 = vmatprep.subr.bf16.mxu0 %v18216_v36  ;;  %v18288_v36 = vld [vmem:[#allocation15 + $0x10b4] ss:$24 sps:$4 sm:$0xff]  }
 0x732   : > { %9589 = vmatpush1.bf16.msra.mxu0 %v18214_v28  ;;  %v18286_v28 = vld [vmem:[#allocation15 + $0x10b0] ss:$24 sps:$4 sm:$0xff]  }
 0x733   : > { %9590 = vmatprep.subr.bf16.mxu0 %v18219_v11  ;;  %v18291_v11 = vld [vmem:[#allocation15 + $0x10e4] ss:$24 sps:$4 sm:$0xff]  }
 0x736   : > { %9591 = vmatpush1.bf16.msra.mxu0 %v18217_v12  ;;  %v18289_v12 = vld [vmem:[#allocation15 + $0x10e0] ss:$24 sps:$4 sm:$0xff]  }
 0x737   : > { %9592 = vmatprep.subr.bf16.mxu0 %v18222_v0  ;;  %v18294_v0 = vld [vmem:[#allocation15 + $0x1114] ss:$24 sps:$4 sm:$0xff]  }
 0x73a   : > { %9593 = vmatpush1.bf16.msra.mxu0 %v18220_v13  ;;  %v18292_v13 = vld [vmem:[#allocation15 + $0x1110] ss:$24 sps:$4 sm:$0xff]  }
 0x73b   : > { %9594 = vmatprep.subr.bf16.mxu0 %v18225_v14  ;;  %v18297_v14 = vld [vmem:[#allocation15 + $0x1144] ss:$24 sps:$4 sm:$0xff]  }
 0x73e   : > { %9595 = vmatpush1.bf16.msra.mxu0 %v18223_v15  ;;  %v18295_v15 = vld [vmem:[#allocation15 + $0x1140] ss:$24 sps:$4 sm:$0xff]  }
 0x73f   : > { %9596 = vmatprep.subr.bf16.mxu0 %v18228_v1  ;;  %v18300_v1 = vld [vmem:[#allocation15 + $0x1174] ss:$24 sps:$4 sm:$0xff]  }
 0x742   : > { %9597 = vmatpush1.bf16.msra.mxu0 %v18226_v2  ;;  %v18298_v2 = vld [vmem:[#allocation15 + $0x1170] ss:$24 sps:$4 sm:$0xff]  }
 0x743   : > { %9598 = vmatprep.subr.bf16.mxu0 %v18231_v18  ;;  %v18303_v18 = vld [vmem:[#allocation15 + $0x11a4] ss:$24 sps:$4 sm:$0xff]  }
 0x746   : > { %9599 = vmatpush1.bf16.msra.mxu0 %v18229_v35  ;;  %v18301_v35 = vld [vmem:[#allocation15 + $0x11a0] ss:$24 sps:$4 sm:$0xff]  }
 0x747   : > { %9600 = vmatprep.subr.bf16.mxu0 %v18234_v55  ;;  %v18306_v55 = vld [vmem:[#allocation15 + $0x11d4] ss:$24 sps:$4 sm:$0xff]  }
 0x74a   : > { %9601 = vmatpush1.bf16.msra.mxu0 %v18232_v53  ;;  %v18304_v53 = vld [vmem:[#allocation15 + $0x11d0] ss:$24 sps:$4 sm:$0xff]  }
 0x74b   : > { %9602 = vmatprep.subr.bf16.mxu0 %v18237_v44  ;;  %v18309_v44 = vld [vmem:[#allocation15 + $0xc14] ss:$24 sps:$4 sm:$0xff]  }
 0x74e   : > { %9603 = vmatpush1.bf16.msra.mxu0 %v18235_v43  ;;  %v18307_v43 = vld [vmem:[#allocation15 + $0xc10] ss:$24 sps:$4 sm:$0xff]  }
 0x74f   : > { %9604 = vmatprep.subr.bf16.mxu0 %v18240_v40  ;;  %v18312_v40 = vld [vmem:[#allocation15 + $0xc44] ss:$24 sps:$4 sm:$0xff]  }
 0x752   : > { %9605 = vmatpush1.bf16.msra.mxu0 %v18238_v49  ;;  %v18310_v49 = vld [vmem:[#allocation15 + $0xc40] ss:$24 sps:$4 sm:$0xff]  }
 0x753   : > { %9606 = vmatprep.subr.bf16.mxu0 %v18243_v50  ;;  %v18315_v50 = vld [vmem:[#allocation15 + $0xc74] ss:$24 sps:$4 sm:$0xff]  }
 0x756   : > { %9607 = vmatpush1.bf16.msra.mxu0 %v18241_v51  ;;  %v18313_v51 = vld [vmem:[#allocation15 + $0xc70] ss:$24 sps:$4 sm:$0xff]  }
 0x757   : > { %9608 = vmatprep.subr.bf16.mxu0 %v18246_v60  ;;  %v18318_v60 = vld [vmem:[#allocation15 + $0xca4] ss:$24 sps:$4 sm:$0xff]  }
 0x75a   : > { %9609 = vmatpush1.bf16.msra.mxu0 %v18244_v38  ;;  %v18316_v38 = vld [vmem:[#allocation15 + $0xca0] ss:$24 sps:$4 sm:$0xff]  }
 0x75b   : > { %9610 = vmatprep.subr.bf16.mxu0 %v18249_v33  ;;  %v18321_v33 = vld [vmem:[#allocation15 + $0xcd4] ss:$24 sps:$4 sm:$0xff]  }
 0x75e   : > { %9611 = vmatpush1.bf16.msra.mxu0 %v18247_v61  ;;  %v18319_v61 = vld [vmem:[#allocation15 + $0xcd0] ss:$24 sps:$4 sm:$0xff]  }
 0x75f   : > { %9612 = vmatprep.subr.bf16.mxu0 %v18252_v52  ;;  %v18324_v52 = vld [vmem:[#allocation15 + $0xd04] ss:$24 sps:$4 sm:$0xff]  }
 0x762   : > { %9613 = vmatpush1.bf16.msra.mxu0 %v18250_v10  ;;  %v18322_v10 = vld [vmem:[#allocation15 + $0xd00] ss:$24 sps:$4 sm:$0xff]  }
 0x763   : > { %9614 = vmatprep.subr.bf16.mxu0 %v18255_v39  ;;  %v18327_v39 = vld [vmem:[#allocation15 + $0xd34] ss:$24 sps:$4 sm:$0xff]  }
 0x766   : > { %9615 = vmatpush1.bf16.msra.mxu0 %v18253_v46  ;;  %v18330_v46 = vld [vmem:[#allocation15 + $0xd64] ss:$24 sps:$4 sm:$0xff]  }
 0x767   : > { %9616 = vmatprep.subr.bf16.mxu0 %v18258_v63  ;;  %v18328_v63 = vld [vmem:[#allocation15 + $0xd60] ss:$24 sps:$4 sm:$0xff]  }
 0x76a   : > { %9617 = vmatpush1.bf16.msra.mxu0 %v18256_v58  ;;  %v18333_v58 = vld [vmem:[#allocation15 + $0xd94] ss:$24 sps:$4 sm:$0xff]  }
 0x76b   : > { %9629 = vmatprep.subr.bf16.mxu0 %v18261_v54  ;;  %v18331_v54 = vld [vmem:[#allocation15 + $0xd90] ss:$24 sps:$4 sm:$0xff]  }
 0x76d   : > { %9619 = vmatmul.mubr.bf16.vlgmr.msra.gmra.mrb[8].mxu0 %v20078_v42 }
 0x76e   : > { %9630 = vmatpush1.bf16.msra.mxu0 %v18259_v16  ;;  %9661 = vmatprep.mubr.bf16.mxu0 %v20085_v47  ;;  %v18336_v16 = vld [vmem:[#allocation15 + $0xdc4] ss:$24 sps:$4 sm:$0xff]  }
 0x76f   : > { %9631 = vmatprep.subr.bf16.mxu0 %v18264_v6  ;;  %v18334_v6 = vld [vmem:[#allocation15 + $0xdc0] ss:$24 sps:$4 sm:$0xff]  }
 0x772   : > { %9632 = vmatpush1.bf16.msra.mxu0 %v18262_v4  ;;  %v18339_v4 = vld [vmem:[#allocation15 + $0xdf4] ss:$24 sps:$4 sm:$0xff]  }
 0x773   : > { %9633 = vmatprep.subr.bf16.mxu0 %v18267_v25  ;;  %v18337_v25 = vld [vmem:[#allocation15 + $0xdf0] ss:$24 sps:$4 sm:$0xff]  }
 0x776   : > { %9634 = vmatpush1.bf16.msra.mxu0 %v18265_v17  ;;  %v18342_v17 = vld [vmem:[#allocation15 + $0xe24] ss:$24 sps:$4 sm:$0xff]  }
 0x777   : > { %9635 = vmatprep.subr.bf16.mxu0 %v18270_v41  ;;  %v18340_v41 = vld [vmem:[#allocation15 + $0xe20] ss:$24 sps:$4 sm:$0xff]  }
 0x77a   : > { %9636 = vmatpush1.bf16.msra.mxu0 %v18268_v20  ;;  %v18345_v20 = vld [vmem:[#allocation15 + $0xe54] ss:$24 sps:$4 sm:$0xff]  }
 0x77b   : > { %9637 = vmatprep.subr.bf16.mxu0 %v18273_v26  ;;  %v18343_v26 = vld [vmem:[#allocation15 + $0xe50] ss:$24 sps:$4 sm:$0xff]  }
 0x77e   : > { %9638 = vmatpush1.bf16.msra.mxu0 %v18271_v29  ;;  %v18348_v29 = vld [vmem:[#allocation15 + $0xe84] ss:$24 sps:$4 sm:$0xff]  }
 0x77f   : > { %9639 = vmatprep.subr.bf16.mxu0 %v18276_v56  ;;  %v18346_v56 = vld [vmem:[#allocation15 + $0xe80] ss:$24 sps:$4 sm:$0xff]  }
 0x782   : > { %9640 = vmatpush1.bf16.msra.mxu0 %v18274_v57  ;;  %v18351_v57 = vld [vmem:[#allocation15 + $0xeb4] ss:$24 sps:$4 sm:$0xff]  }
 0x783   : > { %9641 = vmatprep.subr.bf16.mxu0 %v18279_v31  ;;  %v18349_v31 = vld [vmem:[#allocation15 + $0xeb0] ss:$24 sps:$4 sm:$0xff]  }
 0x786   : > { %9642 = vmatpush1.bf16.msra.mxu0 %v18277_v30  ;;  %v18354_v30 = vld [vmem:[#allocation15 + $0xee4] ss:$24 sps:$4 sm:$0xff]  }
 0x787   : > { %9643 = vmatprep.subr.bf16.mxu0 %v18282_v3  ;;  %v18352_v3 = vld [vmem:[#allocation15 + $0xee0] ss:$24 sps:$4 sm:$0xff]  }
 0x78a   : > { %9644 = vmatpush1.bf16.msra.mxu0 %v18280_v5  ;;  %v18357_v5 = vld [vmem:[#allocation15 + $0xf14] ss:$24 sps:$4 sm:$0xff]  }
 0x78b   : > { %9645 = vmatprep.subr.bf16.mxu0 %v18285_v34  ;;  %v18355_v34 = vld [vmem:[#allocation15 + $0xf10] ss:$24 sps:$4 sm:$0xff]  }
 0x78e   : > { %9646 = vmatpush1.bf16.msra.mxu0 %v18283_v7  ;;  %v18360_v7 = vld [vmem:[#allocation15 + $0xf44] ss:$24 sps:$4 sm:$0xff]  }
 0x78f   : > { %9647 = vmatprep.subr.bf16.mxu0 %v18288_v36  ;;  %v18358_v36 = vld [vmem:[#allocation15 + $0xf40] ss:$24 sps:$4 sm:$0xff]  }
 0x792   : > { %9648 = vmatpush1.bf16.msra.mxu0 %v18286_v28  ;;  %v18363_v28 = vld [vmem:[#allocation15 + $0xf74] ss:$24 sps:$4 sm:$0xff]  }
 0x793   : > { %9649 = vmatprep.subr.bf16.mxu0 %v18291_v11  ;;  %v18361_v11 = vld [vmem:[#allocation15 + $0xf70] ss:$24 sps:$4 sm:$0xff]  }
 0x796   : > { %9650 = vmatpush1.bf16.msra.mxu0 %v18289_v12  ;;  %v18366_v12 = vld [vmem:[#allocation15 + $0xfa4] ss:$24 sps:$4 sm:$0xff]  }
 0x797   : > { %9651 = vmatprep.subr.bf16.mxu0 %v18294_v0  ;;  %v18364_v0 = vld [vmem:[#allocation15 + $0xfa0] ss:$24 sps:$4 sm:$0xff]  }
 0x79a   : > { %9652 = vmatpush1.bf16.msra.mxu0 %v18292_v13  ;;  %v18369_v13 = vld [vmem:[#allocation15 + $0xfd4] ss:$24 sps:$4 sm:$0xff]  }
 0x79b   : > { %9653 = vmatprep.subr.bf16.mxu0 %v18297_v14  ;;  %v18367_v14 = vld [vmem:[#allocation15 + $0xfd0] ss:$24 sps:$4 sm:$0xff]  }
 0x79e   : > { %9654 = vmatpush1.bf16.msra.mxu0 %v18295_v15  ;;  %v20130_v15 = vld [vmem:[#allocation17] sm:$0x3f] }
 0x79f   : > { %9655 = vmatprep.subr.bf16.mxu0 %v18300_v1  ;;  %v18370_v1 = vld [vmem:[#allocation15 + $0x1000] ss:$24 sps:$4 sm:$0xff]  }
 0x7a2   : > { %9656 = vmatpush1.bf16.msra.mxu0 %v18298_v2  ;;  %v11332_v2 = vrot.slane %v20130_v15, %v19693_v24 }
 0x7a3   : > { %9657 = vmatprep.subr.bf16.mxu0 %v18303_v18  ;;  %v18375_v18 = vld [vmem:[#allocation15 + $0x1034] ss:$24 sps:$4 sm:$0xff]  }
 0x7a6   : > { %9658 = vmatpush1.bf16.msra.mxu0 %v18301_v35 }
 0x7a7   : > { %9659 = vmatprep.subr.bf16.mxu0 %v18306_v55 }
 0x7aa   : > { %9660 = vmatpush1.bf16.msra.mxu0 %v18304_v53 }
 0x7ab   : > { %9758 = vmatprep.subr.bf16.mxu0 %v18309_v44  ;;  %v18373_v44 = vld [vmem:[#allocation15 + $0x1030] ss:$24 sps:$4 sm:$0xff]  }
 0x7ad   : > { %9662 = vmatmul.mubr.bf16.vlgmr.msra.gmra.mrb[8].mxu0 %v20096_v8 }
 0x7ae   : > { %9759 = vmatpush1.bf16.msra.mxu0 %v18307_v43  ;;  %9790 = vmatprep.mubr.bf16.mxu0 %v20069_v37  ;;  %v18325_v37 = vld [vmem:[#allocation15 + $0xd30] ss:$24 sps:$4 sm:$0xff]  }
 0x7af   : > { %9760 = vmatprep.subr.bf16.mxu0 %v18312_v40 }
 0x7b2   : > { %9761 = vmatpush1.bf16.msra.mxu0 %v18310_v49  ;;  %v18378_v49 = vld [vmem:[#allocation15 + $0x1064] ss:$24 sps:$4 sm:$0xff]  }
 0x7b3   : > { %9762 = vmatprep.subr.bf16.mxu0 %v18315_v50 }
 0x7b6   : > { %9763 = vmatpush1.bf16.msra.mxu0 %v18313_v51 }
 0x7b7   : > { %9764 = vmatprep.subr.bf16.mxu0 %v18318_v60 }
 0x7ba   : > { %9765 = vmatpush1.bf16.msra.mxu0 %v18316_v38  ;;  %v18376_v38 = vld [vmem:[#allocation15 + $0x1060] ss:$24 sps:$4 sm:$0xff]  }
 0x7bb   : > { %9766 = vmatprep.subr.bf16.mxu0 %v18321_v33 }
 0x7be   : > { %9767 = vmatpush1.bf16.msra.mxu0 %v18319_v61 }
 0x7bf   : > { %9768 = vmatprep.subr.bf16.mxu0 %v18324_v52  ;;  %v18381_v52 = vld [vmem:[#allocation15 + $0x1094] ss:$24 sps:$4 sm:$0xff]  }
 0x7c2   : > { %9769 = vmatpush1.bf16.msra.mxu0 %v18322_v10 }
 0x7c3   : > { %9770 = vmatprep.subr.bf16.mxu0 %v18327_v39 }
 0x7c6   : > { %9771 = vmatpush1.bf16.msra.mxu0 %v18325_v37  ;;  %v18379_v37 = vld [vmem:[#allocation15 + $0x1090] ss:$24 sps:$4 sm:$0xff]  }
 0x7c7   : > { %9772 = vmatprep.subr.bf16.mxu0 %v18330_v46  ;;  %v18384_v46 = vld [vmem:[#allocation15 + $0x10c4] ss:$24 sps:$4 sm:$0xff]  }
 0x7ca   : > { %9773 = vmatpush1.bf16.msra.mxu0 %v18328_v63  ;;  %v18382_v63 = vld [vmem:[#allocation15 + $0x10c0] ss:$24 sps:$4 sm:$0xff]  }
 0x7cb   : > { %9774 = vmatprep.subr.bf16.mxu0 %v18333_v58  ;;  %v18387_v58 = vld [vmem:[#allocation15 + $0x10f4] ss:$24 sps:$4 sm:$0xff]  }
 0x7ce   : > { %9775 = vmatpush1.bf16.msra.mxu0 %v18331_v54  ;;  %v18385_v54 = vld [vmem:[#allocation15 + $0x10f0] ss:$24 sps:$4 sm:$0xff]  }
 0x7cf   : > { %9776 = vmatprep.subr.bf16.mxu0 %v18336_v16  ;;  %v18390_v16 = vld [vmem:[#allocation15 + $0x1124] ss:$24 sps:$4 sm:$0xff]  }
 0x7d2   : > { %9777 = vmatpush1.bf16.msra.mxu0 %v18334_v6  ;;  %v18388_v6 = vld [vmem:[#allocation15 + $0x1120] ss:$24 sps:$4 sm:$0xff]  }
 0x7d3   : > { %9778 = vmatprep.subr.bf16.mxu0 %v18339_v4  ;;  %v18393_v4 = vld [vmem:[#allocation15 + $0x1154] ss:$24 sps:$4 sm:$0xff]  }
 0x7d6   : > { %9779 = vmatpush1.bf16.msra.mxu0 %v18337_v25  ;;  %v18391_v25 = vld [vmem:[#allocation15 + $0x1150] ss:$24 sps:$4 sm:$0xff]  }
 0x7d7   : > { %9780 = vmatprep.subr.bf16.mxu0 %v18342_v17  ;;  %v18396_v17 = vld [vmem:[#allocation15 + $0x1184] ss:$24 sps:$4 sm:$0xff]  }
 0x7da   : > { %9781 = vmatpush1.bf16.msra.mxu0 %v18340_v41  ;;  %v18394_v41 = vld [vmem:[#allocation15 + $0x1180] ss:$24 sps:$4 sm:$0xff]  }
 0x7db   : > { %9782 = vmatprep.subr.bf16.mxu0 %v18345_v20  ;;  %v18399_v20 = vld [vmem:[#allocation15 + $0x11b4] ss:$24 sps:$4 sm:$0xff]  }
 0x7de   : > { %9783 = vmatpush1.bf16.msra.mxu0 %v18343_v26  ;;  %v18397_v26 = vld [vmem:[#allocation15 + $0x11b0] ss:$24 sps:$4 sm:$0xff]  }
 0x7df   : > { %9784 = vmatprep.subr.bf16.mxu0 %v18348_v29  ;;  %v18402_v29 = vld [vmem:[#allocation15 + $0x11e4] ss:$24 sps:$4 sm:$0xff]  }
 0x7e2   : > { %9785 = vmatpush1.bf16.msra.mxu0 %v18346_v56  ;;  %v18400_v56 = vld [vmem:[#allocation15 + $0x11e0] ss:$24 sps:$4 sm:$0xff]  }
 0x7e3   : > { %9786 = vmatprep.subr.bf16.mxu0 %v18351_v57  ;;  %v18405_v57 = vld [vmem:[#allocation15 + $0x1204] ss:$24 sps:$4 sm:$0xff]  }
 0x7e6   : > { %9787 = vmatpush1.bf16.msra.mxu0 %v18349_v31  ;;  %v18403_v31 = vld [vmem:[#allocation15 + $0x1200] ss:$24 sps:$4 sm:$0xff]  }
 0x7e7   : > { %9788 = vmatprep.subr.bf16.mxu0 %v18354_v30  ;;  %v18408_v30 = vld [vmem:[#allocation15 + $0x1234] ss:$24 sps:$4 sm:$0xff]  }
 0x7ea   : > { %9789 = vmatpush1.bf16.msra.mxu0 %v18352_v3  ;;  %v18406_v3 = vld [vmem:[#allocation15 + $0x1230] ss:$24 sps:$4 sm:$0xff]  }
 0x7eb   : > { %9801 = vmatprep.subr.bf16.mxu0 %v18357_v5  ;;  %v18411_v5 = vld [vmem:[#allocation15 + $0x1264] ss:$24 sps:$4 sm:$0xff]  }
 0x7ed   : > { %9791 = vmatmul.mubr.bf16.vlgmr.msra.gmra.mrb[12].mxu0 %v20078_v42  ;;  %v18372_v42 = vld [vmem:[#allocation15 + $0x1004] ss:$24 sps:$4 sm:$0xff]  }
 0x7ee   : > { %9802 = vmatpush1.bf16.msra.mxu0 %v18355_v34  ;;  %9833 = vmatprep.mubr.bf16.mxu0 %v20085_v47  ;;  %v11328_v47 = vrot.slane %v20130_v15, %v19690_v23  ;;  %v18409_v34 = vld [vmem:[#allocation15 + $0x1260] ss:$24 sps:$4 sm:$0xff]  }
 0x7ef   : > { %9803 = vmatprep.subr.bf16.mxu0 %v18360_v7  ;;  %v18414_v7 = vld [vmem:[#allocation15 + $0x1294] ss:$24 sps:$4 sm:$0xff]  }
 0x7f2   : > { %9804 = vmatpush1.bf16.msra.mxu0 %v18358_v36  ;;  %v18412_v36 = vld [vmem:[#allocation15 + $0x1290] ss:$24 sps:$4 sm:$0xff]  }
 0x7f3   : > { %9805 = vmatprep.subr.bf16.mxu0 %v18363_v28  ;;  %v18417_v28 = vld [vmem:[#allocation15 + $0x12c4] ss:$24 sps:$4 sm:$0xff]  }
 0x7f6   : > { %9806 = vmatpush1.bf16.msra.mxu0 %v18361_v11  ;;  %v18415_v11 = vld [vmem:[#allocation15 + $0x12c0] ss:$24 sps:$4 sm:$0xff]  }
 0x7f7   : > { %9807 = vmatprep.subr.bf16.mxu0 %v18366_v12  ;;  %v18420_v12 = vld [vmem:[#allocation15 + $0x12f4] ss:$24 sps:$4 sm:$0xff]  }
 0x7fa   : > { %9808 = vmatpush1.bf16.msra.mxu0 %v18364_v0  ;;  %v18423_v0 = vld [vmem:[#allocation15 + $0x1324] ss:$24 sps:$4 sm:$0xff]  }
 0x7fb   : > { %9809 = vmatprep.subr.bf16.mxu0 %v18369_v13  ;;  %v18421_v13 = vld [vmem:[#allocation15 + $0x1320] ss:$24 sps:$4 sm:$0xff]  }
 0x7fe   : > { %9810 = vmatpush1.bf16.msra.mxu0 %v18367_v14  ;;  %v18426_v14 = vld [vmem:[#allocation15 + $0x1354] ss:$24 sps:$4 sm:$0xff]  }
 0x7ff   : > { %9811 = vmatprep.subr.bf16.mxu0 %v18372_v42  ;;  %v18424_v42 = vld [vmem:[#allocation15 + $0x1350] ss:$24 sps:$4 sm:$0xff]  }
 0x801   : > { %v11208_v35 = vpop.f32.mrb[12].mxu1 }
 0x802   : > { %v20136_v55 = vadd.f32 %v11328_v47, %v11208_v35  ;;  %v11210_v53 = vpop.f32.mrb[13].mxu1  ;;  %9812 = vmatpush1.bf16.msra.mxu0 %v18370_v1  ;;  %v18427_v1 = vld [vmem:[#allocation15 + $0x1380] ss:$24 sps:$4 sm:$0xff]   ;;  %v18435_v35 = vld [vmem:[#allocation15 + $0x13e4] ss:$24 sps:$4 sm:$0xff]  }
 0x803   : > { %v20138_v43 = vadd.f32 %v11332_v2, %v11210_v53  ;;  %v11212_v40 = vpop.f32.mrb[14].mxu1  ;;  %9813 = vmatprep.subr.bf16.mxu0 %v18375_v18  ;;  %v18430_v18 = vld [vmem:[#allocation15 + $0x13b0] ss:$24 sps:$4 sm:$0xff]   ;;  %v18433_v53 = vld [vmem:[#allocation15 + $0x13e0] ss:$24 sps:$4 sm:$0xff]  }
 0x804   : > { %v20140_v50 = vadd.f32 %v11328_v47, %v11212_v40  ;;  %v11214_v23 = vpop.f32.mrb[15].mxu1  ;;  %v11602_v60 = vrot.slane %v20136_v55, 6  ;;  %v18429_v47 = vld [vmem:[#allocation15 + $0x1384] ss:$24 sps:$4 sm:$0xff]   ;;  %v18436_v40 = vld [vmem:[#allocation15 + $0x1410] ss:$24 sps:$4 sm:$0xff]  }
 0x805   : > { %v20142_v51 = vadd.f32 %v11332_v2, %v11214_v23  ;;  %v11605_v33 = vrot.slane %v20138_v43, 6  ;;  %v18432_v2 = vld [vmem:[#allocation15 + $0x13b4] ss:$24 sps:$4 sm:$0xff]   ;;  %v18439_v23 = vld [vmem:[#allocation15 + $0x1440] ss:$24 sps:$4 sm:$0xff]  }
 0x806   : > { %v11603_v24 = vrot.slane %v20140_v50, 6  ;;  %9814 = vmatpush1.bf16.msra.mxu0 %v18373_v44  ;;  %v18438_v44 = vld [vmem:[#allocation15 + $0x1414] ss:$24 sps:$4 sm:$0xff]  }
 0x807   : > { %v11606_v61 = vrot.slane %v20142_v51, 6  ;;  %9815 = vmatprep.subr.bf16.mxu0 %v18378_v49  ;;  %v18441_v49 = vld [vmem:[#allocation15 + $0x1444] ss:$24 sps:$4 sm:$0xff]  }
 0x808   : > { %v20149_v10 = vsel %vm20701_vm12, %v11602_v60, %v11603_v24  ;;  %v18444_v60 = vld [vmem:[#allocation15 + $0x1474] ss:$24 sps:$4 sm:$0xff]   ;;  %v18442_v24 = vld [vmem:[#allocation15 + $0x1470] ss:$24 sps:$4 sm:$0xff]   ;;  %vm20716_vm12 = vmmov %vm20711_vm0 }
 0x809   : > { %v20152_v39 = vsel %vm20702_vm1, %v11605_v33, %v11606_v61  ;;  %v18445_v33 = vld [vmem:[#allocation15 + $0x14a0] ss:$24 sps:$4 sm:$0xff]   ;;  %v18450_v61 = vld [vmem:[#allocation15 + $0x14d4] ss:$24 sps:$4 sm:$0xff]   ;;  %vm20717_vm1 = vmmov %vm20710_vm2 }
 0x80a   : > { %9816 = vmatpush1.bf16.msra.mxu0 %v18376_v38  ;;  %v18447_v38 = vld [vmem:[#allocation15 + $0x14a4] ss:$24 sps:$4 sm:$0xff]  }
 0x80b   : > { %9817 = vmatprep.subr.bf16.mxu0 %v18381_v52  ;;  %v18448_v52 = vld [vmem:[#allocation15 + $0x14d0] ss:$24 sps:$4 sm:$0xff]  }
 0x80e   : > { %9818 = vmatpush1.bf16.msra.mxu0 %v18379_v37  ;;  %v18453_v37 = vld [vmem:[#allocation15 + $0x1504] ss:$24 sps:$4 sm:$0xff]  }
 0x80f   : > { %9819 = vmatprep.subr.bf16.mxu0 %v18384_v46  ;;  %v18451_v46 = vld [vmem:[#allocation15 + $0x1500] ss:$24 sps:$4 sm:$0xff]  }
 0x812   : > { %9820 = vmatpush1.bf16.msra.mxu0 %v18382_v63  ;;  %v18456_v63 = vld [vmem:[#allocation15 + $0x1534] ss:$24 sps:$4 sm:$0xff]  }
 0x813   : > { %9821 = vmatprep.subr.bf16.mxu0 %v18387_v58  ;;  %v18454_v58 = vld [vmem:[#allocation15 + $0x1530] ss:$24 sps:$4 sm:$0xff]  }
 0x816   : > { %9822 = vmatpush1.bf16.msra.mxu0 %v18385_v54  ;;  %v18459_v54 = vld [vmem:[#allocation15 + $0x1564] ss:$24 sps:$4 sm:$0xff]  }
 0x817   : > { %9823 = vmatprep.subr.bf16.mxu0 %v18390_v16  ;;  %v18457_v16 = vld [vmem:[#allocation15 + $0x1560] ss:$24 sps:$4 sm:$0xff]  }
 0x81a   : > { %9824 = vmatpush1.bf16.msra.mxu0 %v18388_v6  ;;  %v18462_v6 = vld [vmem:[#allocation15 + $0x1594] ss:$24 sps:$4 sm:$0xff]  }
 0x81b   : > { %9825 = vmatprep.subr.bf16.mxu0 %v18393_v4  ;;  %v18460_v4 = vld [vmem:[#allocation15 + $0x1590] ss:$24 sps:$4 sm:$0xff]  }
 0x81e   : > { %9826 = vmatpush1.bf16.msra.mxu0 %v18391_v25  ;;  %v18465_v25 = vld [vmem:[#allocation15 + $0x15c4] ss:$24 sps:$4 sm:$0xff]  }
 0x81f   : > { %9827 = vmatprep.subr.bf16.mxu0 %v18396_v17  ;;  %v18463_v17 = vld [vmem:[#allocation15 + $0x15c0] ss:$24 sps:$4 sm:$0xff]  }
 0x822   : > { %9828 = vmatpush1.bf16.msra.mxu0 %v18394_v41  ;;  %v18468_v41 = vld [vmem:[#allocation15 + $0x15f4] ss:$24 sps:$4 sm:$0xff]  }
 0x823   : > { %9829 = vmatprep.subr.bf16.mxu0 %v18399_v20  ;;  %v18466_v20 = vld [vmem:[#allocation15 + $0x15f0] ss:$24 sps:$4 sm:$0xff]  }
 0x826   : > { %9830 = vmatpush1.bf16.msra.mxu0 %v18397_v26  ;;  %v18471_v26 = vld [vmem:[#allocation15 + $0x1624] ss:$24 sps:$4 sm:$0xff]  }
 0x827   : > { %9831 = vmatprep.subr.bf16.mxu0 %v18402_v29  ;;  %v18469_v29 = vld [vmem:[#allocation15 + $0x1620] ss:$24 sps:$4 sm:$0xff]  }
 0x82a   : > { %9832 = vmatpush1.bf16.msra.mxu0 %v18400_v56  ;;  %v18474_v56 = vld [vmem:[#allocation15 + $0x1654] ss:$24 sps:$4 sm:$0xff]  }
 0x82b   : > { %11045 = vmatprep.subr.bf16.mxu0 %v18405_v57  ;;  %v18472_v57 = vld [vmem:[#allocation15 + $0x1650] ss:$24 sps:$4 sm:$0xff]  }
 0x82d   : > { %9834 = vmatmul.mubr.bf16.vlgmr.msra.gmra.mrb[12].mxu0 %v20096_v8  ;;  %v18418_v8 = vld [vmem:[#allocation15 + $0x12f0] ss:$24 sps:$4 sm:$0xff]  }
 0x82e   : > { %11046 = vmatpush1.bf16.msra.mxu0 %v18403_v31  ;;  %11077 = vmatprep.mubr.bf16.mxu0 %v20102_v9  ;;  %v18477_v31 = vld [vmem:[#allocation15 + $0x1684] ss:$24 sps:$4 sm:$0xff]  }
 0x82f   : > { %11047 = vmatprep.subr.bf16.mxu0 %v18408_v30  ;;  %v18475_v30 = vld [vmem:[#allocation15 + $0x1680] ss:$24 sps:$4 sm:$0xff]  }
 0x832   : > { %11048 = vmatpush1.bf16.msra.mxu0 %v18406_v3  ;;  %v18480_v3 = vld [vmem:[#allocation15 + $0x16b4] ss:$24 sps:$4 sm:$0xff]  }
 0x833   : > { %11049 = vmatprep.subr.bf16.mxu0 %v18411_v5  ;;  %v18478_v5 = vld [vmem:[#allocation15 + $0x16b0] ss:$24 sps:$4 sm:$0xff]  }
 0x836   : > { %11050 = vmatpush1.bf16.msra.mxu0 %v18409_v34  ;;  %v18483_v34 = vld [vmem:[#allocation15 + $0x16e4] ss:$24 sps:$4 sm:$0xff]  }
 0x837   : > { %11051 = vmatprep.subr.bf16.mxu0 %v18414_v7  ;;  %v18481_v7 = vld [vmem:[#allocation15 + $0x16e0] ss:$24 sps:$4 sm:$0xff]  }
 0x83a   : > { %11052 = vmatpush1.bf16.msra.mxu0 %v18412_v36  ;;  %v18486_v36 = vld [vmem:[#allocation15 + $0x1714] ss:$24 sps:$4 sm:$0xff]  }
 0x83b   : > { %11053 = vmatprep.subr.bf16.mxu0 %v18417_v28  ;;  %v18484_v28 = vld [vmem:[#allocation15 + $0x1710] ss:$24 sps:$4 sm:$0xff]  }
 0x83e   : > { %11054 = vmatpush1.bf16.msra.mxu0 %v18415_v11  ;;  %v18489_v11 = vld [vmem:[#allocation15 + $0x1744] ss:$24 sps:$4 sm:$0xff]  }
 0x83f   : > { %11055 = vmatprep.subr.bf16.mxu0 %v18420_v12  ;;  %v18487_v12 = vld [vmem:[#allocation15 + $0x1740] ss:$24 sps:$4 sm:$0xff]  }
 0x842   : > { %11056 = vmatpush1.bf16.msra.mxu0 %v18418_v8  ;;  %v18492_v8 = vld [vmem:[#allocation15 + $0x1774] ss:$24 sps:$4 sm:$0xff]  }
 0x843   : > { %11057 = vmatprep.subr.bf16.mxu0 %v18423_v0  ;;  %v18490_v0 = vld [vmem:[#allocation15 + $0x1770] ss:$24 sps:$4 sm:$0xff]  }
 0x846   : > { %11058 = vmatpush1.bf16.msra.mxu0 %v18421_v13  ;;  %v18495_v13 = vld [vmem:[#allocation15 + $0x17a4] ss:$24 sps:$4 sm:$0xff]  }
 0x847   : > { %11059 = vmatprep.subr.bf16.mxu0 %v18426_v14  ;;  %v18493_v14 = vld [vmem:[#allocation15 + $0x17a0] ss:$24 sps:$4 sm:$0xff]  }
 0x84a   : > { %11060 = vmatpush1.bf16.msra.mxu0 %v18424_v42  ;;  %v18498_v42 = vld [vmem:[#allocation15 + $0x17d4] ss:$24 sps:$4 sm:$0xff]  }
 0x84b   : > { %11061 = vmatprep.subr.bf16.mxu0 %v18429_v47  ;;  %v18496_v47 = vld [vmem:[#allocation15 + $0x17d0] ss:$24 sps:$4 sm:$0xff]  }
 0x84e   : > { %11062 = vmatpush1.bf16.msra.mxu0 %v18427_v1  ;;  %v18501_v1 = vld [vmem:[#allocation15 + $0x1214] ss:$24 sps:$4 sm:$0xff]  }
 0x84f   : > { %11063 = vmatprep.subr.bf16.mxu0 %v18432_v2  ;;  %v18499_v2 = vld [vmem:[#allocation15 + $0x1210] ss:$24 sps:$4 sm:$0xff]  }
 0x852   : > { %11064 = vmatpush1.bf16.msra.mxu0 %v18430_v18  ;;  %v18504_v18 = vld [vmem:[#allocation15 + $0x1244] ss:$24 sps:$4 sm:$0xff]  }
 0x853   : > { %11065 = vmatprep.subr.bf16.mxu0 %v18435_v35  ;;  %v18502_v35 = vld [vmem:[#allocation15 + $0x1240] ss:$24 sps:$4 sm:$0xff]  }
 0x856   : > { %11066 = vmatpush1.bf16.msra.mxu0 %v18433_v53  ;;  %v18507_v53 = vld [vmem:[#allocation15 + $0x1274] ss:$24 sps:$4 sm:$0xff]  }
 0x857   : > { %11067 = vmatprep.subr.bf16.mxu0 %v18438_v44  ;;  %v18505_v44 = vld [vmem:[#allocation15 + $0x1270] ss:$24 sps:$4 sm:$0xff]  }
 0x85a   : > { %11068 = vmatpush1.bf16.msra.mxu0 %v18436_v40  ;;  %v18510_v40 = vld [vmem:[#allocation15 + $0x12a4] ss:$24 sps:$4 sm:$0xff]  }
 0x85b   : > { %11069 = vmatprep.subr.bf16.mxu0 %v18441_v49  ;;  %v18508_v49 = vld [vmem:[#allocation15 + $0x12a0] ss:$24 sps:$4 sm:$0xff]  }
 0x85e   : > { %11070 = vmatpush1.bf16.msra.mxu0 %v18439_v23  ;;  %v18513_v23 = vld [vmem:[#allocation15 + $0x12d4] ss:$24 sps:$4 sm:$0xff]  }
 0x85f   : > { %11071 = vmatprep.subr.bf16.mxu0 %v18444_v60  ;;  %v18511_v60 = vld [vmem:[#allocation15 + $0x12d0] ss:$24 sps:$4 sm:$0xff]  }
 0x862   : > { %11072 = vmatpush1.bf16.msra.mxu0 %v18442_v24  ;;  %v18516_v24 = vld [vmem:[#allocation15 + $0x1304] ss:$24 sps:$4 sm:$0xff]  }
 0x863   : > { %11073 = vmatprep.subr.bf16.mxu0 %v18447_v38  ;;  %v18514_v38 = vld [vmem:[#allocation15 + $0x1300] ss:$24 sps:$4 sm:$0xff]  }
 0x866   : > { %11074 = vmatpush1.bf16.msra.mxu0 %v18445_v33  ;;  %v18519_v33 = vld [vmem:[#allocation15 + $0x1334] ss:$24 sps:$4 sm:$0xff]  }
 0x867   : > { %11075 = vmatprep.subr.bf16.mxu0 %v18450_v61  ;;  %v18522_v61 = vld [vmem:[#allocation15 + $0x1364] ss:$24 sps:$4 sm:$0xff]  }
 0x86a   : > { %11076 = vmatpush1.bf16.msra.mxu0 %v18448_v52  ;;  %v18520_v52 = vld [vmem:[#allocation15 + $0x1360] ss:$24 sps:$4 sm:$0xff]  }
 0x86b   : > { %11088 = vmatprep.subr.bf16.mxu0 %v18453_v37  ;;  %v18525_v37 = vld [vmem:[#allocation15 + $0x1394] ss:$24 sps:$4 sm:$0xff]  }
 0x86d   : > { %11078 = vmatmul.mubr.bf16.vlgmr.msra.gmra.mrb[8].mxu0 %v20109_v48 }
 0x86e   : > { %11089 = vmatpush1.bf16.msra.mxu0 %v18451_v46  ;;  %11120 = vmatprep.mubr.bf16.mxu0 %v20113_v59  ;;  %v18523_v46 = vld [vmem:[#allocation15 + $0x1390] ss:$24 sps:$4 sm:$0xff]  }
 0x86f   : > { %11090 = vmatprep.subr.bf16.mxu0 %v18456_v63  ;;  %v18528_v63 = vld [vmem:[#allocation15 + $0x13c4] ss:$24 sps:$4 sm:$0xff]  }
 0x872   : > { %11091 = vmatpush1.bf16.msra.mxu0 %v18454_v58  ;;  %v18526_v58 = vld [vmem:[#allocation15 + $0x13c0] ss:$24 sps:$4 sm:$0xff]  }
 0x873   : > { %11092 = vmatprep.subr.bf16.mxu0 %v18459_v54  ;;  %v18531_v54 = vld [vmem:[#allocation15 + $0x13f4] ss:$24 sps:$4 sm:$0xff]  }
 0x876   : > { %11093 = vmatpush1.bf16.msra.mxu0 %v18457_v16  ;;  %v18529_v16 = vld [vmem:[#allocation15 + $0x13f0] ss:$24 sps:$4 sm:$0xff]  }
 0x877   : > { %11094 = vmatprep.subr.bf16.mxu0 %v18462_v6  ;;  %v18534_v6 = vld [vmem:[#allocation15 + $0x1424] ss:$24 sps:$4 sm:$0xff]  }
 0x87a   : > { %11095 = vmatpush1.bf16.msra.mxu0 %v18460_v4  ;;  %v18532_v4 = vld [vmem:[#allocation15 + $0x1420] ss:$24 sps:$4 sm:$0xff]  }
 0x87b   : > { %11096 = vmatprep.subr.bf16.mxu0 %v18465_v25  ;;  %v18537_v25 = vld [vmem:[#allocation15 + $0x1454] ss:$24 sps:$4 sm:$0xff]  }
 0x87e   : > { %11097 = vmatpush1.bf16.msra.mxu0 %v18463_v17  ;;  %v18535_v17 = vld [vmem:[#allocation15 + $0x1450] ss:$24 sps:$4 sm:$0xff]  }
 0x87f   : > { %11098 = vmatprep.subr.bf16.mxu0 %v18468_v41  ;;  %v18540_v41 = vld [vmem:[#allocation15 + $0x1484] ss:$24 sps:$4 sm:$0xff]  }
 0x882   : > { %11099 = vmatpush1.bf16.msra.mxu0 %v18466_v20  ;;  %v18538_v20 = vld [vmem:[#allocation15 + $0x1480] ss:$24 sps:$4 sm:$0xff]  }
 0x883   : > { %11100 = vmatprep.subr.bf16.mxu0 %v18471_v26  ;;  %v18543_v26 = vld [vmem:[#allocation15 + $0x14b4] ss:$24 sps:$4 sm:$0xff]  }
 0x886   : > { %11101 = vmatpush1.bf16.msra.mxu0 %v18469_v29  ;;  %v18541_v29 = vld [vmem:[#allocation15 + $0x14b0] ss:$24 sps:$4 sm:$0xff]  }
 0x887   : > { %11102 = vmatprep.subr.bf16.mxu0 %v18474_v56  ;;  %v18546_v56 = vld [vmem:[#allocation15 + $0x14e4] ss:$24 sps:$4 sm:$0xff]  }
 0x88a   : > { %11103 = vmatpush1.bf16.msra.mxu0 %v18472_v57  ;;  %v18544_v57 = vld [vmem:[#allocation15 + $0x14e0] ss:$24 sps:$4 sm:$0xff]  }
 0x88b   : > { %11104 = vmatprep.subr.bf16.mxu0 %v18477_v31  ;;  %v18549_v31 = vld [vmem:[#allocation15 + $0x1514] ss:$24 sps:$4 sm:$0xff]  }
 0x88e   : > { %11105 = vmatpush1.bf16.msra.mxu0 %v18475_v30  ;;  %v18547_v30 = vld [vmem:[#allocation15 + $0x1510] ss:$24 sps:$4 sm:$0xff]  }
 0x88f   : > { %11106 = vmatprep.subr.bf16.mxu0 %v18480_v3  ;;  %v18552_v3 = vld [vmem:[#allocation15 + $0x1544] ss:$24 sps:$4 sm:$0xff]  }
 0x892   : > { %11107 = vmatpush1.bf16.msra.mxu0 %v18478_v5  ;;  %v18550_v5 = vld [vmem:[#allocation15 + $0x1540] ss:$24 sps:$4 sm:$0xff]  }
 0x893   : > { %11108 = vmatprep.subr.bf16.mxu0 %v18483_v34  ;;  %v18555_v34 = vld [vmem:[#allocation15 + $0x1574] ss:$24 sps:$4 sm:$0xff]  }
 0x896   : > { %11109 = vmatpush1.bf16.msra.mxu0 %v18481_v7  ;;  %v18553_v7 = vld [vmem:[#allocation15 + $0x1570] ss:$24 sps:$4 sm:$0xff]  }
 0x897   : > { %11110 = vmatprep.subr.bf16.mxu0 %v18486_v36  ;;  %v18558_v36 = vld [vmem:[#allocation15 + $0x15a4] ss:$24 sps:$4 sm:$0xff]  }
 0x89a   : > { %11111 = vmatpush1.bf16.msra.mxu0 %v18484_v28  ;;  %v18556_v28 = vld [vmem:[#allocation15 + $0x15a0] ss:$24 sps:$4 sm:$0xff]  }
 0x89b   : > { %11112 = vmatprep.subr.bf16.mxu0 %v18489_v11  ;;  %v18561_v11 = vld [vmem:[#allocation15 + $0x15d4] ss:$24 sps:$4 sm:$0xff]  }
 0x89e   : > { %11113 = vmatpush1.bf16.msra.mxu0 %v18487_v12  ;;  %v18559_v12 = vld [vmem:[#allocation15 + $0x15d0] ss:$24 sps:$4 sm:$0xff]  }
 0x89f   : > { %11114 = vmatprep.subr.bf16.mxu0 %v18492_v8  ;;  %v18564_v8 = vld [vmem:[#allocation15 + $0x1604] ss:$24 sps:$4 sm:$0xff]  }
 0x8a2   : > { %11115 = vmatpush1.bf16.msra.mxu0 %v18490_v0  ;;  %v18567_v0 = vld [vmem:[#allocation15 + $0x1634] ss:$24 sps:$4 sm:$0xff]  }
 0x8a3   : > { %11116 = vmatprep.subr.bf16.mxu0 %v18495_v13  ;;  %v18570_v13 = vld [vmem:[#allocation15 + $0x1664] ss:$24 sps:$4 sm:$0xff]  }
 0x8a6   : > { %11117 = vmatpush1.bf16.msra.mxu0 %v18493_v14  ;;  %v18568_v14 = vld [vmem:[#allocation15 + $0x1660] ss:$24 sps:$4 sm:$0xff]  }
 0x8a7   : > { %11118 = vmatprep.subr.bf16.mxu0 %v18498_v42  ;;  %v18573_v42 = vld [vmem:[#allocation15 + $0x1694] ss:$24 sps:$4 sm:$0xff]  }
 0x8aa   : > { %11119 = vmatpush1.bf16.msra.mxu0 %v18496_v47  ;;  %v18571_v47 = vld [vmem:[#allocation15 + $0x1690] ss:$24 sps:$4 sm:$0xff]  }
 0x8ab   : > { %11217 = vmatprep.subr.bf16.mxu0 %v18501_v1  ;;  %v18576_v1 = vld [vmem:[#allocation15 + $0x16c4] ss:$24 sps:$4 sm:$0xff]  }
 0x8ad   : > { %11121 = vmatmul.mubr.bf16.vlgmr.msra.gmra.mrb[8].mxu0 %v20119_v45 }
 0x8ae   : > { %11218 = vmatpush1.bf16.msra.mxu0 %v18499_v2  ;;  %11249 = vmatprep.mubr.bf16.mxu0 %v20102_v9  ;;  %v18517_v9 = vld [vmem:[#allocation15 + $0x1330] ss:$24 sps:$4 sm:$0xff]   ;;  %v18574_v2 = vld [vmem:[#allocation15 + $0x16c0] ss:$24 sps:$4 sm:$0xff]  }
 0x8af   : > { %11219 = vmatprep.subr.bf16.mxu0 %v18504_v18  ;;  %v18579_v18 = vld [vmem:[#allocation15 + $0x16f4] ss:$24 sps:$4 sm:$0xff]  }
 0x8b2   : > { %11220 = vmatpush1.bf16.msra.mxu0 %v18502_v35  ;;  %v18577_v35 = vld [vmem:[#allocation15 + $0x16f0] ss:$24 sps:$4 sm:$0xff]  }
 0x8b3   : > { %11221 = vmatprep.subr.bf16.mxu0 %v18507_v53  ;;  %v18582_v53 = vld [vmem:[#allocation15 + $0x1724] ss:$24 sps:$4 sm:$0xff]  }
 0x8b6   : > { %11222 = vmatpush1.bf16.msra.mxu0 %v18505_v44  ;;  %v18580_v44 = vld [vmem:[#allocation15 + $0x1720] ss:$24 sps:$4 sm:$0xff]  }
 0x8b7   : > { %11223 = vmatprep.subr.bf16.mxu0 %v18510_v40  ;;  %v18585_v40 = vld [vmem:[#allocation15 + $0x1754] ss:$24 sps:$4 sm:$0xff]  }
 0x8ba   : > { %11224 = vmatpush1.bf16.msra.mxu0 %v18508_v49  ;;  %v18583_v49 = vld [vmem:[#allocation15 + $0x1750] ss:$24 sps:$4 sm:$0xff]  }
 0x8bb   : > { %11225 = vmatprep.subr.bf16.mxu0 %v18513_v23  ;;  %v18588_v23 = vld [vmem:[#allocation15 + $0x1784] ss:$24 sps:$4 sm:$0xff]  }
 0x8be   : > { %11226 = vmatpush1.bf16.msra.mxu0 %v18511_v60  ;;  %v18586_v60 = vld [vmem:[#allocation15 + $0x1780] ss:$24 sps:$4 sm:$0xff]  }
 0x8bf   : > { %11227 = vmatprep.subr.bf16.mxu0 %v18516_v24  ;;  %v18591_v24 = vld [vmem:[#allocation15 + $0x17b4] ss:$24 sps:$4 sm:$0xff]  }
 0x8c2   : > { %11228 = vmatpush1.bf16.msra.mxu0 %v18514_v38  ;;  %v18589_v38 = vld [vmem:[#allocation15 + $0x17b0] ss:$24 sps:$4 sm:$0xff]  }
 0x8c3   : > { %11229 = vmatprep.subr.bf16.mxu0 %v18519_v33  ;;  %v18594_v33 = vld [vmem:[#allocation15 + $0x17e4] ss:$24 sps:$4 sm:$0xff]  }
 0x8c6   : > { %11230 = vmatpush1.bf16.msra.mxu0 %v18517_v9  ;;  %v18592_v9 = vld [vmem:[#allocation15 + $0x17e0] ss:$24 sps:$4 sm:$0xff]  }
 0x8c7   : > { %11231 = vmatprep.subr.bf16.mxu0 %v18522_v61  ;;  %v11373_v61 = vsel %vm20703_vm4, %v20136_v55, 0.0  ;;  %vm20718_vm4 = vmmov %vm20711_vm0 }
 0x8ca   : > { %11232 = vmatpush1.bf16.msra.mxu0 %v18520_v52  ;;  %v11380_v52 = vsel %vm20704_vm10, %v20138_v43, 0.0  ;;  %vm20719_vm10 = vmmov %vm20717_vm1 }
 0x8cb   : > { %11233 = vmatprep.subr.bf16.mxu0 %v18525_v37  ;;  %v11374_v37 = vrot.slane %v11373_v61, 4 }
 0x8ce   : > { %11234 = vmatpush1.bf16.msra.mxu0 %v18523_v46  ;;  %v11381_v46 = vrot.slane %v11380_v52, 4 }
 0x8cf   : > { %11235 = vmatprep.subr.bf16.mxu0 %v18528_v63  ;;  %v11634_v63 = vsel %vm20705_vm6, %v20149_v10, 0.0  ;;  %vm20720_vm6 = vmmov %vm20717_vm1 }
 0x8d2   : > { %11236 = vmatpush1.bf16.msra.mxu0 %v18526_v58  ;;  %v11641_v58 = vsel %vm20706_vm7, %v20152_v39, 0.0  ;;  %vm20721_vm7 = vmmov %vm20717_vm1 }
 0x8d3   : > { %11237 = vmatprep.subr.bf16.mxu0 %v18531_v54  ;;  %v11320_v54 = vrot.slane %v20130_v15, %v19684_v21 }
 0x8d6   : > { %11238 = vmatpush1.bf16.msra.mxu0 %v18529_v16  ;;  %v11375_v16 = vadd.f32 %v11374_v37, %v11373_v61 }
 0x8d7   : > { %11239 = vmatprep.subr.bf16.mxu0 %v18534_v6  ;;  %v11382_v6 = vadd.f32 %v11381_v46, %v11380_v52 }
 0x8da   : > { %11240 = vmatpush1.bf16.msra.mxu0 %v18532_v4  ;;  %v11635_v4 = vrot.slane %v11634_v63, 4 }
 0x8db   : > { %11241 = vmatprep.subr.bf16.mxu0 %v18537_v25  ;;  %v11642_v25 = vrot.slane %v11641_v58, 4 }
 0x8dc   : > { %v11636_v39 = vadd.f32 %v11635_v4, %v11634_v63 }
 0x8de   : > { %11242 = vmatpush1.bf16.msra.mxu0 %v18535_v17 }
 0x8df   : > { %11243 = vmatprep.subr.bf16.mxu0 %v18540_v41 }
 0x8e2   : > { %11244 = vmatpush1.bf16.msra.mxu0 %v18538_v20 }
 0x8e3   : > { %11245 = vmatprep.subr.bf16.mxu0 %v18543_v26  ;;  %v11376_v26 = vrot.slane %v11375_v16, 2 }
 0x8e6   : > { %11246 = vmatpush1.bf16.msra.mxu0 %v18541_v29 }
 0x8e7   : > { %11247 = vmatprep.subr.bf16.mxu0 %v18546_v56  ;;  %v11383_v56 = vrot.slane %v11382_v6, 2 }
 0x8ea   : > { %11248 = vmatpush1.bf16.msra.mxu0 %v18544_v57 }
 0x8eb   : > { %11260 = vmatprep.subr.bf16.mxu0 %v18549_v31 }
 0x8ed   : > { %11250 = vmatmul.mubr.bf16.vlgmr.msra.gmra.mrb[12].mxu0 %v20109_v48  ;;  %v18562_v48 = vld [vmem:[#allocation15 + $0x1600] ss:$24 sps:$4 sm:$0xff]  }
 0x8ee   : > { %11261 = vmatpush1.bf16.msra.mxu0 %v18547_v30  ;;  %11292 = vmatprep.mubr.bf16.mxu0 %v20113_v59  ;;  %v18565_v59 = vld [vmem:[#allocation15 + $0x1630] ss:$24 sps:$4 sm:$0xff]  }
 0x8ef   : > { %11262 = vmatprep.subr.bf16.mxu0 %v18552_v3 }
 0x8f2   : > { %11263 = vmatpush1.bf16.msra.mxu0 %v18550_v5 }
 0x8f3   : > { %11264 = vmatprep.subr.bf16.mxu0 %v18555_v34 }
 0x8f6   : > { %11265 = vmatpush1.bf16.msra.mxu0 %v18553_v7 }
 0x8f7   : > { %11266 = vmatprep.subr.bf16.mxu0 %v18558_v36 }
 0x8fa   : > { %11267 = vmatpush1.bf16.msra.mxu0 %v18556_v28 }
 0x8fb   : > { %11268 = vmatprep.subr.bf16.mxu0 %v18561_v11  ;;  %v11377_v11 = vadd.f32 %v11376_v26, %v11375_v16 }
 0x8fe   : > { %11269 = vmatpush1.bf16.msra.mxu0 %v18559_v12 }
 0x8ff   : > { %11270 = vmatprep.subr.bf16.mxu0 %v18564_v8 }
 0x902   : > { %11271 = vmatpush1.bf16.msra.mxu0 %v18562_v48 }
 0x903   : > { %11272 = vmatprep.subr.bf16.mxu0 %v18567_v0  ;;  %v11384_v0 = vadd.f32 %v11383_v56, %v11382_v6 }
 0x906   : > { %11273 = vmatpush1.bf16.msra.mxu0 %v18565_v59  ;;  %v11637_v59 = vrot.slane %v11636_v39, 2 }
 0x907   : > { %11274 = vmatprep.subr.bf16.mxu0 %v18570_v13 }
 0x90a   : > { %11275 = vmatpush1.bf16.msra.mxu0 %v18568_v14 }
 0x90b   : > { %11276 = vmatprep.subr.bf16.mxu0 %v18573_v42 }
 0x90e   : > { %11277 = vmatpush1.bf16.msra.mxu0 %v18571_v47 }
 0x90f   : > { %11278 = vmatprep.subr.bf16.mxu0 %v18576_v1 }
 0x912   : > { %11279 = vmatpush1.bf16.msra.mxu0 %v18574_v2 }
 0x913   : > { %11280 = vmatprep.subr.bf16.mxu0 %v18579_v18 }
 0x916   : > { %11281 = vmatpush1.bf16.msra.mxu0 %v18577_v35 }
 0x917   : > { %11282 = vmatprep.subr.bf16.mxu0 %v18582_v53 }
 0x91a   : > { %11283 = vmatpush1.bf16.msra.mxu0 %v18580_v44  ;;  %v11378_v44 = vrot.slane %v11377_v11, 1 }
 0x91b   : > { %11284 = vmatprep.subr.bf16.mxu0 %v18585_v40 }
 0x91c   : > { %v11379_v46 = vadd.f32 %v11378_v44, %v11377_v11  ;;  %v591_v11 = vld [vmem:[#allocation5 + $0x10] sm:$0x11]  ;;  %v18602_v44 = vld [vmem:[#allocation18 + $0x198] sm:$0xff]  }
 0x91e   : > { %11285 = vmatpush1.bf16.msra.mxu0 %v18583_v49 }
 0x91f   : > { %11286 = vmatprep.subr.bf16.mxu0 %v18588_v23  ;;  %v11385_v23 = vrot.slane %v11384_v0, 1 }
 0x922   : > { %11287 = vmatpush1.bf16.msra.mxu0 %v18586_v60  ;;  %v11638_v60 = vadd.f32 %v11637_v59, %v11636_v39 }
 0x923   : > { %11288 = vmatprep.subr.bf16.mxu0 %v18591_v24 }
 0x924   : > { %v11639_v16 = vrot.slane %v11638_v60, 1 }
 0x926   : > { %11289 = vmatpush1.bf16.msra.mxu0 %v18589_v38  ;;  %v11640_v56 = vadd.f32 %v11639_v16, %v11638_v60  ;;  %v18613_v16 = vld [vmem:[#allocation18 + $0x240] sm:$0xff]  }
 0x927   : > { %11290 = vmatprep.subr.bf16.mxu0 %v18594_v33 }
 0x92a   : > { %11291 = vmatpush1.bf16.msra.mxu0 %v18592_v9 }
 0x92d   : > { %11293 = vmatmul.mubr.bf16.vlgmr.msra.gmra.mrb[12].mxu0 %v20119_v45  ;;  %v11324_v45 = vrot.slane %v20130_v15, %v19687_v22  ;;  %v11643_v22 = vadd.f32 %v11642_v25, %v11641_v58 }
 0x92f   : > { %v11644_v42 = vrot.slane %v11643_v22, 2 }
 0x931   : > { %v11645_v33 = vadd.f32 %v11644_v42, %v11643_v22  ;;  %v18595_v42 = vld [vmem:[#allocation18 + $0x1c0] sm:$0xff]  }
 0x932   : > { %16027 = vmatprep.subr.bf16.mxu1 %v18595_v42 }
 0x933   : > { %v11646_v4 = vrot.slane %v11645_v33, 1 }
 0x980   : > { %v11122_v17 = vpop.f32.mrb[8].mxu0 }
 0x981   : > { %v20175_v41 = vadd.f32 %v11320_v54, %v11122_v17  ;;  %v11124_v20 = vpop.f32.mrb[9].mxu0 }
 0x982   : > { %v20177_v29 = vadd.f32 %v11324_v45, %v11124_v20  ;;  %v11126_v10 = vpop.f32.mrb[10].mxu0 }
 0x983   : > { %v11359_v57 = vsel %vm20707_vm14, %v20175_v41, 0.0  ;;  %v20181_v31 = vadd.f32 %v11320_v54, %v11126_v10  ;;  %v11128_v30 = vpop.f32.mrb[11].mxu0  ;;  %v11596_v7 = vrot.slane %v20175_v41, 6  ;;  %v11386_v54 = vadd.f32 %v11385_v23, %v11384_v0  ;;  %v661_v0 = vld [vmem:[#allocation5 + $0x28] sm:$0x11]  ;;  %v18604_v23 = vld [vmem:[#allocation18 + $0x1a0] sm:$0xff]   ;;  %vm20722_vm14 = vmmov %vm20717_vm1 }
 0x984   : > { %v11360_v3 = vrot.slane %v11359_v57, 4  ;;  %v11366_v5 = vsel %vm20708_vm8, %v20177_v29, 0.0  ;;  %v20185_v34 = vadd.f32 %v11324_v45, %v11128_v30  ;;  %v11599_v8 = vrot.slane %v20177_v29, 6  ;;  %vm20723_vm8 = vmmov %vm20717_vm1 }
 0x985   : > { %v11367_v36 = vrot.slane %v11366_v5, 4  ;;  %v11597_v28 = vrot.slane %v20181_v31, 6 }
 0x986   : > { %v11361_v12 = vadd.f32 %v11360_v3, %v11359_v57  ;;  %v11600_v48 = vrot.slane %v20185_v34, 6  ;;  %v11647_v57 = vadd.f32 %v11646_v4, %v11645_v33  ;;  %v18605_v33 = vld [vmem:[#allocation18 + $0x1e8] sm:$0xff]  }
 0x987   : > { %v11368_v13 = vadd.f32 %v11367_v36, %v11366_v5  ;;  %v11598_v14 = vsel %vm20709_vm13, %v11596_v7, %v11597_v28  ;;  %v585_v5 = vld [vmem:[#allocation5] sm:$0x11]  ;;  %v588_v7 = vld [vmem:[#allocation5 + $0x8] sm:$0x11]  ;;  %vm20724_vm13 = vmmov %vm20717_vm1 }
 0x988   : > { %v11362_v47 = vrot.slane %v11361_v12, 2  ;;  %v11620_v1 = vsel %vm20710_vm2, %v11598_v14, 0.0  ;;  %v11601_v2 = vsel %vm20711_vm0, %v11599_v8, %v11600_v48  ;;  %v586_v36 = vsel %vm19616_vm11, 0, %v585_v5  ;;  %v655_v8 = vld [vmem:[#allocation5 + $0x18] sm:$0x11]  ;;  %vm20725_vm2 = vmmov %vm20717_vm1 }
 0x989   : > { %v11369_v18 = vrot.slane %v11368_v13, 2  ;;  %v11621_v35 = vrot.slane %v11620_v1, 4  ;;  %v11627_v53 = vsel %vm20712_vm9, %v11601_v2, 0.0  ;;  %v589_v28 = vsel %vm19616_vm11, 0, %v588_v7  ;;  %587 = vst [vmem:[#allocation5] sm:$0x11] %v586_v36  ;;  %vm20726_vm9 = vmmov %vm20711_vm0 }
 0x98a   : > { %v11363_v40 = vadd.f32 %v11362_v47, %v11361_v12  ;;  %v11628_v49 = vrot.slane %v11627_v53, 4  ;;  %590 = vst [vmem:[#allocation5 + $0x8] sm:$0x11] %v589_v28  ;;  %v592_v12 = vsel %vm19616_vm11, 0, %v591_v11  ;;  %v658_v48 = vld [vmem:[#allocation5 + $0x20] sm:$0x11] }
 0x98b   : > { %v11370_v24 = vadd.f32 %v11369_v18, %v11368_v13  ;;  %v11622_v38 = vadd.f32 %v11621_v35, %v11620_v1  ;;  %593 = vst [vmem:[#allocation5 + $0x10] sm:$0x11] %v592_v12  ;;  %v656_v59 = vsel %vm19658_vm15, 0, %v655_v8  ;;  %v659_v13 = vsel %vm19658_vm15, 0, %v658_v48  ;;  %v18596_v47 = vld [vmem:[#allocation18 + $0x180] sm:$0xff]   ;;  %v18597_v1 = vld [vmem:[#allocation18 + $0x1c8] sm:$0xff]  }
 0x98c   : > { %v11364_v9 = vrot.slane %v11363_v40, 1  ;;  %v11629_v61 = vadd.f32 %v11628_v49, %v11627_v53  ;;  %v662_v14 = vsel %vm19658_vm15, 0, %v661_v0  ;;  %657 = vst [vmem:[#allocation5 + $0x18] sm:$0x11] %v656_v59  ;;  %660 = vst [vmem:[#allocation5 + $0x20] sm:$0x11] %v659_v13  ;;  %16028 = vmatpush3.bf16.msra.mxu1 %v18596_v47  ;;  %vm20713_vm15 = vnez %v20651_v32 }
 0x98d   : > { %v11371_v52 = vrot.slane %v11370_v24, 1  ;;  %v11623_v37 = vrot.slane %v11622_v38, 2  ;;  %663 = vst [vmem:[#allocation5 + $0x28] sm:$0x11] %v662_v14  ;;  %v18598_v2 = vld [vmem:[#allocation18 + $0x188] sm:$0xff]   ;;  %16029 = vmatprep.subr.bf16.mxu1 %v18597_v1  ;;  %v18599_v18 = vld [vmem:[#allocation18 + $0x1d0] sm:$0xff]  }
 0x98e   : > { %v11365_v63 = vadd.f32 %v11364_v9, %v11363_v40  ;;  %v11630_v58 = vrot.slane %v11629_v61, 2  ;;  %v18600_v35 = vld [vmem:[#allocation18 + $0x190] sm:$0xff]   ;;  %v18601_v53 = vld [vmem:[#allocation18 + $0x1d8] sm:$0xff]   ;;  %v646_v40 = vld [vmem:[#allocation5] sm:$0x44] }
 0x98f   : > { %v11372_v45 = vadd.f32 %v11371_v52, %v11370_v24  ;;  %v11624_v6 = vadd.f32 %v11623_v37, %v11622_v38  ;;  %v649_v49 = vld [vmem:[#allocation5 + $0x8] sm:$0x44]  ;;  %v647_v60 = vsel %vm20713_vm15, 0, %v646_v40  ;;  %v652_v38 = vld [vmem:[#allocation5 + $0x10] sm:$0x44] }
 0x990   : > { %v20195_v25 = vadd.f32 %v11379_v46, %v11365_v63  ;;  %v11631_v17 = vadd.f32 %v11630_v58, %v11629_v61  ;;  %16030 = vmatpush3.bf16.msra.mxu1 %v18598_v2  ;;  %v650_v24 = vsel %vm20713_vm15, 0, %v649_v49  ;;  %648 = vst [vmem:[#allocation5] sm:$0x44] %v647_v60  ;;  %v653_v9 = vsel %vm20713_vm15, 0, %v652_v38  ;;  %v18606_v61 = vld [vmem:[#allocation18 + $0x1a8] sm:$0xff]   ;;  %v18607_v52 = vld [vmem:[#allocation18 + $0x1f0] sm:$0xff]   ;;  %vm20727_vm15 = vmmov %vm20711_vm0 }
 0x991   : > { %v20197_v20 = vadd.f32 %v11386_v54, %v11372_v45  ;;  %v11625_v26 = vrot.slane %v11624_v6, 1  ;;  %16031 = vmatprep.subr.bf16.mxu1 %v18599_v18  ;;  %651 = vst [vmem:[#allocation5 + $0x8] sm:$0x44] %v650_v24  ;;  %654 = vst [vmem:[#allocation5 + $0x10] sm:$0x44] %v653_v9  ;;  %v18608_v37 = vld [vmem:[#allocation18 + $0x1b0] sm:$0xff]  }
 0x992   : > { %v11632_v10 = vrot.slane %v11631_v17, 1  ;;  %v18609_v46 = vld [vmem:[#allocation18 + $0x1f8] sm:$0xff]   ;;  %v11335_v58 = vsub.s32 4, %v19681_v19  ;;  %v11339_v54 = vsub.s32 5, %v19681_v19 }
 0x993   : > { %v11626_v39 = vadd.f32 %v11625_v26, %v11624_v6  ;;  %v18610_v63 = vld [vmem:[#allocation18 + $0x1b8] sm:$0xff]  }
 0x994   : > { %v11633_v30 = vadd.f32 %v11632_v10, %v11631_v17  ;;  %16032 = vmatpush3.bf16.msra.mxu1 %v18600_v35  ;;  %v11336_v32 = vrot.slane %v20130_v15, %v11335_v58  ;;  %v11340_v45 = vrot.slane %v20130_v15, %v11339_v54 }
 0x995   : > { %v20199_v22 = vadd.f32 %v11640_v56, %v11626_v39  ;;  %16033 = vmatprep.subr.bf16.mxu1 %v18601_v53 }
 0x996   : > { %v20201_v3 = vadd.f32 %v11647_v57, %v11633_v30 }
 0x998   : > { %16034 = vmatpush3.bf16.msra.mxu1 %v18602_v44 }
 0x999   : > { %16035 = vmatprep.subr.bf16.mxu1 %v18603_v62 }
 0x99c   : > { %16036 = vmatpush3.bf16.msra.mxu1 %v18604_v23 }
 0x99d   : > { %16037 = vmatprep.subr.bf16.mxu1 %v18605_v33 }
 0x9a0   : > { %16038 = vmatpush3.bf16.msra.mxu1 %v18606_v61 }
 0x9a1   : > { %16039 = vmatprep.subr.bf16.mxu1 %v18607_v52 }
 0x9a4   : > { %16040 = vmatpush3.bf16.msra.mxu1 %v18608_v37 }
 0x9a5   : > { %16041 = vmatprep.subr.bf16.mxu1 %v18609_v46 }
 0x9a8   : > { %16042 = vmatpush3.bf16.msra.mxu1 %v18610_v63 }
 0x9a9   : > { %16049 = vmatprep.subr.bf16.mxu1 %v18613_v16 }
 0xa00   : > { %v11294_v6 = vpop.f32.mrb[12].mxu0 }
 0xa01   : > { %v20225_v4 = vadd.f32 %v11336_v32, %v11294_v6  ;;  %v11296_v17 = vpop.f32.mrb[13].mxu0 }
 0xa02   : > { %v20227_v26 = vadd.f32 %v11340_v45, %v11296_v17  ;;  %v11298_v10 = vpop.f32.mrb[14].mxu0 }
 0xa03   : > { %v11387_v56 = vsel %vm20714_vm3, %v20225_v4, 0.0  ;;  %v20231_v39 = vadd.f32 %v11336_v32, %v11298_v10  ;;  %v11300_v19 = vpop.f32.mrb[15].mxu0  ;;  %v11608_v15 = vrot.slane %v20225_v4, 6  ;;  %vm20728_vm3 = vmmov %vm20717_vm1 }
 0xa04   : > { %v11388_v57 = vrot.slane %v11387_v56, 4  ;;  %v11394_v30 = vsel %vm20715_vm5, %v20227_v26, 0.0  ;;  %v20235_v5 = vadd.f32 %v11340_v45, %v11300_v19  ;;  %v11611_v11 = vrot.slane %v20227_v26, 6  ;;  %vm20729_vm5 = vmmov %vm20717_vm1 }
 0xa05   : > { %v11395_v7 = vrot.slane %v11394_v30, 4  ;;  %v11609_v36 = vrot.slane %v20231_v39, 6 }
 0xa06   : > { %v11389_v28 = vadd.f32 %v11388_v57, %v11387_v56  ;;  %v11612_v12 = vrot.slane %v20235_v5, 6 }
 0xa07   : > { %v11396_v8 = vadd.f32 %v11395_v7, %v11394_v30  ;;  %v11610_v48 = vsel %vm20716_vm12, %v11608_v15, %v11609_v36  ;;  %vm20730_vm12 = vmmov %vm20717_vm1 }
 0xa08   : > { %v11390_v0 = vrot.slane %v11389_v28, 2  ;;  %v11648_v59 = vsel %vm20717_vm1, %v11610_v48, 0.0  ;;  %v11613_v13 = vsel %vm20718_vm4, %v11611_v11, %v11612_v12  ;;  %vm20731_vm1 = vmmov %vm20711_vm0 }
 0xa09   : > { %v11397_v14 = vrot.slane %v11396_v8, 2  ;;  %v11649_v42 = vrot.slane %v11648_v59, 4  ;;  %v11655_v47 = vsel %vm20719_vm10, %v11613_v13, 0.0  ;;  %vm20732_vm4 = vmmov %vm20711_vm0 }
 0xa0a   : > { %v11391_v1 = vadd.f32 %v11390_v0, %v11389_v28  ;;  %v11656_v2 = vrot.slane %v11655_v47, 4  ;;  %vm20733_vm10 = vmmov %vm20711_vm0 }
 0xa0b   : > { %v11398_v18 = vadd.f32 %v11397_v14, %v11396_v8  ;;  %v11650_v35 = vadd.f32 %v11649_v42, %v11648_v59 }
 0xa0c   : > { %v11392_v53 = vrot.slane %v11391_v1, 1  ;;  %v11657_v44 = vadd.f32 %v11656_v2, %v11655_v47 }
 0xa0d   : > { %v11399_v62 = vrot.slane %v11398_v18, 1  ;;  %v11651_v40 = vrot.slane %v11650_v35, 2 }
 0xa0e   : > { %v11393_v49 = vadd.f32 %v11392_v53, %v11391_v1  ;;  %v11658_v23 = vrot.slane %v11657_v44, 2 }
 0xa0f   : > { %v11400_v60 = vadd.f32 %v11399_v62, %v11398_v18  ;;  %v11652_v24 = vadd.f32 %v11651_v40, %v11650_v35 }
 0xa10   : > { %v11403_v38 = vadd.f32 %v20195_v25, %v11393_v49  ;;  %v11659_v33 = vadd.f32 %v11658_v23, %v11657_v44 }
 0xa11   : > { %v11404_v9 = vadd.f32 %v20197_v20, %v11400_v60  ;;  %v11653_v61 = vrot.slane %v11652_v24, 1 }
 0xa12   : > { %v11405_v52 = vmul.f32 0.11111111, %v11403_v38  ;;  %v11660_v37 = vrot.slane %v11659_v33, 1 }
 0xa13   : > { %v11406_v46 = vmul.f32 0.11111111, %v11404_v9  ;;  %v11654_v63 = vadd.f32 %v11653_v61, %v11652_v24 }
 0xa14   : > { %v11410_v58 = vrot.slane %v11405_v52, %v19684_v21  ;;  %v11661_v54 = vadd.f32 %v11660_v37, %v11659_v33 }
 0xa15   : > { %v11414_v16 = vrot.slane %v11406_v46, %v19684_v21  ;;  %v11664_v32 = vadd.f32 %v20199_v22, %v11654_v63 }
 0xa16   : > { %v20251_v45 = vsub.f32 %v20175_v41, %v11410_v58  ;;  %v20254_v25 = vsub.f32 %v20136_v55, %v11410_v58  ;;  %v20257_v20 = vsub.f32 %v20225_v4, %v11410_v58  ;;  %v11665_v6 = vadd.f32 %v20201_v3, %v11661_v54 }
 0xa17   : > { %v20261_v17 = vsub.f32 %v20177_v29, %v11414_v16  ;;  %v20264_v10 = vsub.f32 %v20138_v43, %v11414_v16  ;;  %v20267_v56 = vsub.f32 %v20227_v26, %v11414_v16  ;;  %v11666_v22 = vmul.f32 0.11111111, %v11664_v32 }
 0xa18   : > { %v11421_v19 = vmul.f32 %v20251_v45, %v20251_v45  ;;  %v11423_v57 = vmul.f32 %v20254_v25, %v20254_v25  ;;  %v11425_v30 = vmul.f32 %v20257_v20, %v20257_v20  ;;  %v11667_v3 = vmul.f32 0.11111111, %v11665_v6 }
 0xa19   : > { %v11422_v15 = vmul.f32 %v20261_v17, %v20261_v17  ;;  %v11424_v7 = vmul.f32 %v20264_v10, %v20264_v10  ;;  %v11426_v36 = vmul.f32 %v20267_v56, %v20267_v56  ;;  %v11671_v28 = vrot.slane %v11666_v22, %v19684_v21 }
 0xa1a   : > { %v11427_v11 = vsel %vm20720_vm6, %v11421_v19, 0.0  ;;  %v11441_v12 = vsel %vm20721_vm7, %v11423_v57, 0.0  ;;  %v11455_v8 = vsel %vm20722_vm14, %v11425_v30, 0.0  ;;  %v20286_v48 = vrot.slane %v11667_v3, %v19684_v21  ;;  %vm20734_vm6 = vmmov %vm20725_vm2 }
 0xa1b   : > { %v11428_v0 = vrot.slane %v11427_v11, 4  ;;  %v11442_v59 = vrot.slane %v11441_v12, 4  ;;  %v11456_v13 = vrot.slane %v11455_v8, 4  ;;  %v11434_v14 = vsel %vm20723_vm8, %v11422_v15, 0.0  ;;  %vm20735_vm7 = vmmov %vm20725_vm2 }
 0xa1c   : > { %v11435_v42 = vrot.slane %v11434_v14, 4  ;;  %v11448_v47 = vsel %vm20724_vm13, %v11424_v7, 0.0  ;;  %v11462_v1 = vsel %vm20725_vm2, %v11426_v36, 0.0  ;;  %v20292_v2 = vsub.f32 %v20175_v41, %v11671_v28  ;;  %vm20737_vm14 = vmmov %vm20725_vm2 }
 0xa1d   : > { %v11429_v18 = vadd.f32 %v11428_v0, %v11427_v11  ;;  %v11443_v35 = vadd.f32 %v11442_v59, %v11441_v12  ;;  %v11457_v53 = vadd.f32 %v11456_v13, %v11455_v8  ;;  %v11449_v44 = vrot.slane %v11448_v47, 4 }
 0xa1e   : > { %v11436_v62 = vadd.f32 %v11435_v42, %v11434_v14  ;;  %v11463_v40 = vrot.slane %v11462_v1, 4  ;;  %v20295_v49 = vsub.f32 %v20136_v55, %v11671_v28  ;;  %v20298_v23 = vsub.f32 %v20225_v4, %v11671_v28 }
 0xa1f   : > { %v11430_v60 = vrot.slane %v11429_v18, 2  ;;  %v11444_v24 = vrot.slane %v11443_v35, 2  ;;  %v11458_v38 = vrot.slane %v11457_v53, 2  ;;  %v11450_v33 = vadd.f32 %v11449_v44, %v11448_v47 }
 0xa20   : > { %v11437_v9 = vrot.slane %v11436_v62, 2  ;;  %v11464_v61 = vadd.f32 %v11463_v40, %v11462_v1  ;;  %v20301_v41 = vsub.f32 %v20181_v31, %v11671_v28  ;;  %v20304_v52 = vsub.f32 %v20140_v50, %v11671_v28 }
 0xa21   : > { %v11431_v37 = vadd.f32 %v11430_v60, %v11429_v18  ;;  %v11445_v46 = vadd.f32 %v11444_v24, %v11443_v35  ;;  %v11459_v63 = vadd.f32 %v11458_v38, %v11457_v53  ;;  %v11451_v55 = vrot.slane %v11450_v33, 2 }
 0xa22   : > { %v11438_v58 = vadd.f32 %v11437_v9, %v11436_v62  ;;  %v11465_v54 = vrot.slane %v11464_v61, 2  ;;  %v20307_v4 = vsub.f32 %v20231_v39, %v11671_v28  ;;  %v11688_v16 = vmul.f32 %v20292_v2, %v20292_v2 }
 0xa23   : > { %v11432_v32 = vrot.slane %v11431_v37, 1  ;;  %v11446_v6 = vrot.slane %v11445_v46, 1  ;;  %v11460_v22 = vrot.slane %v11459_v63, 1  ;;  %v11452_v31 = vadd.f32 %v11451_v55, %v11450_v33 }
 0xa24   : > { %v11439_v19 = vrot.slane %v11438_v58, 1  ;;  %v11466_v57 = vadd.f32 %v11465_v54, %v11464_v61  ;;  %v11690_v50 = vmul.f32 %v20295_v49, %v20295_v49  ;;  %v11692_v30 = vmul.f32 %v20298_v23, %v20298_v23 }
 0xa25   : > { %v11433_v3 = vadd.f32 %v11432_v32, %v11431_v37  ;;  %v11447_v15 = vadd.f32 %v11446_v6, %v11445_v46  ;;  %v11461_v7 = vadd.f32 %v11460_v22, %v11459_v63  ;;  %v11453_v39 = vrot.slane %v11452_v31, 1 }
 0xa26   : > { %v11440_v36 = vadd.f32 %v11439_v19, %v11438_v58  ;;  %v11467_v28 = vrot.slane %v11466_v57, 1  ;;  %v11694_v11 = vmul.f32 %v20301_v41, %v20301_v41  ;;  %v11696_v12 = vmul.f32 %v20304_v52, %v20304_v52 }
 0xa27   : > { %v11469_v8 = vadd.f32 %v11447_v15, %v11433_v3  ;;  %v11454_v0 = vadd.f32 %v11453_v39, %v11452_v31  ;;  %v11698_v59 = vmul.f32 %v20307_v4, %v20307_v4  ;;  %v11712_v13 = vrot.slane %v11688_v16, 6 }
 0xa28   : > { %v11468_v14 = vadd.f32 %v11467_v28, %v11466_v57  ;;  %v11713_v42 = vrot.slane %v11694_v11, 6  ;;  %v11718_v47 = vrot.slane %v11690_v50, 6  ;;  %v11719_v1 = vrot.slane %v11696_v12, 6 }
 0xa29   : > { %v11471_v18 = vadd.f32 %v11469_v8, %v11461_v7  ;;  %v11470_v35 = vadd.f32 %v11454_v0, %v11440_v36  ;;  %v11724_v53 = vrot.slane %v11692_v30, 6  ;;  %v11725_v44 = vrot.slane %v11698_v59, 6 }
 0xa2a   : > { %v11714_v62 = vsel %vm20711_vm0, %v11712_v13, %v11713_v42  ;;  %v11720_v40 = vsel %vm20726_vm9, %v11718_v47, %v11719_v1  ;;  %v20325_v60 = vsub.f32 %v20177_v29, %v20286_v48  ;;  %v20329_v24 = vsub.f32 %v20138_v43, %v20286_v48 }
 0xa2b   : > { %v11473_v38 = vmul.f32 0.11111111, %v11471_v18  ;;  %v11472_v33 = vadd.f32 %v11470_v35, %v11468_v14  ;;  %v11726_v9 = vsel %vm20727_vm15, %v11724_v53, %v11725_v44  ;;  %v11736_v61 = vsel %vm20728_vm3, %v11714_v62, 0.0 }
 0xa2c   : > { %v11737_v37 = vrot.slane %v11736_v61, 4  ;;  %v11750_v46 = vsel %vm20729_vm5, %v11720_v40, 0.0  ;;  %v11764_v63 = vsel %vm20730_vm12, %v11726_v9, 0.0  ;;  %v20337_v55 = vsub.f32 %v20227_v26, %v20286_v48  ;;  %vm20740_vm5 = vmmov %vm20731_vm1 }
 0xa2d   : > { %v11475_v29 = vadd.f32 1e-05, %v11473_v38  ;;  %v11474_v58 = vmul.f32 0.11111111, %v11472_v33  ;;  %v11751_v54 = vrot.slane %v11750_v46, 4  ;;  %v11765_v43 = vrot.slane %v11764_v63, 4 }
 0xa2e   : > { %v11738_v16 = vadd.f32 %v11737_v37, %v11736_v61  ;;  %v20341_v32 = vsub.f32 %v20185_v34, %v20286_v48  ;;  %v20345_v6 = vsub.f32 %v20142_v51, %v20286_v48  ;;  %v20349_v22 = vsub.f32 %v20235_v5, %v20286_v48 }
 0xa2f   : > { %18806 = vrsqrt.f32 %v11475_v29  ;;  %v11476_v26 = vadd.f32 1e-05, %v11474_v58  ;;  %v11752_v31 = vadd.f32 %v11751_v54, %v11750_v46  ;;  %v11766_v19 = vadd.f32 %v11765_v43, %v11764_v63 }
 0xa30   : > { %v11739_v57 = vrot.slane %v11738_v16, 2  ;;  %v11689_v50 = vmul.f32 %v20325_v60, %v20325_v60  ;;  %v11691_v34 = vmul.f32 %v20329_v24, %v20329_v24  ;;  %v11693_v30 = vmul.f32 %v20337_v55, %v20337_v55 }
 0xa31   : > { %18808 = vrsqrt.f32 %v11476_v26  ;;  %v11753_v51 = vrot.slane %v11752_v31, 2  ;;  %v11767_v3 = vrot.slane %v11766_v19, 2  ;;  %v11695_v5 = vmul.f32 %v20341_v32, %v20341_v32 }
 0xa32   : > { %v11740_v48 = vadd.f32 %v11739_v57, %v11738_v16  ;;  %v11697_v15 = vmul.f32 %v20345_v6, %v20345_v6  ;;  %v11699_v7 = vmul.f32 %v20349_v22, %v20349_v22  ;;  %v11715_v39 = vrot.slane %v11689_v50, 6 }
 0xa33   : > { %v11754_v36 = vadd.f32 %v11753_v51, %v11752_v31  ;;  %v11768_v28 = vadd.f32 %v11767_v3, %v11766_v19  ;;  %v11716_v11 = vrot.slane %v11695_v5, 6  ;;  %v11721_v12 = vrot.slane %v11691_v34, 6 }
 0xa34   : > { %v11741_v8 = vrot.slane %v11740_v48, 1  ;;  %v11722_v0 = vrot.slane %v11697_v15, 6  ;;  %v11727_v59 = vrot.slane %v11693_v30, 6  ;;  %v11728_v13 = vrot.slane %v11699_v7, 6 }
 0xa35   : > { %v11755_v14 = vrot.slane %v11754_v36, 1  ;;  %v11769_v42 = vrot.slane %v11768_v28, 1  ;;  %v11717_v47 = vsel %vm20731_vm1, %v11715_v39, %v11716_v11  ;;  %vm20739_vm3 = vsmask.f32 7938 }
 0xa36   : > { %v11742_v1 = vadd.f32 %v11741_v8, %v11740_v48  ;;  %v11723_v18 = vsel %vm20732_vm4, %v11721_v12, %v11722_v0  ;;  %v11729_v35 = vsel %vm20733_vm10, %v11727_v59, %v11728_v13  ;;  %v11743_v53 = vsel %vm20734_vm6, %v11717_v47, 0.0  ;;  %vm20394_vm12 = vmand %vm20740_vm5, %vm20739_vm3 }
 0xa37   : > { %v11756_v44 = vadd.f32 %v11755_v14, %v11754_v36  ;;  %v11744_v62 = vrot.slane %v11743_v53, 4  ;;  %v11757_v40 = vsel %vm20735_vm7, %v11723_v18, 0.0  ;;  %v11771_v33 = vsel %vm20737_vm14, %v11729_v35, 0.0 }
 0xa38   : > { %v11758_v38 = vrot.slane %v11757_v40, 4  ;;  %v11770_v61 = vadd.f32 %v11769_v42, %v11768_v28  ;;  %v11772_v63 = vrot.slane %v11771_v33, 4  ;;  %vm20743_vm1 = vsmask.f32 7954 }
 0xa39   : > { %v18807_v9 = vpop.eup %18806  ;;  %v11778_v37 = vadd.f32 %v11756_v44, %v11742_v1  ;;  %v11745_v46 = vadd.f32 %v11744_v62, %v11743_v53  ;;  %vm20744_vm4 = vcmask 1045508  }
 0xa3a   : > { %v11482_v29 = vrot.slane %v18807_v9, %v19684_v21  ;;  %v11759_v58 = vadd.f32 %v11758_v38, %v11757_v40  ;;  %v11773_v26 = vadd.f32 %v11772_v63, %v11771_v33  ;;  %vm11572_vm10 = vmand %vm20744_vm4, %vm20743_vm1 }
 0xa3b   : > { %v18809_v54 = vpop.eup %18808  ;;  %v11780_v43 = vadd.f32 %v11778_v37, %v11770_v61  ;;  %v11746_v16 = vrot.slane %v11745_v46, 2  ;;  %vm20405_vm6 = vmor %vm11572_vm10, %vm20394_vm12  ;;  %vm20747_vm10 = vcmask 1041408  }
 0xa3c   : > { %v11487_v31 = vmul.f32 %v11482_v29, %v20251_v45  ;;  %v11489_v19 = vmul.f32 %v11482_v29, %v20254_v25  ;;  %v11491_v57 = vmul.f32 %v11482_v29, %v20257_v20  ;;  %v11486_v50 = vrot.slane %v18809_v54, %v19684_v21 }
 0xa3d   : > { %v11782_v34 = vmul.f32 0.11111111, %v11780_v43  ;;  %v11747_v30 = vadd.f32 %v11746_v16, %v11745_v46  ;;  %v11760_v51 = vrot.slane %v11759_v58, 2  ;;  %v11774_v5 = vrot.slane %v11773_v26, 2  ;;  %v11574_v16 = vld [vmem:[#allocation5] sm:$0x33] }
 0xa3e   : > { %vm11493_vm8 = vcmp.ge.f32.partialorder %v11487_v31, 0.0  ;;  %vm11495_vm13 = vcmp.ge.f32.partialorder %v11489_v19, 0.0  ;;  %v11499_v3 = vmul.f32 0.2, %v11487_v31  ;;  %v11501_v48 = vmul.f32 0.2, %v11489_v19 }
 0xa3f   : > { %v11503_v15 = vmul.f32 0.2, %v11491_v57  ;;  %v11488_v45 = vmul.f32 %v11486_v50, %v20261_v17  ;;  %v11490_v25 = vmul.f32 %v11486_v50, %v20264_v10  ;;  %vm11497_vm2 = vcmp.ge.f32.partialorder %v11491_v57, 0.0 }
 0xa40   : > { %v11505_v20 = vsel %vm11493_vm8, %v11487_v31, %v11499_v3  ;;  %v11492_v7 = vmul.f32 %v11486_v50, %v20267_v56  ;;  %v11784_v39 = vadd.f32 1e-05, %v11782_v34  ;;  %v11507_v36 = vsel %vm11495_vm13, %v11489_v19, %v11501_v48  ;;  %v11577_v31 = vld [vmem:[#allocation5 + $0x8] sm:$0x33]  ;;  %v11580_v19 = vld [vmem:[#allocation5 + $0x10] sm:$0x33] }
 0xa41   : > { %vm11494_vm0 = vcmp.ge.f32.partialorder %v11488_v45, 0.0  ;;  %vm11496_vm9 = vcmp.ge.f32.partialorder %v11490_v25, 0.0  ;;  %v11748_v28 = vrot.slane %v11747_v30, 1  ;;  %v11500_v11 = vmul.f32 0.2, %v11488_v45 }
 0xa42   : > { %vm11498_vm15 = vcmp.ge.f32.partialorder %v11492_v7, 0.0  ;;  %v11502_v12 = vmul.f32 0.2, %v11490_v25  ;;  %18810 = vrsqrt.f32 %v11784_v39  ;;  %v11509_v8 = vsel %vm11497_vm2, %v11491_v57, %v11503_v15 }
 0xa43   : > { %v11504_v0 = vmul.f32 0.2, %v11492_v7  ;;  %v11761_v59 = vadd.f32 %v11760_v51, %v11759_v58  ;;  %v11775_v17 = vadd.f32 %v11774_v5, %v11773_v26  ;;  %v11506_v10 = vsel %vm11494_vm0, %v11488_v45, %v11500_v11 }
 0xa44   : > { %v11508_v56 = vsel %vm11496_vm9, %v11490_v25, %v11502_v12  ;;  %v11517_v14 = vcombine.low %v11505_v20, %v11506_v10  ;;  %v16015_v47 = vpack.c.bf16 %v11506_v10, %v11505_v20  ;;  %v11749_v40 = vadd.f32 %v11748_v28, %v11747_v30 }
 0xa45   : > { %v11510_v13 = vsel %vm11498_vm15, %v11492_v7, %v11504_v0  ;;  %v11518_v42 = vcombine.low %v11507_v36, %v11508_v56  ;;  %v16016_v35 = vpack.c.bf16 %v11508_v56, %v11507_v36  ;;  %v11762_v44 = vrot.slane %v11761_v59, 1 }
 0xa46   : > { %v11519_v18 = vcombine.low %v11509_v8, %v11510_v13  ;;  %v16017_v53 = vpack.c.bf16 %v11510_v13, %v11509_v8  ;;  %v11548_v62 = vshrl.u32 %v16015_v47, 16  ;;  %11523 = vst [vmem:[%s20390_s9] sm:$0x77] %v11517_v14  ;;  %v11776_v38 = vrot.slane %v11775_v17, 1 }
 0xa47   : > { %11524 = vst [vmem:[%s20390_s9 + $0x8] sm:$0x77] %v11518_v42  ;;  %v11555_v33 = vshrl.u32 %v16016_v35, 16  ;;  %v11551_v37 = vshll.u32 %v16015_v47, 16  ;;  %v11763_v46 = vadd.f32 %v11762_v44, %v11761_v59  ;;  %v11558_v58 = vshll.u32 %v16016_v35, 16 }
 0xa48   : > { %11525 = vst [vmem:[%s20390_s9 + $0x10] sm:$0x77] %v11519_v18  ;;  %v11562_v9 = vshrl.u32 %v16017_v53, 16  ;;  %v11550_v61 = vrot.slane %v11548_v62, 7  ;;  %v11565_v43 = vshll.u32 %v16017_v53, 16  ;;  %v11777_v57 = vadd.f32 %v11776_v38, %v11775_v17 }
 0xa49   : > { %v11557_v29 = vrot.slane %v11555_v33, 7  ;;  %v11779_v50 = vadd.f32 %v11763_v46, %v11749_v40 }
 0xa4a   : > { %v11564_v54 = vrot.slane %v11562_v9, 7  ;;  %v11553_v26 = vor.u32 %v11551_v37, %v11550_v61 }
 0xa4b   : > { %v11560_v30 = vor.u32 %v11558_v58, %v11557_v29  ;;  %v11781_v48 = vadd.f32 %v11779_v50, %v11777_v57  ;;  %v11922_v57 = vld [vmem:[#allocation5 + $0x18] sm:$0x11] }
 0xa4c   : > { %v18811_v34 = vpop.eup %18810  ;;  %v11567_v51 = vor.u32 %v11565_v43, %v11564_v54  ;;  %v11575_v3 = vsel %vm20405_vm6, %v11553_v26, %v11574_v16 }
 0xa4d   : > { %v11791_v5 = vrot.slane %v18811_v34, %v19684_v21  ;;  %11576 = vst [vmem:[#allocation5] sm:$0x33] %v11575_v3  ;;  %v11578_v15 = vsel %vm20405_vm6, %v11560_v30, %v11577_v31  ;;  %v11783_v7 = vmul.f32 0.11111111, %v11781_v48  ;;  %v11925_v3 = vld [vmem:[#allocation5 + $0x20] sm:$0x11] }
 0xa4e   : > { %v11581_v45 = vsel %vm20405_vm6, %v11567_v51, %v11580_v19  ;;  %11579 = vst [vmem:[#allocation5 + $0x8] sm:$0x33] %v11578_v15  ;;  %vm20437_vm6 = vmor %vm20747_vm10, %vm20744_vm4 }
 0xa4f   : > { %11582 = vst [vmem:[#allocation5 + $0x10] sm:$0x33] %v11581_v45  ;;  %v11800_v25 = vmul.f32 %v11791_v5, %v20298_v23  ;;  %v11806_v20 = vmul.f32 %v11791_v5, %v20307_v4  ;;  %v11796_v39 = vmul.f32 %v11791_v5, %v20292_v2  ;;  %v11798_v36 = vmul.f32 %v11791_v5, %v20295_v49 }
 0xa50   : > { %v11802_v28 = vmul.f32 %v11791_v5, %v20301_v41  ;;  %v11804_v11 = vmul.f32 %v11791_v5, %v20304_v52  ;;  %v11785_v12 = vadd.f32 1e-05, %v11783_v7  ;;  %v11928_v5 = vld [vmem:[#allocation5 + $0x28] sm:$0x11] }
 0xa51   : > { %v11830_v8 = vmul.f32 0.2, %v11806_v20  ;;  %vm11818_vm7 = vcmp.ge.f32.partialorder %v11806_v20, 0.0  ;;  %v11824_v0 = vmul.f32 0.2, %v11800_v25  ;;  %vm11812_vm14 = vcmp.ge.f32.partialorder %v11800_v25, 0.0 }
 0xa52   : > { %18812 = vrsqrt.f32 %v11785_v12  ;;  %vm11808_vm8 = vcmp.ge.f32.partialorder %v11796_v39, 0.0  ;;  %v11820_v23 = vmul.f32 0.2, %v11796_v39  ;;  %v11822_v17 = vmul.f32 0.2, %v11798_v36 }
 0xa53   : > { %v20422_v4 = vsel %vm11818_vm7, %v11806_v20, %v11830_v8  ;;  %vm11810_vm13 = vcmp.ge.f32.partialorder %v11798_v36, 0.0  ;;  %vm11814_vm2 = vcmp.ge.f32.partialorder %v11802_v28, 0.0  ;;  %vm11816_vm0 = vcmp.ge.f32.partialorder %v11804_v11, 0.0 }
 0xa54   : > { %v11826_v49 = vmul.f32 0.2, %v11802_v28  ;;  %v11828_v41 = vmul.f32 0.2, %v11804_v11  ;;  %v11836_v52 = vsel %vm11812_vm14, %v11800_v25, %v11824_v0  ;;  %v11834_v1 = vsel %vm11810_vm13, %v11798_v36, %v11822_v17 }
 0xa5c   : > { %v18813_v59 = vpop.eup %18812 }
 0xa5d   : > { %v11795_v2 = vrot.slane %v18813_v59, %v19684_v21  ;;  %v11832_v21 = vsel %vm11808_vm8, %v11796_v39, %v11820_v23 }
 0xa5f   : > { %v11797_v10 = vmul.f32 %v11795_v2, %v20325_v60  ;;  %v11799_v56 = vmul.f32 %v11795_v2, %v20329_v24  ;;  %v11801_v13 = vmul.f32 %v11795_v2, %v20337_v55  ;;  %v11803_v14 = vmul.f32 %v11795_v2, %v20341_v32 }
 0xa60   : > { %v11805_v42 = vmul.f32 %v11795_v2, %v20345_v6  ;;  %v11807_v47 = vmul.f32 %v11795_v2, %v20349_v22  ;;  %v11838_v32 = vsel %vm11814_vm2, %v11802_v28, %v11826_v49  ;;  %v11840_v22 = vsel %vm11816_vm0, %v11804_v11, %v11828_v41 }
 0xa61   : > { %vm11809_vm9 = vcmp.ge.f32.partialorder %v11797_v10, 0.0  ;;  %vm11811_vm15 = vcmp.ge.f32.partialorder %v11799_v56, 0.0  ;;  %vm11813_vm3 = vcmp.ge.f32.partialorder %v11801_v13, 0.0  ;;  %vm11815_vm5 = vcmp.ge.f32.partialorder %v11803_v14, 0.0 }
 0xa62   : > { %vm11817_vm12 = vcmp.ge.f32.partialorder %v11805_v42, 0.0  ;;  %vm11819_vm1 = vcmp.ge.f32.partialorder %v11807_v47, 0.0  ;;  %v11821_v60 = vmul.f32 0.2, %v11797_v10  ;;  %v11823_v18 = vmul.f32 0.2, %v11799_v56 }
 0xa63   : > { %v11825_v24 = vmul.f32 0.2, %v11801_v13  ;;  %v11827_v35 = vmul.f32 0.2, %v11803_v14  ;;  %v11829_v55 = vmul.f32 0.2, %v11805_v42 }
 0xa64   : > { %v11831_v53 = vmul.f32 0.2, %v11807_v47  ;;  %v11833_v6 = vsel %vm11809_vm9, %v11797_v10, %v11821_v60  ;;  %v11835_v44 = vsel %vm11811_vm15, %v11799_v56, %v11823_v18  ;;  %v18614_v56 = vld [vmem:[#allocation18 + $0x200] sm:$0xff]   ;;  %v18621_v60 = vld [vmem:[#allocation18 + $0x258] sm:$0xff]  }
 0xa65   : > { %v11837_v62 = vsel %vm11813_vm3, %v11801_v13, %v11825_v24  ;;  %v11839_v40 = vsel %vm11815_vm5, %v11803_v14, %v11827_v35  ;;  %v11841_v38 = vsel %vm11817_vm12, %v11805_v42, %v11829_v55  ;;  %v11856_v33 = vcombine.high %v11832_v21, %v11833_v6  ;;  %v18617_v14 = vld [vmem:[#allocation18 + $0x248] sm:$0xff]   ;;  %v18622_v18 = vld [vmem:[#allocation18 + $0x218] sm:$0xff]   ;;  %v18623_v24 = vld [vmem:[#allocation18 + $0x260] sm:$0xff]  }
 0xa66   : > { %v11843_v9 = vsel %vm11819_vm1, %v11807_v47, %v11831_v53  ;;  %v11857_v61 = vcombine.high %v11834_v1, %v11835_v44  ;;  %v11858_v37 = vcombine.high %v11836_v52, %v11837_v62  ;;  %v11859_v46 = vcombine.low %v11838_v32, %v11839_v40  ;;  %v18618_v47 = vld [vmem:[#allocation18 + $0x208] sm:$0xff]   ;;  %v18624_v35 = vld [vmem:[#allocation18 + $0x220] sm:$0xff]  }
 0xa67   : > { %v11860_v63 = vcombine.low %v11840_v22, %v11841_v38  ;;  %v11861_v29 = vcombine.low %v20422_v4, %v11843_v9  ;;  %v15777_v54 = vrot.slane %v11856_v33, 10  ;;  %v16018_v43 = vpack.c.bf16 %v11833_v6, %v11832_v21  ;;  %v18619_v21 = vld [vmem:[#allocation18 + $0x250] sm:$0xff]   ;;  %v18625_v55 = vld [vmem:[#allocation18 + $0x268] sm:$0xff]  }
 0xa68   : > { %v11866_v16 = vrot.slane %v11859_v46, 6  ;;  %v15778_v26 = vrot.slane %v11857_v61, 10  ;;  %v15779_v31 = vrot.slane %v11858_v37, 10  ;;  %v16019_v19 = vpack.c.bf16 %v11835_v44, %v11834_v1  ;;  %v18620_v1 = vld [vmem:[#allocation18 + $0x210] sm:$0xff]   ;;  %v18626_v53 = vld [vmem:[#allocation18 + $0x228] sm:$0xff]   ;;  %v18631_v37 = vld [vmem:[#allocation18 + $0x2c0] sm:$0xff]  }
 0xa69   : > { %v11870_v50 = vrot.slane %v11860_v63, 6  ;;  %v11874_v34 = vrot.slane %v11861_v29, 6  ;;  %v16020_v30 = vpack.c.bf16 %v11837_v62, %v11836_v52  ;;  %v16021_v51 = vpack.c.bf16 %v11839_v40, %v11838_v32  ;;  %11919 = vst [vmem:[#allocation5] sm:$0x88] %v16018_v43  ;;  %v18627_v44 = vld [vmem:[#allocation18 + $0x270] sm:$0xff]   ;;  %v18629_v40 = vld [vmem:[#allocation18 + $0x278] sm:$0xff]  }
 0xa6a   : > { %v11867_v48 = vsel %vm20437_vm6, %v15777_v54, %v11866_v16  ;;  %v16022_v15 = vpack.c.bf16 %v11841_v38, %v11840_v22  ;;  %v16023_v45 = vpack.c.bf16 %v11843_v9, %v20422_v4  ;;  %11920 = vst [vmem:[#allocation5 + $0x8] sm:$0x88] %v16019_v19  ;;  %v18628_v62 = vld [vmem:[#allocation18 + $0x230] sm:$0xff]   ;;  %v18630_v9 = vld [vmem:[#allocation18 + $0x238] sm:$0xff]   ;;  %v18632_v29 = vld [vmem:[#allocation18 + $0x280] sm:$0xff]  }
 0xa6b   : > { %v11871_v25 = vsel %vm20437_vm6, %v15778_v26, %v11870_v50  ;;  %v11875_v20 = vsel %vm20437_vm6, %v15779_v31, %v11874_v34  ;;  %15780 = vst [vmem:[%s20390_s9 + $0x18] sm:$0x77] %v11867_v48  ;;  %11921 = vst [vmem:[#allocation5 + $0x10] sm:$0x88] %v16020_v30  ;;  %v11923_v7 = vsel %vm19616_vm11, %v16021_v51, %v11922_v57  ;;  %v18635_v43 = vld [vmem:[#allocation18 + $0x2c8] sm:$0xff]   ;;  %v18637_v31 = vld [vmem:[#allocation18 + $0x2d0] sm:$0xff]  }
 0xa6c   : > { %15781 = vst [vmem:[%s20390_s9 + $0x20] sm:$0x77] %v11871_v25  ;;  %15782 = vst [vmem:[%s20390_s9 + $0x28] sm:$0x77] %v11875_v20  ;;  %v11926_v39 = vsel %vm19616_vm11, %v16022_v15, %v11925_v3  ;;  %v11929_v36 = vsel %vm19616_vm11, %v16023_v45, %v11928_v5  ;;  %v18636_v26 = vld [vmem:[#allocation18 + $0x288] sm:$0xff]   ;;  %v18638_v19 = vld [vmem:[#allocation18 + $0x290] sm:$0xff]  }
 0xa6d   : > { %11924 = vst [vmem:[#allocation5 + $0x18] sm:$0x11] %v11923_v7  ;;  %11927 = vst [vmem:[#allocation5 + $0x20] sm:$0x11] %v11926_v39  ;;  %v18639_v57 = vld [vmem:[#allocation18 + $0x2d8] sm:$0xff]   ;;  %v18641_v34 = vld [vmem:[#allocation18 + $0x2e0] sm:$0xff]  }
 0xa6e   : > { %11930 = vst [vmem:[#allocation5 + $0x28] sm:$0x11] %v11929_v36  ;;  %v18640_v50 = vld [vmem:[#allocation18 + $0x298] sm:$0xff]   ;;  %v18642_v30 = vld [vmem:[#allocation18 + $0x2a0] sm:$0xff]   ;;  %v18643_v51 = vld [vmem:[#allocation18 + $0x2e8] sm:$0xff]  }
 0xa6f   : > { %v18644_v3 = vld [vmem:[#allocation18 + $0x2a8] sm:$0xff]   ;;  %v18645_v48 = vld [vmem:[#allocation18 + $0x2f0] sm:$0xff]   ;;  %v18647_v45 = vld [vmem:[#allocation18 + $0x2f8] sm:$0xff]  }
 0xa70   : > { %v11931_v28 = vld [vmem:[#allocation5] sm:$0xff]  ;;  %v18646_v15 = vld [vmem:[#allocation18 + $0x2b0] sm:$0xff]   ;;  %v18648_v20 = vld [vmem:[#allocation18 + $0x2b8] sm:$0xff]  }
 0xa71   : > { %v20457_v11 = vcombine.low %v11931_v28, %v11931_v28  ;;  %v20459_v12 = vcombine.high %v11931_v28, %v11931_v28  ;;  %v11932_v8 = vld [vmem:[#allocation5 + $0x8] sm:$0xff]  ;;  %v18649_v39 = vld [vmem:[#allocation18 + $0x40] sm:$0xff]  }
 0xa72   : > { %v20461_v0 = vcombine.high %v11932_v8, %v11932_v8  ;;  %v11933_v32 = vld [vmem:[#allocation5 + $0x10] sm:$0xff]  ;;  %v20469_v6 = vcombine.low %v11932_v8, %v11932_v8  ;;  %v18650_v28 = vld [vmem:[#allocation18] sm:$0xff]  }
 0xa73   : > { %v12152_v59 = vshll.u32 %v20459_v12, 16  ;;  %v12145_v23 = vshll.u32 %v20457_v11, 16  ;;  %v12150_v17 = vshrl.u32 %v20459_v12, 16  ;;  %v12143_v4 = vshrl.u32 %v20457_v11, 16 }
 0xa74   : > { %v12166_v27 = vshll.u32 %v20461_v0, 16  ;;  %v12164_v13 = vshrl.u32 %v20461_v0, 16  ;;  %v20471_v22 = vcombine.high %v11933_v32, %v11933_v32  ;;  %v12159_v38 = vshll.u32 %v20469_v6, 16 }
 0xa75   : > { %v12154_v2 = vrot.slane %v12152_v59, 1  ;;  %v12147_v49 = vrot.slane %v12145_v23, 1  ;;  %v12157_v63 = vshrl.u32 %v20469_v6, 16  ;;  %v20477_v5 = vcombine.low %v11933_v32, %v11933_v32  ;;  %v18651_v59 = vld [vmem:[#allocation18 + $0x48] sm:$0xff]   ;;  %v18674_v32 = vld [vmem:[#allocation18 + $0xa0] sm:$0xff]  }
 0xa76   : > { %v12168_v41 = vrot.slane %v12166_v27, 1  ;;  %v12180_v33 = vshll.u32 %v20471_v22, 16  ;;  %v12161_v61 = vrot.slane %v12159_v38, 1  ;;  %v12178_v58 = vshrl.u32 %v20471_v22, 16  ;;  %v18652_v23 = vld [vmem:[#allocation18 + $0x8] sm:$0xff]   ;;  %v18655_v27 = vld [vmem:[#allocation18 + $0x58] sm:$0xff]  }
 0xa77   : > { %v12155_v52 = vor.u32 %v12154_v2, %v12150_v17  ;;  %v12148_v10 = vor.u32 %v12147_v49, %v12143_v4  ;;  %v12173_v25 = vshll.u32 %v20477_v5, 16  ;;  %v12171_v36 = vshrl.u32 %v20477_v5, 16  ;;  %v18653_v17 = vld [vmem:[#allocation18 + $0x50] sm:$0xff]   ;;  %v18656_v2 = vld [vmem:[#allocation18 + $0x18] sm:$0xff]   ;;  %v18657_v49 = vld [vmem:[#allocation18 + $0x60] sm:$0xff]  }
 0xa78   : > { %v12169_v42 = vor.u32 %v12168_v41, %v12164_v13  ;;  %v12182_v46 = vrot.slane %v12180_v33, 1  ;;  %v12162_v54 = vor.u32 %v12161_v61, %v12157_v63  ;;  %v18654_v4 = vld [vmem:[#allocation18 + $0x10] sm:$0xff]   ;;  %v18658_v41 = vld [vmem:[#allocation18 + $0x20] sm:$0xff]   ;;  %v18663_v13 = vld [vmem:[#allocation18 + $0x78] sm:$0xff]  }
 0xa79   : > { %12510 = vmatprep.mubr.bf16.mxu1 %v12155_v52  ;;  %v12175_v7 = vrot.slane %v12173_v25, 1  ;;  %v18659_v52 = vld [vmem:[#allocation18 + $0x68] sm:$0xff]   ;;  %v18681_v38 = vld [vmem:[#allocation18 + $0x140] sm:$0xff]   ;;  %v18687_v63 = vld [vmem:[#allocation18 + $0x158] sm:$0xff]  }
 0xa7a   : > { %12511 = vmatmul.mubr.bf16.vlgmr.msra.gmra.mrb[16].mxu1 %v12148_v10  ;;  %v12183_v16 = vor.u32 %v12182_v46, %v12178_v58  ;;  %v18660_v10 = vld [vmem:[#allocation18 + $0x28] sm:$0xff]   ;;  %v18682_v33 = vld [vmem:[#allocation18 + $0x100] sm:$0xff]   ;;  %v18686_v46 = vld [vmem:[#allocation18 + $0x110] sm:$0xff]  }
 0xa7b   : > { %16050 = vmatpush3.bf16.msra.mxu1 %v18614_v56  ;;  %12550 = vmatprep.mubr.bf16.mxu1 %v12169_v42  ;;  %v12176_v8 = vor.u32 %v12175_v7, %v12171_v36  ;;  %v18661_v56 = vld [vmem:[#allocation18 + $0x70] sm:$0xff]   ;;  %v18665_v42 = vld [vmem:[#allocation18 + $0xc0] sm:$0xff]   ;;  %v18684_v61 = vld [vmem:[#allocation18 + $0x108] sm:$0xff]  }
 0xa7c   : > { %16051 = vmatprep.subr.bf16.mxu1 %v18617_v14  ;;  %v18664_v14 = vld [vmem:[#allocation18 + $0x38] sm:$0xff]   ;;  %v18689_v58 = vld [vmem:[#allocation18 + $0x160] sm:$0xff]   ;;  %v18710_v7 = vld [vmem:[#allocation18 + $0x368] sm:$0xff]  }
 0xa7d   : > { %v18708_v25 = vld [vmem:[#allocation18 + $0x360] sm:$0xff]   ;;  %v18713_v36 = vld [vmem:[#allocation18 + $0x330] sm:$0xff]  }
 0xa7f   : > { %16052 = vmatpush3.bf16.msra.mxu1 %v18618_v47  ;;  %v18666_v47 = vld [vmem:[#allocation18 + $0x80] sm:$0xff]  }
 0xa80   : > { %16053 = vmatprep.subr.bf16.mxu1 %v18619_v21  ;;  %v18667_v21 = vld [vmem:[#allocation18 + $0xc8] sm:$0xff]  }
 0xa83   : > { %16054 = vmatpush3.bf16.msra.mxu1 %v18620_v1  ;;  %v18668_v1 = vld [vmem:[#allocation18 + $0x88] sm:$0xff]  }
 0xa84   : > { %16055 = vmatprep.subr.bf16.mxu1 %v18621_v60  ;;  %v18669_v60 = vld [vmem:[#allocation18 + $0xd0] sm:$0xff]  }
 0xa87   : > { %16056 = vmatpush3.bf16.msra.mxu1 %v18622_v18  ;;  %v18670_v18 = vld [vmem:[#allocation18 + $0x90] sm:$0xff]  }
 0xa88   : > { %16057 = vmatprep.subr.bf16.mxu1 %v18623_v24  ;;  %v18671_v24 = vld [vmem:[#allocation18 + $0xd8] sm:$0xff]  }
 0xa8b   : > { %16058 = vmatpush3.bf16.msra.mxu1 %v18624_v35  ;;  %v18672_v35 = vld [vmem:[#allocation18 + $0x98] sm:$0xff]  }
 0xa8c   : > { %16059 = vmatprep.subr.bf16.mxu1 %v18625_v55  ;;  %v18673_v55 = vld [vmem:[#allocation18 + $0xe0] sm:$0xff]  }
 0xa8f   : > { %16060 = vmatpush3.bf16.msra.mxu1 %v18626_v53  ;;  %v18675_v53 = vld [vmem:[#allocation18 + $0xe8] sm:$0xff]  }
 0xa90   : > { %16061 = vmatprep.subr.bf16.mxu1 %v18627_v44  ;;  %v18677_v44 = vld [vmem:[#allocation18 + $0xf0] sm:$0xff]  }
 0xa93   : > { %16062 = vmatpush3.bf16.msra.mxu1 %v18628_v62  ;;  %v18679_v62 = vld [vmem:[#allocation18 + $0xf8] sm:$0xff]  }
 0xa94   : > { %16063 = vmatprep.subr.bf16.mxu1 %v18629_v40  ;;  %v18680_v40 = vld [vmem:[#allocation18 + $0xb8] sm:$0xff]  }
 0xa97   : > { %16064 = vmatpush3.bf16.msra.mxu1 %v18630_v9  ;;  %v18683_v9 = vld [vmem:[#allocation18 + $0x148] sm:$0xff]  }
 0xa98   : > { %16071 = vmatprep.subr.bf16.mxu1 %v18631_v37  ;;  %v18685_v37 = vld [vmem:[#allocation18 + $0x150] sm:$0xff]  }
 0xa9a   : > { %12551 = vmatmul.mubr.bf16.vlgmr.msra.gmra.mrb[20].mxu1 %v12162_v54  ;;  %v18690_v54 = vld [vmem:[#allocation18 + $0x120] sm:$0xff]  }
 0xa9b   : > { %16072 = vmatpush3.bf16.msra.mxu1 %v18632_v29  ;;  %12590 = vmatprep.mubr.bf16.mxu1 %v12183_v16  ;;  %v18688_v29 = vld [vmem:[#allocation18 + $0x118] sm:$0xff]   ;;  %v18693_v16 = vld [vmem:[#allocation18 + $0x170] sm:$0xff]  }
 0xa9c   : > { %16073 = vmatprep.subr.bf16.mxu1 %v18635_v43  ;;  %v18691_v43 = vld [vmem:[#allocation18 + $0x168] sm:$0xff]  }
 0xa9f   : > { %16074 = vmatpush3.bf16.msra.mxu1 %v18636_v26  ;;  %v18695_v26 = vld [vmem:[#allocation18 + $0x178] sm:$0xff]  }
 0xaa0   : > { %16075 = vmatprep.subr.bf16.mxu1 %v18637_v31  ;;  %v18696_v31 = vld [vmem:[#allocation18 + $0x138] sm:$0xff]  }
 0xaa3   : > { %16076 = vmatpush3.bf16.msra.mxu1 %v18638_v19  ;;  %v18697_v19 = vld [vmem:[#allocation18 + $0x340] sm:$0xff]  }
 0xaa4   : > { %16077 = vmatprep.subr.bf16.mxu1 %v18639_v57  ;;  %v20486_v57 = vld [vmem:[#allocation5 + $0x4] ss:$24 sps:$4 sm:$0x1e]  }
 0xaa7   : > { %16078 = vmatpush3.bf16.msra.mxu1 %v18640_v50  ;;  %v18698_v50 = vld [vmem:[#allocation18 + $0x300] sm:$0xff]  }
 0xaa8   : > { %16079 = vmatprep.subr.bf16.mxu1 %v18641_v34  ;;  %v18702_v34 = vld [vmem:[#allocation18 + $0x348] sm:$0xff]  }
 0xaab   : > { %16080 = vmatpush3.bf16.msra.mxu1 %v18642_v30  ;;  %v13140_v30 = vrot.slane %v20486_v57, 1 }
 0xaac   : > { %16081 = vmatprep.subr.bf16.mxu1 %v18643_v51  ;;  %v18703_v51 = vld [vmem:[#allocation18 + $0x308] sm:$0xff]  }
 0xaaf   : > { %16082 = vmatpush3.bf16.msra.mxu1 %v18644_v3  ;;  %v18704_v3 = vld [vmem:[#allocation18 + $0x350] sm:$0xff]  }
 0xab0   : > { %16083 = vmatprep.subr.bf16.mxu1 %v18645_v48  ;;  %v18705_v48 = vld [vmem:[#allocation18 + $0x310] sm:$0xff]  }
 0xab3   : > { %16084 = vmatpush3.bf16.msra.mxu1 %v18646_v15  ;;  %v18706_v15 = vld [vmem:[#allocation18 + $0x358] sm:$0xff]  }
 0xab4   : > { %16085 = vmatprep.subr.bf16.mxu1 %v18647_v45  ;;  %v18707_v45 = vld [vmem:[#allocation18 + $0x318] sm:$0xff]  }
 0xab7   : > { %16086 = vmatpush3.bf16.msra.mxu1 %v18648_v20  ;;  %v18709_v20 = vld [vmem:[#allocation18 + $0x320] sm:$0xff]  }
 0xab8   : > { %16093 = vmatprep.subr.bf16.mxu1 %v18649_v39  ;;  %v18711_v39 = vld [vmem:[#allocation18 + $0x328] sm:$0xff]  }
 0xaba   : > { %12591 = vmatmul.mubr.bf16.vlgmr.msra.gmra.mrb[24].mxu1 %v12176_v8  ;;  %v18715_v8 = vld [vmem:[#allocation18 + $0x338] sm:$0xff]  }
 0xabb   : > { %16094 = vmatpush3.bf16.msra.mxu1 %v18650_v28  ;;  %12924 = vmatprep.mubr.bf16.mxu1 %v20459_v12  ;;  %v18662_v12 = vld [vmem:[#allocation18 + $0x30] sm:$0xff]   ;;  %v18714_v28 = vld [vmem:[#allocation18 + $0x378] sm:$0xff]  }
 0xabc   : > { %16095 = vmatprep.subr.bf16.mxu1 %v18651_v59  ;;  %v20490_v59 = vld [vmem:[#allocation5] ss:$24 sps:$4 sm:$0x1e]  }
 0xabf   : > { %16096 = vmatpush3.bf16.msra.mxu1 %v18652_v23  ;;  %v18716_v23 = vld [vmem:[#allocation18 + $0x3c0] sm:$0xff]  }
 0xac0   : > { %16097 = vmatprep.subr.bf16.mxu1 %v18653_v17  ;;  %v20492_v17 = vld [vmem:[#allocation5 + $0xc] ss:$24 sps:$4 sm:$0x1e]  }
 0xac3   : > { %16098 = vmatpush3.bf16.msra.mxu1 %v18654_v4  ;;  %v18717_v4 = vld [vmem:[#allocation18 + $0x380] sm:$0xff]  }
 0xac4   : > { %16099 = vmatprep.subr.bf16.mxu1 %v18655_v27  ;;  %v13139_v27 = vrot.slane %v20490_v59, 1 }
 0xac7   : > { %16100 = vmatpush3.bf16.msra.mxu1 %v18656_v2  ;;  %v18721_v2 = vld [vmem:[#allocation18 + $0x3c8] sm:$0xff]  }
 0xac8   : > { %16101 = vmatprep.subr.bf16.mxu1 %v18657_v49  ;;  %v13142_v49 = vrot.slane %v20492_v17, 1 }
 0xacb   : > { %16102 = vmatpush3.bf16.msra.mxu1 %v18658_v41  ;;  %v18722_v41 = vld [vmem:[#allocation18 + $0x388] sm:$0xff]  }
 0xacc   : > { %16103 = vmatprep.subr.bf16.mxu1 %v18659_v52  ;;  %v18723_v52 = vld [vmem:[#allocation18 + $0x3d0] sm:$0xff]  }
 0xacf   : > { %16104 = vmatpush3.bf16.msra.mxu1 %v18660_v10  ;;  %v18724_v10 = vld [vmem:[#allocation18 + $0x390] sm:$0xff]  }
 0xad0   : > { %16105 = vmatprep.subr.bf16.mxu1 %v18661_v56  ;;  %v18725_v56 = vld [vmem:[#allocation18 + $0x3d8] sm:$0xff]  }
 0xad3   : > { %16106 = vmatpush3.bf16.msra.mxu1 %v18662_v12  ;;  %v18726_v12 = vld [vmem:[#allocation18 + $0x398] sm:$0xff]  }
 0xad4   : > { %16107 = vmatprep.subr.bf16.mxu1 %v18663_v13  ;;  %v18727_v13 = vld [vmem:[#allocation18 + $0x3e0] sm:$0xff]  }
 0xad7   : > { %16108 = vmatpush3.bf16.msra.mxu1 %v18664_v14  ;;  %v18728_v14 = vld [vmem:[#allocation18 + $0x3a0] sm:$0xff]  }
 0xad8   : > { %16115 = vmatprep.subr.bf16.mxu1 %v18665_v42  ;;  %v18729_v42 = vld [vmem:[#allocation18 + $0x3e8] sm:$0xff]  }
 0xada   : > { %12925 = vmatmul.mubr.bf16.vlgmr.msra.gmra.mrb[28].mxu1 %v20457_v11  ;;  %v18676_v11 = vld [vmem:[#allocation18 + $0xa8] sm:$0xff]  }
 0xadb   : > { %16116 = vmatpush3.bf16.msra.mxu1 %v18666_v47  ;;  %12964 = vmatprep.mubr.bf16.mxu1 %v20461_v0  ;;  %v18678_v0 = vld [vmem:[#allocation18 + $0xb0] sm:$0xff]   ;;  %v18730_v47 = vld [vmem:[#allocation18 + $0x3a8] sm:$0xff]  }
 0xadc   : > { %16117 = vmatprep.subr.bf16.mxu1 %v18667_v21  ;;  %v18731_v21 = vld [vmem:[#allocation18 + $0x3f0] sm:$0xff]  }
 0xadf   : > { %16118 = vmatpush3.bf16.msra.mxu1 %v18668_v1 }
 0xae0   : > { %16119 = vmatprep.subr.bf16.mxu1 %v18669_v60 }
 0xae3   : > { %16120 = vmatpush3.bf16.msra.mxu1 %v18670_v18 }
 0xae4   : > { %16121 = vmatprep.subr.bf16.mxu1 %v18671_v24 }
 0xae7   : > { %16122 = vmatpush3.bf16.msra.mxu1 %v18672_v35  ;;  %v18732_v35 = vld [vmem:[#allocation18 + $0x3b0] sm:$0xff]  }
 0xae8   : > { %16123 = vmatprep.subr.bf16.mxu1 %v18673_v55 }
 0xaeb   : > { %16124 = vmatpush3.bf16.msra.mxu1 %v18674_v32  ;;  %v18733_v32 = vld [vmem:[#allocation18 + $0x3f8] sm:$0xff]  }
 0xaec   : > { %16125 = vmatprep.subr.bf16.mxu1 %v18675_v53  ;;  %v18734_v53 = vld [vmem:[#allocation18 + $0x3b8] sm:$0xff]  }
 0xaef   : > { %16126 = vmatpush3.bf16.msra.mxu1 %v18676_v11  ;;  %v20496_v11 = vld [vmem:[#allocation5 + $0x8] ss:$24 sps:$4 sm:$0x1e]  }
 0xaf0   : > { %16127 = vmatprep.subr.bf16.mxu1 %v18677_v44  ;;  %v18735_v44 = vld [vmem:[#allocation18 + $0x440] sm:$0xff]  }
 0xaf3   : > { %16128 = vmatpush3.bf16.msra.mxu1 %v18678_v0  ;;  %v20498_v0 = vld [vmem:[#allocation5 + $0x14] ss:$24 sps:$4 sm:$0x1e]  }
 0xaf4   : > { %16129 = vmatprep.subr.bf16.mxu1 %v18679_v62  ;;  %v18736_v62 = vld [vmem:[#allocation18 + $0x400] sm:$0xff]  }
 0xaf7   : > { %16130 = vmatpush3.bf16.msra.mxu1 %v18680_v40  ;;  %v13141_v40 = vrot.slane %v20496_v11, 1 }
 0xaf8   : > { %16137 = vmatprep.subr.bf16.mxu1 %v18681_v38  ;;  %v18740_v38 = vld [vmem:[#allocation18 + $0x448] sm:$0xff]  }
 0xafa   : > { %12965 = vmatmul.mubr.bf16.vlgmr.msra.gmra.mrb[32].mxu1 %v20469_v6  ;;  %v18692_v6 = vld [vmem:[#allocation18 + $0x128] sm:$0xff]  }
 0xafb   : > { %16138 = vmatpush3.bf16.msra.mxu1 %v18682_v33  ;;  %13004 = vmatprep.mubr.bf16.mxu1 %v20471_v22  ;;  %v18694_v22 = vld [vmem:[#allocation18 + $0x130] sm:$0xff]   ;;  %v13144_v33 = vrot.slane %v20498_v0, 1 }
 0xafc   : > { %16139 = vmatprep.subr.bf16.mxu1 %v18683_v9  ;;  %v18741_v9 = vld [vmem:[#allocation18 + $0x408] sm:$0xff]  }
 0xaff   : > { %16140 = vmatpush3.bf16.msra.mxu1 %v18684_v61  ;;  %v18742_v61 = vld [vmem:[#allocation18 + $0x450] sm:$0xff]  }
 0xb00   : > { %16141 = vmatprep.subr.bf16.mxu1 %v18685_v37  ;;  %v18743_v37 = vld [vmem:[#allocation18 + $0x410] sm:$0xff]  }
 0xb03   : > { %16142 = vmatpush3.bf16.msra.mxu1 %v18686_v46  ;;  %v18744_v46 = vld [vmem:[#allocation18 + $0x458] sm:$0xff]  }
 0xb04   : > { %16143 = vmatprep.subr.bf16.mxu1 %v18687_v63  ;;  %v18745_v63 = vld [vmem:[#allocation18 + $0x418] sm:$0xff]  }
 0xb07   : > { %16144 = vmatpush3.bf16.msra.mxu1 %v18688_v29  ;;  %v18746_v29 = vld [vmem:[#allocation18 + $0x460] sm:$0xff]  }
 0xb08   : > { %16145 = vmatprep.subr.bf16.mxu1 %v18689_v58  ;;  %v18747_v58 = vld [vmem:[#allocation18 + $0x420] sm:$0xff]  }
 0xb0b   : > { %16146 = vmatpush3.bf16.msra.mxu1 %v18690_v54  ;;  %v18748_v54 = vld [vmem:[#allocation18 + $0x468] sm:$0xff]  }
 0xb0c   : > { %16147 = vmatprep.subr.bf16.mxu1 %v18691_v43  ;;  %v18749_v43 = vld [vmem:[#allocation18 + $0x428] sm:$0xff]  }
 0xb0f   : > { %16148 = vmatpush3.bf16.msra.mxu1 %v18692_v6  ;;  %v18750_v6 = vld [vmem:[#allocation18 + $0x470] sm:$0xff]  }
 0xb10   : > { %16149 = vmatprep.subr.bf16.mxu1 %v18693_v16 }
 0xb13   : > { %16150 = vmatpush3.bf16.msra.mxu1 %v18694_v22 }
 0xb14   : > { %16151 = vmatprep.subr.bf16.mxu1 %v18695_v26 }
 0xb17   : > { %16152 = vmatpush3.bf16.msra.mxu1 %v18696_v31 }
 0xb18   : > { %16159 = vmatprep.subr.bf16.mxu1 %v18697_v19  ;;  %v18751_v19 = vld [vmem:[#allocation18 + $0x430] sm:$0xff]  }
 0xb1a   : > { %13005 = vmatmul.mubr.bf16.vlgmr.msra.gmra.mrb[36].mxu1 %v20477_v5  ;;  %v18712_v5 = vld [vmem:[#allocation18 + $0x370] sm:$0xff]  }
 0xb1b   : > { %16160 = vmatpush3.bf16.msra.mxu1 %v18698_v50  ;;  %13471 = vmatprep.mubr.bf16.mxu1 %v13140_v30 }
 0xb1c   : > { %16161 = vmatprep.subr.bf16.mxu1 %v18702_v34  ;;  %v18752_v34 = vld [vmem:[#allocation18 + $0x478] sm:$0xff]  }
 0xb1f   : > { %16162 = vmatpush3.bf16.msra.mxu1 %v18703_v51  ;;  %v13666_v51 = vshrl.u32 %v20486_v57, 16 }
 0xb20   : > { %16163 = vmatprep.subr.bf16.mxu1 %v18704_v3  ;;  %v13669_v3 = vshll.u32 %v20486_v57, 16  ;;  %v18758_v57 = vld [vmem:[#allocation18 + $0x4d0] sm:$0xff]  }
 0xb23   : > { %16164 = vmatpush3.bf16.msra.mxu1 %v18705_v48  ;;  %v18753_v48 = vld [vmem:[#allocation18 + $0x438] sm:$0xff]  }
 0xb24   : > { %16165 = vmatprep.subr.bf16.mxu1 %v18706_v15  ;;  %v20504_v15 = vld [vmem:[#allocation5 + $0x10] ss:$24 sps:$4 sm:$0x1e]  }
 0xb27   : > { %16166 = vmatpush3.bf16.msra.mxu1 %v18707_v45  ;;  %v18754_v45 = vld [vmem:[#allocation18 + $0x4c0] sm:$0xff]  }
 0xb28   : > { %16167 = vmatprep.subr.bf16.mxu1 %v18708_v25  ;;  %v13668_v25 = vrot.slane %v13666_v51, 1 }
 0xb2b   : > { %16168 = vmatpush3.bf16.msra.mxu1 %v18709_v20  ;;  %v13671_v20 = vrot.slane %v13669_v3, 2  ;;  %v13698_v3 = vshrl.u32 %v20498_v0, 16 }
 0xb2c   : > { %16169 = vmatprep.subr.bf16.mxu1 %v18710_v7  ;;  %v18755_v7 = vld [vmem:[#allocation18 + $0x480] sm:$0xff]  }
 0xb2f   : > { %16170 = vmatpush3.bf16.msra.mxu1 %v18711_v39  ;;  %v13143_v39 = vrot.slane %v20504_v15, 1 }
 0xb30   : > { %16171 = vmatprep.subr.bf16.mxu1 %v18712_v5  ;;  %v18756_v5 = vld [vmem:[#allocation18 + $0x4c8] sm:$0xff]  }
 0xb33   : > { %16172 = vmatpush3.bf16.msra.mxu1 %v18713_v36  ;;  %v13672_v36 = vor.u32 %v13671_v20, %v13668_v25 }
 0xb34   : > { %16173 = vmatprep.subr.bf16.mxu1 %v18714_v28  ;;  %v18757_v28 = vld [vmem:[#allocation18 + $0x488] sm:$0xff]  }
 0xb37   : > { %16174 = vmatpush3.bf16.msra.mxu1 %v18715_v8  ;;  %v18759_v8 = vld [vmem:[#allocation18 + $0x490] sm:$0xff]  }
 0xb38   : > { %16181 = vmatprep.subr.bf16.mxu1 %v18716_v23  ;;  %v18760_v23 = vld [vmem:[#allocation18 + $0x4d8] sm:$0xff]  }
 0xb3a   : > { %13472 = vmatmul.mubr.bf16.vlgmr.msra.gmra.mrb[40].mxu1 %v13139_v27  ;;  %v18762_v27 = vld [vmem:[#allocation18 + $0x4e0] sm:$0xff]  }
 0xb3b   : > { %16182 = vmatpush3.bf16.msra.mxu1 %v18717_v4  ;;  %13511 = vmatprep.mubr.bf16.mxu1 %v13142_v49  ;;  %v18761_v4 = vld [vmem:[#allocation18 + $0x498] sm:$0xff]   ;;  %v18764_v49 = vld [vmem:[#allocation18 + $0x4e8] sm:$0xff]  }
 0xb3c   : > { %16183 = vmatprep.subr.bf16.mxu1 %v18721_v2  ;;  %v18763_v2 = vld [vmem:[#allocation18 + $0x4a0] sm:$0xff]  }
 0xb3f   : > { %16184 = vmatpush3.bf16.msra.mxu1 %v18722_v41  ;;  %v18765_v41 = vld [vmem:[#allocation18 + $0x4a8] sm:$0xff]  }
 0xb40   : > { %16185 = vmatprep.subr.bf16.mxu1 %v18723_v52  ;;  %v18766_v52 = vld [vmem:[#allocation18 + $0x4f0] sm:$0xff]  }
 0xb43   : > { %16186 = vmatpush3.bf16.msra.mxu1 %v18724_v10 }
 0xb44   : > { %16187 = vmatprep.subr.bf16.mxu1 %v18725_v56 }
 0xb47   : > { %16188 = vmatpush3.bf16.msra.mxu1 %v18726_v12 }
 0xb48   : > { %16189 = vmatprep.subr.bf16.mxu1 %v18727_v13 }
 0xb4b   : > { %16190 = vmatpush3.bf16.msra.mxu1 %v18728_v14  ;;  %v18767_v14 = vld [vmem:[#allocation18 + $0x4b0] sm:$0xff]  }
 0xb4c   : > { %16191 = vmatprep.subr.bf16.mxu1 %v18729_v42 }
 0xb4d   : > { %v16043_v1 = vpop.f32.mrb[16].mxu1 }
 0xb4e   : > { %v16044_v60 = vpop.f32.mrb[17].mxu1 }
 0xb4f   : > { %v16045_v18 = vadd.f32 %v16044_v60, %v16043_v1  ;;  %16192 = vmatpush3.bf16.msra.mxu1 %v18730_v47  ;;  %v16046_v24 = vpop.f32.mrb[18].mxu1  ;;  %v18768_v47 = vld [vmem:[#allocation18 + $0x4f8] sm:$0xff]   ;;  %v13661_v1 = vshll.u32 %v20490_v59, 16 }
 0xb50   : > { %v16047_v55 = vpop.f32.mrb[19].mxu1  ;;  %16193 = vmatprep.subr.bf16.mxu1 %v18731_v21  ;;  %v13658_v21 = vshrl.u32 %v20490_v59, 16  ;;  %v13685_v24 = vshll.u32 %v20492_v17, 16  ;;  %v18773_v59 = vld [vmem:[#allocation18 + $0x508] sm:$0xff]  }
 0xb52   : > { %v13660_v55 = vrot.slane %v13658_v21, 1  ;;  %v18800_v21 = vld [vmem:[#allocation18 + $0x5f8] sm:$0xff]  }
 0xb53   : > { %16194 = vmatpush3.bf16.msra.mxu1 %v18732_v35  ;;  %v18769_v35 = vld [vmem:[#allocation18 + $0x4b8] sm:$0xff]  }
 0xb54   : > { %16195 = vmatprep.subr.bf16.mxu1 %v18733_v32  ;;  %v13663_v32 = vrot.slane %v13661_v1, 2  ;;  %v13690_v1 = vshrl.u32 %v20504_v15, 16 }
 0xb57   : > { %16196 = vmatpush3.bf16.msra.mxu1 %v18734_v53  ;;  %v18770_v53 = vld [vmem:[#allocation18 + $0x540] sm:$0xff]  }
 0xb58   : > { %16203 = vmatprep.subr.bf16.mxu1 %v18735_v44 }
 0xb5a   : > { %13512 = vmatmul.mubr.bf16.vlgmr.msra.gmra.mrb[44].mxu1 %v13141_v40  ;;  %v18771_v40 = vld [vmem:[#allocation18 + $0x500] sm:$0xff]  }
 0xb5b   : > { %16204 = vmatpush3.bf16.msra.mxu1 %v18736_v62  ;;  %13551 = vmatprep.mubr.bf16.mxu1 %v13144_v33  ;;  %v13687_v62 = vrot.slane %v13685_v24, 2  ;;  %v18772_v33 = vld [vmem:[#allocation18 + $0x548] sm:$0xff]   ;;  %v18801_v24 = vld [vmem:[#allocation18 + $0x5b8] sm:$0xff]  }
 0xb5c   : > { %16205 = vmatprep.subr.bf16.mxu1 %v18740_v38  ;;  %v13664_v38 = vor.u32 %v13663_v32, %v13660_v55 }
 0xb5f   : > { %16206 = vmatpush3.bf16.msra.mxu1 %v18741_v9 }
 0xb60   : > { %16207 = vmatprep.subr.bf16.mxu1 %v18742_v61  ;;  %v18775_v61 = vld [vmem:[#allocation18 + $0x510] sm:$0xff]  }
 0xb63   : > { %16208 = vmatpush3.bf16.msra.mxu1 %v18743_v37  ;;  %v18776_v37 = vld [vmem:[#allocation18 + $0x558] sm:$0xff]  }
 0xb64   : > { %16209 = vmatprep.subr.bf16.mxu1 %v18744_v46  ;;  %v18777_v46 = vld [vmem:[#allocation18 + $0x518] sm:$0xff]  }
 0xb67   : > { %16210 = vmatpush3.bf16.msra.mxu1 %v18745_v63  ;;  %v18778_v63 = vld [vmem:[#allocation18 + $0x560] sm:$0xff]  }
 0xb68   : > { %16211 = vmatprep.subr.bf16.mxu1 %v18746_v29  ;;  %v18779_v29 = vld [vmem:[#allocation18 + $0x520] sm:$0xff]  }
 0xb6b   : > { %16212 = vmatpush3.bf16.msra.mxu1 %v18747_v58  ;;  %v18780_v58 = vld [vmem:[#allocation18 + $0x568] sm:$0xff]  }
 0xb6c   : > { %16213 = vmatprep.subr.bf16.mxu1 %v18748_v54  ;;  %v18781_v54 = vld [vmem:[#allocation18 + $0x528] sm:$0xff]  }
 0xb6d   : > { %v16065_v16 = vpop.f32.mrb[20].mxu1 }
 0xb6e   : > { %v16066_v22 = vpop.f32.mrb[21].mxu1 }
 0xb6f   : > { %v16067_v26 = vadd.f32 %v16066_v22, %v16065_v16  ;;  %v16068_v31 = vpop.f32.mrb[22].mxu1  ;;  %16214 = vmatpush3.bf16.msra.mxu1 %v18749_v43  ;;  %v18782_v43 = vld [vmem:[#allocation18 + $0x570] sm:$0xff]  }
 0xb70   : > { %v16069_v50 = vpop.f32.mrb[23].mxu1  ;;  %16215 = vmatprep.subr.bf16.mxu1 %v18750_v6  ;;  %v18783_v31 = vld [vmem:[#allocation18 + $0x530] sm:$0xff]  }
 0xb71   : > { %v12553_v30 = vadd.f32 %v16067_v26, %v16045_v18  ;;  %v13682_v18 = vshrl.u32 %v20492_v17, 16  ;;  %v18774_v17 = vld [vmem:[#allocation18 + $0x550] sm:$0xff]   ;;  %v18784_v50 = vld [vmem:[#allocation18 + $0x578] sm:$0xff]  }
 0xb73   : > { %16216 = vmatpush3.bf16.msra.mxu1 %v18751_v19  ;;  %v13684_v44 = vrot.slane %v13682_v18, 1 }
 0xb74   : > { %16217 = vmatprep.subr.bf16.mxu1 %v18752_v34  ;;  %v13674_v34 = vshrl.u32 %v20496_v11, 16 }
 0xb75   : > { %v13688_v9 = vor.u32 %v13687_v62, %v13684_v44 }
 0xb76   : > { %v13676_v25 = vrot.slane %v13674_v34, 1 }
 0xb77   : > { %16218 = vmatpush3.bf16.msra.mxu1 %v18753_v48  ;;  %v13701_v48 = vshll.u32 %v20498_v0, 16  ;;  %v18790_v0 = vld [vmem:[#allocation18 + $0x5d0] sm:$0xff]  }
 0xb78   : > { %16225 = vmatprep.subr.bf16.mxu1 %v18754_v45  ;;  %v18785_v45 = vld [vmem:[#allocation18 + $0x538] sm:$0xff]  }
 0xb7a   : > { %13552 = vmatmul.mubr.bf16.vlgmr.msra.gmra.mrb[48].mxu1 %v13143_v39  ;;  %v13700_v39 = vrot.slane %v13698_v3, 1 }
 0xb7b   : > { %16226 = vmatpush3.bf16.msra.mxu1 %v18755_v7  ;;  %14031 = vmatprep.mubr.bf16.mxu1 %v13672_v36  ;;  %v18786_v7 = vld [vmem:[#allocation18 + $0x5c0] sm:$0xff]  }
 0xb7c   : > { %16227 = vmatprep.subr.bf16.mxu1 %v18756_v5  ;;  %v13703_v5 = vrot.slane %v13701_v48, 2  ;;  %v18787_v36 = vld [vmem:[#allocation18 + $0x580] sm:$0xff]  }
 0xb7f   : > { %16228 = vmatpush3.bf16.msra.mxu1 %v18757_v28 }
 0xb80   : > { %16229 = vmatprep.subr.bf16.mxu1 %v18758_v57  ;;  %v18788_v57 = vld [vmem:[#allocation18 + $0x5c8] sm:$0xff]  }
 0xb83   : > { %16230 = vmatpush3.bf16.msra.mxu1 %v18759_v8  ;;  %v13704_v8 = vor.u32 %v13703_v5, %v13700_v39 }
 0xb84   : > { %16231 = vmatprep.subr.bf16.mxu1 %v18760_v23  ;;  %v18791_v23 = vld [vmem:[#allocation18 + $0x590] sm:$0xff]  }
 0xb87   : > { %16232 = vmatpush3.bf16.msra.mxu1 %v18761_v4  ;;  %v18792_v4 = vld [vmem:[#allocation18 + $0x5d8] sm:$0xff]  }
 0xb88   : > { %16233 = vmatprep.subr.bf16.mxu1 %v18762_v27  ;;  %v18793_v27 = vld [vmem:[#allocation18 + $0x598] sm:$0xff]  }
 0xb8b   : > { %16234 = vmatpush3.bf16.msra.mxu1 %v18763_v2  ;;  %v18794_v2 = vld [vmem:[#allocation18 + $0x5e0] sm:$0xff]  }
 0xb8c   : > { %16235 = vmatprep.subr.bf16.mxu1 %v18764_v49  ;;  %v18795_v49 = vld [vmem:[#allocation18 + $0x5a0] sm:$0xff]  }
 0xb8d   : > { %v16087_v10 = vpop.f32.mrb[24].mxu1 }
 0xb8e   : > { %v16088_v56 = vpop.f32.mrb[25].mxu1 }
 0xb8f   : > { %v16089_v12 = vadd.f32 %v16088_v56, %v16087_v10  ;;  %v16090_v13 = vpop.f32.mrb[26].mxu1  ;;  %16236 = vmatpush3.bf16.msra.mxu1 %v18765_v41  ;;  %v18796_v41 = vld [vmem:[#allocation18 + $0x5e8] sm:$0xff]   ;;  %v18798_v10 = vld [vmem:[#allocation18 + $0x5f0] sm:$0xff]  }
 0xb90   : > { %v16091_v42 = vpop.f32.mrb[27].mxu1  ;;  %16237 = vmatprep.subr.bf16.mxu1 %v18766_v52  ;;  %v18797_v52 = vld [vmem:[#allocation18 + $0x5a8] sm:$0xff]  }
 0xb91   : > { %v12593_v60 = vadd.f32 %v16089_v12, %v12553_v30  ;;  %v13677_v30 = vshll.u32 %v20496_v11, 16  ;;  %v18789_v11 = vld [vmem:[#allocation18 + $0x588] sm:$0xff]   ;;  %v18799_v42 = vld [vmem:[#allocation18 + $0x5b0] sm:$0xff]  }
 0xb93   : > { %16238 = vmatpush3.bf16.msra.mxu1 %v18767_v14  ;;  %v13679_v20 = vrot.slane %v13677_v30, 2 }
 0xb94   : > { %16239 = vmatprep.subr.bf16.mxu1 %v18768_v47 }
 0xb95   : > { %v13680_v28 = vor.u32 %v13679_v20, %v13676_v25 }
 0xb97   : > { %16240 = vmatpush3.bf16.msra.mxu1 %v18769_v35  ;;  %v13692_v35 = vrot.slane %v13690_v1, 1 }
 0xb98   : > { %16247 = vmatprep.subr.bf16.mxu1 %v18770_v53 }
 0xb9a   : > { %14032 = vmatmul.mubr.bf16.vlgmr.msra.gmra.mrb[52].mxu1 %v13664_v38 }
 0xb9b   : > { %16248 = vmatpush3.bf16.msra.mxu1 %v18771_v40  ;;  %14071 = vmatprep.mubr.bf16.mxu1 %v13688_v9 }
 0xb9c   : > { %16249 = vmatprep.subr.bf16.mxu1 %v18772_v33 }
 0xb9f   : > { %16250 = vmatpush3.bf16.msra.mxu1 %v18773_v59 }
 0xba0   : > { %16251 = vmatprep.subr.bf16.mxu1 %v18774_v17 }
 0xba3   : > { %16252 = vmatpush3.bf16.msra.mxu1 %v18775_v61 }
 0xba4   : > { %16253 = vmatprep.subr.bf16.mxu1 %v18776_v37 }
 0xba7   : > { %16254 = vmatpush3.bf16.msra.mxu1 %v18777_v46 }
 0xba8   : > { %16255 = vmatprep.subr.bf16.mxu1 %v18778_v63 }
 0xbab   : > { %16256 = vmatpush3.bf16.msra.mxu1 %v18779_v29 }
 0xbac   : > { %16257 = vmatprep.subr.bf16.mxu1 %v18780_v58 }
 0xbad   : > { %v16109_v6 = vpop.f32.mrb[28].mxu1 }
 0xbae   : > { %v16110_v16 = vpop.f32.mrb[29].mxu1 }
 0xbaf   : > { %v16111_v22 = vadd.f32 %v16110_v16, %v16109_v6  ;;  %v16112_v26 = vpop.f32.mrb[30].mxu1  ;;  %16258 = vmatpush3.bf16.msra.mxu1 %v18781_v54 }
 0xbb0   : > { %v16113_v19 = vpop.f32.mrb[31].mxu1  ;;  %16259 = vmatprep.subr.bf16.mxu1 %v18782_v43 }
 0xbb1   : > { %v12927_v51 = vadd.f32 %v16111_v22, %v12593_v60  ;;  %v13693_v60 = vshll.u32 %v20504_v15, 16 }
 0xbb3   : > { %16260 = vmatpush3.bf16.msra.mxu1 %v18783_v31  ;;  %v13695_v55 = vrot.slane %v13693_v60, 2 }
 0xbb4   : > { %16261 = vmatprep.subr.bf16.mxu1 %v18784_v50 }
 0xbb5   : > { %v13696_v32 = vor.u32 %v13695_v55, %v13692_v35 }
 0xbb7   : > { %16262 = vmatpush3.bf16.msra.mxu1 %v18785_v45 }
 0xbb8   : > { %16269 = vmatprep.subr.bf16.mxu1 %v18786_v7 }
 0xbba   : > { %14072 = vmatmul.mubr.bf16.vlgmr.msra.gmra.mrb[56].mxu1 %v13680_v28 }
 0xbbb   : > { %16270 = vmatpush3.bf16.msra.mxu1 %v18787_v36  ;;  %14111 = vmatprep.mubr.bf16.mxu1 %v13704_v8 }
 0xbbc   : > { %16271 = vmatprep.subr.bf16.mxu1 %v18788_v57 }
 0xbbf   : > { %16272 = vmatpush3.bf16.msra.mxu1 %v18789_v11 }
 0xbc0   : > { %16273 = vmatprep.subr.bf16.mxu1 %v18790_v0 }
 0xbc3   : > { %16274 = vmatpush3.bf16.msra.mxu1 %v18791_v23 }
 0xbc4   : > { %16275 = vmatprep.subr.bf16.mxu1 %v18792_v4 }
 0xbc7   : > { %16276 = vmatpush3.bf16.msra.mxu1 %v18793_v27 }
 0xbc8   : > { %16277 = vmatprep.subr.bf16.mxu1 %v18794_v2 }
 0xbcb   : > { %16278 = vmatpush3.bf16.msra.mxu1 %v18795_v49 }
 0xbcc   : > { %16279 = vmatprep.subr.bf16.mxu1 %v18796_v41 }
 0xbcd   : > { %v16131_v56 = vpop.f32.mrb[32].mxu1 }
 0xbce   : > { %v16132_v12 = vpop.f32.mrb[33].mxu1 }
 0xbcf   : > { %v16133_v13 = vadd.f32 %v16132_v12, %v16131_v56  ;;  %v16134_v14 = vpop.f32.mrb[34].mxu1  ;;  %16280 = vmatpush3.bf16.msra.mxu1 %v18797_v52 }
 0xbd0   : > { %v16135_v47 = vpop.f32.mrb[35].mxu1  ;;  %16281 = vmatprep.subr.bf16.mxu1 %v18798_v10 }
 0xbd1   : > { %v12967_v18 = vadd.f32 %v16133_v13, %v12927_v51 }
 0xbd3   : > { %16282 = vmatpush3.bf16.msra.mxu1 %v18799_v42 }
 0xbd4   : > { %16283 = vmatprep.subr.bf16.mxu1 %v18800_v21 }
 0xbd7   : > { %16284 = vmatpush3.bf16.msra.mxu1 %v18801_v24 }
 0xbda   : > { %14112 = vmatmul.mubr.bf16.vlgmr.msra.gmra.mrb[60].mxu1 %v13696_v32 }
 0xbed   : > { %v16153_v53 = vpop.f32.mrb[36].mxu1 }
 0xbee   : > { %v16154_v44 = vpop.f32.mrb[37].mxu1 }
 0xbef   : > { %v16155_v62 = vadd.f32 %v16154_v44, %v16153_v53  ;;  %v16156_v40 = vpop.f32.mrb[38].mxu1 }
 0xbf0   : > { %v16157_v38 = vpop.f32.mrb[39].mxu1 }
 0xbf1   : > { %v13007_v33 = vadd.f32 %v16155_v62, %v12967_v18 }
 0xc0d   : > { %v16175_v9 = vpop.f32.mrb[40].mxu1 }
 0xc0e   : > { %v16176_v15 = vpop.f32.mrb[41].mxu1 }
 0xc0f   : > { %v16177_v59 = vadd.f32 %v16176_v15, %v16175_v9  ;;  %v16178_v17 = vpop.f32.mrb[42].mxu1 }
 0xc10   : > { %v16179_v61 = vpop.f32.mrb[43].mxu1 }
 0xc2d   : > { %v16197_v37 = vpop.f32.mrb[44].mxu1 }
 0xc2e   : > { %v16198_v46 = vpop.f32.mrb[45].mxu1 }
 0xc2f   : > { %v16199_v63 = vadd.f32 %v16198_v46, %v16197_v37  ;;  %v16200_v29 = vpop.f32.mrb[46].mxu1 }
 0xc30   : > { %v16201_v58 = vpop.f32.mrb[47].mxu1 }
 0xc31   : > { %v13514_v54 = vadd.f32 %v16199_v63, %v16177_v59 }
 0xc32   : > { %19094 = shalt.err (!%p19091_p11)
}
 0xc33   : > { %s19095_s9 = scalar_lea.hbm %s20522_s27, 512  ;;  %s19099_s24 = scalar_lea.hbm %s20750_s15, 1024 }
 0xc34   : > { %p19096_p3 = scmp.ne.s32.totalorder %s20522_s27, %s19095_s9  ;;  %p19100_p6 = scmp.lt.u32.totalorder %s20522_s27, %s20750_s15 }
 0xc35   : > { %p19101_p9 = scmp.lt.u32.totalorder %s19099_s24, %s19095_s9  ;;  %p19103_p1 = scmp.lt.u32.totalorder %s19095_s9, %s20522_s27 }
 0xc36   : > { %p19097_p5 = pnand %p19096_p3, %p20751_p13 }
 0xc37   : > { %p19102_p12 = por %p19101_p9, %p19100_p6 }
 0xc38   : > { %p19098_p7 = pneg %p19097_p5 }
 0xc39   : > { %p19104_p0 = por %p19103_p1, %p19102_p12 }
 0xc3b   : > { %p19105_p2 = pnand %p19104_p0, %p19098_p7 }
 0xc3d   : > { %19108 = shalt.err (!%p19105_p2)
}
 0xc3e   : > { %s19215_s11 = smov 256   ;;  %s19216_s10 = smov 16   ;;  %v15993_v0 = vld [vmem:[#allocation20] ss:$0 sm:$0xff] }
 0xc3f   : > { %16466 = dma.vmem_to_hbm [thread:$0]  (%p20751_p13), %s20524_s28, 512, %s20522_s27, %s14132_s22, %s19215_s11, %s19215_s11, %s19216_s10  }
 0xc40   : > { %s14409_s28 = sshll.u32 %s19586_s13, 2  ;;  %s16026_s9 = sshll.u32 %s19301_s23, 6 }
 0xc41   : > { %s531_s27 = scalar_lea.vmem [#allocation22], %s14409_s28  ;;  %s20752_s24 = sld [smem:[#allocation33_spill]] }
 0xc42   : > { %s14177_s22 = sshll.u32 %s531_s27, 4  ;;  %s14143_s12 = scalar_lea.sflag [#allocation23], %s19586_s13  ;;  %s20557_s22 = int_to_ptr.vmem [resolvable:$true] %s14177_s22 }
 0xc43   : > { %s19109_s11 = scalar_lea.vmem %s20557_s22, 64  ;;  %s19217_s23 = smov [#allocation22]  }
 0xc44   : > { %p19110_p8 = scmp.ne.s32.totalorder %s20557_s22, %s19109_s11  ;;  %s19113_s10 = sshll.u32 %s19217_s23, 4  ;;  %s19114_s10 = int_to_ptr.vmem [resolvable:$false] %s19113_s10 }
 0xc45   : > { %s19115_s28 = scalar_lea.vmem %s19114_s10, 128  ;;  %p19116_p11 = scmp.lt.s32.totalorder %s20557_s22, %s19114_s10 }
 0xc46   : > { %p19111_p4 = pnand %p19110_p8, %p20751_p13  ;;  %p19117_p3 = scmp.lt.s32.totalorder %s19115_s28, %s19109_s11 }
 0xc47   : > { %s20555_s29 = scalar_lea.hbm %s20752_s24, %s16026_s9 }
 0xc48   : > { %p19112_p10 = pneg %p19111_p4  ;;  %p19118_p5 = por %p19117_p3, %p19116_p11 }
 0xc4a   : > { %p19119_p7 = pnand %p19118_p5, %p19112_p10 }
 0xc4d   : > { %v16219_v43 = vpop.f32.mrb[48].mxu1 }
 0xc4e   : > { %v16220_v6 = vpop.f32.mrb[49].mxu1 }
 0xc4f   : > { %v16221_v16 = vadd.f32 %v16220_v6, %v16219_v43  ;;  %v16222_v22 = vpop.f32.mrb[50].mxu1 }
 0xc50   : > { %v16223_v26 = vpop.f32.mrb[51].mxu1 }
 0xc51   : > { %v13554_v31 = vadd.f32 %v16221_v16, %v13514_v54 }
 0xc53   : > { %v13559_v19 = vadd.f32 %v13554_v31, %v13007_v33 }
 0xc6d   : > { %v16241_v50 = vpop.f32.mrb[52].mxu1 }
 0xc6e   : > { %v16242_v34 = vpop.f32.mrb[53].mxu1 }
 0xc6f   : > { %v16243_v30 = vadd.f32 %v16242_v34, %v16241_v50  ;;  %v16244_v51 = vpop.f32.mrb[54].mxu1 }
 0xc70   : > { %v16245_v3 = vpop.f32.mrb[55].mxu1 }
 0xc8d   : > { %v16263_v48 = vpop.f32.mrb[56].mxu1 }
 0xc8e   : > { %v16264_v45 = vpop.f32.mrb[57].mxu1 }
 0xc8f   : > { %v16265_v25 = vadd.f32 %v16264_v45, %v16263_v48  ;;  %v16266_v20 = vpop.f32.mrb[58].mxu1 }
 0xc90   : > { %v16267_v7 = vpop.f32.mrb[59].mxu1 }
 0xc91   : > { %v14074_v39 = vadd.f32 %v16265_v25, %v16243_v30 }
 0xcad   : > { %v16285_v5 = vpop.f32.mrb[60].mxu1 }
 0xcae   : > { %v16286_v36 = vpop.f32.mrb[61].mxu1 }
 0xcaf   : > { %v16287_v28 = vadd.f32 %v16286_v36, %v16285_v5  ;;  %v16288_v57 = vpop.f32.mrb[62].mxu1 }
 0xcb0   : > { %v16289_v8 = vpop.f32.mrb[63].mxu1 }
 0xcb1   : > { %v14114_v11 = vadd.f32 %v16287_v28, %v14074_v39 }
 0xcb3   : > { %v14119_v23 = vadd.f32 %v14114_v11, %v13559_v19 }
 0xcb5   : > { %v14127_v4 = vadd.f32 %v15993_v0, %v14119_v23 }
 0xcb7   : > { %14128 = vst [vmem:[%s531_s27] sm:$0x3] %v14127_v4  ;;  %15994 = vst [vmem:[%s531_s27 - $0x3] sm:$0x60] %v14127_v4 }
 0xcb8   : > { %19122 = shalt.err (!%p19119_p7)
}
 0xcb9   : > { %s19123_s27 = scalar_lea.hbm %s20555_s29, 64  ;;  %s19127_s26 = scalar_lea.hbm %s20752_s24, 128 }
 0xcba   : > { %p19124_p6 = scmp.ne.s32.totalorder %s20555_s29, %s19123_s27  ;;  %p19128_p1 = scmp.lt.u32.totalorder %s20555_s29, %s20752_s24 }
 0xcbb   : > { %p19129_p0 = scmp.lt.u32.totalorder %s19127_s26, %s19123_s27  ;;  %p19131_p8 = scmp.lt.u32.totalorder %s19123_s27, %s20555_s29 }
 0xcbc   : > { %p19125_p9 = pnand %p19124_p6, %p20751_p13 }
 0xcbd   : > { %p19130_p2 = por %p19129_p0, %p19128_p1 }
 0xcbe   : > { %p19126_p12 = pneg %p19125_p9 }
 0xcbf   : > { %p19132_p4 = por %p19131_p8, %p19130_p2 }
 0xcc1   : > { %p19133_p10 = pnand %p19132_p4, %p19126_p12 }
 0xcc3   : > { %19136 = shalt.err (!%p19133_p10)
}
 0xcc4   : > { %s19218_s11 = smov 32   ;;  %s19219_s28 = smov 2  }
 0xcc5   : > { %16467 = dma.vmem_to_hbm [thread:$0]  (%p20751_p13), %s20557_s22, 64, %s20555_s29, %s14143_s12, %s19218_s11, %s19218_s11, %s19219_s28  }
 0xcc6 PF: > { %s14192_s9 = sand.u32 1, %s19183_s17   ;;  %p20753_p11 = scmp.ne.s32.totalorder %s20637_s25, 0 }
 0xcc7   : > { %p20754_p3 = scmp.ge.s32.totalorder %s19195_s20, 2  ;;  %s14193_s27 = scalar_lea.sflag [#allocation8], %s14192_s9 }
 0xcc9   : > { %p16500_p5 = pnand %p20754_p3, %p20753_p11 }
 0xccb   : > { %19174 = dma.done.wait (!%p16500_p5), %s14193_s27, 512  }
 0xccc   : > { %19176 = vsyncadd (!%p16500_p5), %s14193_s27, 4294966784  ;;  %s14211_s14 = scalar_lea.sflag [#allocation23], %s14192_s9 }
 0xccd   : > { %19178 = dma.done.wait (!%p16500_p5), %s14211_s14, 64  }
 0xcce   : > { %19180 = vsyncadd (!%p16500_p5), %s14211_s14, 4294967232  ;;  %p32_p13 = scmp.ge.s32.totalorder %s19507_s16, 4   ;;  %s20755_s17 = smov %s19187_s18 }
 0xccf   : > { %s20756_s18 = smov %s19191_s19  ;;  %s20757_s19 = smov %s19518_s30 }
 0xcd0   : > { %s20758_s20 = smov %s19507_s16  ;;  %34 = sbr.rel (!%p32_p13) target bundleno = 15 (0xf), region = 174 }
 0xcd7   :  { %14216 = vsyncpa [#allocation7], 1 }
 0xcd8   :  { %14218 = vsyncpa [#allocation7 + $0x1], 1 }
 0xcd9   :  { %14219 = vsyncpa [#allocation10], 1 }
 0xcda   :  { %14220 = vsyncpa [#allocation13], 1 }
 0xcdb   :  { %14221 = vsyncpa [#allocation16], 1 }
 0xcdc   :  { %14222 = vsyncpa [#allocation19], 1 }
 0xcdd   :  { %14223 = vsyncpa [#allocation8], 1 }
 0xcde   :  { %14225 = vsyncpa [#allocation8 + $0x1], 1 }
 0xcdf   :  { %14226 = vsyncpa [#allocation23], 1 }
 0xce0   :  { %14228 = vsyncpa [#allocation23 + $0x1], 1 }

</bundles_post_ra>
